<compile_context>
chip_gen: v7x
topology: tpu7x:2x2x1
jax: 0.10.0
libtpu: 0.0.40
codegen_flags: <defaults>
</compile_context>

<pallas_src>
import functools

import jax
import jax.numpy as jnp
from jax.experimental import pallas as pl
from jax.experimental.pallas import tpu as pltpu


def _round_up(v: int, m: int) -> int:
    return (v + m - 1) // m * m


def _conv2d_block_kernel(x_ref, wf_ref, bf_ref, wt_ref, bt_ref, spike_ref, yt_ref, *,
                         oh, ow, pk, tn, cout, thresh):
    """Processes one batch tile of TN images.

    x_ref:     (1, OH*OW, TN, KKC)  bf16  im2col patches (lane = K*K*Cin)
    wf_ref:    (KKC, Cp)            bf16  BN-folded conv weight (lane = Cout padded to 128)
    bf_ref:    (1, Cp)              f32   BN-folded conv bias
    wt_ref:    (S, Cp, Lp)          bf16  t_fc weight, one (Cp, Lp) block per pooled position
    bt_ref:    (1, Lp)              f32   t_fc bias
    spike_ref: (OHp, OWp, TN, Cout) bf16  pooled f_lif spikes (output, real dims only)
    yt_ref:    (TN, Lp)             f32   t_lif spikes (output)
    """
    kkc, cp = wf_ref.shape
    ohp, owp = oh // pk, ow // pk
    m = oh * ow * tn

    # ---- Conv2d + folded BatchNorm: ONE im2col contraction on the MXU (f32 accumulate). ----
    lhs = x_ref[...].reshape(m, kkc)                 # trivial major-dim merge (TN % 16 == 0)
    h = jnp.dot(lhs, wf_ref[...], preferred_element_type=jnp.float32) + bf_ref[...]

    # ---- f_lif single step, v0=0: spike = heaviside(h/tau - v_th) == (h >= tau*v_th). ----
    # tau is folded into the threshold at trace time; 0/1 spikes are exact in bf16.
    spk = (h >= thresh).astype(jnp.bfloat16)

    # ---- MaxPool2d (pk x pk, stride pk): both pooled axes are major dims (sublane = TN,
    # lane = Cp), so each reshape is a free relabel and the max is a cheap cross-slab reduce.
    s = spk.reshape(oh, owp, pk, tn, cp).max(axis=2)             # pool along W
    pooled = s.reshape(ohp, pk, owp, tn, cp).max(axis=1)         # pool along H -> (OHp,OWp,TN,Cp)

    # Pooled-spike output: only the real Cout channels, bf16 (no 128-lane / f32 padding in HBM).
    spike_ref[...] = pooled[:, :, :, :cout]

    # ---- t_fc + t_lif: contract channels per pooled position (batched matmul over positions,
    # which stay on the major axis -> no relayout), sum over positions, bias, threshold. ----
    lhs_t = pooled.reshape(ohp * owp, tn, cp)
    z = jnp.einsum("snc,scl->snl", lhs_t, wt_ref[...],
                   preferred_element_type=jnp.float32)           # (S, TN, Lp)
    yt = z.sum(axis=0) + bt_ref[...]                             # (TN, Lp)
    yt_ref[...] = (yt >= thresh).astype(yt_ref.dtype)


def conv2d_block_forward(x, conv_w, conv_b, bn_gamma, bn_beta, bn_mean, bn_var, t_w, t_b, *,
                         conv_stride=1, conv_padding=1, pool_kernel=2, pool_stride=2,
                         pool_padding=0, tau=2.0, v_threshold=1.0, bn_eps=1e-5,
                         target=True, batch_tile=None):
    """x: (T, B, Cin, H, W); conv_w: (Cout, Cin, K, K); conv_b/bn_*: (Cout,);
       t_w: (label, Cout*OHp*OWp) torch-flatten order (c, h, w); t_b: (label,).
       Returns (pooled spikes (T, B, Cout, OHp, OWp) f32 0/1, y_t (T, B, label) f32 0/1 or None)."""
    T, B, Cin, H, W = x.shape
    Cout, Cin2, K, K2 = conv_w.shape
    assert Cin2 == Cin and K == K2
    assert conv_stride == 1, "TODO(synk): only conv_stride == 1 is implemented"
    assert pool_stride == pool_kernel and pool_padding == 0, \
        "TODO(synk): only pool_stride == pool_kernel, pool_padding == 0 is implemented"

    OH = (H + 2 * conv_padding - K) // conv_stride + 1
    OW = (W + 2 * conv_padding - K) // conv_stride + 1
    assert OH % pool_kernel == 0 and OW % pool_kernel == 0
    OHp, OWp = OH // pool_kernel, OW // pool_kernel
    L = t_w.shape[0]
    assert t_w.shape[1] == Cout * OHp * OWp

    N = T * B
    KKC = K * K * Cin
    OHOW = OH * OW
    S = OHp * OWp
    Cp = _round_up(Cout, 128)
    Lp = _round_up(L, 128)

    # ---- generation-aware VMEM sizing (v7x: 64 MiB physical, v5e/v6e: 128 MiB) ----
    try:
        vmem_cap = int(pltpu.get_tpu_info().vmem_capacity_bytes)
    except Exception:  # conservative fallback
        vmem_cap = 64 * 1024 * 1024
    vmem_limit = (vmem_cap * 3) // 4              # ~48 MiB on v7x, ~96 MiB on v5e/v6e

    # Per-image working set: only the x tile and the two outputs are double-buffered
    # (weights use constant index_maps -> single buffer); intermediates are single-copy.
    x_img = 2 * _round_up(OHOW, 16) * _round_up(KKC, 128) * 2          # bf16 x tile, x2 buffers
    h_img = OHOW * Cp * 4                                              # f32 conv result
    spk_img = OHOW * Cp * 2                                            # bf16 spikes
    pool_img = S * Cp * 2                                              # bf16 pooled spikes
    z_img = S * Lp * 4                                                 # f32 t_fc partials
    out_img = 2 * (S * _round_up(Cout, 128) * 2 + Lp * 4)              # out tiles, x2 buffers
    per_image = x_img + h_img + spk_img + pool_img + z_img + out_img
    weight_bytes = (_round_up(KKC, 16) * Cp * 2 + 8 * Cp * 4
                    + S * Cp * Lp * 2 + 8 * Lp * 4)

    if batch_tile is None:
        budget = max(int(vmem_limit * 0.6) - weight_bytes, 16 * per_image)
        tn_vmem = max(16, (budget // per_image) // 16 * 16)
        tn_grid = max(16, _round_up(pl.cdiv(N, 4), 16))   # keep >= ~4 grid steps (2 per TC, v7x)
        batch_tile = int(min(tn_vmem, tn_grid, _round_up(N, 16)))
    assert batch_tile % 16 == 0 and batch_tile >= 16
    TN = batch_tile
    Np = _round_up(N, TN)
    G = Np // TN

    # ---- wrapper-side layout plumbing (no compute hoisted out of the kernel) ----
    # Flatten time into batch, zero-pad to Np, im2col so the contraction dim is K*K*Cin and
    # the grid-sliced dim is OUTERMOST -> one contiguous HBM slab per grid step.
    xf = x.reshape(N, Cin, H, W).astype(jnp.float32)
    if Np != N:
        xf = jnp.pad(xf, ((0, Np - N), (0, 0), (0, 0), (0, 0)))
    x_nhwc = jnp.transpose(xf, (0, 2, 3, 1))
    x_nhwc = jnp.pad(x_nhwc, ((0, 0), (conv_padding,) * 2, (conv_padding,) * 2, (0, 0)))
    cols = [x_nhwc[:, i:i + OH, j:j + OW, :] for i in range(K) for j in range(K)]
    x_cols = jnp.concatenate(cols, axis=-1)                           # (Np, OH, OW, KKC)
    x_cols = x_cols.reshape(G, TN, OHOW, KKC).transpose(0, 2, 1, 3)   # (G, OH*OW, TN, KKC)
    x_cols = x_cols.astype(jnp.bfloat16)                              # bf16 MXU operand

    # Conv weight/bias with BatchNorm folded (inference stats); Cout zero-padded to Cp, bf16.
    scale = bn_gamma / jnp.sqrt(bn_var + bn_eps)
    wf = jnp.transpose(conv_w.astype(jnp.float32), (2, 3, 1, 0)) * scale   # (K, K, Cin, Cout)
    wf = jnp.pad(wf.reshape(KKC, Cout), ((0, 0), (0, Cp - Cout))).astype(jnp.bfloat16)
    bf = ((conv_b - bn_mean) * scale + bn_beta).astype(jnp.float32)
    bf = jnp.pad(bf, (0, Cp - Cout)).reshape(1, Cp)

    # t_fc weight: torch flatten order is (c, h, w); regroup to per-pooled-position blocks.
    wt = t_w.astype(jnp.float32).reshape(L, Cout, OHp, OWp).transpose(2, 3, 1, 0)
    wt = jnp.pad(wt, ((0, 0), (0, 0), (0, Cp - Cout), (0, Lp - L)))
    wt = wt.reshape(S, Cp, Lp).astype(jnp.bfloat16)                   # 0/1 spikes -> lossless
    bt = jnp.pad(t_b.astype(jnp.float32), (0, Lp - L)).reshape(1, Lp)

    kern = functools.partial(_conv2d_block_kernel, oh=int(OH), ow=int(OW),
                             pk=int(pool_kernel), tn=int(TN), cout=int(Cout),
                             thresh=float(tau) * float(v_threshold))

    flops = 2 * Np * OHOW * KKC * Cp + 2 * Np * S * Cp * Lp
    bytes_accessed = (x_cols.size * 2 + wf.size * 2 + bf.size * 4 + wt.size * 2 + bt.size * 4
                      + S * Np * Cout * 2 + Np * Lp * 4)

    pooled, y_t = pl.pallas_call(
        kern,
        grid=(G,),
        in_specs=[
            pl.BlockSpec((1, OHOW, TN, KKC), lambda n: (n, 0, 0, 0)),   # contiguous x slab / step
            pl.BlockSpec((KKC, Cp), lambda n: (0, 0)),                  # resident weights
            pl.BlockSpec((1, Cp), lambda n: (0, 0)),
            pl.BlockSpec((S, Cp, Lp), lambda n: (0, 0, 0)),             # resident weights
            pl.BlockSpec((1, Lp), lambda n: (0, 0)),
        ],
        out_specs=(
            pl.BlockSpec((OHp, OWp, TN, Cout), lambda n: (0, 0, n, 0)),
            pl.BlockSpec((TN, Lp), lambda n: (n, 0)),
        ),
        out_shape=(
            jax.ShapeDtypeStruct((OHp, OWp, Np, Cout), jnp.bfloat16),
            jax.ShapeDtypeStruct((Np, Lp), jnp.float32),
        ),
        compiler_params=pltpu.CompilerParams(
            dimension_semantics=("parallel",),          # v7x: both TensorCores split batch tiles
            vmem_limit_bytes=int(vmem_limit)),
        cost_estimate=pl.CostEstimate(flops=int(flops), transcendentals=0,
                                      bytes_accessed=int(bytes_accessed)),
    )(x_cols, wf, bf, wt, bt)

    # Strip batch padding, restore the PyTorch (T, B, C, H, W) layout, promote spikes to f32.
    pooled = pooled[:, :, :N, :]
    pooled = jnp.transpose(pooled, (2, 3, 0, 1)).astype(jnp.float32)
    pooled = pooled.reshape(T, B, Cout, OHp, OWp)
    if not target:
        return pooled, None
    y_t = y_t[:N, :L].reshape(T, B, L)
    return pooled, y_t


if __name__ == "__main__":
    T, B, Cin, H, W = 2, 8, 2, 16, 16
    Cout, K, label = 8, 3, 16
    conv_pad, pool_k = 1, 2
    tau = 2.0

    key = jax.random.PRNGKey(0)
    ks = jax.random.split(key, 9)

    # Scale inputs / t_fc weights so a reasonable fraction of neurons actually spike.
    x = 4.0 * jax.random.normal(ks[0], (T, B, Cin, H, W), jnp.float32)
    fan_in = Cin * K * K
    bound = 1.0 / (fan_in ** 0.5)
    conv_w = jax.random.uniform(ks[1], (Cout, Cin, K, K), jnp.float32, -bound, bound)
    conv_b = jax.random.uniform(ks[2], (Cout,), jnp.float32, -bound, bound)
    bn_gamma = jax.random.uniform(ks[3], (Cout,), jnp.float32, 0.8, 1.2)
    bn_beta = 0.1 * jax.random.normal(ks[4], (Cout,), jnp.float32)
    bn_mean = 0.1 * jax.random.normal(ks[5], (Cout,), jnp.float32)
    bn_var = jax.random.uniform(ks[6], (Cout,), jnp.float32, 0.5, 1.5)

    OH = (H + 2 * conv_pad - K) + 1
    OHp = OH // pool_k
    feat = Cout * OHp * OHp
    t_w = jax.random.uniform(ks[7], (label, feat), jnp.float32, -0.2, 0.2)
    t_b = jax.random.uniform(ks[8], (label,), jnp.float32, -0.2, 0.2)

    pooled, y_t = conv2d_block_forward(
        x, conv_w, conv_b, bn_gamma, bn_beta, bn_mean, bn_var, t_w, t_b,
        conv_stride=1, conv_padding=conv_pad,
        pool_kernel=pool_k, pool_stride=pool_k, pool_padding=0,
        tau=tau, target=True)
    jax.block_until_ready((pooled, y_t))

    # ---- pure-JAX reference (module semantics with BN folded; operands mirrored to bf16
    #      exactly as the kernel does, so only accumulation order can differ) ----
    N = T * B
    scale = bn_gamma / jnp.sqrt(bn_var + 1e-5)
    w_fold = (conv_w * scale[:, None, None, None]).astype(jnp.bfloat16).astype(jnp.float32)
    b_fold = (conv_b - bn_mean) * scale + bn_beta
    xq = x.reshape(N, Cin, H, W).astype(jnp.bfloat16).astype(jnp.float32)
    h = jax.lax.conv_general_dilated(
        xq, w_fold, window_strides=(1, 1),
        padding=((conv_pad, conv_pad), (conv_pad, conv_pad)),
        dimension_numbers=("NCHW", "OIHW", "NCHW"))
    h = h + b_fold[None, :, None, None]
    spk = (h / tau >= 1.0).astype(jnp.float32)
    pooled_ref_nchw = jax.lax.reduce_window(
        spk, -jnp.inf, jax.lax.max,
        (1, 1, pool_k, pool_k), (1, 1, pool_k, pool_k), "VALID")
    t_w_q = t_w.astype(jnp.bfloat16).astype(jnp.float32)
    flat = pooled_ref_nchw.reshape(N, feat)
    yt_pre = flat @ t_w_q.T + t_b
    yt_ref = (yt_pre / tau >= 1.0).astype(jnp.float32).reshape(T, B, label)
    pooled_ref = pooled_ref_nchw.reshape(T, B, Cout, OHp, OHp)

    # Spike outputs are exactly 0/1; with identical (bf16-quantized) operands only values
    # sitting exactly on the threshold can flip, so require a (near-)zero mismatch rate.
    spike_err = float(jnp.mean(jnp.abs(pooled - pooled_ref)))
    yt_err = float(jnp.mean(jnp.abs(y_t - yt_ref)))
    assert spike_err < 1e-3, f"pooled-spike mismatch rate {spike_err}"
    assert yt_err < 1e-2, f"y_t mismatch rate {yt_err}"

    print("KERNEL_OK")
</pallas_src>

<mosaic_0001>
module attributes {stable_mosaic.version = 11 : i64} {
  func.func @_conv2d_block_kernel(%arg0: i32, %arg1: memref<1x256x16x18xbf16, #tpu.memory_space<vmem>>, %arg2: memref<18x128xbf16, #tpu.memory_space<vmem>>, %arg3: memref<1x128xf32, #tpu.memory_space<vmem>>, %arg4: memref<64x128x128xbf16, #tpu.memory_space<vmem>>, %arg5: memref<1x128xf32, #tpu.memory_space<vmem>>, %arg6: memref<8x8x16x8xbf16, #tpu.memory_space<vmem>>, %arg7: memref<16x128xf32, #tpu.memory_space<vmem>>) attributes {dimension_semantics = [#tpu.dimension_semantics<parallel>], iteration_bounds = array<i64: 1>, scalar_prefetch = 0 : i64, scratch_operands = 0 : i64, tpu.core_type = #tpu.core_type<tc>, window_params = [{transform_indices = @transform_0, window_bounds = array<i64: 1, 256, 16, 18>}, {pipeline_mode = #tpu.pipeline_mode<synchronous>, transform_indices = @transform_1, window_bounds = array<i64: 18, 128>}, {pipeline_mode = #tpu.pipeline_mode<synchronous>, transform_indices = @transform_2, window_bounds = array<i64: 1, 128>}, {pipeline_mode = #tpu.pipeline_mode<synchronous>, transform_indices = @transform_3, window_bounds = array<i64: 64, 128, 128>}, {pipeline_mode = #tpu.pipeline_mode<synchronous>, transform_indices = @transform_4, window_bounds = array<i64: 1, 128>}, {transform_indices = @transform_5, window_bounds = array<i64: 8, 8, 16, 8>}, {transform_indices = @transform_6, window_bounds = array<i64: 16, 128>}]} {
    %c0 = arith.constant 0 : index
    %c0_0 = arith.constant 0 : index
    %c0_1 = arith.constant 0 : index
    %c0_2 = arith.constant 0 : index
    %0 = vector.load %arg1[%c0, %c0_0, %c0_1, %c0_2] : memref<1x256x16x18xbf16, #tpu.memory_space<vmem>>, vector<1x256x16x18xbf16>
    %1 = vector.shape_cast %0 : vector<1x256x16x18xbf16> to vector<4096x18xbf16>
    %c0_3 = arith.constant 0 : index
    %c0_4 = arith.constant 0 : index
    %2 = vector.load %arg2[%c0_3, %c0_4] : memref<18x128xbf16, #tpu.memory_space<vmem>>, vector<18x128xbf16>
    %cst = arith.constant dense<0.000000e+00> : vector<4096x128xf32>
    %3 = tpu.matmul %1, %2, %cst {dimension_numbers = #tpu.dot_dimension_numbers<[1], [0], [0], [1], [0, 0, 1, 1], [], []>} : vector<4096x18xbf16>, vector<18x128xbf16>, vector<4096x128xf32> -> vector<4096x128xf32>
    %c0_5 = arith.constant 0 : index
    %c0_6 = arith.constant 0 : index
    %4 = vector.load %arg3[%c0_5, %c0_6] : memref<1x128xf32, #tpu.memory_space<vmem>>, vector<1x128xf32>
    %5 = vector.broadcast %4 : vector<1x128xf32> to vector<4096x128xf32>
    %6 = arith.addf %3, %5 : vector<4096x128xf32>
    %cst_7 = arith.constant 2.000000e+00 : f32
    %7 = vector.broadcast %cst_7 : f32 to vector<4096x128xf32>
    %8 = arith.cmpf oge, %6, %7 : vector<4096x128xf32>
    %9 = arith.extui %8 : vector<4096x128xi1> to vector<4096x128xi32>
    %10 = arith.sitofp %9 : vector<4096x128xi32> to vector<4096x128xf32>
    %11 = arith.truncf %10 : vector<4096x128xf32> to vector<4096x128xbf16>
    %12 = vector.shape_cast %11 : vector<4096x128xbf16> to vector<16x8x2x16x128xbf16>
    %cst_8 = arith.constant dense<0xFF80> : vector<16x8x16x128xbf16>
    %13 = vector.multi_reduction <maximumf>, %12, %cst_8 [2] : vector<16x8x2x16x128xbf16> to vector<16x8x16x128xbf16>
    %14 = vector.shape_cast %13 : vector<16x8x16x128xbf16> to vector<8x2x8x16x128xbf16>
    %cst_9 = arith.constant dense<0xFF80> : vector<8x8x16x128xbf16>
    %15 = vector.multi_reduction <maximumf>, %14, %cst_9 [1] : vector<8x2x8x16x128xbf16> to vector<8x8x16x128xbf16>
    %16 = vector.extract_strided_slice %15 {offsets = [0, 0, 0, 0], sizes = [8, 8, 16, 8], strides = [1, 1, 1, 1]} : vector<8x8x16x128xbf16> to vector<8x8x16x8xbf16>
    %c0_10 = arith.constant 0 : index
    %c0_11 = arith.constant 0 : index
    %c0_12 = arith.constant 0 : index
    %c0_13 = arith.constant 0 : index
    %17 = vector.load %arg6[%c0_10, %c0_11, %c0_12, %c0_13] : memref<8x8x16x8xbf16, #tpu.memory_space<vmem>>, vector<8x8x16x8xbf16>
    tpu.vector_store %arg6[%c0_10, %c0_11, %c0_12, %c0_13], %16 {strides = array<i32>} : memref<8x8x16x8xbf16, #tpu.memory_space<vmem>>, vector<8x8x16x8xbf16>,
    %18 = vector.shape_cast %15 : vector<8x8x16x128xbf16> to vector<64x16x128xbf16>
    %c0_14 = arith.constant 0 : index
    %c0_15 = arith.constant 0 : index
    %c0_16 = arith.constant 0 : index
    %19 = vector.load %arg4[%c0_14, %c0_15, %c0_16] : memref<64x128x128xbf16, #tpu.memory_space<vmem>>, vector<64x128x128xbf16>
    "tpu.trace_start"() <{level = 10 : i32, message = "snc,scl->snl"}> : () -> ()
    %cst_17 = arith.constant dense<0.000000e+00> : vector<64x16x128xf32>
    %20 = tpu.matmul %18, %19, %cst_17 {dimension_numbers = #tpu.dot_dimension_numbers<[2], [1], [1], [2], [0, 0, 0, 1, 1, 2], [0], [0]>} : vector<64x16x128xbf16>, vector<64x128x128xbf16>, vector<64x16x128xf32> -> vector<64x16x128xf32>
    "tpu.trace_stop"() : () -> ()
    %cst_18 = arith.constant dense<0.000000e+00> : vector<16x128xf32>
    %21 = vector.multi_reduction <add>, %20, %cst_18 [0] : vector<64x16x128xf32> to vector<16x128xf32>
    %c0_19 = arith.constant 0 : index
    %c0_20 = arith.constant 0 : index
    %22 = vector.load %arg5[%c0_19, %c0_20] : memref<1x128xf32, #tpu.memory_space<vmem>>, vector<1x128xf32>
    %23 = vector.broadcast %22 : vector<1x128xf32> to vector<16x128xf32>
    %24 = arith.addf %21, %23 : vector<16x128xf32>
    %cst_21 = arith.constant 2.000000e+00 : f32
    %25 = vector.broadcast %cst_21 : f32 to vector<16x128xf32>
    %26 = arith.cmpf oge, %24, %25 : vector<16x128xf32>
    %27 = arith.extui %26 : vector<16x128xi1> to vector<16x128xi32>
    %28 = arith.sitofp %27 : vector<16x128xi32> to vector<16x128xf32>
    %c0_22 = arith.constant 0 : index
    %c0_23 = arith.constant 0 : index
    %29 = vector.load %arg7[%c0_22, %c0_23] : memref<16x128xf32, #tpu.memory_space<vmem>>, vector<16x128xf32>
    tpu.vector_store %arg7[%c0_22, %c0_23], %28 {strides = array<i32>} : memref<16x128xf32, #tpu.memory_space<vmem>>, vector<16x128xf32>,
    return
  }
  func.func @transform_0(%arg0: i32) -> (i32, i32, i32, i32) {
    %c0_i32 = arith.constant 0 : i32
    %c0_i32_0 = arith.constant 0 : i32
    %c0_i32_1 = arith.constant 0 : i32
    %c0_i32_2 = arith.constant 0 : i32
    return %arg0, %c0_i32, %c0_i32_0, %c0_i32_1 : i32, i32, i32, i32
  }
  func.func @transform_1(%arg0: i32) -> (i32, i32) {
    %c0_i32 = arith.constant 0 : i32
    %c0_i32_0 = arith.constant 0 : i32
    %c0_i32_1 = arith.constant 0 : i32
    return %c0_i32, %c0_i32_0 : i32, i32
  }
  func.func @transform_2(%arg0: i32) -> (i32, i32) {
    %c0_i32 = arith.constant 0 : i32
    %c0_i32_0 = arith.constant 0 : i32
    %c0_i32_1 = arith.constant 0 : i32
    return %c0_i32, %c0_i32_0 : i32, i32
  }
  func.func @transform_3(%arg0: i32) -> (i32, i32, i32) {
    %c0_i32 = arith.constant 0 : i32
    %c0_i32_0 = arith.constant 0 : i32
    %c0_i32_1 = arith.constant 0 : i32
    %c0_i32_2 = arith.constant 0 : i32
    return %c0_i32, %c0_i32_0, %c0_i32_1 : i32, i32, i32
  }
  func.func @transform_4(%arg0: i32) -> (i32, i32) {
    %c0_i32 = arith.constant 0 : i32
    %c0_i32_0 = arith.constant 0 : i32
    %c0_i32_1 = arith.constant 0 : i32
    return %c0_i32, %c0_i32_0 : i32, i32
  }
  func.func @transform_5(%arg0: i32) -> (i32, i32, i32, i32) {
    %c0_i32 = arith.constant 0 : i32
    %c0_i32_0 = arith.constant 0 : i32
    %c0_i32_1 = arith.constant 0 : i32
    %c0_i32_2 = arith.constant 0 : i32
    return %c0_i32, %c0_i32_0, %arg0, %c0_i32_1 : i32, i32, i32, i32
  }
  func.func @transform_6(%arg0: i32) -> (i32, i32) {
    %c0_i32 = arith.constant 0 : i32
    %c0_i32_0 = arith.constant 0 : i32
    return %arg0, %c0_i32 : i32, i32
  }
}

</mosaic_0001>

<bundles_post_ra>
// kernel: tpu_custom_call.1
= control target key start
LH: loop header
LB: loop body
LE: loop exit
PB: predicated region body
PF: predicated region fallthrough
CT: control target
= control target key end

     0   :  { %12 = vsyncpa [#allocation3], 0  ;;  %s23603_s0 = inlined_call_operand.vmem [shape: bf16[1,256,16,18], index: 0, kind: input, shape index: {}]   ;;  %s23604_s1 = inlined_call_operand.hbm [shape: bf16[18,128], index: 1, kind: input, shape index: {}]   ;;  %s23605_s2 = inlined_call_operand.hbm [shape: f32[1,128], index: 2, kind: input, shape index: {}]   ;;  %s23606_s3 = inlined_call_operand.hbm [shape: bf16[64,128,128], index: 3, kind: input, shape index: {}]   ;;  %s23607_s4 = inlined_call_operand.hbm [shape: f32[1,128], index: 4, kind: input, shape index: {}]   ;;  %s23608_s5 = inlined_call_operand.vmem [shape: bf16[8,8,16,8], index: 5, kind: output, shape index: {0}]   ;;  %s23609_s6 = inlined_call_operand.hbm [shape: f32[16,128], index: 6, kind: output, shape index: {1}]  }
   0x1   :  { %13 = vsyncpa [#allocation6], 0 }
   0x2   :  { %14 = vsyncpa [#allocation9], 0 }
   0x3   :  { %15 = vsyncpa [#allocation4], 0  ;;  %s19396_s21 = smov [#allocation5]   ;;  %s19397_s23 = smov [#allocation2]  }
   0x4   :  { %s36_s22 = sshll.u32 %s19396_s21, 4  ;;  %s23_s24 = sshll.u32 %s19397_s23, 4  ;;  %s37_s22 = int_to_ptr.vmem [resolvable:$true] %s36_s22  ;;  %s19442_s24 = int_to_ptr.vmem [resolvable:$true] %s23_s24 }
   0x5   :  { %s19278_s27 = scalar_lea.hbm %s23605_s2, 16 }
   0x6   :  { %p19279_p0 = scmp.ne.s32.totalorder %s23605_s2, %s19278_s27  ;;  %p19282_p1 = scmp.lt.u32.totalorder %s19278_s27, %s23605_s2 }
   0x8   :  { %p19284_p2 = pnand %p19282_p1, %p19279_p0 }
   0xa   :  { %19287 = shalt.err (!%p19284_p2)
}
   0xb   :  { %s19288_s8 = scalar_lea.vmem %s37_s22, 16  ;;  %s19292_s9 = scalar_lea.vmem %s37_s22, 32 }
   0xc   :  { %p19289_p3 = scmp.ne.s32.totalorder %s37_s22, %s19288_s8  ;;  %p19293_p4 = scmp.lt.s32.totalorder %s37_s22, %s37_s22 }
   0xd   :  { %p19294_p5 = scmp.lt.s32.totalorder %s19292_s9, %s19288_s8 }
   0xf   :  { %p19295_p6 = por %p19294_p5, %p19293_p4 }
  0x11   :  { %p19296_p7 = pnand %p19295_p6, %p19289_p3 }
  0x13   :  { %19299 = shalt.err (!%p19296_p7)
}
  0x14   :  { %39 = dma.hbm_to_vmem [thread:$0]  %s23605_s2, 16, %s37_s22, [#allocation6]  }
  0x15   :  { %s19300_s14 = scalar_lea.hbm %s23604_s1, 192 }
  0x16   :  { %p19301_p8 = scmp.ne.s32.totalorder %s23604_s1, %s19300_s14  ;;  %p19304_p9 = scmp.lt.u32.totalorder %s19300_s14, %s23604_s1 }
  0x18   :  { %p19306_p10 = pnand %p19304_p9, %p19301_p8 }
  0x1a   :  { %19309 = shalt.err (!%p19306_p10)
}
  0x1b   :  { %s19310_s19 = scalar_lea.vmem %s19442_s24, 192  ;;  %p19315_p12 = scmp.lt.s32.totalorder %s19442_s24, %s19442_s24 }
  0x1c   :  { %p19311_p11 = scmp.ne.s32.totalorder %s19442_s24, %s19310_s19  ;;  %p19316_p13 = scmp.lt.s32.totalorder %s19310_s19, %s19310_s19 }
  0x1e   :  { %p19317_p0 = por %p19316_p13, %p19315_p12 }
  0x20   :  { %p19318_p1 = pnand %p19317_p0, %p19311_p11 }
  0x22   :  { %19321 = shalt.err (!%p19318_p1)
}
  0x23   :  { %s19398_s2 = smov 64   ;;  %s19399_s20 = smov 4  }
  0x24   :  { %29 = dma.hbm_to_vmem [thread:$0]  %s23604_s1, 192, %s19442_s24, [#allocation3], %s19398_s2, %s19398_s2, %s19399_s20  }
  0x25   :  { %s19400_s23 = smov [#allocation7]   ;;  %s19401_s26 = smov [#allocation8]  }
  0x26   :  { %s45_s25 = sshll.u32 %s19400_s23, 4  ;;  %s58_s27 = sshll.u32 %s19401_s26, 4  ;;  %s46_s25 = int_to_ptr.vmem [resolvable:$true] %s45_s25  ;;  %s59_s27 = int_to_ptr.vmem [resolvable:$true] %s58_s27 }
  0x27   :  { %s19322_s30 = scalar_lea.hbm %s23606_s3, 65536 }
  0x28   :  { %p19323_p2 = scmp.ne.s32.totalorder %s23606_s3, %s19322_s30  ;;  %p19326_p3 = scmp.lt.u32.totalorder %s19322_s30, %s23606_s3 }
  0x2a   :  { %p19328_p4 = pnand %p19326_p3, %p19323_p2 }
  0x2c   :  { %19331 = shalt.err (!%p19328_p4)
}
  0x2d   :  { %s19332_s1 = scalar_lea.vmem %s46_s25, 65536  ;;  %p19337_p6 = scmp.lt.s32.totalorder %s46_s25, %s46_s25 }
  0x2e   :  { %p19333_p5 = scmp.ne.s32.totalorder %s46_s25, %s19332_s1  ;;  %p19338_p7 = scmp.lt.s32.totalorder %s19332_s1, %s19332_s1 }
  0x30   :  { %p19339_p8 = por %p19338_p7, %p19337_p6 }
  0x32   :  { %p19340_p9 = pnand %p19339_p8, %p19333_p5 }
  0x34   :  { %19343 = shalt.err (!%p19340_p9)
}
  0x35   :  { %51 = dma.hbm_to_vmem [thread:$0]  %s23606_s3, 65536, %s46_s25, [#allocation6], %s19398_s2, %s19398_s2, %s19399_s20  }
  0x36   :  { %s19344_s14 = scalar_lea.hbm %s23607_s4, 16 }
  0x37   :  { %p19345_p10 = scmp.ne.s32.totalorder %s23607_s4, %s19344_s14  ;;  %p19348_p11 = scmp.lt.u32.totalorder %s19344_s14, %s23607_s4 }
  0x39   :  { %p19350_p12 = pnand %p19348_p11, %p19345_p10 }
  0x3b   :  { %19353 = shalt.err (!%p19350_p12)
}
  0x3c   :  { %s19354_s19 = scalar_lea.vmem %s59_s27, 16  ;;  %s19358_s21 = scalar_lea.vmem %s59_s27, 32 }
  0x3d   :  { %p19355_p13 = scmp.ne.s32.totalorder %s59_s27, %s19354_s19  ;;  %p19359_p0 = scmp.lt.s32.totalorder %s59_s27, %s59_s27 }
  0x3e   :  { %p19360_p1 = scmp.lt.s32.totalorder %s19358_s21, %s19354_s19 }
  0x40   :  { %p19361_p2 = por %p19360_p1, %p19359_p0 }
  0x42   :  { %p19362_p3 = pnand %p19361_p2, %p19355_p13 }
  0x44   :  { %19365 = shalt.err (!%p19362_p3)
}
  0x45   :  { %61 = dma.hbm_to_vmem [thread:$0]  %s23607_s4, 16, %s59_s27, [#allocation9]  }
  0x46   :  { %19388 = dma.done.wait [#allocation3], 192  }
  0x47   :  { %19389 = vsyncadd [#allocation3], 4294967104 }
  0x48   :  { %19390 = dma.done.wait [#allocation6], 65552  }
  0x49   :  { %19391 = vsyncadd [#allocation6], 4294901744 }
  0x4a   :  { %19392 = dma.done.wait [#allocation9], 16  }
  0x4b   :  { %19393 = vsyncadd [#allocation9], 4294967280  ;;  %vm2655_vm0 = vcmask 1040384   ;;  %v18499_v0 = vld [vmem:[#allocation2] sm:$0xff]   ;;  %vm1886_vm1 = vcmask 146432   ;;  %v18502_v4 = vld [vmem:[%s23603_s0 + $0x8] sm:$0xff]  }
  0x4c   :  { %v18500_v1 = vld [vmem:[#allocation2 + $0x8] ss:$0 sps:$4 sm:$0x11]   ;;  %v18501_v2 = vld [vmem:[%s23603_s0] sm:$0xff]   ;;  %16691 = vmatprep.subr.bf16.mxu0 %v18499_v0  ;;  %v18503_v5 = vld [vmem:[%s23603_s0 + $0x10] sm:$0xff]   ;;  %v19402_v28 = vmov 0.0  }
  0x4d   :  { %16692 = vmatpush3.bf16.msra.mxu0 %v18499_v0  ;;  %16695 = vmatprep.mubr.msk.bf16.mxu0 %vm1886_vm1, %v18501_v2  ;;  %v2657_v3 = vsel %vm2655_vm0, %v18500_v1, 0  ;;  %v18504_v6 = vld [vmem:[%s23603_s0 + $0x18] sm:$0xff]   ;;  %v18505_v7 = vld [vmem:[%s23603_s0 + $0x20] sm:$0xff]   ;;  %v18506_v8 = vld [vmem:[%s23603_s0 + $0x28] sm:$0xff]   ;;  %vm19403_vm2 = vmmov 0  }
  0x4e   :  { %18487 = vmatprep.subr.msk.bf16.mxu0 %vm2655_vm0, %v18500_v1  ;;  %v18507_v9 = vld [vmem:[%s23603_s0 + $0x30] sm:$0xff]   ;;  %v18508_v10 = vld [vmem:[%s23603_s0 + $0x38] sm:$0xff]   ;;  %v18509_v11 = vld [vmem:[%s23603_s0 + $0x40] sm:$0xff]   ;;  %17207 = vmatprep.subr.bf16.mxu1 %v19402_v28 }
  0x4f   :  { %v18510_v12 = vld [vmem:[%s23603_s0 + $0x48] sm:$0xff]   ;;  %v18511_v13 = vld [vmem:[%s23603_s0 + $0x50] sm:$0xff]   ;;  %v18512_v14 = vld [vmem:[%s23603_s0 + $0x58] sm:$0xff]   ;;  %17223 = vmatprep.mubr.msk.bf16.mxu1 %vm19403_vm2, %v19402_v28 }
  0x50   :  { %v18513_v15 = vld [vmem:[%s23603_s0 + $0x60] sm:$0xff]   ;;  %v18514_v16 = vld [vmem:[%s23603_s0 + $0x68] sm:$0xff]   ;;  %v18515_v17 = vld [vmem:[%s23603_s0 + $0x70] sm:$0xff]  }
  0x51   :  { %16694 = vmatpush3.bf16.msra.mxu0 %v2657_v3  ;;  %v18516_v18 = vld [vmem:[%s23603_s0 + $0x78] sm:$0xff]   ;;  %v18517_v19 = vld [vmem:[%s23603_s0 + $0x80] sm:$0xff]   ;;  %v18518_v20 = vld [vmem:[%s23603_s0 + $0x88] sm:$0xff]  }
  0x52   :  { %v18519_v21 = vld [vmem:[%s23603_s0 + $0x90] sm:$0xff]   ;;  %v18520_v22 = vld [vmem:[%s23603_s0 + $0x98] sm:$0xff]   ;;  %v18521_v23 = vld [vmem:[%s23603_s0 + $0xa0] sm:$0xff]   ;;  %17847 = vmatprep.subr.bf16.mxu0 %v19402_v28 }
  0x53   :  { %v18522_v24 = vld [vmem:[%s23603_s0 + $0xa8] sm:$0xff]   ;;  %v18523_v25 = vld [vmem:[%s23603_s0 + $0xb0] sm:$0xff]   ;;  %v18524_v26 = vld [vmem:[%s23603_s0 + $0xb8] sm:$0xff]  }
  0x54   :  { %16696 = vmatmul.mubr.msk.bf16.vlgmr.msra.gmra.mrb[0].mxu0 %vm1886_vm1, %v18502_v4  ;;  %v18525_v27 = vld [vmem:[%s23603_s0 + $0xc0] sm:$0xff]   ;;  %v18526_v29 = vld [vmem:[%s23603_s0 + $0xc8] sm:$0xff]   ;;  %v18527_v30 = vld [vmem:[%s23603_s0 + $0xd0] sm:$0xff]  }
  0x55   :  { %16699 = vmatprep.mubr.msk.bf16.mxu0 %vm1886_vm1, %v18503_v5  ;;  %v18528_v31 = vld [vmem:[%s23603_s0 + $0xd8] sm:$0xff]   ;;  %v18529_v32 = vld [vmem:[%s23603_s0 + $0xe0] sm:$0xff]   ;;  %v18530_v33 = vld [vmem:[%s23603_s0 + $0xe8] sm:$0xff]  }
  0x56   :  { %v18531_v34 = vld [vmem:[%s23603_s0 + $0xf0] sm:$0xff]   ;;  %v18532_v35 = vld [vmem:[%s23603_s0 + $0xf8] sm:$0xff]   ;;  %v18533_v36 = vld [vmem:[%s23603_s0 + $0x100] sm:$0xff]  }
  0x57   :  { %v18534_v37 = vld [vmem:[%s23603_s0 + $0x108] sm:$0xff]   ;;  %v18535_v38 = vld [vmem:[%s23603_s0 + $0x110] sm:$0xff]   ;;  %v18536_v40 = vld [vmem:[%s23603_s0 + $0x118] sm:$0xff]  }
  0x58   :  { %v18567_v39 = vld [vmem:[#allocation7] sm:$0xff]   ;;  %v18568_v41 = vld [vmem:[#allocation7 + $0x8] sm:$0xff]   ;;  %v18537_v42 = vld [vmem:[%s23603_s0 + $0x120] sm:$0xff]  }
  0x59   :  { %17208 = vmatpush3.bf16.msra.mxu1 %v18567_v39  ;;  %v18571_v43 = vld [vmem:[#allocation7 + $0x10] sm:$0xff]   ;;  %v18538_v44 = vld [vmem:[%s23603_s0 + $0x128] sm:$0xff]   ;;  %v18539_v46 = vld [vmem:[%s23603_s0 + $0x130] sm:$0xff]  }
  0x5a   :  { %17209 = vmatprep.subr.bf16.mxu1 %v19402_v28  ;;  %v18572_v45 = vld [vmem:[#allocation7 + $0x18] sm:$0xff]   ;;  %v18575_v47 = vld [vmem:[#allocation7 + $0x20] sm:$0xff]   ;;  %v18540_v48 = vld [vmem:[%s23603_s0 + $0x138] sm:$0xff]  }
  0x5b   :  { %v18576_v49 = vld [vmem:[#allocation7 + $0x28] sm:$0xff]   ;;  %v18541_v50 = vld [vmem:[%s23603_s0 + $0x140] sm:$0xff]   ;;  %v18542_v52 = vld [vmem:[%s23603_s0 + $0x148] sm:$0xff]  }
  0x5c   :  { %16700 = vmatmul.mubr.msk.bf16.gmra.mrb[4].mxu0 %vm1886_vm1, %v18504_v6  ;;  %v18579_v51 = vld [vmem:[#allocation7 + $0x30] sm:$0xff]   ;;  %v18580_v53 = vld [vmem:[#allocation7 + $0x38] sm:$0xff]   ;;  %v18543_v54 = vld [vmem:[%s23603_s0 + $0x150] sm:$0xff]  }
  0x5d   :  { %16703 = vmatprep.mubr.msk.bf16.mxu0 %vm1886_vm1, %v18505_v7  ;;  %17210 = vmatpush3.bf16.msra.mxu1 %v18568_v41  ;;  %v18544_v55 = vld [vmem:[%s23603_s0 + $0x158] sm:$0xff]   ;;  %v18545_v56 = vld [vmem:[%s23603_s0 + $0x160] sm:$0xff]   ;;  %v18582_v57 = vld [vmem:[#allocation7 + $0x800] sm:$0xff]  }
  0x5e   :  { %17211 = vmatprep.subr.bf16.mxu1 %v19402_v28  ;;  %17848 = vmatpush3.bf16.msra.mxu0 %v18582_v57  ;;  %v18546_v58 = vld [vmem:[%s23603_s0 + $0x168] sm:$0xff]   ;;  %v18547_v59 = vld [vmem:[%s23603_s0 + $0x170] sm:$0xff]   ;;  %v18548_v60 = vld [vmem:[%s23603_s0 + $0x178] sm:$0xff]  }
  0x5f   :  { %17849 = vmatprep.subr.bf16.mxu0 %v19402_v28  ;;  %v18549_v61 = vld [vmem:[%s23603_s0 + $0x180] sm:$0xff]   ;;  %v18550_v62 = vld [vmem:[%s23603_s0 + $0x188] sm:$0xff]   ;;  %v18551_v63 = vld [vmem:[%s23603_s0 + $0x190] sm:$0xff]  }
  0x60   :  { %v18552_v0 = vld [vmem:[%s23603_s0 + $0x198] sm:$0xff]   ;;  %v18553_v1 = vld [vmem:[%s23603_s0 + $0x1a0] sm:$0xff]   ;;  %v18554_v2 = vld [vmem:[%s23603_s0 + $0x1a8] sm:$0xff]  }
  0x61   :  { %17212 = vmatpush3.bf16.msra.mxu1 %v18571_v43  ;;  %v18555_v3 = vld [vmem:[%s23603_s0 + $0x1b0] sm:$0xff]   ;;  %v19729_v4 = vld [vmem:[#allocation5] ss:$0 sm:$0xff] }
  0x62   :  { %17213 = vmatprep.subr.bf16.mxu1 %v19402_v28 }
  0x64   :  { %16704 = vmatmul.mubr.msk.bf16.gmra.mrb[8].mxu0 %vm1886_vm1, %v18506_v8  ;;  %v18556_v8 = vld [vmem:[%s23603_s0 + $0x1b8] sm:$0xff]  }
  0x65   :  { %16707 = vmatprep.mubr.msk.bf16.mxu0 %vm1886_vm1, %v18507_v9  ;;  %17214 = vmatpush3.bf16.msra.mxu1 %v18572_v45 }
  0x66   :  { %17215 = vmatprep.subr.bf16.mxu1 %v19402_v28 }
  0x69   :  { %17216 = vmatpush3.bf16.msra.mxu1 %v18575_v47 }
  0x6a   :  { %17217 = vmatprep.subr.bf16.mxu1 %v19402_v28 }
  0x6c   :  { %16708 = vmatmul.mubr.msk.bf16.gmra.mrb[12].mxu0 %vm1886_vm1, %v18508_v10 }
  0x6d   :  { %16711 = vmatprep.mubr.msk.bf16.mxu0 %vm1886_vm1, %v18509_v11  ;;  %17218 = vmatpush3.bf16.msra.mxu1 %v18576_v49  ;;  %v18557_v11 = vld [vmem:[%s23603_s0 + $0x1c0] sm:$0xff]  }
  0x6e   :  { %17219 = vmatprep.subr.bf16.mxu1 %v19402_v28 }
  0x71   :  { %17220 = vmatpush3.bf16.msra.mxu1 %v18579_v51 }
  0x72   :  { %17221 = vmatprep.subr.bf16.mxu1 %v19402_v28 }
  0x74   :  { %16712 = vmatmul.mubr.msk.bf16.gmra.mrb[16].mxu0 %vm1886_vm1, %v18510_v12 }
  0x75   :  { %16715 = vmatprep.mubr.msk.bf16.mxu0 %vm1886_vm1, %v18511_v13  ;;  %17222 = vmatpush3.bf16.msra.mxu1 %v18580_v53 }
  0x76   :  { %17227 = vmatprep.subr.bf16.mxu1 %v19402_v28 }
  0x7c   :  { %16716 = vmatmul.mubr.msk.bf16.gmra.mrb[20].mxu0 %vm1886_vm1, %v18512_v14 }
  0x7d   :  { %16719 = vmatprep.mubr.msk.bf16.mxu0 %vm1886_vm1, %v18513_v15 }
  0x84   :  { %16720 = vmatmul.mubr.msk.bf16.gmra.mrb[24].mxu0 %vm1886_vm1, %v18514_v16 }
  0x85   :  { %16723 = vmatprep.mubr.msk.bf16.mxu0 %vm1886_vm1, %v18515_v17 }
  0x8c   :  { %16724 = vmatmul.mubr.msk.bf16.gmra.mrb[28].mxu0 %vm1886_vm1, %v18516_v18 }
  0x8d   :  { %16727 = vmatprep.mubr.msk.bf16.mxu0 %vm1886_vm1, %v18517_v19 }
  0x94   :  { %16728 = vmatmul.mubr.msk.bf16.gmra.mrb[32].mxu0 %vm1886_vm1, %v18518_v20 }
  0x95   :  { %16731 = vmatprep.mubr.msk.bf16.mxu0 %vm1886_vm1, %v18519_v21 }
  0x9c   :  { %16732 = vmatmul.mubr.msk.bf16.gmra.mrb[36].mxu0 %vm1886_vm1, %v18520_v22 }
  0x9d   :  { %16735 = vmatprep.mubr.msk.bf16.mxu0 %vm1886_vm1, %v18521_v23 }
  0xa4   :  { %16736 = vmatmul.mubr.msk.bf16.gmra.mrb[40].mxu0 %vm1886_vm1, %v18522_v24  ;;  %v18558_v24 = vld [vmem:[%s23603_s0 + $0x1c8] sm:$0xff]  }
  0xa5   :  { %16739 = vmatprep.mubr.msk.bf16.mxu0 %vm1886_vm1, %v18523_v25 }
  0xac   :  { %16740 = vmatmul.mubr.msk.bf16.gmra.mrb[44].mxu0 %vm1886_vm1, %v18524_v26 }
  0xad   :  { %16743 = vmatprep.mubr.msk.bf16.mxu0 %vm1886_vm1, %v18525_v27  ;;  %v18559_v27 = vld [vmem:[%s23603_s0 + $0x1d0] sm:$0xff]  }
  0xb4   :  { %16744 = vmatmul.mubr.msk.bf16.gmra.mrb[48].mxu0 %vm1886_vm1, %v18526_v29 }
  0xb5   :  { %16747 = vmatprep.mubr.msk.bf16.mxu0 %vm1886_vm1, %v18527_v30 }
  0xbc   :  { %16748 = vmatmul.mubr.msk.bf16.gmra.mrb[52].mxu0 %vm1886_vm1, %v18528_v31 }
  0xbd   :  { %16751 = vmatprep.mubr.msk.bf16.mxu0 %vm1886_vm1, %v18529_v32 }
  0xc4   :  { %16752 = vmatmul.mubr.msk.bf16.gmra.mrb[56].mxu0 %vm1886_vm1, %v18530_v33 }
  0xc5   :  { %16755 = vmatprep.mubr.msk.bf16.mxu0 %vm1886_vm1, %v18531_v34 }
  0xcc   :  { %16756 = vmatmul.mubr.msk.bf16.gmra.mrb[60].mxu0 %vm1886_vm1, %v18532_v35 }
  0xcd   :  { %16759 = vmatprep.mubr.msk.bf16.mxu0 %vm1886_vm1, %v18533_v36 }
  0xd4   :  { %16760 = vmatmul.mubr.msk.bf16.gmra.mrb[64].mxu0 %vm1886_vm1, %v18534_v37 }
  0xd5   :  { %16763 = vmatprep.mubr.msk.bf16.mxu0 %vm1886_vm1, %v18535_v38 }
  0xdc   :  { %16764 = vmatmul.mubr.msk.bf16.gmra.mrb[68].mxu0 %vm1886_vm1, %v18536_v40 }
  0xdd   :  { %16767 = vmatprep.mubr.msk.bf16.mxu0 %vm1886_vm1, %v18537_v42  ;;  %v18560_v42 = vld [vmem:[%s23603_s0 + $0x1d8] sm:$0xff]  }
  0xe4   :  { %16768 = vmatmul.mubr.msk.bf16.gmra.mrb[72].mxu0 %vm1886_vm1, %v18538_v44 }
  0xe5   :  { %16771 = vmatprep.mubr.msk.bf16.mxu0 %vm1886_vm1, %v18539_v46  ;;  %v18561_v46 = vld [vmem:[%s23603_s0 + $0x1e0] sm:$0xff]  }
  0xec   :  { %16772 = vmatmul.mubr.msk.bf16.gmra.mrb[76].mxu0 %vm1886_vm1, %v18540_v48 }
  0xed   :  { %16775 = vmatprep.mubr.msk.bf16.mxu0 %vm1886_vm1, %v18541_v50 }
  0xf4   :  { %16776 = vmatmul.mubr.msk.bf16.gmra.mrb[80].mxu0 %vm1886_vm1, %v18542_v52 }
  0xf5   :  { %16779 = vmatprep.mubr.msk.bf16.mxu0 %vm1886_vm1, %v18543_v54 }
  0xfc   :  { %16780 = vmatmul.mubr.msk.bf16.gmra.mrb[84].mxu0 %vm1886_vm1, %v18544_v55 }
  0xfd   :  { %16783 = vmatprep.mubr.msk.bf16.mxu0 %vm1886_vm1, %v18545_v56 }
 0x104   :  { %16784 = vmatmul.mubr.msk.bf16.gmra.mrb[88].mxu0 %vm1886_vm1, %v18546_v58 }
 0x105   :  { %16787 = vmatprep.mubr.msk.bf16.mxu0 %vm1886_vm1, %v18547_v59  ;;  %v18562_v59 = vld [vmem:[%s23603_s0 + $0x1e8] sm:$0xff]  }
 0x10c   :  { %16788 = vmatmul.mubr.msk.bf16.gmra.mrb[92].mxu0 %vm1886_vm1, %v18548_v60 }
 0x10d   :  { %16791 = vmatprep.mubr.msk.bf16.mxu0 %vm1886_vm1, %v18549_v61 }
 0x114   :  { %16792 = vmatmul.mubr.msk.bf16.gmra.mrb[96].mxu0 %vm1886_vm1, %v18550_v62 }
 0x115   :  { %16795 = vmatprep.mubr.msk.bf16.mxu0 %vm1886_vm1, %v18551_v63  ;;  %v18563_v63 = vld [vmem:[%s23603_s0 + $0x1f0] sm:$0xff]  }
 0x11c   :  { %16796 = vmatmul.mubr.msk.bf16.gmra.mrb[100].mxu0 %vm1886_vm1, %v18552_v0 }
 0x11d   :  { %16799 = vmatprep.mubr.msk.bf16.mxu0 %vm1886_vm1, %v18553_v1 }
 0x124   :  { %16800 = vmatmul.mubr.msk.bf16.gmra.mrb[104].mxu0 %vm1886_vm1, %v18554_v2 }
 0x125   :  { %16803 = vmatprep.mubr.msk.bf16.mxu0 %vm1886_vm1, %v18555_v3 }
 0x127   :  { %v16697_v5 = vpop.f32.mrb[0].mxu0 }
 0x128   :  { %v2702_v6 = vadd.f32 %v16697_v5, %v19729_v4  ;;  %v2693_v7 = vpop.f32.mrb[1].mxu0 }
 0x129   :  { %v2694_v9 = vadd.f32 %v19729_v4, %v2693_v7  ;;  %v16698_v10 = vpop.f32.mrb[2].mxu0 }
 0x12a   :  { %vm4742_vm3 = vcmp.ge.f32.partialorder %v2702_v6, 2.0  ;;  %v2705_v12 = vadd.f32 %v16698_v10, %v19729_v4  ;;  %v2696_v13 = vpop.f32.mrb[3].mxu0 }
 0x12b   :  { %vm4740_vm4 = vcmp.ge.f32.partialorder %v2694_v9, 2.0  ;;  %v2697_v14 = vadd.f32 %v19729_v4, %v2696_v13  ;;  %v14704_v15 = vsel %vm4742_vm3, 1.0, %v19402_v28  ;;  %v18564_v13 = vld [vmem:[%s23603_s0 + $0x1f8] sm:$0xff]  }
 0x12c   :  { %vm4743_vm5 = vcmp.ge.f32.partialorder %v2705_v12, 2.0  ;;  %16804 = vmatmul.mubr.msk.bf16.gmra.mrb[108].mxu0 %vm1886_vm1, %v18556_v8  ;;  %v14702_v17 = vsel %vm4740_vm4, 1.0, %v19402_v28 }
 0x12d   :  { %v14705_v16 = vsel %vm4743_vm5, 1.0, %v19402_v28  ;;  %vm4741_vm6 = vcmp.ge.f32.partialorder %v2697_v14, 2.0  ;;  %16807 = vmatprep.mubr.msk.bf16.mxu0 %vm1886_vm1, %v18557_v11 }
 0x12e   :  { %v6277_v18 = vpack.c.bf16 %v14705_v16, %v14704_v15  ;;  %v14703_v19 = vsel %vm4741_vm6, 1.0, %v19402_v28 }
 0x12f   :  { %v6276_v20 = vpack.c.bf16 %v14703_v19, %v14702_v17  ;;  %v16701_v21 = vpop.f32.mrb[4].mxu0  ;;  %v18565_v17 = vld [vmem:[%s23603_s0 + $0x200] sm:$0xff]  }
 0x130   :  { %v2718_v22 = vadd.f32 %v16701_v21, %v19729_v4  ;;  %v2709_v23 = vpop.f32.mrb[5].mxu0 }
 0x131   :  { %v2710_v25 = vadd.f32 %v19729_v4, %v2709_v23  ;;  %v16702_v26 = vpop.f32.mrb[6].mxu0  ;;  %v19756_v29 = vmax.bf16 %v6277_v18, %v6276_v20 }
 0x132   :  { %vm4746_vm7 = vcmp.ge.f32.partialorder %v2718_v22, 2.0  ;;  %v2721_v30 = vadd.f32 %v16702_v26, %v19729_v4  ;;  %v2712_v31 = vpop.f32.mrb[7].mxu0 }
 0x133   :  { %vm4744_vm8 = vcmp.ge.f32.partialorder %v2710_v25, 2.0  ;;  %v2713_v32 = vadd.f32 %v19729_v4, %v2712_v31  ;;  %v14708_v33 = vsel %vm4746_vm7, 1.0, %v19402_v28 }
 0x134   :  { %vm4747_vm9 = vcmp.ge.f32.partialorder %v2721_v30, 2.0  ;;  %16808 = vmatmul.mubr.msk.bf16.gmra.mrb[112].mxu0 %vm1886_vm1, %v18558_v24  ;;  %v14706_v35 = vsel %vm4744_vm8, 1.0, %v19402_v28 }
 0x135   :  { %v14709_v34 = vsel %vm4747_vm9, 1.0, %v19402_v28  ;;  %vm4745_vm10 = vcmp.ge.f32.partialorder %v2713_v32, 2.0  ;;  %16811 = vmatprep.mubr.msk.bf16.mxu0 %vm1886_vm1, %v18559_v27  ;;  %v18566_v32 = vld [vmem:[%s23603_s0 + $0x208] sm:$0xff]  }
 0x136   :  { %v6279_v36 = vpack.c.bf16 %v14709_v34, %v14708_v33  ;;  %v14707_v37 = vsel %vm4745_vm10, 1.0, %v19402_v28 }
 0x137   :  { %v6278_v38 = vpack.c.bf16 %v14707_v37, %v14706_v35  ;;  %v16705_v39 = vpop.f32.mrb[8].mxu0 }
 0x138   :  { %v2734_v40 = vadd.f32 %v16705_v39, %v19729_v4  ;;  %v2725_v41 = vpop.f32.mrb[9].mxu0 }
 0x139   :  { %v19770_v43 = vmax.bf16 %v6279_v36, %v6278_v38  ;;  %v2726_v44 = vadd.f32 %v19729_v4, %v2725_v41  ;;  %v16706_v45 = vpop.f32.mrb[10].mxu0  ;;  %v18569_v36 = vld [vmem:[%s23603_s0 + $0x210] sm:$0xff]  }
 0x13a   :  { %vm4750_vm11 = vcmp.ge.f32.partialorder %v2734_v40, 2.0  ;;  %v2737_v47 = vadd.f32 %v16706_v45, %v19729_v4  ;;  %v2728_v48 = vpop.f32.mrb[11].mxu0 }
 0x13b   :  { %vm4748_vm12 = vcmp.ge.f32.partialorder %v2726_v44, 2.0  ;;  %v2729_v49 = vadd.f32 %v19729_v4, %v2728_v48  ;;  %v14712_v50 = vsel %vm4750_vm11, 1.0, %v19402_v28 }
 0x13c   :  { %vm4751_vm13 = vcmp.ge.f32.partialorder %v2737_v47, 2.0  ;;  %16812 = vmatmul.mubr.msk.bf16.gmra.mrb[116].mxu0 %vm1886_vm1, %v18560_v42  ;;  %v14710_v52 = vsel %vm4748_vm12, 1.0, %v19402_v28 }
 0x13d   :  { %v14713_v51 = vsel %vm4751_vm13, 1.0, %v19402_v28  ;;  %vm4749_vm14 = vcmp.ge.f32.partialorder %v2729_v49, 2.0  ;;  %16815 = vmatprep.mubr.msk.bf16.mxu0 %vm1886_vm1, %v18561_v46 }
 0x13e   :  { %v6281_v53 = vpack.c.bf16 %v14713_v51, %v14712_v50  ;;  %v14711_v54 = vsel %vm4749_vm14, 1.0, %v19402_v28  ;;  %v18570_v50 = vld [vmem:[%s23603_s0 + $0x218] sm:$0xff]  }
 0x13f   :  { %v6280_v55 = vpack.c.bf16 %v14711_v54, %v14710_v52  ;;  %v16709_v56 = vpop.f32.mrb[12].mxu0  ;;  %v18573_v54 = vld [vmem:[%s23603_s0 + $0x220] sm:$0xff]  }
 0x140   :  { %v2750_v57 = vadd.f32 %v16709_v56, %v19729_v4  ;;  %v2741_v58 = vpop.f32.mrb[13].mxu0 }
 0x141   :  { %v19788_v60 = vmax.bf16 %v6281_v53, %v6280_v55  ;;  %v2742_v61 = vadd.f32 %v19729_v4, %v2741_v58  ;;  %v16710_v62 = vpop.f32.mrb[14].mxu0 }
 0x142   :  { %vm4754_vm15 = vcmp.ge.f32.partialorder %v2750_v57, 2.0  ;;  %v2753_v0 = vadd.f32 %v16710_v62, %v19729_v4  ;;  %v2744_v1 = vpop.f32.mrb[15].mxu0 }
 0x143   :  { %vm4752_vm0 = vcmp.ge.f32.partialorder %v2742_v61, 2.0  ;;  %v2745_v2 = vadd.f32 %v19729_v4, %v2744_v1  ;;  %v14716_v3 = vsel %vm4754_vm15, 1.0, %v19402_v28 }
 0x144   :  { %vm4755_vm3 = vcmp.ge.f32.partialorder %v2753_v0, 2.0  ;;  %16816 = vmatmul.mubr.msk.bf16.gmra.mrb[120].mxu0 %vm1886_vm1, %v18562_v59  ;;  %v14714_v6 = vsel %vm4752_vm0, 1.0, %v19402_v28 }
 0x145   :  { %v14717_v5 = vsel %vm4755_vm3, 1.0, %v19402_v28  ;;  %vm4753_vm4 = vcmp.ge.f32.partialorder %v2745_v2, 2.0  ;;  %16819 = vmatprep.mubr.msk.bf16.mxu0 %vm1886_vm1, %v18563_v63 }
 0x146   :  { %v6283_v7 = vpack.c.bf16 %v14717_v5, %v14716_v3  ;;  %v14715_v8 = vsel %vm4753_vm4, 1.0, %v19402_v28  ;;  %v18574_v5 = vld [vmem:[%s23603_s0 + $0x228] sm:$0xff]  }
 0x147   :  { %v6282_v9 = vpack.c.bf16 %v14715_v8, %v14714_v6  ;;  %v16713_v10 = vpop.f32.mrb[16].mxu0 }
 0x148   :  { %v2766_v11 = vadd.f32 %v16713_v10, %v19729_v4  ;;  %v2757_v12 = vpop.f32.mrb[17].mxu0 }
 0x149   :  { %v19806_v14 = vmax.bf16 %v6283_v7, %v6282_v9  ;;  %v2758_v15 = vadd.f32 %v19729_v4, %v2757_v12  ;;  %v16714_v16 = vpop.f32.mrb[18].mxu0  ;;  %v18577_v9 = vld [vmem:[%s23603_s0 + $0x230] sm:$0xff]  }
 0x14a   :  { %vm4758_vm5 = vcmp.ge.f32.partialorder %v2766_v11, 2.0  ;;  %v2769_v18 = vadd.f32 %v16714_v16, %v19729_v4  ;;  %v2760_v19 = vpop.f32.mrb[19].mxu0 }
 0x14b   :  { %vm4756_vm6 = vcmp.ge.f32.partialorder %v2758_v15, 2.0  ;;  %v2761_v20 = vadd.f32 %v19729_v4, %v2760_v19  ;;  %v14720_v21 = vsel %vm4758_vm5, 1.0, %v19402_v28 }
 0x14c   :  { %vm4759_vm7 = vcmp.ge.f32.partialorder %v2769_v18, 2.0  ;;  %16820 = vmatmul.mubr.msk.bf16.gmra.mrb[124].mxu0 %vm1886_vm1, %v18564_v13  ;;  %v14718_v23 = vsel %vm4756_vm6, 1.0, %v19402_v28 }
 0x14d   :  { %v14721_v22 = vsel %vm4759_vm7, 1.0, %v19402_v28  ;;  %vm4757_vm8 = vcmp.ge.f32.partialorder %v2761_v20, 2.0  ;;  %16823 = vmatprep.mubr.msk.bf16.mxu0 %vm1886_vm1, %v18565_v17 }
 0x14e   :  { %v6285_v24 = vpack.c.bf16 %v14721_v22, %v14720_v21  ;;  %v14719_v25 = vsel %vm4757_vm8, 1.0, %v19402_v28 }
 0x14f   :  { %v6284_v26 = vpack.c.bf16 %v14719_v25, %v14718_v23  ;;  %v16717_v27 = vpop.f32.mrb[20].mxu0  ;;  %v18578_v23 = vld [vmem:[%s23603_s0 + $0x238] sm:$0xff]  }
 0x150   :  { %v2782_v30 = vadd.f32 %v16717_v27, %v19729_v4  ;;  %v2773_v31 = vpop.f32.mrb[21].mxu0  ;;  %v18581_v27 = vld [vmem:[%s23603_s0 + $0x240] sm:$0xff]  }
 0x151   :  { %v19824_v33 = vmax.bf16 %v6285_v24, %v6284_v26  ;;  %v2774_v34 = vadd.f32 %v19729_v4, %v2773_v31  ;;  %v16718_v35 = vpop.f32.mrb[22].mxu0 }
 0x152   :  { %vm4762_vm9 = vcmp.ge.f32.partialorder %v2782_v30, 2.0  ;;  %v2785_v37 = vadd.f32 %v16718_v35, %v19729_v4  ;;  %v2776_v38 = vpop.f32.mrb[23].mxu0 }
 0x153   :  { %vm4760_vm10 = vcmp.ge.f32.partialorder %v2774_v34, 2.0  ;;  %v2777_v39 = vadd.f32 %v19729_v4, %v2776_v38  ;;  %v14724_v40 = vsel %vm4762_vm9, 1.0, %v19402_v28 }
 0x154   :  { %vm4763_vm11 = vcmp.ge.f32.partialorder %v2785_v37, 2.0  ;;  %16824 = vmatmul.mubr.msk.bf16.gmra.mrb[128].mxu0 %vm1886_vm1, %v18566_v32  ;;  %v14722_v42 = vsel %vm4760_vm10, 1.0, %v19402_v28 }
 0x155   :  { %v14725_v41 = vsel %vm4763_vm11, 1.0, %v19402_v28  ;;  %vm4761_vm12 = vcmp.ge.f32.partialorder %v2777_v39, 2.0  ;;  %16827 = vmatprep.mubr.msk.bf16.mxu0 %vm1886_vm1, %v18569_v36 }
 0x156   :  { %v6287_v44 = vpack.c.bf16 %v14725_v41, %v14724_v40  ;;  %v14723_v45 = vsel %vm4761_vm12, 1.0, %v19402_v28 }
 0x157   :  { %v6286_v46 = vpack.c.bf16 %v14723_v45, %v14722_v42  ;;  %v16721_v47 = vpop.f32.mrb[24].mxu0 }
 0x158   :  { %v2798_v48 = vadd.f32 %v16721_v47, %v19729_v4  ;;  %v2789_v49 = vpop.f32.mrb[25].mxu0 }
 0x159   :  { %v19842_v51 = vmax.bf16 %v6287_v44, %v6286_v46  ;;  %v2790_v52 = vadd.f32 %v19729_v4, %v2789_v49  ;;  %v16722_v53 = vpop.f32.mrb[26].mxu0  ;;  %v18583_v44 = vld [vmem:[%s23603_s0 + $0x248] sm:$0xff]  }
 0x15a   :  { %vm4766_vm13 = vcmp.ge.f32.partialorder %v2798_v48, 2.0  ;;  %v2801_v55 = vadd.f32 %v16722_v53, %v19729_v4  ;;  %v2792_v56 = vpop.f32.mrb[27].mxu0  ;;  %v18586_v48 = vld [vmem:[%s23603_s0 + $0x250] sm:$0xff]  }
 0x15b   :  { %vm4764_vm14 = vcmp.ge.f32.partialorder %v2790_v52, 2.0  ;;  %v2793_v57 = vadd.f32 %v19729_v4, %v2792_v56  ;;  %v14728_v58 = vsel %vm4766_vm13, 1.0, %v19402_v28  ;;  %v18584_v52 = vld [vmem:[#allocation7 + $0x40] sm:$0xff]   ;;  %v18647_v53 = vld [vmem:[#allocation7 + $0x808] sm:$0xff]  }
 0x15c   :  { %vm4767_vm15 = vcmp.ge.f32.partialorder %v2801_v55, 2.0  ;;  %16828 = vmatmul.mubr.msk.bf16.gmra.mrb[132].mxu0 %vm1886_vm1, %v18570_v50  ;;  %v14726_v61 = vsel %vm4764_vm14, 1.0, %v19402_v28  ;;  %vm7172_vm14 = vcmask 60416  }
 0x15d   :  { %v14729_v59 = vsel %vm4767_vm15, 1.0, %v19402_v28  ;;  %vm4765_vm0 = vcmp.ge.f32.partialorder %v2793_v57, 2.0  ;;  %16831 = vmatprep.mubr.msk.bf16.mxu0 %vm1886_vm1, %v18573_v54  ;;  %17850 = vmatpush3.bf16.msra.mxu0 %v18647_v53 }
 0x15e   :  { %v6289_v62 = vpack.c.bf16 %v14729_v59, %v14728_v58  ;;  %v14727_v63 = vsel %vm4765_vm0, 1.0, %v19402_v28  ;;  %17851 = vmatprep.subr.bf16.mxu0 %v19402_v28 }
 0x15f   :  { %v6288_v0 = vpack.c.bf16 %v14727_v63, %v14726_v61  ;;  %v16725_v1 = vpop.f32.mrb[28].mxu0 }
 0x160   :  { %v2814_v2 = vadd.f32 %v16725_v1, %v19729_v4  ;;  %v2805_v3 = vpop.f32.mrb[29].mxu0 }
 0x161   :  { %v19860_v6 = vmax.bf16 %v6289_v62, %v6288_v0  ;;  %v2806_v7 = vadd.f32 %v19729_v4, %v2805_v3  ;;  %v16726_v8 = vpop.f32.mrb[30].mxu0  ;;  %v18585_v0 = vld [vmem:[#allocation7 + $0x48] sm:$0xff]  }
 0x162   :  { %vm4770_vm3 = vcmp.ge.f32.partialorder %v2814_v2, 2.0  ;;  %v2817_v10 = vadd.f32 %v16726_v8, %v19729_v4  ;;  %v2808_v11 = vpop.f32.mrb[31].mxu0 }
 0x163   :  { %vm4768_vm4 = vcmp.ge.f32.partialorder %v2806_v7, 2.0  ;;  %v2809_v12 = vadd.f32 %v19729_v4, %v2808_v11  ;;  %v14732_v13 = vsel %vm4770_vm3, 1.0, %v19402_v28 }
 0x164   :  { %vm4771_vm5 = vcmp.ge.f32.partialorder %v2817_v10, 2.0  ;;  %16832 = vmatmul.mubr.msk.bf16.gmra.mrb[136].mxu0 %vm1886_vm1, %v18574_v5  ;;  %v14730_v16 = vsel %vm4768_vm4, 1.0, %v19402_v28  ;;  %v18587_v5 = vld [vmem:[%s23603_s0 + $0x258] sm:$0xff]   ;;  %v18590_v10 = vld [vmem:[%s23603_s0 + $0x260] sm:$0xff]  }
 0x165   :  { %v14733_v15 = vsel %vm4771_vm5, 1.0, %v19402_v28  ;;  %vm4769_vm6 = vcmp.ge.f32.partialorder %v2809_v12, 2.0  ;;  %16835 = vmatprep.mubr.msk.bf16.mxu0 %vm1886_vm1, %v18577_v9 }
 0x166   :  { %v6291_v17 = vpack.c.bf16 %v14733_v15, %v14732_v13  ;;  %v14731_v18 = vsel %vm4769_vm6, 1.0, %v19402_v28  ;;  %v18588_v13 = vld [vmem:[#allocation7 + $0x50] sm:$0xff]  }
 0x167   :  { %v6290_v19 = vpack.c.bf16 %v14731_v18, %v14730_v16  ;;  %v16729_v20 = vpop.f32.mrb[32].mxu0 }
 0x168   :  { %v2830_v21 = vadd.f32 %v16729_v20, %v19729_v4  ;;  %v2821_v22 = vpop.f32.mrb[33].mxu0 }
 0x169   :  { %v19878_v24 = vmax.bf16 %v6291_v17, %v6290_v19  ;;  %v2822_v25 = vadd.f32 %v19729_v4, %v2821_v22  ;;  %v16730_v26 = vpop.f32.mrb[34].mxu0 }
 0x16a   :  { %vm4774_vm7 = vcmp.ge.f32.partialorder %v2830_v21, 2.0  ;;  %v2833_v30 = vadd.f32 %v16730_v26, %v19729_v4  ;;  %v2824_v31 = vpop.f32.mrb[35].mxu0 }
 0x16b   :  { %vm4772_vm8 = vcmp.ge.f32.partialorder %v2822_v25, 2.0  ;;  %v2825_v32 = vadd.f32 %v19729_v4, %v2824_v31  ;;  %v14736_v34 = vsel %vm4774_vm7, 1.0, %v19402_v28  ;;  %v18591_v31 = vld [vmem:[%s23603_s0 + $0x268] sm:$0xff]  }
 0x16c   :  { %vm4775_vm9 = vcmp.ge.f32.partialorder %v2833_v30, 2.0  ;;  %16836 = vmatmul.mubr.msk.bf16.gmra.mrb[140].mxu0 %vm1886_vm1, %v18578_v23  ;;  %v14734_v36 = vsel %vm4772_vm8, 1.0, %v19402_v28  ;;  %v18589_v23 = vld [vmem:[#allocation7 + $0x58] sm:$0xff]  }
 0x16d   :  { %v14737_v35 = vsel %vm4775_vm9, 1.0, %v19402_v28  ;;  %vm4773_vm10 = vcmp.ge.f32.partialorder %v2825_v32, 2.0  ;;  %16839 = vmatprep.mubr.msk.bf16.mxu0 %vm1886_vm1, %v18581_v27 }
 0x16e   :  { %v6293_v37 = vpack.c.bf16 %v14737_v35, %v14736_v34  ;;  %v14735_v38 = vsel %vm4773_vm10, 1.0, %v19402_v28 }
 0x16f   :  { %v6292_v39 = vpack.c.bf16 %v14735_v38, %v14734_v36  ;;  %v16733_v40 = vpop.f32.mrb[36].mxu0  ;;  %v18594_v36 = vld [vmem:[%s23603_s0 + $0x270] sm:$0xff]  }
 0x170   :  { %v2846_v41 = vadd.f32 %v16733_v40, %v19729_v4  ;;  %v2837_v42 = vpop.f32.mrb[37].mxu0 }
 0x171   :  { %v2838_v45 = vadd.f32 %v19729_v4, %v2837_v42  ;;  %v16734_v46 = vpop.f32.mrb[38].mxu0  ;;  %v6540_v47 = vmax.bf16 %v6293_v37, %v6292_v39  ;;  %v18592_v39 = vld [vmem:[#allocation7 + $0x60] sm:$0xff]  }
 0x172   :  { %vm4778_vm11 = vcmp.ge.f32.partialorder %v2846_v41, 2.0  ;;  %v2849_v49 = vadd.f32 %v16734_v46, %v19729_v4  ;;  %v2840_v50 = vpop.f32.mrb[39].mxu0 }
 0x173   :  { %v14740_v54 = vsel %vm4778_vm11, 1.0, %v19402_v28  ;;  %vm4776_vm12 = vcmp.ge.f32.partialorder %v2838_v45, 2.0  ;;  %v2841_v55 = vadd.f32 %v19729_v4, %v2840_v50  ;;  %v6660_v56 = vmax.bf16 %v6540_v47, %v19756_v29 }
 0x174   :  { %v14738_v57 = vsel %vm4776_vm12, 1.0, %v19402_v28  ;;  %vm4779_vm13 = vcmp.ge.f32.partialorder %v2849_v49, 2.0  ;;  %16840 = vmatmul.mubr.msk.bf16.gmra.mrb[144].mxu0 %vm1886_vm1, %v18583_v44  ;;  %v18593_v49 = vld [vmem:[#allocation7 + $0x68] sm:$0xff]  }
 0x175   :  { %v14741_v58 = vsel %vm4779_vm13, 1.0, %v19402_v28  ;;  %vm4777_vm15 = vcmp.ge.f32.partialorder %v2841_v55, 2.0  ;;  %v15214_v59 = vcombine.low %v6660_v56, %v6660_v56  ;;  %v15215_v61 = vcombine.high %v6660_v56, %v6660_v56  ;;  %17224 = vmatmul.mubr.bf16.vlgmr.msra.gmra.mrb[0].mxu1 %v6660_v56  ;;  %16843 = vmatprep.mubr.msk.bf16.mxu0 %vm1886_vm1, %v18586_v48  ;;  %v18595_v55 = vld [vmem:[%s23603_s0 + $0x278] sm:$0xff]  }
 0x176   :  { %v6295_v62 = vpack.c.bf16 %v14741_v58, %v14740_v54  ;;  %v14739_v63 = vsel %vm4777_vm15, 1.0, %v19402_v28  ;;  %17228 = vmatpush3.bf16.msra.mxu1 %v18584_v52  ;;  %17243 = vmatprep.mubr.msk.bf16.mxu1 %vm19403_vm2, %v19402_v28 }
 0x177   :  { %v6294_v29 = vpack.c.bf16 %v14739_v63, %v14738_v57  ;;  %7173 = vst.msk [vmem:[%s23608_s5] sm:$0xf] %vm7172_vm14, %v15214_v59  ;;  %7174 = vst.msk [vmem:[%s23608_s5 + $0x4] sm:$0xf] %vm7172_vm14, %v15215_v61  ;;  %v16737_v1 = vpop.f32.mrb[40].mxu0  ;;  %17229 = vmatprep.subr.bf16.mxu1 %v19402_v28  ;;  %v18598_v59 = vld [vmem:[%s23603_s0 + $0x280] sm:$0xff]  }
 0x178   :  { %v2862_v2 = vadd.f32 %v16737_v1, %v19729_v4  ;;  %v2853_v3 = vpop.f32.mrb[41].mxu0  ;;  %v18596_v63 = vld [vmem:[#allocation7 + $0x70] sm:$0xff]  }
 0x179   :  { %v6541_v7 = vmax.bf16 %v6295_v62, %v6294_v29  ;;  %v2854_v8 = vadd.f32 %v19729_v4, %v2853_v3  ;;  %v16738_v9 = vpop.f32.mrb[42].mxu0 }
 0x17a   :  { %vm4782_vm0 = vcmp.ge.f32.partialorder %v2862_v2, 2.0  ;;  %v2865_v11 = vadd.f32 %v16738_v9, %v19729_v4  ;;  %17230 = vmatpush3.bf16.msra.mxu1 %v18585_v0  ;;  %v2856_v12 = vpop.f32.mrb[43].mxu0 }
 0x17b   :  { %v14744_v15 = vsel %vm4782_vm0, 1.0, %v19402_v28  ;;  %vm4780_vm3 = vcmp.ge.f32.partialorder %v2854_v8, 2.0  ;;  %v2857_v16 = vadd.f32 %v19729_v4, %v2856_v12  ;;  %17231 = vmatprep.subr.bf16.mxu1 %v19402_v28  ;;  %v19934_v17 = vmax.bf16 %v6541_v7, %v19770_v43  ;;  %v18597_v8 = vld [vmem:[#allocation7 + $0x78] sm:$0xff]  }
 0x17c   :  { %v14742_v18 = vsel %vm4780_vm3, 1.0, %v19402_v28  ;;  %vm4783_vm4 = vcmp.ge.f32.partialorder %v2865_v11, 2.0  ;;  %16844 = vmatmul.mubr.msk.bf16.gmra.mrb[148].mxu0 %vm1886_vm1, %v18587_v5  ;;  %v20020_v11 = vld [vmem:[#allocation5] ss:$0 sm:$0xff] }
 0x17d   :  { %v14745_v19 = vsel %vm4783_vm4, 1.0, %v19402_v28  ;;  %vm4781_vm5 = vcmp.ge.f32.partialorder %v2857_v16, 2.0  ;;  %16847 = vmatprep.mubr.msk.bf16.mxu0 %vm1886_vm1, %v18590_v10  ;;  %v15216_v20 = vcombine.low %v19934_v17, %v19934_v17  ;;  %v15217_v21 = vcombine.high %v19934_v17, %v19934_v17 }
 0x17e   :  { %v6297_v22 = vpack.c.bf16 %v14745_v19, %v14744_v15  ;;  %v14743_v43 = vsel %vm4781_vm5, 1.0, %v19402_v28  ;;  %17232 = vmatpush3.bf16.msra.mxu1 %v18588_v13  ;;  %v18599_v15 = vld [vmem:[%s23603_s0 + $0x288] sm:$0xff]  }
 0x17f   :  { %v6296_v25 = vpack.c.bf16 %v14743_v43, %v14742_v18  ;;  %v16741_v26 = vpop.f32.mrb[44].mxu0  ;;  %17233 = vmatprep.subr.bf16.mxu1 %v19402_v28  ;;  %7175 = vst.msk [vmem:[%s23608_s5 + $0x8] sm:$0xf] %vm7172_vm14, %v15216_v20  ;;  %7176 = vst.msk [vmem:[%s23608_s5 + $0xc] sm:$0xf] %vm7172_vm14, %v15217_v21  ;;  %v18602_v20 = vld [vmem:[%s23603_s0 + $0x290] sm:$0xff]  }
 0x180   :  { %v2878_v27 = vadd.f32 %v16741_v26, %v19729_v4  ;;  %v2869_v30 = vpop.f32.mrb[45].mxu0  ;;  %v18600_v43 = vld [vmem:[#allocation7 + $0x80] sm:$0xff]  }
 0x181   :  { %v6542_v32 = vmax.bf16 %v6297_v22, %v6296_v25  ;;  %v2870_v34 = vadd.f32 %v19729_v4, %v2869_v30  ;;  %v16742_v35 = vpop.f32.mrb[46].mxu0 }
 0x182   :  { %vm4786_vm6 = vcmp.ge.f32.partialorder %v2878_v27, 2.0  ;;  %v2881_v37 = vadd.f32 %v16742_v35, %v19729_v4  ;;  %17234 = vmatpush3.bf16.msra.mxu1 %v18589_v23  ;;  %v2872_v38 = vpop.f32.mrb[47].mxu0  ;;  %v18601_v35 = vld [vmem:[#allocation7 + $0x88] sm:$0xff]  }
 0x183   :  { %v14748_v40 = vsel %vm4786_vm6, 1.0, %v19402_v28  ;;  %vm4784_vm7 = vcmp.ge.f32.partialorder %v2870_v34, 2.0  ;;  %v2873_v41 = vadd.f32 %v19729_v4, %v2872_v38  ;;  %17235 = vmatprep.subr.bf16.mxu1 %v19402_v28  ;;  %v19967_v42 = vmax.bf16 %v6542_v32, %v19788_v60 }
 0x184   :  { %v14746_v44 = vsel %vm4784_vm7, 1.0, %v19402_v28  ;;  %vm4787_vm8 = vcmp.ge.f32.partialorder %v2881_v37, 2.0  ;;  %16848 = vmatmul.mubr.msk.bf16.gmra.mrb[152].mxu0 %vm1886_vm1, %v18591_v31 }
 0x185   :  { %v14749_v45 = vsel %vm4787_vm8, 1.0, %v19402_v28  ;;  %vm4785_vm9 = vcmp.ge.f32.partialorder %v2873_v41, 2.0  ;;  %16851 = vmatprep.mubr.msk.bf16.mxu0 %vm1886_vm1, %v18594_v36  ;;  %v15218_v46 = vcombine.low %v19967_v42, %v19967_v42  ;;  %v15219_v47 = vcombine.high %v19967_v42, %v19967_v42 }
 0x186   :  { %v6299_v48 = vpack.c.bf16 %v14749_v45, %v14748_v40  ;;  %v14747_v60 = vsel %vm4785_vm9, 1.0, %v19402_v28  ;;  %17236 = vmatpush3.bf16.msra.mxu1 %v18592_v39  ;;  %v18603_v39 = vld [vmem:[%s23603_s0 + $0x298] sm:$0xff]   ;;  %v18606_v45 = vld [vmem:[%s23603_s0 + $0x2a0] sm:$0xff]  }
 0x187   :  { %v6298_v50 = vpack.c.bf16 %v14747_v60, %v14746_v44  ;;  %v16745_v52 = vpop.f32.mrb[48].mxu0  ;;  %17237 = vmatprep.subr.bf16.mxu1 %v19402_v28  ;;  %7177 = vst.msk [vmem:[%s23608_s5 + $0x10] sm:$0xf] %vm7172_vm14, %v15218_v46  ;;  %7178 = vst.msk [vmem:[%s23608_s5 + $0x14] sm:$0xf] %vm7172_vm14, %v15219_v47 }
 0x188   :  { %v2894_v53 = vadd.f32 %v16745_v52, %v19729_v4  ;;  %v2885_v54 = vpop.f32.mrb[49].mxu0 }
 0x189   :  { %v6543_v56 = vmax.bf16 %v6299_v48, %v6298_v50  ;;  %v2886_v57 = vadd.f32 %v19729_v4, %v2885_v54  ;;  %v16746_v58 = vpop.f32.mrb[50].mxu0  ;;  %v18604_v48 = vld [vmem:[#allocation7 + $0x90] sm:$0xff]  }
 0x18a   :  { %vm4790_vm10 = vcmp.ge.f32.partialorder %v2894_v53, 2.0  ;;  %v2897_v61 = vadd.f32 %v16746_v58, %v19729_v4  ;;  %17238 = vmatpush3.bf16.msra.mxu1 %v18593_v49  ;;  %v2888_v62 = vpop.f32.mrb[51].mxu0 }
 0x18b   :  { %v14752_v0 = vsel %vm4790_vm10, 1.0, %v19402_v28  ;;  %vm4788_vm11 = vcmp.ge.f32.partialorder %v2886_v57, 2.0  ;;  %v2889_v29 = vadd.f32 %v19729_v4, %v2888_v62  ;;  %17239 = vmatprep.subr.bf16.mxu1 %v19402_v28  ;;  %v20000_v1 = vmax.bf16 %v6543_v56, %v19806_v14  ;;  %v18605_v57 = vld [vmem:[#allocation7 + $0x98] sm:$0xff]  }
 0x18c   :  { %v14750_v2 = vsel %vm4788_vm11, 1.0, %v19402_v28  ;;  %vm4791_vm12 = vcmp.ge.f32.partialorder %v2897_v61, 2.0  ;;  %16852 = vmatmul.mubr.msk.bf16.gmra.mrb[156].mxu0 %vm1886_vm1, %v18595_v55 }
 0x18d   :  { %v14753_v3 = vsel %vm4791_vm12, 1.0, %v19402_v28  ;;  %vm4789_vm13 = vcmp.ge.f32.partialorder %v2889_v29, 2.0  ;;  %16855 = vmatprep.mubr.msk.bf16.mxu0 %vm1886_vm1, %v18598_v59  ;;  %v15220_v5 = vcombine.low %v20000_v1, %v20000_v1  ;;  %v15221_v4 = vcombine.high %v20000_v1, %v20000_v1 }
 0x18e   :  { %v6301_v7 = vpack.c.bf16 %v14753_v3, %v14752_v0  ;;  %v14751_v14 = vsel %vm4789_vm13, 1.0, %v19402_v28  ;;  %17240 = vmatpush3.bf16.msra.mxu1 %v18596_v63  ;;  %v18607_v63 = vld [vmem:[%s23603_s0 + $0x2a8] sm:$0xff]   ;;  %v18610_v3 = vld [vmem:[%s23603_s0 + $0x2b0] sm:$0xff]  }
 0x18f   :  { %v6300_v9 = vpack.c.bf16 %v14751_v14, %v14750_v2  ;;  %v16749_v10 = vpop.f32.mrb[52].mxu0  ;;  %17241 = vmatprep.subr.bf16.mxu1 %v19402_v28  ;;  %7179 = vst.msk [vmem:[%s23608_s5 + $0x18] sm:$0xf] %vm7172_vm14, %v15220_v5  ;;  %7180 = vst.msk [vmem:[%s23608_s5 + $0x1c] sm:$0xf] %vm7172_vm14, %v15221_v4 }
 0x190   :  { %v2910_v12 = vadd.f32 %v20020_v11, %v16749_v10  ;;  %v2901_v13 = vpop.f32.mrb[53].mxu0 }
 0x191   :  { %v6544_v16 = vmax.bf16 %v6301_v7, %v6300_v9  ;;  %v2902_v18 = vadd.f32 %v20020_v11, %v2901_v13  ;;  %v16750_v19 = vpop.f32.mrb[54].mxu0  ;;  %v18608_v7 = vld [vmem:[#allocation7 + $0xa0] sm:$0xff]  }
 0x192   :  { %vm4794_vm15 = vcmp.ge.f32.partialorder %v2910_v12, 2.0  ;;  %v2913_v21 = vadd.f32 %v20020_v11, %v16750_v19  ;;  %17242 = vmatpush3.bf16.msra.mxu1 %v18597_v8  ;;  %v2904_v22 = vpop.f32.mrb[55].mxu0 }
 0x193   :  { %v14756_v23 = vsel %vm4794_vm15, 1.0, %v19402_v28  ;;  %vm4792_vm0 = vcmp.ge.f32.partialorder %v2902_v18, 2.0  ;;  %v2905_v25 = vadd.f32 %v20020_v11, %v2904_v22  ;;  %17247 = vmatprep.subr.bf16.mxu1 %v19402_v28  ;;  %v20035_v26 = vmax.bf16 %v6544_v16, %v19824_v33  ;;  %v18609_v18 = vld [vmem:[#allocation7 + $0xa8] sm:$0xff]  }
 0x194   :  { %v14754_v27 = vsel %vm4792_vm0, 1.0, %v19402_v28  ;;  %vm4795_vm3 = vcmp.ge.f32.partialorder %v2913_v21, 2.0  ;;  %16856 = vmatmul.mubr.msk.bf16.gmra.mrb[160].mxu0 %vm1886_vm1, %v18599_v15  ;;  %v18611_v21 = vld [vmem:[%s23603_s0 + $0x2b8] sm:$0xff]  }
 0x195   :  { %v14757_v30 = vsel %vm4795_vm3, 1.0, %v19402_v28  ;;  %vm4793_vm4 = vcmp.ge.f32.partialorder %v2905_v25, 2.0  ;;  %17244 = vmatmul.mubr.bf16.vlgmr.msra.gmra.mrb[4].mxu1 %v19934_v17  ;;  %16859 = vmatprep.mubr.msk.bf16.mxu0 %vm1886_vm1, %v18602_v20  ;;  %v15222_v31 = vcombine.low %v20035_v26, %v20035_v26  ;;  %v15223_v32 = vcombine.high %v20035_v26, %v20035_v26  ;;  %v18614_v25 = vld [vmem:[%s23603_s0 + $0x2c0] sm:$0xff]  }
 0x196   :  { %v6303_v33 = vpack.c.bf16 %v14757_v30, %v14756_v23  ;;  %v14755_v34 = vsel %vm4793_vm4, 1.0, %v19402_v28  ;;  %17248 = vmatpush3.bf16.msra.mxu1 %v18600_v43  ;;  %17263 = vmatprep.mubr.msk.bf16.mxu1 %vm19403_vm2, %v19402_v28 }
 0x197   :  { %v6302_v36 = vpack.c.bf16 %v14755_v34, %v14754_v27  ;;  %v16753_v37 = vpop.f32.mrb[56].mxu0  ;;  %17249 = vmatprep.subr.bf16.mxu1 %v19402_v28  ;;  %7181 = vst.msk [vmem:[%s23608_s5 + $0x20] sm:$0xf] %vm7172_vm14, %v15222_v31  ;;  %7182 = vst.msk [vmem:[%s23608_s5 + $0x24] sm:$0xf] %vm7172_vm14, %v15223_v32  ;;  %v18612_v31 = vld [vmem:[#allocation7 + $0xb0] sm:$0xff]  }
 0x198   :  { %v2926_v17 = vadd.f32 %v20020_v11, %v16753_v37  ;;  %v2917_v38 = vpop.f32.mrb[57].mxu0 }
 0x199   :  { %v6545_v40 = vmax.bf16 %v6303_v33, %v6302_v36  ;;  %v2918_v41 = vadd.f32 %v20020_v11, %v2917_v38  ;;  %v16754_v44 = vpop.f32.mrb[58].mxu0 }
 0x19a   :  { %vm4798_vm5 = vcmp.ge.f32.partialorder %v2926_v17, 2.0  ;;  %v2929_v46 = vadd.f32 %v20020_v11, %v16754_v44  ;;  %17250 = vmatpush3.bf16.msra.mxu1 %v18601_v35  ;;  %v2920_v47 = vpop.f32.mrb[59].mxu0 }
 0x19b   :  { %v14760_v60 = vsel %vm4798_vm5, 1.0, %v19402_v28  ;;  %vm4796_vm6 = vcmp.ge.f32.partialorder %v2918_v41, 2.0  ;;  %v2921_v49 = vadd.f32 %v20020_v11, %v2920_v47  ;;  %17251 = vmatprep.subr.bf16.mxu1 %v19402_v28  ;;  %v20071_v50 = vmax.bf16 %v6545_v40, %v19842_v51  ;;  %v18613_v40 = vld [vmem:[#allocation7 + $0xb8] sm:$0xff]  }
 0x19c   :  { %v14758_v52 = vsel %vm4796_vm6, 1.0, %v19402_v28  ;;  %vm4799_vm7 = vcmp.ge.f32.partialorder %v2929_v46, 2.0  ;;  %16860 = vmatmul.mubr.msk.bf16.gmra.mrb[164].mxu0 %vm1886_vm1, %v18603_v39  ;;  %v18615_v46 = vld [vmem:[%s23603_s0 + $0x2c8] sm:$0xff]  }
 0x19d   :  { %v14761_v53 = vsel %vm4799_vm7, 1.0, %v19402_v28  ;;  %vm4797_vm8 = vcmp.ge.f32.partialorder %v2921_v49, 2.0  ;;  %16863 = vmatprep.mubr.msk.bf16.mxu0 %vm1886_vm1, %v18606_v45  ;;  %v15224_v54 = vcombine.low %v20071_v50, %v20071_v50  ;;  %v15225_v55 = vcombine.high %v20071_v50, %v20071_v50 }
 0x19e   :  { %v6305_v56 = vpack.c.bf16 %v14761_v53, %v14760_v60  ;;  %v14759_v51 = vsel %vm4797_vm8, 1.0, %v19402_v28  ;;  %17252 = vmatpush3.bf16.msra.mxu1 %v18604_v48  ;;  %v18618_v60 = vld [vmem:[%s23603_s0 + $0x2d0] sm:$0xff]  }
 0x19f   :  { %v6304_v58 = vpack.c.bf16 %v14759_v51, %v14758_v52  ;;  %v16757_v59 = vpop.f32.mrb[60].mxu0  ;;  %17253 = vmatprep.subr.bf16.mxu1 %v19402_v28  ;;  %7183 = vst.msk [vmem:[%s23608_s5 + $0x28] sm:$0xf] %vm7172_vm14, %v15224_v54  ;;  %7184 = vst.msk [vmem:[%s23608_s5 + $0x2c] sm:$0xf] %vm7172_vm14, %v15225_v55  ;;  %v18616_v54 = vld [vmem:[#allocation7 + $0xc0] sm:$0xff]  }
 0x1a0   :  { %v2942_v61 = vadd.f32 %v20020_v11, %v16757_v59  ;;  %v2933_v62 = vpop.f32.mrb[61].mxu0 }
 0x1a1   :  { %v6546_v0 = vmax.bf16 %v6305_v56, %v6304_v58  ;;  %v2934_v29 = vadd.f32 %v20020_v11, %v2933_v62  ;;  %v16758_v2 = vpop.f32.mrb[62].mxu0 }
 0x1a2   :  { %vm4802_vm9 = vcmp.ge.f32.partialorder %v2942_v61, 2.0  ;;  %v2945_v5 = vadd.f32 %v20020_v11, %v16758_v2  ;;  %17254 = vmatpush3.bf16.msra.mxu1 %v18605_v57  ;;  %v2936_v4 = vpop.f32.mrb[63].mxu0  ;;  %v18617_v61 = vld [vmem:[#allocation7 + $0xc8] sm:$0xff]  }
 0x1a3   :  { %v14764_v14 = vsel %vm4802_vm9, 1.0, %v19402_v28  ;;  %vm4800_vm10 = vcmp.ge.f32.partialorder %v2934_v29, 2.0  ;;  %v2937_v8 = vadd.f32 %v20020_v11, %v2936_v4  ;;  %17255 = vmatprep.subr.bf16.mxu1 %v19402_v28  ;;  %v20104_v9 = vmax.bf16 %v6546_v0, %v19860_v6 }
 0x1a4   :  { %v14762_v10 = vsel %vm4800_vm10, 1.0, %v19402_v28  ;;  %vm4803_vm11 = vcmp.ge.f32.partialorder %v2945_v5, 2.0  ;;  %16864 = vmatmul.mubr.msk.bf16.gmra.mrb[168].mxu0 %vm1886_vm1, %v18607_v63  ;;  %v18622_v5 = vld [vmem:[%s23603_s0 + $0x2e0] sm:$0xff]  }
 0x1a5   :  { %v14765_v12 = vsel %vm4803_vm11, 1.0, %v19402_v28  ;;  %vm4801_vm12 = vcmp.ge.f32.partialorder %v2937_v8, 2.0  ;;  %16867 = vmatprep.mubr.msk.bf16.mxu0 %vm1886_vm1, %v18610_v3  ;;  %v15226_v13 = vcombine.low %v20104_v9, %v20104_v9  ;;  %v15227_v15 = vcombine.high %v20104_v9, %v20104_v9  ;;  %v18620_v8 = vld [vmem:[#allocation7 + $0xd0] sm:$0xff]  }
 0x1a6   :  { %v6307_v16 = vpack.c.bf16 %v14765_v12, %v14764_v14  ;;  %v14763_v6 = vsel %vm4801_vm12, 1.0, %v19402_v28  ;;  %17256 = vmatpush3.bf16.msra.mxu1 %v18608_v7 }
 0x1a7   :  { %v6306_v19 = vpack.c.bf16 %v14763_v6, %v14762_v10  ;;  %17257 = vmatprep.subr.bf16.mxu1 %v19402_v28  ;;  %v16761_v20 = vpop.f32.mrb[64].mxu0  ;;  %7185 = vst.msk [vmem:[%s23608_s5 + $0x30] sm:$0xf] %vm7172_vm14, %v15226_v13  ;;  %7186 = vst.msk [vmem:[%s23608_s5 + $0x34] sm:$0xf] %vm7172_vm14, %v15227_v15 }
 0x1a8   :  { %v2958_v22 = vadd.f32 %v20020_v11, %v16761_v20  ;;  %v2949_v43 = vpop.f32.mrb[65].mxu0 }
 0x1a9   :  { %v6547_v23 = vmax.bf16 %v6307_v16, %v6306_v19  ;;  %v2950_v27 = vadd.f32 %v20020_v11, %v2949_v43  ;;  %v16762_v30 = vpop.f32.mrb[66].mxu0  ;;  %v18623_v43 = vld [vmem:[%s23603_s0 + $0x2e8] sm:$0xff]  }
 0x1aa   :  { %17258 = vmatpush3.bf16.msra.mxu1 %v18609_v18  ;;  %vm4806_vm13 = vcmp.ge.f32.partialorder %v2958_v22, 2.0  ;;  %v2961_v32 = vadd.f32 %v20020_v11, %v16762_v30  ;;  %v2952_v33 = vpop.f32.mrb[67].mxu0  ;;  %v18621_v18 = vld [vmem:[#allocation7 + $0xd8] sm:$0xff]  }
 0x1ab   :  { %17259 = vmatprep.subr.bf16.mxu1 %v19402_v28  ;;  %v14768_v34 = vsel %vm4806_vm13, 1.0, %v19402_v28  ;;  %vm4804_vm15 = vcmp.ge.f32.partialorder %v2950_v27, 2.0  ;;  %v2953_v35 = vadd.f32 %v20020_v11, %v2952_v33  ;;  %v20137_v36 = vmax.bf16 %v6547_v23, %v19878_v24  ;;  %v18626_v27 = vld [vmem:[%s23603_s0 + $0x2f0] sm:$0xff]  }
 0x1ac   :  { %16868 = vmatmul.mubr.msk.bf16.gmra.mrb[172].mxu0 %vm1886_vm1, %v18611_v21  ;;  %v14766_v37 = vsel %vm4804_vm15, 1.0, %v19402_v28  ;;  %vm4807_vm0 = vcmp.ge.f32.partialorder %v2961_v32, 2.0  ;;  %v18624_v33 = vld [vmem:[#allocation7 + $0xe0] sm:$0xff]  }
 0x1ad   :  { %16871 = vmatprep.mubr.msk.bf16.mxu0 %vm1886_vm1, %v18614_v25  ;;  %v14769_v17 = vsel %vm4807_vm0, 1.0, %v19402_v28  ;;  %vm4805_vm3 = vcmp.ge.f32.partialorder %v2953_v35, 2.0  ;;  %v15228_v38 = vcombine.low %v20137_v36, %v20137_v36  ;;  %v15229_v39 = vcombine.high %v20137_v36, %v20137_v36 }
 0x1ae   :  { %17260 = vmatpush3.bf16.msra.mxu1 %v18612_v31  ;;  %v6309_v24 = vpack.c.bf16 %v14769_v17, %v14768_v34  ;;  %v14767_v41 = vsel %vm4805_vm3, 1.0, %v19402_v28 }
 0x1af   :  { %17261 = vmatprep.subr.bf16.mxu1 %v19402_v28  ;;  %v6308_v44 = vpack.c.bf16 %v14767_v41, %v14766_v37  ;;  %v16765_v45 = vpop.f32.mrb[68].mxu0  ;;  %7187 = vst.msk [vmem:[%s23608_s5 + $0x38] sm:$0xf] %vm7172_vm14, %v15228_v38  ;;  %7188 = vst.msk [vmem:[%s23608_s5 + $0x3c] sm:$0xf] %vm7172_vm14, %v15229_v39 }
 0x1b0   :  { %v2974_v47 = vadd.f32 %v20020_v11, %v16765_v45  ;;  %v2965_v48 = vpop.f32.mrb[69].mxu0 }
 0x1b1   :  { %v20164_v49 = vmax.bf16 %v6309_v24, %v6308_v44  ;;  %v2966_v52 = vadd.f32 %v20020_v11, %v2965_v48  ;;  %v16766_v53 = vpop.f32.mrb[70].mxu0 }
 0x1b2   :  { %17262 = vmatpush3.bf16.msra.mxu1 %v18613_v40  ;;  %vm4810_vm4 = vcmp.ge.f32.partialorder %v2974_v47, 2.0  ;;  %v2977_v55 = vadd.f32 %v20020_v11, %v16766_v53  ;;  %v2968_v56 = vpop.f32.mrb[71].mxu0  ;;  %v18625_v40 = vld [vmem:[#allocation7 + $0xe8] sm:$0xff]  }
 0x1b3   :  { %17267 = vmatprep.subr.bf16.mxu1 %v19402_v28  ;;  %v14772_v51 = vsel %vm4810_vm4, 1.0, %v19402_v28  ;;  %vm4808_vm5 = vcmp.ge.f32.partialorder %v2966_v52, 2.0  ;;  %v2969_v57 = vadd.f32 %v20020_v11, %v2968_v56 }
 0x1b4   :  { %16872 = vmatmul.mubr.msk.bf16.gmra.mrb[176].mxu0 %vm1886_vm1, %v18615_v46  ;;  %v14770_v58 = vsel %vm4808_vm5, 1.0, %v19402_v28  ;;  %vm4811_vm6 = vcmp.ge.f32.partialorder %v2977_v55, 2.0  ;;  %v18627_v46 = vld [vmem:[%s23603_s0 + $0x2f8] sm:$0xff]  }
 0x1b5   :  { %17264 = vmatmul.mubr.bf16.vlgmr.msra.gmra.mrb[8].mxu1 %v19967_v42  ;;  %16875 = vmatprep.mubr.msk.bf16.mxu0 %vm1886_vm1, %v18618_v60  ;;  %v14773_v59 = vsel %vm4811_vm6, 1.0, %v19402_v28  ;;  %vm4809_vm7 = vcmp.ge.f32.partialorder %v2969_v57, 2.0  ;;  %v18619_v42 = vld [vmem:[%s23603_s0 + $0x2d8] sm:$0xff]   ;;  %v18630_v60 = vld [vmem:[%s23603_s0 + $0x300] sm:$0xff]  }
 0x1b6   :  { %17268 = vmatpush3.bf16.msra.mxu1 %v18616_v54  ;;  %17283 = vmatprep.mubr.msk.bf16.mxu1 %vm19403_vm2, %v19402_v28  ;;  %v6311_v62 = vpack.c.bf16 %v14773_v59, %v14772_v51  ;;  %v14771_v63 = vsel %vm4809_vm7, 1.0, %v19402_v28  ;;  %v18628_v55 = vld [vmem:[#allocation7 + $0xf0] sm:$0xff]  }
 0x1b7   :  { %17269 = vmatprep.subr.bf16.mxu1 %v19402_v28  ;;  %v6310_v0 = vpack.c.bf16 %v14771_v63, %v14770_v58  ;;  %v16769_v29 = vpop.f32.mrb[72].mxu0 }
 0x1b8   :  { %v2990_v2 = vadd.f32 %v20020_v11, %v16769_v29  ;;  %v2981_v3 = vpop.f32.mrb[73].mxu0 }
 0x1b9   :  { %v20187_v4 = vmax.bf16 %v6311_v62, %v6310_v0  ;;  %v2982_v7 = vadd.f32 %v20020_v11, %v2981_v3  ;;  %v16770_v14 = vpop.f32.mrb[74].mxu0  ;;  %v18629_v62 = vld [vmem:[#allocation7 + $0xf8] sm:$0xff]  }
 0x1ba   :  { %17270 = vmatpush3.bf16.msra.mxu1 %v18617_v61  ;;  %vm4814_vm8 = vcmp.ge.f32.partialorder %v2990_v2, 2.0  ;;  %v2993_v10 = vadd.f32 %v20020_v11, %v16770_v14  ;;  %v2984_v12 = vpop.f32.mrb[75].mxu0  ;;  %v18631_v2 = vld [vmem:[%s23603_s0 + $0x308] sm:$0xff]  }
 0x1bb   :  { %17271 = vmatprep.subr.bf16.mxu1 %v19402_v28  ;;  %v14776_v13 = vsel %vm4814_vm8, 1.0, %v19402_v28  ;;  %vm4812_vm9 = vcmp.ge.f32.partialorder %v2982_v7, 2.0  ;;  %v2985_v15 = vadd.f32 %v20020_v11, %v2984_v12  ;;  %v18634_v7 = vld [vmem:[%s23603_s0 + $0x310] sm:$0xff]  }
 0x1bc   :  { %16876 = vmatmul.mubr.msk.bf16.gmra.mrb[180].mxu0 %vm1886_vm1, %v18619_v42  ;;  %v14774_v16 = vsel %vm4812_vm9, 1.0, %v19402_v28  ;;  %vm4815_vm10 = vcmp.ge.f32.partialorder %v2993_v10, 2.0  ;;  %v18632_v12 = vld [vmem:[#allocation7 + $0x100] sm:$0xff]  }
 0x1bd   :  { %16879 = vmatprep.mubr.msk.bf16.mxu0 %vm1886_vm1, %v18622_v5  ;;  %v14777_v6 = vsel %vm4815_vm10, 1.0, %v19402_v28  ;;  %vm4813_vm11 = vcmp.ge.f32.partialorder %v2985_v15, 2.0 }
 0x1be   :  { %17272 = vmatpush3.bf16.msra.mxu1 %v18620_v8  ;;  %v6313_v19 = vpack.c.bf16 %v14777_v6, %v14776_v13  ;;  %v14775_v20 = vsel %vm4813_vm11, 1.0, %v19402_v28 }
 0x1bf   :  { %17273 = vmatprep.subr.bf16.mxu1 %v19402_v28  ;;  %v6312_v21 = vpack.c.bf16 %v14775_v20, %v14774_v16  ;;  %v16773_v22 = vpop.f32.mrb[76].mxu0  ;;  %v18633_v20 = vld [vmem:[#allocation7 + $0x108] sm:$0xff]  }
 0x1c0   :  { %v3006_v23 = vadd.f32 %v20020_v11, %v16773_v22  ;;  %v2997_v25 = vpop.f32.mrb[77].mxu0 }
 0x1c1   :  { %v20207_v30 = vmax.bf16 %v6313_v19, %v6312_v21  ;;  %v2998_v31 = vadd.f32 %v20020_v11, %v2997_v25  ;;  %v16774_v32 = vpop.f32.mrb[78].mxu0 }
 0x1c2   :  { %17274 = vmatpush3.bf16.msra.mxu1 %v18621_v18  ;;  %vm4818_vm12 = vcmp.ge.f32.partialorder %v3006_v23, 2.0  ;;  %v3009_v34 = vadd.f32 %v20020_v11, %v16774_v32  ;;  %v3000_v35 = vpop.f32.mrb[79].mxu0 }
 0x1c3   :  { %17275 = vmatprep.subr.bf16.mxu1 %v19402_v28  ;;  %v14780_v37 = vsel %vm4818_vm12, 1.0, %v19402_v28  ;;  %vm4816_vm13 = vcmp.ge.f32.partialorder %v2998_v31, 2.0  ;;  %v3001_v17 = vadd.f32 %v20020_v11, %v3000_v35  ;;  %v18638_v31 = vld [vmem:[%s23603_s0 + $0x320] sm:$0xff]  }
 0x1c4   :  { %16880 = vmatmul.mubr.msk.bf16.gmra.mrb[184].mxu0 %vm1886_vm1, %v18623_v43  ;;  %v14778_v38 = vsel %vm4816_vm13, 1.0, %v19402_v28  ;;  %vm4819_vm15 = vcmp.ge.f32.partialorder %v3009_v34, 2.0  ;;  %v18636_v35 = vld [vmem:[#allocation7 + $0x110] sm:$0xff]  }
 0x1c5   :  { %16883 = vmatprep.mubr.msk.bf16.mxu0 %vm1886_vm1, %v18626_v27  ;;  %v14781_v39 = vsel %vm4819_vm15, 1.0, %v19402_v28  ;;  %vm4817_vm0 = vcmp.ge.f32.partialorder %v3001_v17, 2.0 }
 0x1c6   :  { %17276 = vmatpush3.bf16.msra.mxu1 %v18624_v33  ;;  %v6315_v24 = vpack.c.bf16 %v14781_v39, %v14780_v37  ;;  %v14779_v41 = vsel %vm4817_vm0, 1.0, %v19402_v28 }
 0x1c7   :  { %17277 = vmatprep.subr.bf16.mxu1 %v19402_v28  ;;  %v6314_v44 = vpack.c.bf16 %v14779_v41, %v14778_v38  ;;  %v16777_v45 = vpop.f32.mrb[80].mxu0  ;;  %v18637_v41 = vld [vmem:[#allocation7 + $0x118] sm:$0xff]  }
 0x1c8   :  { %v3022_v47 = vadd.f32 %v20020_v11, %v16777_v45  ;;  %v3013_v48 = vpop.f32.mrb[81].mxu0 }
 0x1c9   :  { %v20227_v52 = vmax.bf16 %v6315_v24, %v6314_v44  ;;  %v3014_v53 = vadd.f32 %v20020_v11, %v3013_v48  ;;  %v16778_v54 = vpop.f32.mrb[82].mxu0  ;;  %v18639_v48 = vld [vmem:[%s23603_s0 + $0x328] sm:$0xff]  }
 0x1ca   :  { %17278 = vmatpush3.bf16.msra.mxu1 %v18625_v40  ;;  %vm4822_vm3 = vcmp.ge.f32.partialorder %v3022_v47, 2.0  ;;  %v3025_v56 = vadd.f32 %v20020_v11, %v16778_v54  ;;  %v3016_v51 = vpop.f32.mrb[83].mxu0  ;;  %v18642_v54 = vld [vmem:[%s23603_s0 + $0x330] sm:$0xff]  }
 0x1cb   :  { %17279 = vmatprep.subr.bf16.mxu1 %v19402_v28  ;;  %v14784_v57 = vsel %vm4822_vm3, 1.0, %v19402_v28  ;;  %vm4820_vm4 = vcmp.ge.f32.partialorder %v3014_v53, 2.0  ;;  %v3017_v58 = vadd.f32 %v20020_v11, %v3016_v51 }
 0x1cc   :  { %16884 = vmatmul.mubr.msk.bf16.gmra.mrb[188].mxu0 %vm1886_vm1, %v18627_v46  ;;  %v14782_v59 = vsel %vm4820_vm4, 1.0, %v19402_v28  ;;  %vm4823_vm5 = vcmp.ge.f32.partialorder %v3025_v56, 2.0 }
 0x1cd   :  { %16887 = vmatprep.mubr.msk.bf16.mxu0 %vm1886_vm1, %v18630_v60  ;;  %v14785_v61 = vsel %vm4823_vm5, 1.0, %v19402_v28  ;;  %vm4821_vm6 = vcmp.ge.f32.partialorder %v3017_v58, 2.0 }
 0x1ce   :  { %17280 = vmatpush3.bf16.msra.mxu1 %v18628_v55  ;;  %v6317_v63 = vpack.c.bf16 %v14785_v61, %v14784_v57  ;;  %v14783_v0 = vsel %vm4821_vm6, 1.0, %v19402_v28  ;;  %v18640_v57 = vld [vmem:[#allocation7 + $0x120] sm:$0xff]  }
 0x1cf   :  { %17281 = vmatprep.subr.bf16.mxu1 %v19402_v28  ;;  %v6316_v29 = vpack.c.bf16 %v14783_v0, %v14782_v59  ;;  %v16781_v42 = vpop.f32.mrb[84].mxu0 }
 0x1d0   :  { %v3038_v3 = vadd.f32 %v20020_v11, %v16781_v42  ;;  %v3029_v5 = vpop.f32.mrb[85].mxu0 }
 0x1d1   :  { %v20247_v14 = vmax.bf16 %v6317_v63, %v6316_v29  ;;  %v3030_v8 = vadd.f32 %v20020_v11, %v3029_v5  ;;  %v16782_v10 = vpop.f32.mrb[86].mxu0  ;;  %v18641_v29 = vld [vmem:[#allocation7 + $0x128] sm:$0xff]  }
 0x1d2   :  { %17282 = vmatpush3.bf16.msra.mxu1 %v18629_v62  ;;  %vm4826_vm7 = vcmp.ge.f32.partialorder %v3038_v3, 2.0  ;;  %v3041_v13 = vadd.f32 %v20020_v11, %v16782_v10  ;;  %v3032_v15 = vpop.f32.mrb[87].mxu0 }
 0x1d3   :  { %17287 = vmatprep.subr.bf16.mxu1 %v19402_v28  ;;  %v14788_v16 = vsel %vm4826_vm7, 1.0, %v19402_v28  ;;  %vm4824_vm8 = vcmp.ge.f32.partialorder %v3030_v8, 2.0  ;;  %v3033_v6 = vadd.f32 %v20020_v11, %v3032_v15 }
 0x1d4   :  { %16888 = vmatmul.mubr.msk.bf16.gmra.mrb[192].mxu0 %vm1886_vm1, %v18631_v2  ;;  %v14786_v18 = vsel %vm4824_vm8, 1.0, %v19402_v28  ;;  %vm4827_vm9 = vcmp.ge.f32.partialorder %v3041_v13, 2.0 }
 0x1d5   :  { %17284 = vmatmul.mubr.bf16.vlgmr.msra.gmra.mrb[12].mxu1 %v20000_v1  ;;  %16891 = vmatprep.mubr.msk.bf16.mxu0 %vm1886_vm1, %v18634_v7  ;;  %v14789_v19 = vsel %vm4827_vm9, 1.0, %v19402_v28  ;;  %vm4825_vm10 = vcmp.ge.f32.partialorder %v3033_v6, 2.0  ;;  %v18635_v1 = vld [vmem:[%s23603_s0 + $0x318] sm:$0xff]  }
 0x1d6   :  { %17288 = vmatpush3.bf16.msra.mxu1 %v18632_v12  ;;  %17303 = vmatprep.mubr.msk.bf16.mxu1 %vm19403_vm2, %v19402_v28  ;;  %v6319_v21 = vpack.c.bf16 %v14789_v19, %v14788_v16  ;;  %v14787_v22 = vsel %vm4825_vm10, 1.0, %v19402_v28  ;;  %v18643_v7 = vld [vmem:[%s23603_s0 + $0x338] sm:$0xff]   ;;  %v18646_v12 = vld [vmem:[%s23603_s0 + $0x340] sm:$0xff]  }
 0x1d7   :  { %17289 = vmatprep.subr.bf16.mxu1 %v19402_v28  ;;  %v6318_v43 = vpack.c.bf16 %v14787_v22, %v14786_v18  ;;  %v16785_v23 = vpop.f32.mrb[88].mxu0  ;;  %v18644_v6 = vld [vmem:[#allocation7 + $0x130] sm:$0xff]   ;;  %v20313_v18 = vld [vmem:[#allocation5] ss:$0 sm:$0xff] }
 0x1d8   :  { %v3054_v25 = vadd.f32 %v20020_v11, %v16785_v23  ;;  %v3045_v27 = vpop.f32.mrb[89].mxu0  ;;  %v18645_v23 = vld [vmem:[#allocation7 + $0x138] sm:$0xff]  }
 0x1d9   :  { %v20270_v32 = vmax.bf16 %v6319_v21, %v6318_v43  ;;  %v3046_v33 = vadd.f32 %v20020_v11, %v3045_v27  ;;  %v16786_v34 = vpop.f32.mrb[90].mxu0 }
 0x1da   :  { %17290 = vmatpush3.bf16.msra.mxu1 %v18633_v20  ;;  %vm4830_vm11 = vcmp.ge.f32.partialorder %v3054_v25, 2.0  ;;  %v3057_v37 = vadd.f32 %v20020_v11, %v16786_v34  ;;  %v3048_v17 = vpop.f32.mrb[91].mxu0 }
 0x1db   :  { %17291 = vmatprep.subr.bf16.mxu1 %v19402_v28  ;;  %v14792_v38 = vsel %vm4830_vm11, 1.0, %v19402_v28  ;;  %vm4828_vm12 = vcmp.ge.f32.partialorder %v3046_v33, 2.0  ;;  %v3049_v39 = vadd.f32 %v20020_v11, %v3048_v17  ;;  %v18648_v33 = vld [vmem:[%s23603_s0 + $0x348] sm:$0xff]  }
 0x1dc   :  { %16892 = vmatmul.mubr.msk.bf16.gmra.mrb[196].mxu0 %vm1886_vm1, %v18635_v1  ;;  %v14790_v40 = vsel %vm4828_vm12, 1.0, %v19402_v28  ;;  %vm4831_vm13 = vcmp.ge.f32.partialorder %v3057_v37, 2.0  ;;  %v18651_v37 = vld [vmem:[%s23603_s0 + $0x350] sm:$0xff]  }
 0x1dd   :  { %16895 = vmatprep.mubr.msk.bf16.mxu0 %vm1886_vm1, %v18638_v31  ;;  %v14793_v24 = vsel %vm4831_vm13, 1.0, %v19402_v28  ;;  %vm4829_vm15 = vcmp.ge.f32.partialorder %v3049_v39, 2.0 }
 0x1de   :  { %17292 = vmatpush3.bf16.msra.mxu1 %v18636_v35  ;;  %v6321_v44 = vpack.c.bf16 %v14793_v24, %v14792_v38  ;;  %v14791_v45 = vsel %vm4829_vm15, 1.0, %v19402_v28 }
 0x1df   :  { %17293 = vmatprep.subr.bf16.mxu1 %v19402_v28  ;;  %v6320_v46 = vpack.c.bf16 %v14791_v45, %v14790_v40  ;;  %v16789_v47 = vpop.f32.mrb[92].mxu0  ;;  %v18649_v40 = vld [vmem:[#allocation7 + $0x140] sm:$0xff]  }
 0x1e0   :  { %v3070_v60 = vadd.f32 %v20020_v11, %v16789_v47  ;;  %v3061_v53 = vpop.f32.mrb[93].mxu0 }
 0x1e1   :  { %v20290_v55 = vmax.bf16 %v6321_v44, %v6320_v46  ;;  %v3062_v56 = vadd.f32 %v20020_v11, %v3061_v53  ;;  %v16790_v51 = vpop.f32.mrb[94].mxu0  ;;  %v18712_v44 = vld [vmem:[#allocation7 + $0x810] sm:$0xff]  }
 0x1e2   :  { %17294 = vmatpush3.bf16.msra.mxu1 %v18637_v41  ;;  %vm4834_vm0 = vcmp.ge.f32.partialorder %v3070_v60, 2.0  ;;  %v3073_v58 = vadd.f32 %v20020_v11, %v16790_v51  ;;  %v3064_v59 = vpop.f32.mrb[95].mxu0  ;;  %17852 = vmatpush3.bf16.msra.mxu0 %v18712_v44 }
 0x1e3   :  { %17295 = vmatprep.subr.bf16.mxu1 %v19402_v28  ;;  %v14796_v61 = vsel %vm4834_vm0, 1.0, %v19402_v28  ;;  %vm4832_vm3 = vcmp.ge.f32.partialorder %v3062_v56, 2.0  ;;  %v3065_v62 = vadd.f32 %v20020_v11, %v3064_v59  ;;  %17853 = vmatprep.subr.bf16.mxu0 %v19402_v28 }
 0x1e4   :  { %16896 = vmatmul.mubr.msk.bf16.gmra.mrb[200].mxu0 %vm1886_vm1, %v18639_v48  ;;  %v14794_v63 = vsel %vm4832_vm3, 1.0, %v19402_v28  ;;  %vm4835_vm4 = vcmp.ge.f32.partialorder %v3073_v58, 2.0  ;;  %v18652_v58 = vld [vmem:[%s23603_s0 + $0x358] sm:$0xff]  }
 0x1e5   :  { %16899 = vmatprep.mubr.msk.bf16.mxu0 %vm1886_vm1, %v18642_v54  ;;  %v14797_v0 = vsel %vm4835_vm4, 1.0, %v19402_v28  ;;  %vm4833_vm5 = vcmp.ge.f32.partialorder %v3065_v62, 2.0  ;;  %v18655_v62 = vld [vmem:[%s23603_s0 + $0x360] sm:$0xff]  }
 0x1e6   :  { %17296 = vmatpush3.bf16.msra.mxu1 %v18640_v57  ;;  %v6323_v42 = vpack.c.bf16 %v14797_v0, %v14796_v61  ;;  %v14795_v2 = vsel %vm4833_vm5, 1.0, %v19402_v28 }
 0x1e7   :  { %17297 = vmatprep.subr.bf16.mxu1 %v19402_v28  ;;  %v6322_v3 = vpack.c.bf16 %v14795_v2, %v14794_v63  ;;  %v16793_v5 = vpop.f32.mrb[96].mxu0 }
 0x1e8   :  { %v3086_v8 = vadd.f32 %v20020_v11, %v16793_v5  ;;  %v3077_v10 = vpop.f32.mrb[97].mxu0 }
 0x1e9   :  { %v20310_v13 = vmax.bf16 %v6323_v42, %v6322_v3  ;;  %v3078_v15 = vadd.f32 %v20020_v11, %v3077_v10  ;;  %v16794_v16 = vpop.f32.mrb[98].mxu0  ;;  %v18653_v42 = vld [vmem:[#allocation7 + $0x150] sm:$0xff]  }
 0x1ea   :  { %17298 = vmatpush3.bf16.msra.mxu1 %v18641_v29  ;;  %vm4838_vm6 = vcmp.ge.f32.partialorder %v3086_v8, 2.0  ;;  %v3089_v19 = vadd.f32 %v20313_v18, %v16794_v16  ;;  %v3080_v20 = vpop.f32.mrb[99].mxu0 }
 0x1eb   :  { %17299 = vmatprep.subr.bf16.mxu1 %v19402_v28  ;;  %v14800_v21 = vsel %vm4838_vm6, 1.0, %v19402_v28  ;;  %vm4836_vm7 = vcmp.ge.f32.partialorder %v3078_v15, 2.0  ;;  %v3081_v22 = vadd.f32 %v20313_v18, %v3080_v20 }
 0x1ec   :  { %16900 = vmatmul.mubr.msk.bf16.gmra.mrb[204].mxu0 %vm1886_vm1, %v18643_v7  ;;  %v14798_v11 = vsel %vm4836_vm7, 1.0, %v19402_v28  ;;  %vm4839_vm8 = vcmp.ge.f32.partialorder %v3089_v19, 2.0 }
 0x1ed   :  { %16903 = vmatprep.mubr.msk.bf16.mxu0 %vm1886_vm1, %v18646_v12  ;;  %v14801_v43 = vsel %vm4839_vm8, 1.0, %v19402_v28  ;;  %vm4837_vm9 = vcmp.ge.f32.partialorder %v3081_v22, 2.0  ;;  %v18656_v22 = vld [vmem:[%s23603_s0 + $0x368] sm:$0xff]  }
 0x1ee   :  { %17300 = vmatpush3.bf16.msra.mxu1 %v18644_v6  ;;  %v6325_v1 = vpack.c.bf16 %v14801_v43, %v14800_v21  ;;  %v14799_v25 = vsel %vm4837_vm9, 1.0, %v19402_v28  ;;  %v18654_v6 = vld [vmem:[#allocation7 + $0x158] sm:$0xff]  }
 0x1ef   :  { %17301 = vmatprep.subr.bf16.mxu1 %v19402_v28  ;;  %v6324_v27 = vpack.c.bf16 %v14799_v25, %v14798_v11  ;;  %v16797_v31 = vpop.f32.mrb[100].mxu0 }
 0x1f0   :  { %v3102_v34 = vadd.f32 %v20313_v18, %v16797_v31  ;;  %v3093_v35 = vpop.f32.mrb[101].mxu0  ;;  %v18657_v31 = vld [vmem:[#allocation7 + $0x160] sm:$0xff]  }
 0x1f1   :  { %v6556_v17 = vmax.bf16 %v6325_v1, %v6324_v27  ;;  %v3094_v38 = vadd.f32 %v20313_v18, %v3093_v35  ;;  %v16798_v39 = vpop.f32.mrb[102].mxu0 }
 0x1f2   :  { %17302 = vmatpush3.bf16.msra.mxu1 %v18645_v23  ;;  %vm4842_vm10 = vcmp.ge.f32.partialorder %v3102_v34, 2.0  ;;  %v3105_v24 = vadd.f32 %v20313_v18, %v16798_v39  ;;  %v3096_v41 = vpop.f32.mrb[103].mxu0  ;;  %v18659_v23 = vld [vmem:[%s23603_s0 + $0x370] sm:$0xff]  }
 0x1f3   :  { %17307 = vmatprep.subr.bf16.mxu1 %v19402_v28  ;;  %v14804_v45 = vsel %vm4842_vm10, 1.0, %v19402_v28  ;;  %vm4840_vm11 = vcmp.ge.f32.partialorder %v3094_v38, 2.0  ;;  %v3097_v46 = vadd.f32 %v20313_v18, %v3096_v41  ;;  %v20338_v47 = vmax.bf16 %v6556_v17, %v20164_v49  ;;  %v18650_v49 = vld [vmem:[#allocation7 + $0x148] sm:$0xff]  }
 0x1f4   :  { %16904 = vmatmul.mubr.msk.bf16.gmra.mrb[208].mxu0 %vm1886_vm1, %v18648_v33  ;;  %v14802_v48 = vsel %vm4840_vm11, 1.0, %v19402_v28  ;;  %vm4843_vm12 = vcmp.ge.f32.partialorder %v3105_v24, 2.0  ;;  %v18658_v41 = vld [vmem:[#allocation7 + $0x168] sm:$0xff]  }
 0x1f5   :  { %17304 = vmatmul.mubr.bf16.vlgmr.msra.gmra.mrb[16].mxu1 %v20035_v26  ;;  %16907 = vmatprep.mubr.msk.bf16.mxu0 %vm1886_vm1, %v18651_v37  ;;  %v14805_v60 = vsel %vm4843_vm12, 1.0, %v19402_v28  ;;  %vm4841_vm13 = vcmp.ge.f32.partialorder %v3097_v46, 2.0  ;;  %v15230_v53 = vcombine.low %v20338_v47, %v20338_v47  ;;  %v15231_v54 = vcombine.high %v20338_v47, %v20338_v47 }
 0x1f6   :  { %17308 = vmatpush3.bf16.msra.mxu1 %v18649_v40  ;;  %17323 = vmatprep.mubr.msk.bf16.mxu1 %vm19403_vm2, %v19402_v28  ;;  %v6327_v56 = vpack.c.bf16 %v14805_v60, %v14804_v45  ;;  %v14803_v51 = vsel %vm4841_vm13, 1.0, %v19402_v28 }
 0x1f7   :  { %17309 = vmatprep.subr.bf16.mxu1 %v19402_v28  ;;  %v6326_v26 = vpack.c.bf16 %v14803_v51, %v14802_v48  ;;  %v16801_v57 = vpop.f32.mrb[104].mxu0  ;;  %7189 = vst.msk [vmem:[%s23608_s5 + $0x40] sm:$0xf] %vm7172_vm14, %v15230_v53  ;;  %7190 = vst.msk [vmem:[%s23608_s5 + $0x44] sm:$0xf] %vm7172_vm14, %v15231_v54  ;;  %v18660_v48 = vld [vmem:[%s23603_s0 + $0x378] sm:$0xff]  }
 0x1f8   :  { %v3118_v59 = vadd.f32 %v20313_v18, %v16801_v57  ;;  %v3109_v61 = vpop.f32.mrb[105].mxu0  ;;  %v18663_v54 = vld [vmem:[%s23603_s0 + $0x380] sm:$0xff]  }
 0x1f9   :  { %v6557_v63 = vmax.bf16 %v6327_v56, %v6326_v26  ;;  %v3110_v0 = vadd.f32 %v20313_v18, %v3109_v61  ;;  %v16802_v29 = vpop.f32.mrb[106].mxu0  ;;  %v18661_v26 = vld [vmem:[#allocation7 + $0x170] sm:$0xff]  }
 0x1fa   :  { %17310 = vmatpush3.bf16.msra.mxu1 %v18650_v49  ;;  %vm4846_vm15 = vcmp.ge.f32.partialorder %v3118_v59, 2.0  ;;  %v3121_v2 = vadd.f32 %v20313_v18, %v16802_v29  ;;  %v3112_v3 = vpop.f32.mrb[107].mxu0 }
 0x1fb   :  { %17311 = vmatprep.subr.bf16.mxu1 %v19402_v28  ;;  %v14808_v5 = vsel %vm4846_vm15, 1.0, %v19402_v28  ;;  %vm4844_vm0 = vcmp.ge.f32.partialorder %v3110_v0, 2.0  ;;  %v3113_v7 = vadd.f32 %v20313_v18, %v3112_v3  ;;  %v20375_v8 = vmax.bf16 %v6557_v63, %v20187_v4 }
 0x1fc   :  { %16908 = vmatmul.mubr.msk.bf16.gmra.mrb[212].mxu0 %vm1886_vm1, %v18652_v58  ;;  %v14806_v10 = vsel %vm4844_vm0, 1.0, %v19402_v28  ;;  %vm4847_vm3 = vcmp.ge.f32.partialorder %v3121_v2, 2.0  ;;  %v18662_v2 = vld [vmem:[#allocation7 + $0x178] sm:$0xff]  }
 0x1fd   :  { %16911 = vmatprep.mubr.msk.bf16.mxu0 %vm1886_vm1, %v18655_v62  ;;  %v14809_v12 = vsel %vm4847_vm3, 1.0, %v19402_v28  ;;  %vm4845_vm4 = vcmp.ge.f32.partialorder %v3113_v7, 2.0  ;;  %v15232_v15 = vcombine.low %v20375_v8, %v20375_v8  ;;  %v15233_v16 = vcombine.high %v20375_v8, %v20375_v8 }
 0x1fe   :  { %17312 = vmatpush3.bf16.msra.mxu1 %v18653_v42  ;;  %v6329_v4 = vpack.c.bf16 %v14809_v12, %v14808_v5  ;;  %v14807_v19 = vsel %vm4845_vm4, 1.0, %v19402_v28 }
 0x1ff   :  { %17313 = vmatprep.subr.bf16.mxu1 %v19402_v28  ;;  %v6328_v20 = vpack.c.bf16 %v14807_v19, %v14806_v10  ;;  %v16805_v21 = vpop.f32.mrb[108].mxu0  ;;  %7191 = vst.msk [vmem:[%s23608_s5 + $0x48] sm:$0xf] %vm7172_vm14, %v15232_v15  ;;  %7192 = vst.msk [vmem:[%s23608_s5 + $0x4c] sm:$0xf] %vm7172_vm14, %v15233_v16  ;;  %v18664_v10 = vld [vmem:[%s23603_s0 + $0x388] sm:$0xff]  }
 0x200   :  { %v3134_v11 = vadd.f32 %v20313_v18, %v16805_v21  ;;  %v3125_v43 = vpop.f32.mrb[109].mxu0  ;;  %v18667_v16 = vld [vmem:[%s23603_s0 + $0x390] sm:$0xff]  }
 0x201   :  { %v6558_v1 = vmax.bf16 %v6329_v4, %v6328_v20  ;;  %v3126_v25 = vadd.f32 %v20313_v18, %v3125_v43  ;;  %v16806_v27 = vpop.f32.mrb[110].mxu0  ;;  %v18665_v20 = vld [vmem:[#allocation7 + $0x180] sm:$0xff]  }
 0x202   :  { %17314 = vmatpush3.bf16.msra.mxu1 %v18654_v6  ;;  %vm4850_vm5 = vcmp.ge.f32.partialorder %v3134_v11, 2.0  ;;  %v3137_v33 = vadd.f32 %v20313_v18, %v16806_v27  ;;  %v3128_v34 = vpop.f32.mrb[111].mxu0 }
 0x203   :  { %17315 = vmatprep.subr.bf16.mxu1 %v19402_v28  ;;  %v14812_v35 = vsel %vm4850_vm5, 1.0, %v19402_v28  ;;  %vm4848_vm6 = vcmp.ge.f32.partialorder %v3126_v25, 2.0  ;;  %v3129_v37 = vadd.f32 %v20313_v18, %v3128_v34  ;;  %v20408_v17 = vmax.bf16 %v6558_v1, %v20207_v30 }
 0x204   :  { %16912 = vmatmul.mubr.msk.bf16.gmra.mrb[216].mxu0 %vm1886_vm1, %v18656_v22  ;;  %v14810_v38 = vsel %vm4848_vm6, 1.0, %v19402_v28  ;;  %vm4851_vm7 = vcmp.ge.f32.partialorder %v3137_v33, 2.0 }
 0x205   :  { %16915 = vmatprep.mubr.msk.bf16.mxu0 %vm1886_vm1, %v18659_v23  ;;  %v14813_v39 = vsel %vm4851_vm7, 1.0, %v19402_v28  ;;  %vm4849_vm8 = vcmp.ge.f32.partialorder %v3129_v37, 2.0  ;;  %v15234_v40 = vcombine.low %v20408_v17, %v20408_v17  ;;  %v15235_v24 = vcombine.high %v20408_v17, %v20408_v17  ;;  %v18668_v37 = vld [vmem:[%s23603_s0 + $0x398] sm:$0xff]  }
 0x206   :  { %17316 = vmatpush3.bf16.msra.mxu1 %v18657_v31  ;;  %v6331_v30 = vpack.c.bf16 %v14813_v39, %v14812_v35  ;;  %v14811_v44 = vsel %vm4849_vm8, 1.0, %v19402_v28 }
 0x207   :  { %17317 = vmatprep.subr.bf16.mxu1 %v19402_v28  ;;  %v6330_v45 = vpack.c.bf16 %v14811_v44, %v14810_v38  ;;  %v16809_v46 = vpop.f32.mrb[112].mxu0  ;;  %7193 = vst.msk [vmem:[%s23608_s5 + $0x50] sm:$0xf] %vm7172_vm14, %v15234_v40  ;;  %7194 = vst.msk [vmem:[%s23608_s5 + $0x54] sm:$0xf] %vm7172_vm14, %v15235_v24  ;;  %v18671_v40 = vld [vmem:[%s23603_s0 + $0x3a0] sm:$0xff]  }
 0x208   :  { %v3150_v60 = vadd.f32 %v20313_v18, %v16809_v46  ;;  %v3141_v53 = vpop.f32.mrb[113].mxu0  ;;  %v18669_v44 = vld [vmem:[#allocation7 + $0x190] sm:$0xff]  }
 0x209   :  { %v6559_v49 = vmax.bf16 %v6331_v30, %v6330_v45  ;;  %v3142_v56 = vadd.f32 %v20313_v18, %v3141_v53  ;;  %v16810_v51 = vpop.f32.mrb[114].mxu0 }
 0x20a   :  { %17318 = vmatpush3.bf16.msra.mxu1 %v18658_v41  ;;  %vm4854_vm9 = vcmp.ge.f32.partialorder %v3150_v60, 2.0  ;;  %v3153_v57 = vadd.f32 %v20313_v18, %v16810_v51  ;;  %v3144_v58 = vpop.f32.mrb[115].mxu0 }
 0x20b   :  { %17319 = vmatprep.subr.bf16.mxu1 %v19402_v28  ;;  %v14816_v59 = vsel %vm4854_vm9, 1.0, %v19402_v28  ;;  %vm4852_vm10 = vcmp.ge.f32.partialorder %v3142_v56, 2.0  ;;  %v3145_v61 = vadd.f32 %v20313_v18, %v3144_v58  ;;  %v20441_v62 = vmax.bf16 %v6559_v49, %v20227_v52 }
 0x20c   :  { %16916 = vmatmul.mubr.msk.bf16.gmra.mrb[220].mxu0 %vm1886_vm1, %v18660_v48  ;;  %v14814_v63 = vsel %vm4852_vm10, 1.0, %v19402_v28  ;;  %vm4855_vm11 = vcmp.ge.f32.partialorder %v3153_v57, 2.0 }
 0x20d   :  { %16919 = vmatprep.mubr.msk.bf16.mxu0 %vm1886_vm1, %v18663_v54  ;;  %v14817_v0 = vsel %vm4855_vm11, 1.0, %v19402_v28  ;;  %vm4853_vm12 = vcmp.ge.f32.partialorder %v3145_v61, 2.0  ;;  %v15236_v29 = vcombine.low %v20441_v62, %v20441_v62  ;;  %v15237_v42 = vcombine.high %v20441_v62, %v20441_v62  ;;  %v18672_v61 = vld [vmem:[%s23603_s0 + $0x3a8] sm:$0xff]  }
 0x20e   :  { %17320 = vmatpush3.bf16.msra.mxu1 %v18661_v26  ;;  %v6333_v52 = vpack.c.bf16 %v14817_v0, %v14816_v59  ;;  %v14815_v3 = vsel %vm4853_vm12, 1.0, %v19402_v28  ;;  %v18670_v26 = vld [vmem:[#allocation7 + $0x198] sm:$0xff]  }
 0x20f   :  { %17321 = vmatprep.subr.bf16.mxu1 %v19402_v28  ;;  %v6332_v5 = vpack.c.bf16 %v14815_v3, %v14814_v63  ;;  %v16813_v7 = vpop.f32.mrb[116].mxu0  ;;  %7195 = vst.msk [vmem:[%s23608_s5 + $0x58] sm:$0xf] %vm7172_vm14, %v15236_v29  ;;  %7196 = vst.msk [vmem:[%s23608_s5 + $0x5c] sm:$0xf] %vm7172_vm14, %v15237_v42  ;;  %v18675_v29 = vld [vmem:[%s23603_s0 + $0x3b0] sm:$0xff]  }
 0x210   :  { %v3166_v12 = vadd.f32 %v20313_v18, %v16813_v7  ;;  %v3157_v15 = vpop.f32.mrb[117].mxu0  ;;  %v18673_v3 = vld [vmem:[#allocation7 + $0x1a0] sm:$0xff]  }
 0x211   :  { %v6560_v6 = vmax.bf16 %v6333_v52, %v6332_v5  ;;  %v3158_v4 = vadd.f32 %v20313_v18, %v3157_v15  ;;  %v16814_v19 = vpop.f32.mrb[118].mxu0 }
 0x212   :  { %17322 = vmatpush3.bf16.msra.mxu1 %v18662_v2  ;;  %vm4858_vm13 = vcmp.ge.f32.partialorder %v3166_v12, 2.0  ;;  %v3169_v21 = vadd.f32 %v20313_v18, %v16814_v19  ;;  %v3160_v22 = vpop.f32.mrb[119].mxu0 }
 0x213   :  { %17327 = vmatprep.subr.bf16.mxu1 %v19402_v28  ;;  %v14820_v11 = vsel %vm4858_vm13, 1.0, %v19402_v28  ;;  %vm4856_vm15 = vcmp.ge.f32.partialorder %v3158_v4, 2.0  ;;  %v3161_v43 = vadd.f32 %v20313_v18, %v3160_v22  ;;  %v20474_v23 = vmax.bf16 %v6560_v6, %v20247_v14  ;;  %v18666_v14 = vld [vmem:[#allocation7 + $0x188] sm:$0xff]  }
 0x214   :  { %16920 = vmatmul.mubr.msk.bf16.gmra.mrb[224].mxu0 %vm1886_vm1, %v18664_v10  ;;  %v14818_v1 = vsel %vm4856_vm15, 1.0, %v19402_v28  ;;  %vm4859_vm0 = vcmp.ge.f32.partialorder %v3169_v21, 2.0 }
 0x215   :  { %17324 = vmatmul.mubr.bf16.vlgmr.msra.gmra.mrb[20].mxu1 %v20071_v50  ;;  %16923 = vmatprep.mubr.msk.bf16.mxu0 %vm1886_vm1, %v18667_v16  ;;  %v14821_v25 = vsel %vm4859_vm0, 1.0, %v19402_v28  ;;  %vm4857_vm3 = vcmp.ge.f32.partialorder %v3161_v43, 2.0  ;;  %v15238_v27 = vcombine.low %v20474_v23, %v20474_v23  ;;  %v15239_v31 = vcombine.high %v20474_v23, %v20474_v23  ;;  %v18674_v16 = vld [vmem:[#allocation7 + $0x1a8] sm:$0xff]  }
 0x216   :  { %17328 = vmatpush3.bf16.msra.mxu1 %v18665_v20  ;;  %17343 = vmatprep.mubr.msk.bf16.mxu1 %vm19403_vm2, %v19402_v28  ;;  %v6335_v33 = vpack.c.bf16 %v14821_v25, %v14820_v11  ;;  %v14819_v34 = vsel %vm4857_vm3, 1.0, %v19402_v28  ;;  %v18679_v11 = vld [vmem:[%s23603_s0 + $0x3c0] sm:$0xff]  }
 0x217   :  { %17329 = vmatprep.subr.bf16.mxu1 %v19402_v28  ;;  %v6334_v50 = vpack.c.bf16 %v14819_v34, %v14818_v1  ;;  %v16817_v35 = vpop.f32.mrb[120].mxu0  ;;  %7197 = vst.msk [vmem:[%s23608_s5 + $0x60] sm:$0xf] %vm7172_vm14, %v15238_v27  ;;  %7198 = vst.msk [vmem:[%s23608_s5 + $0x64] sm:$0xf] %vm7172_vm14, %v15239_v31  ;;  %v18677_v1 = vld [vmem:[#allocation7 + $0x1b0] sm:$0xff]  }
 0x218   :  { %v3182_v38 = vadd.f32 %v20313_v18, %v16817_v35  ;;  %v3173_v39 = vpop.f32.mrb[121].mxu0  ;;  %v18678_v27 = vld [vmem:[#allocation7 + $0x1b8] sm:$0xff]   ;;  %v18681_v34 = vld [vmem:[#allocation7 + $0x1c0] sm:$0xff]   ;;  %v18684_v35 = vld [vmem:[%s23603_s0 + $0x3d8] sm:$0xff]  }
 0x219   :  { %v6561_v24 = vmax.bf16 %v6335_v33, %v6334_v50  ;;  %v3174_v41 = vadd.f32 %v20313_v18, %v3173_v39  ;;  %v16818_v30 = vpop.f32.mrb[122].mxu0  ;;  %v18680_v33 = vld [vmem:[%s23603_s0 + $0x3c8] sm:$0xff]   ;;  %v18682_v50 = vld [vmem:[#allocation7 + $0x1c8] sm:$0xff]  }
 0x21a   :  { %17330 = vmatpush3.bf16.msra.mxu1 %v18666_v14  ;;  %vm4862_vm4 = vcmp.ge.f32.partialorder %v3182_v38, 2.0  ;;  %v3185_v45 = vadd.f32 %v20313_v18, %v16818_v30  ;;  %v3176_v46 = vpop.f32.mrb[123].mxu0  ;;  %v18685_v38 = vld [vmem:[#allocation7 + $0x1d0] sm:$0xff]   ;;  %v18688_v39 = vld [vmem:[%s23603_s0 + $0x3e8] sm:$0xff]  }
 0x21b   :  { %17331 = vmatprep.subr.bf16.mxu1 %v19402_v28  ;;  %v14824_v48 = vsel %vm4862_vm4, 1.0, %v19402_v28  ;;  %vm4860_vm5 = vcmp.ge.f32.partialorder %v3174_v41, 2.0  ;;  %v3177_v60 = vadd.f32 %v20313_v18, %v3176_v46  ;;  %v20510_v53 = vmax.bf16 %v6561_v24, %v20270_v32  ;;  %v18689_v24 = vld [vmem:[#allocation7 + $0x1e0] sm:$0xff]   ;;  %v18690_v41 = vld [vmem:[#allocation7 + $0x1e8] sm:$0xff]   ;;  %v18695_v46 = vld [vmem:[%s23603_s0 + $0x400] sm:$0xff]  }
 0x21c   :  { %16924 = vmatmul.mubr.msk.bf16.gmra.mrb[228].mxu0 %vm1886_vm1, %v18668_v37  ;;  %v14822_v54 = vsel %vm4860_vm5, 1.0, %v19402_v28  ;;  %vm4863_vm6 = vcmp.ge.f32.partialorder %v3185_v45, 2.0  ;;  %v18687_v37 = vld [vmem:[%s23603_s0 + $0x3e0] sm:$0xff]  }
 0x21d   :  { %16927 = vmatprep.mubr.msk.bf16.mxu0 %vm1886_vm1, %v18671_v40  ;;  %v14825_v49 = vsel %vm4863_vm6, 1.0, %v19402_v28  ;;  %vm4861_vm7 = vcmp.ge.f32.partialorder %v3177_v60, 2.0  ;;  %v15240_v56 = vcombine.low %v20510_v53, %v20510_v53  ;;  %v15241_v51 = vcombine.high %v20510_v53, %v20510_v53  ;;  %v18691_v40 = vld [vmem:[%s23603_s0 + $0x3f0] sm:$0xff]   ;;  %v18693_v60 = vld [vmem:[#allocation7 + $0x1f0] sm:$0xff]  }
 0x21e   :  { %17332 = vmatpush3.bf16.msra.mxu1 %v18669_v44  ;;  %v6337_v32 = vpack.c.bf16 %v14825_v49, %v14824_v48  ;;  %v14823_v57 = vsel %vm4861_vm7, 1.0, %v19402_v28  ;;  %v18692_v44 = vld [vmem:[%s23603_s0 + $0x3f8] sm:$0xff]   ;;  %v18694_v49 = vld [vmem:[#allocation7 + $0x1f8] sm:$0xff]  }
 0x21f   :  { %17333 = vmatprep.subr.bf16.mxu1 %v19402_v28  ;;  %v6336_v58 = vpack.c.bf16 %v14823_v57, %v14822_v54  ;;  %v16821_v59 = vpop.f32.mrb[124].mxu0  ;;  %7199 = vst.msk [vmem:[%s23608_s5 + $0x68] sm:$0xf] %vm7172_vm14, %v15240_v56  ;;  %7200 = vst.msk [vmem:[%s23608_s5 + $0x6c] sm:$0xf] %vm7172_vm14, %v15241_v51  ;;  %v18696_v56 = vld [vmem:[%s23603_s0 + $0x408] sm:$0xff]  }
 0x220   :  { %v3198_v63 = vadd.f32 %v20313_v18, %v16821_v59  ;;  %v3189_v0 = vpop.f32.mrb[125].mxu0  ;;  %v18699_v51 = vld [vmem:[%s23603_s0 + $0x410] sm:$0xff]   ;;  %v18700_v57 = vld [vmem:[%s23603_s0 + $0x418] sm:$0xff]  }
 0x221   :  { %v6562_v42 = vmax.bf16 %v6337_v32, %v6336_v58  ;;  %v3190_v2 = vadd.f32 %v20313_v18, %v3189_v0  ;;  %v16822_v52 = vpop.f32.mrb[126].mxu0  ;;  %v18698_v32 = vld [vmem:[#allocation7 + $0x208] sm:$0xff]   ;;  %v18703_v58 = vld [vmem:[%s23603_s0 + $0x420] sm:$0xff]   ;;  %v18705_v0 = vld [vmem:[#allocation7 + $0x220] sm:$0xff]  }
 0x222   :  { %17334 = vmatpush3.bf16.msra.mxu1 %v18670_v26  ;;  %vm4866_vm8 = vcmp.ge.f32.partialorder %v3198_v63, 2.0  ;;  %v3201_v5 = vadd.f32 %v20313_v18, %v16822_v52  ;;  %v3192_v7 = vpop.f32.mrb[127].mxu0  ;;  %v18697_v26 = vld [vmem:[#allocation7 + $0x200] sm:$0xff]   ;;  %v18701_v59 = vld [vmem:[#allocation7 + $0x210] sm:$0xff]  }
 0x223   :  { %17335 = vmatprep.subr.bf16.mxu1 %v19402_v28  ;;  %v14828_v10 = vsel %vm4866_vm8, 1.0, %v19402_v28  ;;  %vm4864_vm9 = vcmp.ge.f32.partialorder %v3190_v2, 2.0  ;;  %v3193_v12 = vadd.f32 %v20313_v18, %v3192_v7  ;;  %v20543_v15 = vmax.bf16 %v6562_v42, %v20290_v55  ;;  %v18676_v55 = vld [vmem:[%s23603_s0 + $0x3b8] sm:$0xff]   ;;  %v18707_v63 = vld [vmem:[%s23603_s0 + $0x430] sm:$0xff]  }
 0x224   :  { %16928 = vmatmul.mubr.msk.bf16.gmra.mrb[232].mxu0 %vm1886_vm1, %v18672_v61  ;;  %v14826_v6 = vsel %vm4864_vm9, 1.0, %v19402_v28  ;;  %vm4867_vm10 = vcmp.ge.f32.partialorder %v3201_v5, 2.0  ;;  %v18704_v61 = vld [vmem:[%s23603_s0 + $0x428] sm:$0xff]   ;;  %v18708_v2 = vld [vmem:[%s23603_s0 + $0x438] sm:$0xff]   ;;  %v18711_v5 = vld [vmem:[%s23603_s0 + $0x440] sm:$0xff]  }
 0x225   :  { %16931 = vmatprep.mubr.msk.bf16.mxu0 %vm1886_vm1, %v18675_v29  ;;  %v14829_v4 = vsel %vm4867_vm10, 1.0, %v19402_v28  ;;  %vm4865_vm11 = vcmp.ge.f32.partialorder %v3193_v12, 2.0  ;;  %v15242_v19 = vcombine.low %v20543_v15, %v20543_v15  ;;  %v15243_v18 = vcombine.high %v20543_v15, %v20543_v15  ;;  %v18706_v29 = vld [vmem:[#allocation7 + $0x228] sm:$0xff]  }
 0x226   :  { %17336 = vmatpush3.bf16.msra.mxu1 %v18673_v3  ;;  %v6339_v20 = vpack.c.bf16 %v14829_v4, %v14828_v10  ;;  %v14827_v21 = vsel %vm4865_vm11, 1.0, %v19402_v28  ;;  %v18709_v10 = vld [vmem:[#allocation7 + $0x230] sm:$0xff]   ;;  %v18713_v4 = vld [vmem:[%s23603_s0 + $0x448] sm:$0xff]  }
 0x227   :  { %17337 = vmatprep.subr.bf16.mxu1 %v19402_v28  ;;  %v6338_v22 = vpack.c.bf16 %v14827_v21, %v14826_v6  ;;  %7201 = vst.msk [vmem:[%s23608_s5 + $0x70] sm:$0xf] %vm7172_vm14, %v15242_v19  ;;  %7202 = vst.msk [vmem:[%s23608_s5 + $0x74] sm:$0xf] %vm7172_vm14, %v15243_v18  ;;  %v18710_v6 = vld [vmem:[#allocation7 + $0x238] sm:$0xff]   ;;  %v18716_v19 = vld [vmem:[%s23603_s0 + $0x450] sm:$0xff]  }
 0x228   :  { %v18714_v18 = vld [vmem:[#allocation7 + $0x240] sm:$0xff]   ;;  %v18717_v21 = vld [vmem:[%s23603_s0 + $0x458] sm:$0xff]  }
 0x229   :  { %v6563_v43 = vmax.bf16 %v6339_v20, %v6338_v22  ;;  %v18715_v20 = vld [vmem:[#allocation7 + $0x248] sm:$0xff]   ;;  %v18720_v22 = vld [vmem:[%s23603_s0 + $0x460] sm:$0xff]  }
 0x22a   :  { %17338 = vmatpush3.bf16.msra.mxu1 %v18674_v16 }
 0x22b   :  { %17339 = vmatprep.subr.bf16.mxu1 %v19402_v28  ;;  %v20571_v25 = vmax.bf16 %v6563_v43, %v20310_v13  ;;  %v18683_v13 = vld [vmem:[%s23603_s0 + $0x3d0] sm:$0xff]   ;;  %v18721_v43 = vld [vmem:[%s23603_s0 + $0x468] sm:$0xff]  }
 0x22c   :  { %16932 = vmatmul.mubr.msk.bf16.gmra.mrb[236].mxu0 %vm1886_vm1, %v18676_v55  ;;  %v18777_v55 = vld [vmem:[#allocation7 + $0x818] sm:$0xff]  }
 0x22d   :  { %16935 = vmatprep.mubr.msk.bf16.mxu0 %vm1886_vm1, %v18679_v11  ;;  %v15244_v31 = vcombine.low %v20571_v25, %v20571_v25  ;;  %v15245_v14 = vcombine.high %v20571_v25, %v20571_v25  ;;  %17854 = vmatpush3.bf16.msra.mxu0 %v18777_v55  ;;  %v18719_v11 = vld [vmem:[#allocation7 + $0x258] sm:$0xff]  }
 0x22e   :  { %17340 = vmatpush3.bf16.msra.mxu1 %v18677_v1  ;;  %17855 = vmatprep.subr.bf16.mxu0 %v19402_v28  ;;  %v18724_v1 = vld [vmem:[%s23603_s0 + $0x470] sm:$0xff]  }
 0x22f   :  { %17341 = vmatprep.subr.bf16.mxu1 %v19402_v28  ;;  %7203 = vst.msk [vmem:[%s23608_s5 + $0x78] sm:$0xf] %vm7172_vm14, %v15244_v31  ;;  %7204 = vst.msk [vmem:[%s23608_s5 + $0x7c] sm:$0xf] %vm7172_vm14, %v15245_v14  ;;  %v16825_v31 = vpop.f32.mrb[128].mxu0 }
 0x230   :  { %v20709_v14 = vld [vmem:[#allocation5] ss:$0 sm:$0xff] }
 0x232   :  { %17342 = vmatpush3.bf16.msra.mxu1 %v18678_v27  ;;  %v18722_v27 = vld [vmem:[#allocation7 + $0x260] sm:$0xff]  }
 0x233   :  { %17347 = vmatprep.subr.bf16.mxu1 %v19402_v28 }
 0x234   :  { %16936 = vmatmul.mubr.msk.bf16.gmra.mrb[240].mxu0 %vm1886_vm1, %v18680_v33  ;;  %v3214_v33 = vadd.f32 %v20709_v14, %v16825_v31 }
 0x235   :  { %17344 = vmatmul.mubr.bf16.vlgmr.msra.gmra.mrb[24].mxu1 %v20104_v9  ;;  %16939 = vmatprep.mubr.msk.bf16.mxu0 %vm1886_vm1, %v18683_v13  ;;  %v18686_v9 = vld [vmem:[#allocation7 + $0x1d8] sm:$0xff]   ;;  %v3205_v13 = vpop.f32.mrb[129].mxu0 }
 0x236   :  { %17348 = vmatpush3.bf16.msra.mxu1 %v18681_v34  ;;  %17363 = vmatprep.mubr.msk.bf16.mxu1 %vm19403_vm2, %v19402_v28  ;;  %vm4870_vm12 = vcmp.ge.f32.partialorder %v3214_v33, 2.0  ;;  %v3206_v34 = vadd.f32 %v20709_v14, %v3205_v13 }
 0x237   :  { %17349 = vmatprep.subr.bf16.mxu1 %v19402_v28 }
 0x238   :  { %vm4868_vm13 = vcmp.ge.f32.partialorder %v3206_v34, 2.0 }
 0x23a   :  { %17350 = vmatpush3.bf16.msra.mxu1 %v18682_v50  ;;  %v18723_v50 = vld [vmem:[#allocation7 + $0x268] sm:$0xff]  }
 0x23b   :  { %17351 = vmatprep.subr.bf16.mxu1 %v19402_v28 }
 0x23c   :  { %16940 = vmatmul.mubr.msk.bf16.gmra.mrb[244].mxu0 %vm1886_vm1, %v18684_v35  ;;  %v16826_v35 = vpop.f32.mrb[130].mxu0 }
 0x23d   :  { %16943 = vmatprep.mubr.msk.bf16.mxu0 %vm1886_vm1, %v18687_v37  ;;  %v3217_v37 = vadd.f32 %v20709_v14, %v16826_v35 }
 0x23e   :  { %17352 = vmatpush3.bf16.msra.mxu1 %v18685_v38  ;;  %v3208_v38 = vpop.f32.mrb[131].mxu0 }
 0x23f   :  { %17353 = vmatprep.subr.bf16.mxu1 %v19402_v28  ;;  %vm4871_vm15 = vcmp.ge.f32.partialorder %v3217_v37, 2.0 }
 0x242   :  { %17354 = vmatpush3.bf16.msra.mxu1 %v18686_v9 }
 0x243   :  { %17355 = vmatprep.subr.bf16.mxu1 %v19402_v28 }
 0x244   :  { %16944 = vmatmul.mubr.msk.bf16.gmra.mrb[248].mxu0 %vm1886_vm1, %v18688_v39  ;;  %v18725_v39 = vld [vmem:[%s23603_s0 + $0x478] sm:$0xff]  }
 0x245   :  { %16947 = vmatprep.mubr.msk.bf16.mxu0 %vm1886_vm1, %v18691_v40  ;;  %v18728_v40 = vld [vmem:[%s23603_s0 + $0x480] sm:$0xff]  }
 0x246   :  { %17356 = vmatpush3.bf16.msra.mxu1 %v18689_v24  ;;  %v14832_v24 = vsel %vm4870_vm12, 1.0, %v19402_v28 }
 0x247   :  { %17357 = vmatprep.subr.bf16.mxu1 %v19402_v28 }
 0x248   :  { %v8407_v30 = vpop.f32.mrb[0].mxu1 }
 0x249   :  { %v17225_v45 = vpop.f32.mrb[1].mxu1 }
 0x24a   :  { %17358 = vmatpush3.bf16.msra.mxu1 %v18690_v41  ;;  %v8410_v48 = vpop.f32.mrb[2].mxu1  ;;  %v3209_v41 = vadd.f32 %v20709_v14, %v3208_v38  ;;  %v14830_v45 = vsel %vm4868_vm13, 1.0, %v19402_v28 }
 0x24b   :  { %v17226_v54 = vpop.f32.mrb[3].mxu1  ;;  %17359 = vmatprep.subr.bf16.mxu1 %v19402_v28 }
 0x24c   :  { %16948 = vmatmul.mubr.msk.bf16.gmra.mrb[252].mxu0 %vm1886_vm1, %v18692_v44  ;;  %v14833_v54 = vsel %vm4871_vm15, 1.0, %v19402_v28  ;;  %vm4869_vm0 = vcmp.ge.f32.partialorder %v3209_v41, 2.0 }
 0x24d   :  { %16951 = vmatprep.mubr.msk.bf16.mxu0 %vm1886_vm1, %v18695_v46  ;;  %v16829_v46 = vpop.f32.mrb[132].mxu0 }
 0x24e   :  { %17360 = vmatpush3.bf16.msra.mxu1 %v18693_v60  ;;  %v18726_v60 = vld [vmem:[#allocation7 + $0x270] sm:$0xff]  }
 0x24f   :  { %17361 = vmatprep.subr.bf16.mxu1 %v19402_v28 }
 0x252   :  { %17362 = vmatpush3.bf16.msra.mxu1 %v18694_v49  ;;  %v3230_v49 = vadd.f32 %v20709_v14, %v16829_v46 }
 0x253   :  { %17367 = vmatprep.subr.bf16.mxu1 %v19402_v28 }
 0x254   :  { %16952 = vmatmul.mubr.msk.bf16.gmra.mrb[0].mxu0 %vm1886_vm1, %v18696_v56  ;;  %v3221_v56 = vpop.f32.mrb[133].mxu0  ;;  %vm4874_vm3 = vcmp.ge.f32.partialorder %v3230_v49, 2.0 }
 0x255   :  { %17364 = vmatmul.mubr.bf16.vlgmr.msra.gmra.mrb[28].mxu1 %v20137_v36  ;;  %16955 = vmatprep.mubr.msk.bf16.mxu0 %vm1886_vm1, %v18699_v51  ;;  %v18702_v36 = vld [vmem:[#allocation7 + $0x218] sm:$0xff]  }
 0x256   :  { %17368 = vmatpush3.bf16.msra.mxu1 %v18697_v26  ;;  %17383 = vmatprep.mubr.msk.bf16.mxu1 %vm19403_vm2, %v19402_v28 }
 0x257   :  { %17369 = vmatprep.subr.bf16.mxu1 %v19402_v28 }
 0x25a   :  { %17370 = vmatpush3.bf16.msra.mxu1 %v18698_v32  ;;  %v6341_v32 = vpack.c.bf16 %v14833_v54, %v14832_v24 }
 0x25b   :  { %17371 = vmatprep.subr.bf16.mxu1 %v19402_v28 }
 0x25c   :  { %16956 = vmatmul.mubr.msk.bf16.gmra.mrb[4].mxu0 %vm1886_vm1, %v18700_v57  ;;  %v14831_v57 = vsel %vm4869_vm0, 1.0, %v19402_v28 }
 0x25d   :  { %16959 = vmatprep.mubr.msk.bf16.mxu0 %vm1886_vm1, %v18703_v58  ;;  %v3222_v58 = vadd.f32 %v20709_v14, %v3221_v56  ;;  %v18733_v56 = vld [vmem:[%s23603_s0 + $0x498] sm:$0xff]  }
 0x25e   :  { %17372 = vmatpush3.bf16.msra.mxu1 %v18701_v59  ;;  %v16830_v59 = vpop.f32.mrb[134].mxu0 }
 0x25f   :  { %17373 = vmatprep.subr.bf16.mxu1 %v19402_v28  ;;  %vm4872_vm4 = vcmp.ge.f32.partialorder %v3222_v58, 2.0 }
 0x262   :  { %17374 = vmatpush3.bf16.msra.mxu1 %v18702_v36  ;;  %v6340_v36 = vpack.c.bf16 %v14831_v57, %v14830_v45 }
 0x263   :  { %17375 = vmatprep.subr.bf16.mxu1 %v19402_v28 }
 0x264   :  { %16960 = vmatmul.mubr.msk.bf16.gmra.mrb[8].mxu0 %vm1886_vm1, %v18704_v61  ;;  %v3233_v61 = vadd.f32 %v20709_v14, %v16830_v59  ;;  %v18736_v59 = vld [vmem:[%s23603_s0 + $0x4a0] sm:$0xff]  }
 0x265   :  { %16963 = vmatprep.mubr.msk.bf16.mxu0 %vm1886_vm1, %v18707_v63  ;;  %v3224_v63 = vpop.f32.mrb[135].mxu0 }
 0x266   :  { %17376 = vmatpush3.bf16.msra.mxu1 %v18705_v0  ;;  %v14836_v0 = vsel %vm4874_vm3, 1.0, %v19402_v28  ;;  %vm4875_vm5 = vcmp.ge.f32.partialorder %v3233_v61, 2.0 }
 0x267   :  { %17377 = vmatprep.subr.bf16.mxu1 %v19402_v28 }
 0x268   :  { %v8496_v42 = vpop.f32.mrb[4].mxu1 }
 0x269   :  { %v20667_v52 = vadd.f32 %v8496_v42, %v8407_v30  ;;  %v17245_v3 = vpop.f32.mrb[5].mxu1  ;;  %v16833_v42 = vpop.f32.mrb[136].mxu0 }
 0x26a   :  { %v8499_v7 = vpop.f32.mrb[6].mxu1  ;;  %17378 = vmatpush3.bf16.msra.mxu1 %v18706_v29  ;;  %v3225_v29 = vadd.f32 %v20709_v14, %v3224_v63  ;;  %v14834_v3 = vsel %vm4872_vm4, 1.0, %v19402_v28 }
 0x26b   :  { %v20672_v12 = vadd.f32 %v8499_v7, %v8410_v48  ;;  %v17246_v16 = vpop.f32.mrb[7].mxu1  ;;  %17379 = vmatprep.subr.bf16.mxu1 %v19402_v28  ;;  %v3237_v7 = vpop.f32.mrb[137].mxu0 }
 0x26c   :  { %16964 = vmatmul.mubr.msk.bf16.gmra.mrb[12].mxu0 %vm1886_vm1, %v18708_v2  ;;  %v18727_v2 = vld [vmem:[#allocation7 + $0x278] sm:$0xff]   ;;  %vm4873_vm6 = vcmp.ge.f32.partialorder %v3225_v29, 2.0  ;;  %v16834_v16 = vpop.f32.mrb[138].mxu0  ;;  %v18734_v29 = vld [vmem:[#allocation7 + $0x290] sm:$0xff]  }
 0x26d   :  { %16967 = vmatprep.mubr.msk.bf16.mxu0 %vm1886_vm1, %v18711_v5  ;;  %v3246_v5 = vadd.f32 %v20709_v14, %v16833_v42  ;;  %v3240_v55 = vpop.f32.mrb[139].mxu0 }
 0x26e   :  { %17380 = vmatpush3.bf16.msra.mxu1 %v18709_v10  ;;  %v14837_v10 = vsel %vm4875_vm5, 1.0, %v19402_v28 }
 0x26f   :  { %17381 = vmatprep.subr.bf16.mxu1 %v19402_v28  ;;  %vm4878_vm7 = vcmp.ge.f32.partialorder %v3246_v5, 2.0 }
 0x272   :  { %17382 = vmatpush3.bf16.msra.mxu1 %v18710_v6  ;;  %v18729_v6 = vld [vmem:[%s23603_s0 + $0x488] sm:$0xff]  }
 0x273   :  { %17387 = vmatprep.subr.bf16.mxu1 %v19402_v28 }
 0x274   :  { %16968 = vmatmul.mubr.msk.bf16.gmra.mrb[16].mxu0 %vm1886_vm1, %v18713_v4  ;;  %v6343_v4 = vpack.c.bf16 %v14837_v10, %v14836_v0 }
 0x275   :  { %17384 = vmatmul.mubr.bf16.vlgmr.msra.gmra.mrb[32].mxu1 %v20338_v47  ;;  %16971 = vmatprep.mubr.msk.bf16.mxu0 %vm1886_vm1, %v18716_v19  ;;  %v18718_v47 = vld [vmem:[#allocation7 + $0x250] sm:$0xff]   ;;  %v14835_v19 = vsel %vm4873_vm6, 1.0, %v19402_v28 }
 0x276   :  { %17388 = vmatpush3.bf16.msra.mxu1 %v18714_v18  ;;  %17403 = vmatprep.mubr.msk.bf16.mxu1 %vm19403_vm2, %v19402_v28  ;;  %v3249_v18 = vadd.f32 %v20709_v14, %v16834_v16 }
 0x277   :  { %17389 = vmatprep.subr.bf16.mxu1 %v19402_v28 }
 0x278   :  { %vm4879_vm9 = vcmp.ge.f32.partialorder %v3249_v18, 2.0 }
 0x279   :  { %v14841_v13 = vsel %vm4879_vm9, 1.0, %v19402_v28 }
 0x27a   :  { %17390 = vmatpush3.bf16.msra.mxu1 %v18715_v20  ;;  %v18732_v20 = vld [vmem:[%s23603_s0 + $0x490] sm:$0xff]  }
 0x27b   :  { %17391 = vmatprep.subr.bf16.mxu1 %v19402_v28 }
 0x27c   :  { %16972 = vmatmul.mubr.msk.bf16.gmra.mrb[20].mxu0 %vm1886_vm1, %v18717_v21  ;;  %v6342_v21 = vpack.c.bf16 %v14835_v19, %v14834_v3 }
 0x27d   :  { %16975 = vmatprep.mubr.msk.bf16.mxu0 %vm1886_vm1, %v18720_v22  ;;  %v14840_v22 = vsel %vm4878_vm7, 1.0, %v19402_v28 }
 0x27e   :  { %17392 = vmatpush3.bf16.msra.mxu1 %v18718_v47  ;;  %v3241_v47 = vadd.f32 %v20709_v14, %v3240_v55  ;;  %v20762_v33 = vmax.bf16 %v6343_v4, %v6342_v21  ;;  %v6345_v35 = vpack.c.bf16 %v14841_v13, %v14840_v22  ;;  %v18735_v22 = vld [vmem:[#allocation7 + $0x298] sm:$0xff]  }
 0x27f   :  { %17393 = vmatprep.subr.bf16.mxu1 %v19402_v28 }
 0x280   :  { %vm4877_vm10 = vcmp.ge.f32.partialorder %v3241_v47, 2.0 }
 0x281   :  { %v14839_v37 = vsel %vm4877_vm10, 1.0, %v19402_v28 }
 0x282   :  { %17394 = vmatpush3.bf16.msra.mxu1 %v18719_v11  ;;  %v16837_v11 = vpop.f32.mrb[140].mxu0 }
 0x283   :  { %17395 = vmatprep.subr.bf16.mxu1 %v19402_v28  ;;  %v3253_v31 = vpop.f32.mrb[141].mxu0 }
 0x284   :  { %16976 = vmatmul.mubr.msk.bf16.gmra.mrb[24].mxu0 %vm1886_vm1, %v18721_v43  ;;  %v18730_v43 = vld [vmem:[#allocation7 + $0x280] sm:$0xff]   ;;  %v3254_v34 = vadd.f32 %v20709_v14, %v3253_v31 }
 0x285   :  { %16979 = vmatprep.mubr.msk.bf16.mxu0 %vm1886_vm1, %v18724_v1 }
 0x286   :  { %17396 = vmatpush3.bf16.msra.mxu1 %v18722_v27  ;;  %v3262_v27 = vadd.f32 %v20709_v14, %v16837_v11  ;;  %vm4880_vm12 = vcmp.ge.f32.partialorder %v3254_v34, 2.0  ;;  %v18737_v34 = vld [vmem:[%s23603_s0 + $0x4a8] sm:$0xff]  }
 0x287   :  { %17397 = vmatprep.subr.bf16.mxu1 %v19402_v28  ;;  %v14842_v45 = vsel %vm4880_vm12, 1.0, %v19402_v28 }
 0x288   :  { %v8585_v9 = vpop.f32.mrb[8].mxu1  ;;  %vm4882_vm11 = vcmp.ge.f32.partialorder %v3262_v27, 2.0 }
 0x289   :  { %v20726_v30 = vadd.f32 %v20667_v52, %v8585_v9  ;;  %v17265_v44 = vpop.f32.mrb[9].mxu1  ;;  %v20742_v52 = vmax.bf16 %v6341_v32, %v6340_v36 }
 0x28a   :  { %v8588_v48 = vpop.f32.mrb[10].mxu1  ;;  %17398 = vmatpush3.bf16.msra.mxu1 %v18723_v50  ;;  %v16838_v50 = vpop.f32.mrb[142].mxu0  ;;  %v18731_v44 = vld [vmem:[#allocation7 + $0x288] sm:$0xff]  }
 0x28b   :  { %v20732_v51 = vadd.f32 %v20672_v12, %v8588_v48  ;;  %v17266_v26 = vpop.f32.mrb[11].mxu1  ;;  %17399 = vmatprep.subr.bf16.mxu1 %v19402_v28  ;;  %v3238_v12 = vadd.f32 %v20709_v14, %v3237_v7  ;;  %v3265_v38 = vadd.f32 %v20709_v14, %v16838_v50  ;;  %v3256_v9 = vpop.f32.mrb[143].mxu0 }
 0x28c   :  { %16980 = vmatmul.mubr.msk.bf16.gmra.mrb[28].mxu0 %vm1886_vm1, %v18725_v39  ;;  %v3257_v24 = vadd.f32 %v20709_v14, %v3256_v9  ;;  %v16841_v41 = vpop.f32.mrb[144].mxu0  ;;  %v18740_v9 = vld [vmem:[%s23603_s0 + $0x4b0] sm:$0xff]  }
 0x28d   :  { %16983 = vmatprep.mubr.msk.bf16.mxu0 %vm1886_vm1, %v18728_v40  ;;  %vm4876_vm8 = vcmp.ge.f32.partialorder %v3238_v12, 2.0  ;;  %v14844_v40 = vsel %vm4882_vm11, 1.0, %v19402_v28  ;;  %vm4883_vm13 = vcmp.ge.f32.partialorder %v3265_v38, 2.0  ;;  %v3278_v46 = vadd.f32 %v20709_v14, %v16841_v41 }
 0x28e   :  { %17400 = vmatpush3.bf16.msra.mxu1 %v18726_v60  ;;  %v14838_v1 = vsel %vm4876_vm8, 1.0, %v19402_v28  ;;  %v14845_v60 = vsel %vm4883_vm13, 1.0, %v19402_v28  ;;  %vm4881_vm15 = vcmp.ge.f32.partialorder %v3257_v24, 2.0 }
 0x28f   :  { %17401 = vmatprep.subr.bf16.mxu1 %v19402_v28  ;;  %v6344_v39 = vpack.c.bf16 %v14839_v37, %v14838_v1  ;;  %v6347_v26 = vpack.c.bf16 %v14845_v60, %v14844_v40  ;;  %v14843_v32 = vsel %vm4881_vm15, 1.0, %v19402_v28  ;;  %vm4886_vm0 = vcmp.ge.f32.partialorder %v3278_v46, 2.0 }
 0x290   :  { %v6346_v36 = vpack.c.bf16 %v14843_v32, %v14842_v45  ;;  %v14848_v61 = vsel %vm4886_vm0, 1.0, %v19402_v28 }
 0x291   :  { %v20778_v48 = vmax.bf16 %v6345_v35, %v6344_v39 }
 0x292   :  { %17402 = vmatpush3.bf16.msra.mxu1 %v18727_v2  ;;  %v20795_v5 = vmax.bf16 %v6347_v26, %v6346_v36 }
 0x293   :  { %17407 = vmatprep.subr.bf16.mxu1 %v19402_v28 }
 0x294   :  { %16984 = vmatmul.mubr.msk.bf16.gmra.mrb[32].mxu0 %vm1886_vm1, %v18729_v6 }
 0x295   :  { %17404 = vmatmul.mubr.bf16.vlgmr.msra.gmra.mrb[36].mxu1 %v20375_v8  ;;  %16987 = vmatprep.mubr.msk.bf16.mxu0 %vm1886_vm1, %v18732_v20  ;;  %v3269_v8 = vpop.f32.mrb[145].mxu0 }
 0x296   :  { %17408 = vmatpush3.bf16.msra.mxu1 %v18730_v43  ;;  %17423 = vmatprep.mubr.msk.bf16.mxu1 %vm19403_vm2, %v19402_v28  ;;  %v3270_v54 = vadd.f32 %v20709_v14, %v3269_v8  ;;  %v16842_v49 = vpop.f32.mrb[146].mxu0 }
 0x297   :  { %17409 = vmatprep.subr.bf16.mxu1 %v19402_v28  ;;  %v3281_v57 = vadd.f32 %v20709_v14, %v16842_v49  ;;  %v3272_v58 = vpop.f32.mrb[147].mxu0 }
 0x298   :  { %vm4884_vm3 = vcmp.ge.f32.partialorder %v3270_v54, 2.0  ;;  %v3273_v63 = vadd.f32 %v20709_v14, %v3272_v58  ;;  %v16845_v0 = vpop.f32.mrb[148].mxu0 }
 0x299   :  { %v14846_v42 = vsel %vm4884_vm3, 1.0, %v19402_v28  ;;  %vm4887_vm4 = vcmp.ge.f32.partialorder %v3281_v57, 2.0  ;;  %v3294_v2 = vadd.f32 %v20709_v14, %v16845_v0  ;;  %v3285_v3 = vpop.f32.mrb[149].mxu0  ;;  %v18739_v0 = vld [vmem:[#allocation7 + $0x2a8] sm:$0xff]  }
 0x29a   :  { %17410 = vmatpush3.bf16.msra.mxu1 %v18731_v44  ;;  %v14849_v7 = vsel %vm4887_vm4, 1.0, %v19402_v28  ;;  %vm4885_vm5 = vcmp.ge.f32.partialorder %v3273_v63, 2.0  ;;  %v3286_v10 = vadd.f32 %v20709_v14, %v3285_v3  ;;  %v16846_v12 = vpop.f32.mrb[150].mxu0  ;;  %v18738_v44 = vld [vmem:[#allocation7 + $0x2a0] sm:$0xff]  }
 0x29b   :  { %17411 = vmatprep.subr.bf16.mxu1 %v19402_v28  ;;  %v6349_v16 = vpack.c.bf16 %v14849_v7, %v14848_v61  ;;  %v14847_v6 = vsel %vm4885_vm5, 1.0, %v19402_v28  ;;  %vm4890_vm6 = vcmp.ge.f32.partialorder %v3294_v2, 2.0  ;;  %v3297_v4 = vadd.f32 %v20709_v14, %v16846_v12  ;;  %v3288_v19 = vpop.f32.mrb[151].mxu0 }
 0x29c   :  { %16988 = vmatmul.mubr.msk.bf16.gmra.mrb[36].mxu0 %vm1886_vm1, %v18733_v56  ;;  %v6348_v18 = vpack.c.bf16 %v14847_v6, %v14846_v42  ;;  %v14852_v55 = vsel %vm4890_vm6, 1.0, %v19402_v28  ;;  %vm4888_vm7 = vcmp.ge.f32.partialorder %v3286_v10, 2.0  ;;  %v3289_v20 = vadd.f32 %v20709_v14, %v3288_v19  ;;  %v16849_v21 = vpop.f32.mrb[152].mxu0  ;;  %v18741_v6 = vld [vmem:[%s23603_s0 + $0x4b8] sm:$0xff]  }
 0x29d   :  { %16991 = vmatprep.mubr.msk.bf16.mxu0 %vm1886_vm1, %v18736_v59  ;;  %v14850_v47 = vsel %vm4888_vm7, 1.0, %v19402_v28  ;;  %vm4891_vm8 = vcmp.ge.f32.partialorder %v3297_v4, 2.0  ;;  %v3310_v11 = vadd.f32 %v20709_v14, %v16849_v21  ;;  %v3301_v43 = vpop.f32.mrb[153].mxu0 }
 0x29e   :  { %17412 = vmatpush3.bf16.msra.mxu1 %v18734_v29  ;;  %v20808_v1 = vmax.bf16 %v6349_v16, %v6348_v18  ;;  %v14853_v27 = vsel %vm4891_vm8, 1.0, %v19402_v28  ;;  %vm4889_vm9 = vcmp.ge.f32.partialorder %v3289_v20, 2.0  ;;  %v3302_v31 = vadd.f32 %v20709_v14, %v3301_v43  ;;  %v16850_v13 = vpop.f32.mrb[154].mxu0 }
 0x29f   :  { %17413 = vmatprep.subr.bf16.mxu1 %v19402_v28  ;;  %v6351_v50 = vpack.c.bf16 %v14853_v27, %v14852_v55  ;;  %v14851_v35 = vsel %vm4889_vm9, 1.0, %v19402_v28  ;;  %vm4894_vm10 = vcmp.ge.f32.partialorder %v3310_v11, 2.0  ;;  %v3313_v37 = vadd.f32 %v20709_v14, %v16850_v13  ;;  %v3304_v38 = vpop.f32.mrb[155].mxu0  ;;  %v18742_v27 = vld [vmem:[#allocation7 + $0x2b0] sm:$0xff]  }
 0x2a0   :  { %v6350_v39 = vpack.c.bf16 %v14851_v35, %v14850_v47  ;;  %v14856_v40 = vsel %vm4894_vm10, 1.0, %v19402_v28  ;;  %vm4892_vm11 = vcmp.ge.f32.partialorder %v3302_v31, 2.0  ;;  %v3305_v24 = vadd.f32 %v20709_v14, %v3304_v38  ;;  %v16853_v41 = vpop.f32.mrb[156].mxu0 }
 0x2a1   :  { %v14854_v45 = vsel %vm4892_vm11, 1.0, %v19402_v28  ;;  %vm4895_vm12 = vcmp.ge.f32.partialorder %v3313_v37, 2.0  ;;  %v3326_v46 = vadd.f32 %v20709_v14, %v16853_v41  ;;  %v3317_v8 = vpop.f32.mrb[157].mxu0 }
 0x2a2   :  { %17414 = vmatpush3.bf16.msra.mxu1 %v18735_v22  ;;  %v20825_v60 = vmax.bf16 %v6351_v50, %v6350_v39  ;;  %v14857_v54 = vsel %vm4895_vm12, 1.0, %v19402_v28  ;;  %vm4893_vm13 = vcmp.ge.f32.partialorder %v3305_v24, 2.0  ;;  %v3318_v49 = vadd.f32 %v20709_v14, %v3317_v8  ;;  %v16854_v56 = vpop.f32.mrb[158].mxu0  ;;  %v18744_v22 = vld [vmem:[%s23603_s0 + $0x4c0] sm:$0xff]  }
 0x2a3   :  { %17415 = vmatprep.subr.bf16.mxu1 %v19402_v28  ;;  %v6353_v26 = vpack.c.bf16 %v14857_v54, %v14856_v40  ;;  %v14855_v32 = vsel %vm4893_vm13, 1.0, %v19402_v28  ;;  %vm4898_vm15 = vcmp.ge.f32.partialorder %v3326_v46, 2.0  ;;  %v3329_v57 = vadd.f32 %v20709_v14, %v16854_v56  ;;  %v3320_v58 = vpop.f32.mrb[159].mxu0  ;;  %v18743_v40 = vld [vmem:[#allocation7 + $0x2b8] sm:$0xff]   ;;  %v18748_v54 = vld [vmem:[%s23603_s0 + $0x4d0] sm:$0xff]  }
 0x2a4   :  { %16992 = vmatmul.mubr.msk.bf16.gmra.mrb[40].mxu0 %vm1886_vm1, %v18737_v34  ;;  %v6352_v59 = vpack.c.bf16 %v14855_v32, %v14854_v45  ;;  %v14860_v36 = vsel %vm4898_vm15, 1.0, %v19402_v28  ;;  %vm4896_vm0 = vcmp.ge.f32.partialorder %v3318_v49, 2.0  ;;  %v3321_v61 = vadd.f32 %v20709_v14, %v3320_v58  ;;  %v16857_v63 = vpop.f32.mrb[160].mxu0  ;;  %v18745_v45 = vld [vmem:[%s23603_s0 + $0x4c8] sm:$0xff]  }
 0x2a5   :  { %16995 = vmatprep.mubr.msk.bf16.mxu0 %vm1886_vm1, %v18740_v9  ;;  %v14858_v29 = vsel %vm4896_vm0, 1.0, %v19402_v28  ;;  %vm4899_vm3 = vcmp.ge.f32.partialorder %v3329_v57, 2.0  ;;  %v3342_v42 = vadd.f32 %v20709_v14, %v16857_v63  ;;  %v3333_v2 = vpop.f32.mrb[161].mxu0  ;;  %v18746_v57 = vld [vmem:[#allocation7 + $0x2c0] sm:$0xff]  }
 0x2a6   :  { %17416 = vmatpush3.bf16.msra.mxu1 %v18738_v44  ;;  %v20838_v3 = vmax.bf16 %v6353_v26, %v6352_v59  ;;  %v14861_v7 = vsel %vm4899_vm3, 1.0, %v19402_v28  ;;  %vm4897_vm4 = vcmp.ge.f32.partialorder %v3321_v61, 2.0  ;;  %v3334_v10 = vadd.f32 %v20709_v14, %v3333_v2  ;;  %v16858_v12 = vpop.f32.mrb[162].mxu0 }
 0x2a7   :  { %17417 = vmatprep.subr.bf16.mxu1 %v19402_v28  ;;  %v6355_v4 = vpack.c.bf16 %v14861_v7, %v14860_v36  ;;  %v14859_v19 = vsel %vm4897_vm4, 1.0, %v19402_v28  ;;  %vm4902_vm5 = vcmp.ge.f32.partialorder %v3342_v42, 2.0  ;;  %v3345_v18 = vadd.f32 %v20709_v14, %v16858_v12  ;;  %v3336_v55 = vpop.f32.mrb[163].mxu0 }
 0x2a8   :  { %v8674_v16 = vpop.f32.mrb[12].mxu1  ;;  %v6354_v47 = vpack.c.bf16 %v14859_v19, %v14858_v29  ;;  %v14864_v11 = vsel %vm4902_vm5, 1.0, %v19402_v28  ;;  %vm4900_vm6 = vcmp.ge.f32.partialorder %v3334_v10, 2.0  ;;  %v3337_v31 = vadd.f32 %v20709_v14, %v3336_v55  ;;  %v16861_v37 = vpop.f32.mrb[164].mxu0  ;;  %v18747_v29 = vld [vmem:[#allocation7 + $0x2c8] sm:$0xff]  }
 0x2a9   :  { %v20848_v20 = vadd.f32 %v20726_v30, %v8674_v16  ;;  %v17285_v21 = vpop.f32.mrb[13].mxu1  ;;  %vm4903_vm7 = vcmp.ge.f32.partialorder %v3345_v18, 2.0  ;;  %v14862_v50 = vsel %vm4900_vm6, 1.0, %v19402_v28  ;;  %v3358_v9 = vadd.f32 %v20709_v14, %v16861_v37  ;;  %v3349_v39 = vpop.f32.mrb[165].mxu0  ;;  %v18749_v10 = vld [vmem:[%s23603_s0 + $0x4d8] sm:$0xff]  }
 0x2aa   :  { %v8677_v43 = vpop.f32.mrb[14].mxu1  ;;  %17418 = vmatpush3.bf16.msra.mxu1 %v18739_v0  ;;  %v20859_v34 = vmax.bf16 %v6355_v4, %v6354_v47  ;;  %v14865_v35 = vsel %vm4903_vm7, 1.0, %v19402_v28  ;;  %vm4901_vm8 = vcmp.ge.f32.partialorder %v3337_v31, 2.0  ;;  %v3350_v24 = vadd.f32 %v20709_v14, %v3349_v39  ;;  %v16862_v44 = vpop.f32.mrb[166].mxu0  ;;  %v18750_v47 = vld [vmem:[#allocation7 + $0x2d0] sm:$0xff]  }
 0x2ab   :  { %v20856_v13 = vadd.f32 %v20732_v51, %v8677_v43  ;;  %v17286_v30 = vpop.f32.mrb[15].mxu1  ;;  %17419 = vmatprep.subr.bf16.mxu1 %v19402_v28  ;;  %v6357_v38 = vpack.c.bf16 %v14865_v35, %v14864_v11  ;;  %v14863_v51 = vsel %vm4901_vm8, 1.0, %v19402_v28  ;;  %vm4906_vm9 = vcmp.ge.f32.partialorder %v3358_v9, 2.0  ;;  %v3352_v8 = vpop.f32.mrb[167].mxu0  ;;  %v18751_v9 = vld [vmem:[#allocation7 + $0x2d8] sm:$0xff]  }
 0x2ac   :  { %16996 = vmatmul.mubr.msk.bf16.gmra.mrb[44].mxu0 %vm1886_vm1, %v18741_v6  ;;  %v6356_v41 = vpack.c.bf16 %v14863_v51, %v14862_v50  ;;  %vm4904_vm10 = vcmp.ge.f32.partialorder %v3350_v24, 2.0  ;;  %v3361_v46 = vadd.f32 %v20709_v14, %v16862_v44  ;;  %v14868_v56 = vsel %vm4906_vm9, 1.0, %v19402_v28  ;;  %v16865_v59 = vpop.f32.mrb[168].mxu0  ;;  %v18753_v51 = vld [vmem:[%s23603_s0 + $0x4e8] sm:$0xff]   ;;  %v18756_v44 = vld [vmem:[%s23603_s0 + $0x4f0] sm:$0xff]  }
 0x2ad   :  { %16999 = vmatprep.mubr.msk.bf16.mxu0 %vm1886_vm1, %v18744_v22  ;;  %v3353_v26 = vadd.f32 %v20709_v14, %v3352_v8  ;;  %v14866_v32 = vsel %vm4904_vm10, 1.0, %v19402_v28  ;;  %v3374_v0 = vadd.f32 %v20709_v14, %v16865_v59 }
 0x2ae   :  { %17420 = vmatpush3.bf16.msra.mxu1 %v18742_v27  ;;  %v6572_v49 = vmax.bf16 %v6357_v38, %v6356_v41  ;;  %vm4907_vm11 = vcmp.ge.f32.partialorder %v3361_v46, 2.0 }
 0x2af   :  { %17421 = vmatprep.subr.bf16.mxu1 %v19402_v28  ;;  %v14869_v58 = vsel %vm4907_vm11, 1.0, %v19402_v28  ;;  %vm4905_vm12 = vcmp.ge.f32.partialorder %v3353_v26, 2.0  ;;  %vm4910_vm13 = vcmp.ge.f32.partialorder %v3374_v0, 2.0  ;;  %v18755_v0 = vld [vmem:[#allocation7 + $0x2e8] sm:$0xff]  }
 0x2b0   :  { %v20881_v36 = vmax.bf16 %v6572_v49, %v20742_v52  ;;  %v6359_v61 = vpack.c.bf16 %v14869_v58, %v14868_v56  ;;  %v14867_v63 = vsel %vm4905_vm12, 1.0, %v19402_v28  ;;  %v3365_v52 = vpop.f32.mrb[169].mxu0  ;;  %v14872_v18 = vsel %vm4910_vm13, 1.0, %v19402_v28  ;;  %v18754_v49 = vld [vmem:[#allocation7 + $0x2e0] sm:$0xff]  }
 0x2b1   :  { %v6358_v42 = vpack.c.bf16 %v14867_v63, %v14866_v32  ;;  %v3366_v16 = vadd.f32 %v20709_v14, %v3365_v52  ;;  %v16866_v6 = vpop.f32.mrb[170].mxu0 }
 0x2b2   :  { %17422 = vmatpush3.bf16.msra.mxu1 %v18743_v40  ;;  %v15246_v2 = vcombine.low %v20881_v36, %v20881_v36  ;;  %v15247_v7 = vcombine.high %v20881_v36, %v20881_v36  ;;  %v3377_v4 = vadd.f32 %v20709_v14, %v16866_v6  ;;  %v3368_v19 = vpop.f32.mrb[171].mxu0 }
 0x2b3   :  { %17427 = vmatprep.subr.bf16.mxu1 %v19402_v28  ;;  %v6573_v12 = vmax.bf16 %v6359_v61, %v6358_v42  ;;  %vm4908_vm15 = vcmp.ge.f32.partialorder %v3366_v16, 2.0  ;;  %v3369_v55 = vadd.f32 %v20709_v14, %v3368_v19  ;;  %v16869_v43 = vpop.f32.mrb[172].mxu0  ;;  %v18757_v42 = vld [vmem:[%s23603_s0 + $0x4f8] sm:$0xff]   ;;  %v18760_v16 = vld [vmem:[%s23603_s0 + $0x500] sm:$0xff]  }
 0x2b4   :  { %17000 = vmatmul.mubr.msk.bf16.gmra.mrb[48].mxu0 %vm1886_vm1, %v18745_v45  ;;  %7205 = vst.msk [vmem:[%s23608_s5 + $0x80] sm:$0xf] %vm7172_vm14, %v15246_v2  ;;  %7206 = vst.msk [vmem:[%s23608_s5 + $0x84] sm:$0xf] %vm7172_vm14, %v15247_v7  ;;  %v14870_v21 = vsel %vm4908_vm15, 1.0, %v19402_v28  ;;  %vm4911_vm0 = vcmp.ge.f32.partialorder %v3377_v4, 2.0  ;;  %v3390_v30 = vadd.f32 %v20709_v14, %v16869_v43 }
 0x2b5   :  { %17424 = vmatmul.mubr.bf16.vlgmr.msra.gmra.mrb[40].mxu1 %v20408_v17  ;;  %17003 = vmatprep.mubr.msk.bf16.mxu0 %vm1886_vm1, %v18748_v54  ;;  %v18752_v17 = vld [vmem:[%s23603_s0 + $0x4e0] sm:$0xff]   ;;  %v20916_v22 = vmax.bf16 %v6573_v12, %v20762_v33  ;;  %v14873_v11 = vsel %vm4911_vm0, 1.0, %v19402_v28  ;;  %vm4909_vm3 = vcmp.ge.f32.partialorder %v3369_v55, 2.0  ;;  %v3381_v35 = vpop.f32.mrb[173].mxu0 }
 0x2b6   :  { %17428 = vmatpush3.bf16.msra.mxu1 %v18746_v57  ;;  %17443 = vmatprep.mubr.msk.bf16.mxu1 %vm19403_vm2, %v19402_v28  ;;  %v6361_v27 = vpack.c.bf16 %v14873_v11, %v14872_v18  ;;  %v14871_v31 = vsel %vm4909_vm3, 1.0, %v19402_v28  ;;  %vm4914_vm4 = vcmp.ge.f32.partialorder %v3390_v30, 2.0  ;;  %v3382_v38 = vadd.f32 %v20709_v14, %v3381_v35  ;;  %v16870_v40 = vpop.f32.mrb[174].mxu0 }
 0x2b7   :  { %17429 = vmatprep.subr.bf16.mxu1 %v19402_v28  ;;  %v15248_v50 = vcombine.low %v20916_v22, %v20916_v22  ;;  %v6360_v33 = vpack.c.bf16 %v14871_v31, %v14870_v21  ;;  %v15249_v37 = vcombine.high %v20916_v22, %v20916_v22  ;;  %v3393_v24 = vadd.f32 %v20709_v14, %v16870_v40  ;;  %v3384_v41 = vpop.f32.mrb[175].mxu0  ;;  %v18761_v40 = vld [vmem:[%s23603_s0 + $0x508] sm:$0xff]  }
 0x2b8   :  { %vm4912_vm5 = vcmp.ge.f32.partialorder %v3382_v38, 2.0  ;;  %v14876_v45 = vsel %vm4914_vm4, 1.0, %v19402_v28  ;;  %v3385_v46 = vadd.f32 %v20709_v14, %v3384_v41  ;;  %v16873_v26 = vpop.f32.mrb[176].mxu0  ;;  %v18764_v41 = vld [vmem:[%s23603_s0 + $0x510] sm:$0xff]  }
 0x2b9   :  { %7207 = vst.msk [vmem:[%s23608_s5 + $0x88] sm:$0xf] %vm7172_vm14, %v15248_v50  ;;  %v6574_v39 = vmax.bf16 %v6361_v27, %v6360_v33  ;;  %7208 = vst.msk [vmem:[%s23608_s5 + $0x8c] sm:$0xf] %vm7172_vm14, %v15249_v37  ;;  %v14874_v8 = vsel %vm4912_vm5, 1.0, %v19402_v28  ;;  %vm4915_vm6 = vcmp.ge.f32.partialorder %v3393_v24, 2.0  ;;  %v3406_v58 = vadd.f32 %v20709_v14, %v16873_v26 }
 0x2ba   :  { %17430 = vmatpush3.bf16.msra.mxu1 %v18747_v29  ;;  %v14877_v56 = vsel %vm4915_vm6, 1.0, %v19402_v28  ;;  %vm4913_vm7 = vcmp.ge.f32.partialorder %v3385_v46, 2.0  ;;  %v3397_v61 = vpop.f32.mrb[177].mxu0  ;;  %v18759_v50 = vld [vmem:[#allocation7 + $0x2f8] sm:$0xff]  }
 0x2bb   :  { %17431 = vmatprep.subr.bf16.mxu1 %v19402_v28  ;;  %v20949_v54 = vmax.bf16 %v6574_v39, %v20778_v48  ;;  %v6363_v32 = vpack.c.bf16 %v14877_v56, %v14876_v45  ;;  %v14875_v57 = vsel %vm4913_vm7, 1.0, %v19402_v28  ;;  %vm4918_vm8 = vcmp.ge.f32.partialorder %v3406_v58, 2.0  ;;  %v16874_v7 = vpop.f32.mrb[178].mxu0  ;;  %v21026_v58 = vld [vmem:[#allocation5] ss:$0 sm:$0xff] }
 0x2bc   :  { %17004 = vmatmul.mubr.msk.bf16.gmra.mrb[52].mxu0 %vm1886_vm1, %v18749_v10  ;;  %v6362_v48 = vpack.c.bf16 %v14875_v57, %v14874_v8  ;;  %v3398_v29 = vadd.f32 %v20709_v14, %v3397_v61  ;;  %v3409_v52 = vadd.f32 %v20709_v14, %v16874_v7  ;;  %v3400_v10 = vpop.f32.mrb[179].mxu0  ;;  %v14880_v6 = vsel %vm4918_vm8, 1.0, %v19402_v28 }
 0x2bd   :  { %17007 = vmatprep.mubr.msk.bf16.mxu0 %vm1886_vm1, %v18752_v17  ;;  %v15250_v59 = vcombine.low %v20949_v54, %v20949_v54  ;;  %v15251_v63 = vcombine.high %v20949_v54, %v20949_v54  ;;  %v3401_v4 = vadd.f32 %v20709_v14, %v3400_v10  ;;  %v16877_v30 = vpop.f32.mrb[180].mxu0 }
 0x2be   :  { %17432 = vmatpush3.bf16.msra.mxu1 %v18750_v47  ;;  %v6575_v2 = vmax.bf16 %v6363_v32, %v6362_v48  ;;  %vm4916_vm9 = vcmp.ge.f32.partialorder %v3398_v29, 2.0  ;;  %vm4919_vm10 = vcmp.ge.f32.partialorder %v3409_v52, 2.0  ;;  %v18758_v47 = vld [vmem:[#allocation7 + $0x2f0] sm:$0xff]   ;;  %v3422_v35 = vadd.f32 %v20709_v14, %v16877_v30  ;;  %v3413_v37 = vpop.f32.mrb[181].mxu0 }
 0x2bf   :  { %17433 = vmatprep.subr.bf16.mxu1 %v19402_v28  ;;  %7209 = vst.msk [vmem:[%s23608_s5 + $0x90] sm:$0xf] %vm7172_vm14, %v15250_v59  ;;  %7210 = vst.msk [vmem:[%s23608_s5 + $0x94] sm:$0xf] %vm7172_vm14, %v15251_v63  ;;  %v14878_v17 = vsel %vm4916_vm9, 1.0, %v19402_v28  ;;  %v14881_v11 = vsel %vm4919_vm10, 1.0, %v19402_v28  ;;  %v3414_v38 = vadd.f32 %v20709_v14, %v3413_v37 }
 0x2c0   :  { %v20985_v55 = vmax.bf16 %v6575_v2, %v20795_v5  ;;  %vm4917_vm11 = vcmp.ge.f32.partialorder %v3401_v4, 2.0  ;;  %v6365_v31 = vpack.c.bf16 %v14881_v11, %v14880_v6  ;;  %vm4922_vm12 = vcmp.ge.f32.partialorder %v3422_v35, 2.0  ;;  %v16878_v39 = vpop.f32.mrb[182].mxu0  ;;  %v18768_v2 = vld [vmem:[%s23603_s0 + $0x520] sm:$0xff]   ;;  %v18769_v35 = vld [vmem:[%s23603_s0 + $0x528] sm:$0xff]  }
 0x2c1   :  { %vm4920_vm13 = vcmp.ge.f32.partialorder %v3414_v38, 2.0  ;;  %v3416_v24 = vpop.f32.mrb[183].mxu0  ;;  %v18772_v38 = vld [vmem:[%s23603_s0 + $0x530] sm:$0xff]  }
 0x2c2   :  { %17434 = vmatpush3.bf16.msra.mxu1 %v18751_v9  ;;  %v15252_v5 = vcombine.low %v20985_v55, %v20985_v55  ;;  %v3417_v45 = vadd.f32 %v20709_v14, %v3416_v24  ;;  %v14882_v46 = vsel %vm4920_vm13, 1.0, %v19402_v28  ;;  %v16881_v26 = vpop.f32.mrb[184].mxu0  ;;  %v18770_v24 = vld [vmem:[#allocation7 + $0x320] sm:$0xff]  }
 0x2c3   :  { %17435 = vmatprep.subr.bf16.mxu1 %v19402_v28  ;;  %v3429_v63 = vpop.f32.mrb[185].mxu0 }
 0x2c4   :  { %17008 = vmatmul.mubr.msk.bf16.gmra.mrb[56].mxu0 %vm1886_vm1, %v18753_v51  ;;  %7211 = vst.msk [vmem:[%s23608_s5 + $0x98] sm:$0xf] %vm7172_vm14, %v15252_v5  ;;  %v3425_v51 = vadd.f32 %v20709_v14, %v16878_v39  ;;  %vm4921_vm0 = vcmp.ge.f32.partialorder %v3417_v45, 2.0  ;;  %v3438_v14 = vadd.f32 %v21026_v58, %v16881_v26  ;;  %v18767_v5 = vld [vmem:[#allocation7 + $0x318] sm:$0xff]  }
 0x2c5   :  { %17011 = vmatprep.mubr.msk.bf16.mxu0 %vm1886_vm1, %v18756_v44  ;;  %v14884_v44 = vsel %vm4922_vm12, 1.0, %v19402_v28  ;;  %v14883_v57 = vsel %vm4921_vm0, 1.0, %v19402_v28 }
 0x2c6   :  { %17436 = vmatpush3.bf16.msra.mxu1 %v18754_v49  ;;  %vm4923_vm15 = vcmp.ge.f32.partialorder %v3425_v51, 2.0  ;;  %v18762_v49 = vld [vmem:[#allocation7 + $0x300] sm:$0xff]   ;;  %v6366_v48 = vpack.c.bf16 %v14883_v57, %v14882_v46  ;;  %vm4926_vm3 = vcmp.ge.f32.partialorder %v3438_v14, 2.0  ;;  %v18773_v57 = vld [vmem:[%s23603_s0 + $0x538] sm:$0xff]  }
 0x2c7   :  { %17437 = vmatprep.subr.bf16.mxu1 %v19402_v28  ;;  %v14885_v56 = vsel %vm4923_vm15, 1.0, %v19402_v28  ;;  %v14888_v10 = vsel %vm4926_vm3, 1.0, %v19402_v28 }
 0x2c8   :  { %v8763_v12 = vpop.f32.mrb[16].mxu1  ;;  %v6367_v32 = vpack.c.bf16 %v14885_v56, %v14884_v44 }
 0x2c9   :  { %v20982_v19 = vadd.f32 %v20848_v20, %v8763_v12  ;;  %v17305_v18 = vpop.f32.mrb[17].mxu1  ;;  %v14879_v20 = vsel %vm4917_vm11, 1.0, %v19402_v28 }
 0x2ca   :  { %v8766_v21 = vpop.f32.mrb[18].mxu1  ;;  %17438 = vmatpush3.bf16.msra.mxu1 %v18755_v0  ;;  %v6364_v33 = vpack.c.bf16 %v14879_v20, %v14878_v17  ;;  %v18765_v0 = vld [vmem:[%s23603_s0 + $0x518] sm:$0xff]   ;;  %v6577_v29 = vmax.bf16 %v6367_v32, %v6366_v48 }
 0x2cb   :  { %v20989_v43 = vadd.f32 %v20856_v13, %v8766_v21  ;;  %v17306_v27 = vpop.f32.mrb[19].mxu1  ;;  %17439 = vmatprep.subr.bf16.mxu1 %v19402_v28  ;;  %v15253_v13 = vcombine.high %v20985_v55, %v20985_v55  ;;  %v18766_v17 = vld [vmem:[#allocation7 + $0x310] sm:$0xff]  }
 0x2cc   :  { %17012 = vmatmul.mubr.msk.bf16.gmra.mrb[60].mxu0 %vm1886_vm1, %v18757_v42  ;;  %v6576_v9 = vmax.bf16 %v6365_v31, %v6364_v33  ;;  %v16882_v42 = vpop.f32.mrb[186].mxu0  ;;  %v21059_v6 = vmax.bf16 %v6577_v29, %v20825_v60 }
 0x2cd   :  { %17015 = vmatprep.mubr.msk.bf16.mxu0 %vm1886_vm1, %v18760_v16  ;;  %7212 = vst.msk [vmem:[%s23608_s5 + $0x9c] sm:$0xf] %vm7172_vm14, %v15253_v13  ;;  %v3441_v7 = vadd.f32 %v21026_v58, %v16882_v42  ;;  %v3432_v52 = vpop.f32.mrb[187].mxu0  ;;  %v18775_v42 = vld [vmem:[#allocation7 + $0x338] sm:$0xff]  }
 0x2ce   :  { %17440 = vmatpush3.bf16.msra.mxu1 %v18758_v47  ;;  %v21021_v8 = vmax.bf16 %v6576_v9, %v20808_v1  ;;  %v18763_v1 = vld [vmem:[#allocation7 + $0x308] sm:$0xff]   ;;  %v3433_v12 = vadd.f32 %v21026_v58, %v3432_v52  ;;  %v16885_v18 = vpop.f32.mrb[188].mxu0  ;;  %v15256_v27 = vcombine.low %v21059_v6, %v21059_v6  ;;  %v15257_v20 = vcombine.high %v21059_v6, %v21059_v6 }
 0x2cf   :  { %17441 = vmatprep.subr.bf16.mxu1 %v19402_v28  ;;  %vm4927_vm5 = vcmp.ge.f32.partialorder %v3441_v7, 2.0  ;;  %v3454_v11 = vadd.f32 %v21026_v58, %v16885_v18  ;;  %v3445_v31 = vpop.f32.mrb[189].mxu0  ;;  %v18842_v7 = vld [vmem:[#allocation7 + $0x820] sm:$0xff]   ;;  %v18780_v52 = vld [vmem:[#allocation7 + $0x348] sm:$0xff]  }
 0x2d0   :  { %v15254_v59 = vcombine.low %v21021_v8, %v21021_v8  ;;  %v15255_v61 = vcombine.high %v21021_v8, %v21021_v8  ;;  %v14889_v4 = vsel %vm4927_vm5, 1.0, %v19402_v28  ;;  %vm4925_vm6 = vcmp.ge.f32.partialorder %v3433_v12, 2.0  ;;  %7215 = vst.msk [vmem:[%s23608_s5 + $0xa8] sm:$0xf] %vm7172_vm14, %v15256_v27  ;;  %v16886_v33 = vpop.f32.mrb[190].mxu0  ;;  %v18785_v12 = vld [vmem:[%s23603_s0 + $0x560] sm:$0xff]   ;;  %17856 = vmatpush3.bf16.msra.mxu0 %v18842_v7 }
 0x2d1   :  { %v6369_v21 = vpack.c.bf16 %v14889_v4, %v14888_v10  ;;  %v14887_v47 = vsel %vm4925_vm6, 1.0, %v19402_v28  ;;  %vm4930_vm7 = vcmp.ge.f32.partialorder %v3454_v11, 2.0  ;;  %v3446_v30 = vadd.f32 %v21026_v58, %v3445_v31  ;;  %7216 = vst.msk [vmem:[%s23608_s5 + $0xac] sm:$0xf] %vm7172_vm14, %v15257_v20  ;;  %v3448_v13 = vpop.f32.mrb[191].mxu0  ;;  %v18782_v10 = vld [vmem:[%s23603_s0 + $0x558] sm:$0xff]   ;;  %17857 = vmatprep.subr.bf16.mxu0 %v19402_v28 }
 0x2d2   :  { %17442 = vmatpush3.bf16.msra.mxu1 %v18759_v50  ;;  %7213 = vst.msk [vmem:[%s23608_s5 + $0xa0] sm:$0xf] %vm7172_vm14, %v15254_v59  ;;  %7214 = vst.msk [vmem:[%s23608_s5 + $0xa4] sm:$0xf] %vm7172_vm14, %v15255_v61  ;;  %v3457_v37 = vadd.f32 %v21026_v58, %v16886_v33  ;;  %v14892_v9 = vsel %vm4930_vm7, 1.0, %v19402_v28  ;;  %v3449_v39 = vadd.f32 %v21026_v58, %v3448_v13  ;;  %v18789_v4 = vld [vmem:[%s23603_s0 + $0x570] sm:$0xff]  }
 0x2d3   :  { %17447 = vmatprep.subr.bf16.mxu1 %v19402_v28  ;;  %vm4928_vm8 = vcmp.ge.f32.partialorder %v3446_v30, 2.0  ;;  %v18787_v18 = vld [vmem:[#allocation7 + $0x360] sm:$0xff]   ;;  %v18790_v11 = vld [vmem:[%s23603_s0 + $0x578] sm:$0xff]   ;;  %v18793_v31 = vld [vmem:[%s23603_s0 + $0x580] sm:$0xff]  }
 0x2d4   :  { %17016 = vmatmul.mubr.msk.bf16.gmra.mrb[64].mxu0 %vm1886_vm1, %v18761_v40  ;;  %v14890_v40 = vsel %vm4928_vm8, 1.0, %v19402_v28  ;;  %vm4931_vm9 = vcmp.ge.f32.partialorder %v3457_v37, 2.0  ;;  %vm4929_vm10 = vcmp.ge.f32.partialorder %v3449_v39, 2.0  ;;  %v18791_v30 = vld [vmem:[#allocation7 + $0x370] sm:$0xff]   ;;  %v18792_v33 = vld [vmem:[#allocation7 + $0x378] sm:$0xff]   ;;  %v18797_v37 = vld [vmem:[%s23603_s0 + $0x590] sm:$0xff]  }
 0x2d5   :  { %17444 = vmatmul.mubr.bf16.vlgmr.msra.gmra.mrb[44].mxu1 %v20441_v62  ;;  %17019 = vmatprep.mubr.msk.bf16.mxu0 %vm1886_vm1, %v18764_v41  ;;  %v3430_v62 = vadd.f32 %v21026_v58, %v3429_v63  ;;  %v14893_v41 = vsel %vm4931_vm9, 1.0, %v19402_v28  ;;  %v14891_v45 = vsel %vm4929_vm10, 1.0, %v19402_v28  ;;  %v18774_v63 = vld [vmem:[#allocation7 + $0x330] sm:$0xff]   ;;  %v18795_v13 = vld [vmem:[#allocation7 + $0x380] sm:$0xff]  }
 0x2d6   :  { %17448 = vmatpush3.bf16.msra.mxu1 %v18762_v49  ;;  %17463 = vmatprep.mubr.msk.bf16.mxu1 %vm19403_vm2, %v19402_v28  ;;  %v6371_v44 = vpack.c.bf16 %v14893_v41, %v14892_v9  ;;  %v6370_v56 = vpack.c.bf16 %v14891_v45, %v14890_v40  ;;  %v18798_v9 = vld [vmem:[%s23603_s0 + $0x598] sm:$0xff]   ;;  %v18801_v39 = vld [vmem:[%s23603_s0 + $0x5a0] sm:$0xff]   ;;  %v18805_v41 = vld [vmem:[%s23603_s0 + $0x5b0] sm:$0xff]   ;;  %v16889_v45 = vpop.f32.mrb[192].mxu0 }
 0x2d7   :  { %17449 = vmatprep.subr.bf16.mxu1 %v19402_v28  ;;  %vm4924_vm4 = vcmp.ge.f32.partialorder %v3430_v62, 2.0  ;;  %v18799_v40 = vld [vmem:[#allocation7 + $0x390] sm:$0xff]  }
 0x2d8   :  { %v14886_v16 = vsel %vm4924_vm4, 1.0, %v19402_v28  ;;  %v6579_v26 = vmax.bf16 %v6371_v44, %v6370_v56  ;;  %v18803_v44 = vld [vmem:[#allocation7 + $0x3a0] sm:$0xff]  }
 0x2d9   :  { %v6368_v60 = vpack.c.bf16 %v14887_v47, %v14886_v16  ;;  %v18784_v16 = vld [vmem:[#allocation7 + $0x358] sm:$0xff]  }
 0x2da   :  { %17450 = vmatpush3.bf16.msra.mxu1 %v18763_v1  ;;  %v18776_v1 = vld [vmem:[%s23603_s0 + $0x540] sm:$0xff]   ;;  %v21120_v48 = vmax.bf16 %v6579_v26, %v20859_v34  ;;  %v18778_v34 = vld [vmem:[%s23603_s0 + $0x548] sm:$0xff]  }
 0x2db   :  { %17451 = vmatprep.subr.bf16.mxu1 %v19402_v28  ;;  %v6578_v50 = vmax.bf16 %v6369_v21, %v6368_v60  ;;  %v18788_v21 = vld [vmem:[#allocation7 + $0x368] sm:$0xff]  }
 0x2dc   :  { %17020 = vmatmul.mubr.msk.bf16.gmra.mrb[68].mxu0 %vm1886_vm1, %v18765_v0  ;;  %v15260_v62 = vcombine.low %v21120_v48, %v21120_v48 }
 0x2dd   :  { %17023 = vmatprep.mubr.msk.bf16.mxu0 %vm1886_vm1, %v18768_v2  ;;  %v21092_v51 = vmax.bf16 %v6578_v50, %v20838_v3  ;;  %v18771_v3 = vld [vmem:[#allocation7 + $0x328] sm:$0xff]   ;;  %v18779_v2 = vld [vmem:[#allocation7 + $0x340] sm:$0xff]  }
 0x2de   :  { %17452 = vmatpush3.bf16.msra.mxu1 %v18766_v17  ;;  %7219 = vst.msk [vmem:[%s23608_s5 + $0xb8] sm:$0xf] %vm7172_vm14, %v15260_v62  ;;  %v18786_v17 = vld [vmem:[%s23603_s0 + $0x568] sm:$0xff]  }
 0x2df   :  { %17453 = vmatprep.subr.bf16.mxu1 %v19402_v28  ;;  %v15258_v46 = vcombine.low %v21092_v51, %v21092_v51  ;;  %v15259_v49 = vcombine.high %v21092_v51, %v21092_v51 }
 0x2e1   :  { %7217 = vst.msk [vmem:[%s23608_s5 + $0xb0] sm:$0xf] %vm7172_vm14, %v15258_v46  ;;  %7218 = vst.msk [vmem:[%s23608_s5 + $0xb4] sm:$0xf] %vm7172_vm14, %v15259_v49  ;;  %v3470_v46 = vadd.f32 %v21026_v58, %v16889_v45  ;;  %v3461_v49 = vpop.f32.mrb[193].mxu0 }
 0x2e2   :  { %17454 = vmatpush3.bf16.msra.mxu1 %v18767_v5  ;;  %v16890_v56 = vpop.f32.mrb[194].mxu0 }
 0x2e3   :  { %17455 = vmatprep.subr.bf16.mxu1 %v19402_v28  ;;  %vm4934_vm11 = vcmp.ge.f32.partialorder %v3470_v46, 2.0  ;;  %v3473_v26 = vadd.f32 %v21026_v58, %v16890_v56 }
 0x2e4   :  { %17024 = vmatmul.mubr.msk.bf16.gmra.mrb[72].mxu0 %vm1886_vm1, %v18769_v35  ;;  %v18794_v35 = vld [vmem:[%s23603_s0 + $0x588] sm:$0xff]  }
 0x2e5   :  { %17027 = vmatprep.mubr.msk.bf16.mxu0 %vm1886_vm1, %v18772_v38  ;;  %v18796_v38 = vld [vmem:[#allocation7 + $0x388] sm:$0xff]   ;;  %vm4935_vm13 = vcmp.ge.f32.partialorder %v3473_v26, 2.0 }
 0x2e6   :  { %17456 = vmatpush3.bf16.msra.mxu1 %v18770_v24  ;;  %v18802_v24 = vld [vmem:[%s23603_s0 + $0x5a8] sm:$0xff]  }
 0x2e7   :  { %17457 = vmatprep.subr.bf16.mxu1 %v19402_v28 }
 0x2e8   :  { %v8852_v32 = vpop.f32.mrb[20].mxu1 }
 0x2e9   :  { %v14025_v14 = vadd.f32 %v20982_v19, %v8852_v32  ;;  %v17325_v59 = vpop.f32.mrb[21].mxu1  ;;  %v15261_v19 = vcombine.high %v21120_v48, %v21120_v48  ;;  %v18804_v32 = vld [vmem:[#allocation7 + $0x3a8] sm:$0xff]  }
 0x2ea   :  { %v8855_v61 = vpop.f32.mrb[22].mxu1  ;;  %17458 = vmatpush3.bf16.msra.mxu1 %v18771_v3  ;;  %v3462_v3 = vadd.f32 %v21026_v58, %v3461_v49 }
 0x2eb   :  { %v14088_v0 = vadd.f32 %v20989_v43, %v8855_v61  ;;  %v17326_v29 = vpop.f32.mrb[23].mxu1  ;;  %17459 = vmatprep.subr.bf16.mxu1 %v19402_v28  ;;  %7220 = vst.msk [vmem:[%s23608_s5 + $0xbc] sm:$0xf] %vm7172_vm14, %v15261_v19  ;;  %v18781_v43 = vld [vmem:[%s23603_s0 + $0x550] sm:$0xff]  }
 0x2ec   :  { %17028 = vmatmul.mubr.msk.bf16.gmra.mrb[76].mxu0 %vm1886_vm1, %v18773_v57  ;;  %v14896_v57 = vsel %vm4934_vm11, 1.0, %v19402_v28  ;;  %vm4932_vm12 = vcmp.ge.f32.partialorder %v3462_v3, 2.0  ;;  %v14897_v29 = vsel %vm4935_vm13, 1.0, %v19402_v28  ;;  %v18811_v3 = vld [vmem:[#allocation7 + $0x3c0] sm:$0xff]  }
 0x2ed   :  { %17031 = vmatprep.mubr.msk.bf16.mxu0 %vm1886_vm1, %v18776_v1 }
 0x2ee   :  { %17460 = vmatpush3.bf16.msra.mxu1 %v18774_v63  ;;  %v18806_v63 = vld [vmem:[%s23603_s0 + $0x5b8] sm:$0xff]  }
 0x2ef   :  { %17461 = vmatprep.subr.bf16.mxu1 %v19402_v28 }
 0x2f2   :  { %17462 = vmatpush3.bf16.msra.mxu1 %v18775_v42 }
 0x2f3   :  { %17467 = vmatprep.subr.bf16.mxu1 %v19402_v28 }
 0x2f4   :  { %17032 = vmatmul.mubr.msk.bf16.gmra.mrb[80].mxu0 %vm1886_vm1, %v18778_v34  ;;  %v18809_v34 = vld [vmem:[%s23603_s0 + $0x5c0] sm:$0xff]  }
 0x2f5   :  { %17464 = vmatmul.mubr.bf16.vlgmr.msra.gmra.mrb[48].mxu1 %v20474_v23  ;;  %17035 = vmatprep.mubr.msk.bf16.mxu0 %vm1886_vm1, %v18781_v43  ;;  %v18783_v23 = vld [vmem:[#allocation7 + $0x350] sm:$0xff]   ;;  %v6373_v43 = vpack.c.bf16 %v14897_v29, %v14896_v57 }
 0x2f6   :  { %17468 = vmatpush3.bf16.msra.mxu1 %v18779_v2  ;;  %17483 = vmatprep.mubr.msk.bf16.mxu1 %vm19403_vm2, %v19402_v28 }
 0x2f7   :  { %17469 = vmatprep.subr.bf16.mxu1 %v19402_v28 }
 0x2fa   :  { %17470 = vmatpush3.bf16.msra.mxu1 %v18780_v52  ;;  %v18807_v52 = vld [vmem:[#allocation7 + $0x3b0] sm:$0xff]  }
 0x2fb   :  { %17471 = vmatprep.subr.bf16.mxu1 %v19402_v28 }
 0x2fc   :  { %17036 = vmatmul.mubr.msk.bf16.gmra.mrb[84].mxu0 %vm1886_vm1, %v18782_v10 }
 0x2fd   :  { %17039 = vmatprep.mubr.msk.bf16.mxu0 %vm1886_vm1, %v18785_v12 }
 0x2fe   :  { %17472 = vmatpush3.bf16.msra.mxu1 %v18783_v23 }
 0x2ff   :  { %17473 = vmatprep.subr.bf16.mxu1 %v19402_v28 }
 0x302   :  { %17474 = vmatpush3.bf16.msra.mxu1 %v18784_v16 }
 0x303   :  { %17475 = vmatprep.subr.bf16.mxu1 %v19402_v28 }
 0x304   :  { %17040 = vmatmul.mubr.msk.bf16.gmra.mrb[88].mxu0 %vm1886_vm1, %v18786_v17 }
 0x305   :  { %17043 = vmatprep.mubr.msk.bf16.mxu0 %vm1886_vm1, %v18789_v4 }
 0x306   :  { %17476 = vmatpush3.bf16.msra.mxu1 %v18787_v18 }
 0x307   :  { %17477 = vmatprep.subr.bf16.mxu1 %v19402_v28 }
 0x308   :  { %v8941_v47 = vpop.f32.mrb[24].mxu1 }
 0x309   :  { %v21176_v27 = vadd.f32 %v14025_v14, %v8941_v47  ;;  %v17345_v60 = vpop.f32.mrb[25].mxu1  ;;  %v3464_v14 = vpop.f32.mrb[195].mxu0 }
 0x30a   :  { %v8944_v20 = vpop.f32.mrb[26].mxu1  ;;  %17478 = vmatpush3.bf16.msra.mxu1 %v18788_v21  ;;  %v3465_v59 = vadd.f32 %v21026_v58, %v3464_v14  ;;  %v16893_v1 = vpop.f32.mrb[196].mxu0 }
 0x30b   :  { %v21181_v5 = vadd.f32 %v14088_v0, %v8944_v20  ;;  %v17346_v50 = vpop.f32.mrb[27].mxu1  ;;  %17479 = vmatprep.subr.bf16.mxu1 %v19402_v28  ;;  %v14894_v0 = vsel %vm4932_vm12, 1.0, %v19402_v28  ;;  %v3486_v62 = vadd.f32 %v21026_v58, %v16893_v1  ;;  %v3477_v2 = vpop.f32.mrb[197].mxu0 }
 0x30c   :  { %17044 = vmatmul.mubr.msk.bf16.gmra.mrb[92].mxu0 %vm1886_vm1, %v18790_v11  ;;  %vm4933_vm15 = vcmp.ge.f32.partialorder %v3465_v59, 2.0  ;;  %v3478_v12 = vadd.f32 %v21026_v58, %v3477_v2  ;;  %v16894_v23 = vpop.f32.mrb[198].mxu0  ;;  %v18812_v2 = vld [vmem:[#allocation7 + $0x3c8] sm:$0xff]  }
 0x30d   :  { %17047 = vmatprep.mubr.msk.bf16.mxu0 %vm1886_vm1, %v18793_v31  ;;  %v14895_v10 = vsel %vm4933_vm15, 1.0, %v19402_v28  ;;  %vm4938_vm0 = vcmp.ge.f32.partialorder %v3486_v62, 2.0  ;;  %v3489_v18 = vadd.f32 %v21026_v58, %v16894_v23  ;;  %v3480_v21 = vpop.f32.mrb[199].mxu0 }
 0x30e   :  { %17480 = vmatpush3.bf16.msra.mxu1 %v18791_v30  ;;  %v6372_v4 = vpack.c.bf16 %v14895_v10, %v14894_v0  ;;  %v14900_v47 = vsel %vm4938_vm0, 1.0, %v19402_v28  ;;  %vm4936_vm3 = vcmp.ge.f32.partialorder %v3478_v12, 2.0  ;;  %v3481_v11 = vadd.f32 %v21026_v58, %v3480_v21 }
 0x30f   :  { %17481 = vmatprep.subr.bf16.mxu1 %v19402_v28  ;;  %v14898_v31 = vsel %vm4936_vm3, 1.0, %v19402_v28  ;;  %vm4939_vm4 = vcmp.ge.f32.partialorder %v3489_v18, 2.0  ;;  %v18814_v18 = vld [vmem:[%s23603_s0 + $0x5d8] sm:$0xff]  }
 0x310   :  { %v21248_v60 = vmax.bf16 %v6373_v43, %v6372_v4  ;;  %v14901_v50 = vsel %vm4939_vm4, 1.0, %v19402_v28  ;;  %vm4937_vm5 = vcmp.ge.f32.partialorder %v3481_v11, 2.0 }
 0x312   :  { %17482 = vmatpush3.bf16.msra.mxu1 %v18792_v33 }
 0x313   :  { %17487 = vmatprep.subr.bf16.mxu1 %v19402_v28 }
 0x314   :  { %17048 = vmatmul.mubr.msk.bf16.gmra.mrb[96].mxu0 %vm1886_vm1, %v18794_v35 }
 0x315   :  { %17484 = vmatmul.mubr.bf16.vlgmr.msra.gmra.mrb[52].mxu1 %v20510_v53  ;;  %17051 = vmatprep.mubr.msk.bf16.mxu0 %vm1886_vm1, %v18797_v37  ;;  %v18800_v53 = vld [vmem:[#allocation7 + $0x398] sm:$0xff]   ;;  %v6375_v37 = vpack.c.bf16 %v14901_v50, %v14900_v47  ;;  %v18815_v50 = vld [vmem:[#allocation7 + $0x3d0] sm:$0xff]  }
 0x316   :  { %17488 = vmatpush3.bf16.msra.mxu1 %v18795_v13  ;;  %17503 = vmatprep.mubr.msk.bf16.mxu1 %vm19403_vm2, %v19402_v28  ;;  %v14899_v13 = vsel %vm4937_vm5, 1.0, %v19402_v28 }
 0x317   :  { %17489 = vmatprep.subr.bf16.mxu1 %v19402_v28 }
 0x31a   :  { %17490 = vmatpush3.bf16.msra.mxu1 %v18796_v38 }
 0x31b   :  { %17491 = vmatprep.subr.bf16.mxu1 %v19402_v28 }
 0x31c   :  { %17052 = vmatmul.mubr.msk.bf16.gmra.mrb[100].mxu0 %vm1886_vm1, %v18798_v9 }
 0x31d   :  { %17055 = vmatprep.mubr.msk.bf16.mxu0 %vm1886_vm1, %v18801_v39  ;;  %v18810_v39 = vld [vmem:[%s23603_s0 + $0x5c8] sm:$0xff]  }
 0x31e   :  { %17492 = vmatpush3.bf16.msra.mxu1 %v18799_v40  ;;  %v6374_v40 = vpack.c.bf16 %v14899_v13, %v14898_v31  ;;  %v18817_v31 = vld [vmem:[%s23603_s0 + $0x5e0] sm:$0xff]  }
 0x31f   :  { %17493 = vmatprep.subr.bf16.mxu1 %v19402_v28 }
 0x320   :  { %v21267_v56 = vmax.bf16 %v6375_v37, %v6374_v40  ;;  %v21303_v37 = vld [vmem:[#allocation5] ss:$0 sm:$0xff] }
 0x322   :  { %17494 = vmatpush3.bf16.msra.mxu1 %v18800_v53 }
 0x323   :  { %17495 = vmatprep.subr.bf16.mxu1 %v19402_v28 }
 0x324   :  { %17056 = vmatmul.mubr.msk.bf16.gmra.mrb[104].mxu0 %vm1886_vm1, %v18802_v24 }
 0x325   :  { %17059 = vmatprep.mubr.msk.bf16.mxu0 %vm1886_vm1, %v18805_v41 }
 0x326   :  { %17496 = vmatpush3.bf16.msra.mxu1 %v18803_v44  ;;  %v18813_v44 = vld [vmem:[%s23603_s0 + $0x5d0] sm:$0xff]  }
 0x327   :  { %17497 = vmatprep.subr.bf16.mxu1 %v19402_v28 }
 0x328   :  { %v9030_v61 = vpop.f32.mrb[28].mxu1 }
 0x329   :  { %v21232_v19 = vadd.f32 %v21176_v27, %v9030_v61  ;;  %v17365_v42 = vpop.f32.mrb[29].mxu1  ;;  %v16897_v27 = vpop.f32.mrb[200].mxu0 }
 0x32a   :  { %v9033_v7 = vpop.f32.mrb[30].mxu1  ;;  %17498 = vmatpush3.bf16.msra.mxu1 %v18804_v32  ;;  %v3502_v20 = vadd.f32 %v21026_v58, %v16897_v27  ;;  %v3493_v30 = vpop.f32.mrb[201].mxu0 }
 0x32b   :  { %v21240_v16 = vadd.f32 %v21181_v5, %v9033_v7  ;;  %v17366_v17 = vpop.f32.mrb[31].mxu1  ;;  %17499 = vmatprep.subr.bf16.mxu1 %v19402_v28  ;;  %v18808_v5 = vld [vmem:[#allocation7 + $0x3b8] sm:$0xff]   ;;  %v3494_v33 = vadd.f32 %v21026_v58, %v3493_v30  ;;  %v16898_v35 = vpop.f32.mrb[202].mxu0 }
 0x32c   :  { %17060 = vmatmul.mubr.msk.bf16.gmra.mrb[108].mxu0 %vm1886_vm1, %v18806_v63  ;;  %vm4942_vm6 = vcmp.ge.f32.partialorder %v3502_v20, 2.0  ;;  %v3505_v38 = vadd.f32 %v21026_v58, %v16898_v35  ;;  %v3496_v9 = vpop.f32.mrb[203].mxu0 }
 0x32d   :  { %17063 = vmatprep.mubr.msk.bf16.mxu0 %vm1886_vm1, %v18809_v34  ;;  %v14904_v53 = vsel %vm4942_vm6, 1.0, %v19402_v28  ;;  %vm4940_vm7 = vcmp.ge.f32.partialorder %v3494_v33, 2.0  ;;  %v3497_v24 = vadd.f32 %v21026_v58, %v3496_v9  ;;  %v16901_v41 = vpop.f32.mrb[204].mxu0 }
 0x32e   :  { %17500 = vmatpush3.bf16.msra.mxu1 %v18807_v52  ;;  %v14902_v45 = vsel %vm4940_vm7, 1.0, %v19402_v28  ;;  %vm4943_vm8 = vcmp.ge.f32.partialorder %v3505_v38, 2.0  ;;  %v3518_v46 = vadd.f32 %v21026_v58, %v16901_v41  ;;  %v3509_v49 = vpop.f32.mrb[205].mxu0 }
 0x32f   :  { %17501 = vmatprep.subr.bf16.mxu1 %v19402_v28  ;;  %v14905_v26 = vsel %vm4943_vm8, 1.0, %v19402_v28  ;;  %vm4941_vm9 = vcmp.ge.f32.partialorder %v3497_v24, 2.0  ;;  %v3510_v32 = vadd.f32 %v21026_v58, %v3509_v49  ;;  %v16902_v57 = vpop.f32.mrb[206].mxu0 }
 0x330   :  { %v6377_v14 = vpack.c.bf16 %v14905_v26, %v14904_v53  ;;  %v14903_v59 = vsel %vm4941_vm9, 1.0, %v19402_v28  ;;  %vm4946_vm10 = vcmp.ge.f32.partialorder %v3518_v46, 2.0  ;;  %v3521_v1 = vadd.f32 %v21026_v58, %v16902_v57  ;;  %v3512_v61 = vpop.f32.mrb[207].mxu0 }
 0x331   :  { %v6376_v63 = vpack.c.bf16 %v14903_v59, %v14902_v45  ;;  %v14908_v0 = vsel %vm4946_vm10, 1.0, %v19402_v28  ;;  %vm4944_vm11 = vcmp.ge.f32.partialorder %v3510_v32, 2.0  ;;  %v3513_v29 = vadd.f32 %v21026_v58, %v3512_v61  ;;  %v16905_v62 = vpop.f32.mrb[208].mxu0 }
 0x332   :  { %17502 = vmatpush3.bf16.msra.mxu1 %v18808_v5  ;;  %v14906_v42 = vsel %vm4944_vm11, 1.0, %v19402_v28  ;;  %vm4947_vm12 = vcmp.ge.f32.partialorder %v3521_v1, 2.0  ;;  %v3534_v34 = vadd.f32 %v21026_v58, %v16905_v62  ;;  %v3525_v43 = vpop.f32.mrb[209].mxu0 }
 0x333   :  { %17507 = vmatprep.subr.bf16.mxu1 %v19402_v28  ;;  %v21283_v7 = vmax.bf16 %v6377_v14, %v6376_v63  ;;  %v14909_v52 = vsel %vm4947_vm12, 1.0, %v19402_v28  ;;  %vm4945_vm13 = vcmp.ge.f32.partialorder %v3513_v29, 2.0  ;;  %v16906_v10 = vpop.f32.mrb[210].mxu0 }
 0x334   :  { %17064 = vmatmul.mubr.msk.bf16.gmra.mrb[112].mxu0 %vm1886_vm1, %v18810_v39  ;;  %v6379_v12 = vpack.c.bf16 %v14909_v52, %v14908_v0  ;;  %v14907_v23 = vsel %vm4945_vm13, 1.0, %v19402_v28  ;;  %vm4950_vm15 = vcmp.ge.f32.partialorder %v3534_v34, 2.0  ;;  %v3537_v17 = vadd.f32 %v21026_v58, %v16906_v10  ;;  %v3528_v4 = vpop.f32.mrb[211].mxu0  ;;  %v18818_v0 = vld [vmem:[%s23603_s0 + $0x5e8] sm:$0xff]  }
 0x335   :  { %17504 = vmatmul.mubr.bf16.vlgmr.msra.gmra.mrb[56].mxu1 %v20543_v15  ;;  %17067 = vmatprep.mubr.msk.bf16.mxu0 %vm1886_vm1, %v18813_v44  ;;  %v3526_v15 = vadd.f32 %v21026_v58, %v3525_v43  ;;  %v6378_v21 = vpack.c.bf16 %v14907_v23, %v14906_v42  ;;  %v14912_v47 = vsel %vm4950_vm15, 1.0, %v19402_v28  ;;  %v3529_v11 = vadd.f32 %v21026_v58, %v3528_v4  ;;  %v16909_v27 = vpop.f32.mrb[212].mxu0  ;;  %v18821_v43 = vld [vmem:[%s23603_s0 + $0x5f0] sm:$0xff]  }
 0x336   :  { %17508 = vmatpush3.bf16.msra.mxu1 %v18811_v3  ;;  %17523 = vmatprep.mubr.msk.bf16.mxu1 %vm19403_vm2, %v19402_v28  ;;  %vm4951_vm3 = vcmp.ge.f32.partialorder %v3537_v17, 2.0  ;;  %v3550_v30 = vadd.f32 %v21026_v58, %v16909_v27  ;;  %v3541_v5 = vpop.f32.mrb[213].mxu0  ;;  %v18816_v3 = vld [vmem:[#allocation7 + $0x3d8] sm:$0xff]   ;;  %v18819_v10 = vld [vmem:[#allocation7 + $0x3e0] sm:$0xff]  }
 0x337   :  { %17509 = vmatprep.subr.bf16.mxu1 %v19402_v28  ;;  %vm4948_vm0 = vcmp.ge.f32.partialorder %v3526_v15, 2.0  ;;  %v21300_v33 = vmax.bf16 %v6379_v12, %v6378_v21  ;;  %v14913_v35 = vsel %vm4951_vm3, 1.0, %v19402_v28  ;;  %vm4949_vm4 = vcmp.ge.f32.partialorder %v3529_v11, 2.0  ;;  %v16910_v38 = vpop.f32.mrb[214].mxu0 }
 0x338   :  { %v14910_v20 = vsel %vm4948_vm0, 1.0, %v19402_v28  ;;  %v3542_v13 = vadd.f32 %v21303_v37, %v3541_v5  ;;  %v6381_v9 = vpack.c.bf16 %v14913_v35, %v14912_v47  ;;  %v14911_v39 = vsel %vm4949_vm4, 1.0, %v19402_v28  ;;  %v3544_v40 = vpop.f32.mrb[215].mxu0 }
 0x339   :  { %vm4954_vm5 = vcmp.ge.f32.partialorder %v3550_v30, 2.0  ;;  %v3553_v58 = vadd.f32 %v21303_v37, %v16910_v38  ;;  %v6380_v53 = vpack.c.bf16 %v14911_v39, %v14910_v20  ;;  %v3545_v41 = vadd.f32 %v21303_v37, %v3544_v40  ;;  %v16913_v44 = vpop.f32.mrb[216].mxu0 }
 0x33a   :  { %17510 = vmatpush3.bf16.msra.mxu1 %v18812_v2  ;;  %v14916_v24 = vsel %vm4954_vm5, 1.0, %v19402_v28  ;;  %vm4952_vm6 = vcmp.ge.f32.partialorder %v3542_v13, 2.0  ;;  %v3566_v46 = vadd.f32 %v21303_v37, %v16913_v44  ;;  %v3557_v49 = vpop.f32.mrb[217].mxu0  ;;  %v18820_v13 = vld [vmem:[#allocation7 + $0x3e8] sm:$0xff]  }
 0x33b   :  { %17511 = vmatprep.subr.bf16.mxu1 %v19402_v28  ;;  %v14914_v45 = vsel %vm4952_vm6, 1.0, %v19402_v28  ;;  %vm4955_vm7 = vcmp.ge.f32.partialorder %v3553_v58, 2.0  ;;  %v21315_v26 = vmax.bf16 %v6381_v9, %v6380_v53  ;;  %vm4953_vm8 = vcmp.ge.f32.partialorder %v3545_v41, 2.0  ;;  %v16914_v14 = vpop.f32.mrb[218].mxu0 }
 0x33c   :  { %17068 = vmatmul.mubr.msk.bf16.gmra.mrb[116].mxu0 %vm1886_vm1, %v18814_v18  ;;  %v14917_v32 = vsel %vm4955_vm7, 1.0, %v19402_v28  ;;  %v3558_v57 = vadd.f32 %v21303_v37, %v3557_v49  ;;  %v14915_v1 = vsel %vm4953_vm8, 1.0, %v19402_v28  ;;  %vm4958_vm9 = vcmp.ge.f32.partialorder %v3566_v46, 2.0  ;;  %v3560_v63 = vpop.f32.mrb[219].mxu0 }
 0x33d   :  { %17071 = vmatprep.mubr.msk.bf16.mxu0 %vm1886_vm1, %v18817_v31  ;;  %v6383_v59 = vpack.c.bf16 %v14917_v32, %v14916_v24  ;;  %v3569_v61 = vadd.f32 %v21303_v37, %v16914_v14  ;;  %v6382_v29 = vpack.c.bf16 %v14915_v1, %v14914_v45  ;;  %v14920_v62 = vsel %vm4958_vm9, 1.0, %v19402_v28  ;;  %v16917_v34 = vpop.f32.mrb[220].mxu0  ;;  %v18822_v45 = vld [vmem:[%s23603_s0 + $0x5f8] sm:$0xff]   ;;  %v18825_v14 = vld [vmem:[%s23603_s0 + $0x600] sm:$0xff]  }
 0x33e   :  { %17512 = vmatpush3.bf16.msra.mxu1 %v18815_v50  ;;  %vm4956_vm10 = vcmp.ge.f32.partialorder %v3558_v57, 2.0  ;;  %v3561_v42 = vadd.f32 %v21303_v37, %v3560_v63  ;;  %v3582_v52 = vadd.f32 %v21303_v37, %v16917_v34  ;;  %v3573_v15 = vpop.f32.mrb[221].mxu0 }
 0x33f   :  { %17513 = vmatprep.subr.bf16.mxu1 %v19402_v28  ;;  %v14918_v2 = vsel %vm4956_vm10, 1.0, %v19402_v28  ;;  %vm4959_vm11 = vcmp.ge.f32.partialorder %v3569_v61, 2.0  ;;  %v21332_v12 = vmax.bf16 %v6383_v59, %v6382_v29  ;;  %v3574_v17 = vadd.f32 %v21303_v37, %v3573_v15  ;;  %v16918_v4 = vpop.f32.mrb[222].mxu0  ;;  %v18823_v61 = vld [vmem:[#allocation7 + $0x3f0] sm:$0xff]  }
 0x340   :  { %v14921_v23 = vsel %vm4959_vm11, 1.0, %v19402_v28  ;;  %vm4957_vm12 = vcmp.ge.f32.partialorder %v3561_v42, 2.0  ;;  %vm4962_vm13 = vcmp.ge.f32.partialorder %v3582_v52, 2.0  ;;  %v3585_v47 = vadd.f32 %v21303_v37, %v16918_v4  ;;  %v3576_v11 = vpop.f32.mrb[223].mxu0 }
 0x341   :  { %v6385_v18 = vpack.c.bf16 %v14921_v23, %v14920_v62  ;;  %v14919_v21 = vsel %vm4957_vm12, 1.0, %v19402_v28  ;;  %v14924_v31 = vsel %vm4962_vm13, 1.0, %v19402_v28  ;;  %vm4960_vm15 = vcmp.ge.f32.partialorder %v3574_v17, 2.0  ;;  %v16921_v30 = vpop.f32.mrb[224].mxu0 }
 0x342   :  { %17514 = vmatpush3.bf16.msra.mxu1 %v18816_v3  ;;  %v6384_v27 = vpack.c.bf16 %v14919_v21, %v14918_v2  ;;  %v3577_v20 = vadd.f32 %v21303_v37, %v3576_v11  ;;  %v14922_v5 = vsel %vm4960_vm15, 1.0, %v19402_v28  ;;  %vm4963_vm0 = vcmp.ge.f32.partialorder %v3585_v47, 2.0  ;;  %v3589_v35 = vpop.f32.mrb[225].mxu0  ;;  %v18826_v47 = vld [vmem:[%s23603_s0 + $0x608] sm:$0xff]  }
 0x343   :  { %17515 = vmatprep.subr.bf16.mxu1 %v19402_v28  ;;  %v3598_v50 = vadd.f32 %v21303_v37, %v16921_v30  ;;  %v14925_v9 = vsel %vm4963_vm0, 1.0, %v19402_v28  ;;  %v3590_v39 = vadd.f32 %v21303_v37, %v3589_v35  ;;  %v16922_v58 = vpop.f32.mrb[226].mxu0  ;;  %v18827_v30 = vld [vmem:[#allocation7 + $0x400] sm:$0xff]  }
 0x344   :  { %17072 = vmatmul.mubr.msk.bf16.gmra.mrb[120].mxu0 %vm1886_vm1, %v18818_v0  ;;  %v21345_v38 = vmax.bf16 %v6385_v18, %v6384_v27  ;;  %vm4961_vm3 = vcmp.ge.f32.partialorder %v3577_v20, 2.0  ;;  %v6387_v40 = vpack.c.bf16 %v14925_v9, %v14924_v31  ;;  %v3601_v24 = vadd.f32 %v21303_v37, %v16922_v58  ;;  %v3592_v41 = vpop.f32.mrb[227].mxu0  ;;  %v18829_v31 = vld [vmem:[%s23603_s0 + $0x610] sm:$0xff]  }
 0x345   :  { %17075 = vmatprep.mubr.msk.bf16.mxu0 %vm1886_vm1, %v18821_v43  ;;  %v14923_v53 = vsel %vm4961_vm3, 1.0, %v19402_v28  ;;  %vm4966_vm4 = vcmp.ge.f32.partialorder %v3598_v50, 2.0  ;;  %vm4964_vm5 = vcmp.ge.f32.partialorder %v3590_v39, 2.0  ;;  %v3593_v3 = vadd.f32 %v21303_v37, %v3592_v41  ;;  %v16925_v34 = vpop.f32.mrb[228].mxu0  ;;  %v18828_v41 = vld [vmem:[#allocation7 + $0x408] sm:$0xff]  }
 0x346   :  { %17516 = vmatpush3.bf16.msra.mxu1 %v18819_v10  ;;  %v6386_v46 = vpack.c.bf16 %v14923_v53, %v14922_v5  ;;  %v14928_v49 = vsel %vm4966_vm4, 1.0, %v19402_v28  ;;  %v14926_v59 = vsel %vm4964_vm5, 1.0, %v19402_v28  ;;  %vm4967_vm6 = vcmp.ge.f32.partialorder %v3601_v24, 2.0  ;;  %v3605_v52 = vpop.f32.mrb[229].mxu0 }
 0x347   :  { %17517 = vmatprep.subr.bf16.mxu1 %v19402_v28  ;;  %v14929_v0 = vsel %vm4967_vm6, 1.0, %v19402_v28  ;;  %vm4965_vm7 = vcmp.ge.f32.partialorder %v3593_v3, 2.0  ;;  %v3614_v2 = vadd.f32 %v21303_v37, %v16925_v34  ;;  %v3606_v15 = vadd.f32 %v21303_v37, %v3605_v52  ;;  %v16926_v10 = vpop.f32.mrb[230].mxu0 }
 0x348   :  { %v9119_v44 = vpop.f32.mrb[32].mxu1  ;;  %v21364_v63 = vmax.bf16 %v6387_v40, %v6386_v46  ;;  %v6389_v62 = vpack.c.bf16 %v14929_v0, %v14928_v49  ;;  %v14927_v42 = vsel %vm4965_vm7, 1.0, %v19402_v28  ;;  %v3617_v17 = vadd.f32 %v21303_v37, %v16926_v10  ;;  %v3608_v4 = vpop.f32.mrb[231].mxu0  ;;  %v18830_v49 = vld [vmem:[%s23603_s0 + $0x618] sm:$0xff]  }
 0x349   :  { %v21358_v32 = vadd.f32 %v21232_v19, %v9119_v44  ;;  %v17385_v57 = vpop.f32.mrb[33].mxu1  ;;  %v6388_v43 = vpack.c.bf16 %v14927_v42, %v14926_v59  ;;  %vm4970_vm8 = vcmp.ge.f32.partialorder %v3614_v2, 2.0  ;;  %vm4968_vm9 = vcmp.ge.f32.partialorder %v3606_v15, 2.0  ;;  %v16929_v35 = vpop.f32.mrb[232].mxu0 }
 0x34a   :  { %v9122_v1 = vpop.f32.mrb[34].mxu1  ;;  %17518 = vmatpush3.bf16.msra.mxu1 %v18820_v13  ;;  %v14932_v18 = vsel %vm4970_vm8, 1.0, %v19402_v28  ;;  %v3609_v21 = vadd.f32 %v21303_v37, %v3608_v4  ;;  %v14930_v11 = vsel %vm4968_vm9, 1.0, %v19402_v28  ;;  %vm4971_vm10 = vcmp.ge.f32.partialorder %v3617_v17, 2.0  ;;  %v3621_v58 = vpop.f32.mrb[233].mxu0 }
 0x34b   :  { %v21368_v29 = vadd.f32 %v21240_v16, %v9122_v1  ;;  %v17386_v19 = vpop.f32.mrb[35].mxu1  ;;  %17519 = vmatprep.subr.bf16.mxu1 %v19402_v28  ;;  %v18824_v16 = vld [vmem:[#allocation7 + $0x3f8] sm:$0xff]   ;;  %v6588_v23 = vmax.bf16 %v6389_v62, %v6388_v43  ;;  %v14933_v20 = vsel %vm4971_vm10, 1.0, %v19402_v28  ;;  %v3630_v39 = vadd.f32 %v21303_v37, %v16929_v35  ;;  %v16930_v24 = vpop.f32.mrb[234].mxu0  ;;  %v18831_v1 = vld [vmem:[#allocation7 + $0x410] sm:$0xff]  }
 0x34c   :  { %17076 = vmatmul.mubr.msk.bf16.gmra.mrb[124].mxu0 %vm1886_vm1, %v18822_v45  ;;  %vm4969_vm11 = vcmp.ge.f32.partialorder %v3609_v21, 2.0  ;;  %v6391_v5 = vpack.c.bf16 %v14933_v20, %v14932_v18  ;;  %v3622_v40 = vadd.f32 %v21303_v37, %v3621_v58  ;;  %v3633_v44 = vadd.f32 %v21303_v37, %v16930_v24  ;;  %v3624_v45 = vpop.f32.mrb[235].mxu0  ;;  %v18834_v18 = vld [vmem:[%s23603_s0 + $0x628] sm:$0xff]   ;;  %v18836_v24 = vld [vmem:[#allocation7 + $0x428] sm:$0xff]  }
 0x34d   :  { %17079 = vmatprep.mubr.msk.bf16.mxu0 %vm1886_vm1, %v18825_v14  ;;  %v21385_v27 = vmax.bf16 %v6588_v23, %v21248_v60  ;;  %v14931_v50 = vsel %vm4969_vm11, 1.0, %v19402_v28  ;;  %vm4974_vm12 = vcmp.ge.f32.partialorder %v3630_v39, 2.0  ;;  %v18833_v14 = vld [vmem:[%s23603_s0 + $0x620] sm:$0xff]   ;;  %v16933_v19 = vpop.f32.mrb[236].mxu0 }
 0x34e   :  { %17520 = vmatpush3.bf16.msra.mxu1 %v18823_v61  ;;  %v6390_v9 = vpack.c.bf16 %v14931_v50, %v14930_v11  ;;  %vm4972_vm13 = vcmp.ge.f32.partialorder %v3622_v40, 2.0  ;;  %v14936_v46 = vsel %vm4974_vm12, 1.0, %v19402_v28  ;;  %vm4975_vm15 = vcmp.ge.f32.partialorder %v3633_v44, 2.0  ;;  %v3637_v43 = vpop.f32.mrb[237].mxu0 }
 0x34f   :  { %17521 = vmatprep.subr.bf16.mxu1 %v19402_v28  ;;  %v15262_v13 = vcombine.low %v21385_v27, %v21385_v27  ;;  %v15263_v60 = vcombine.high %v21385_v27, %v21385_v27  ;;  %v14934_v3 = vsel %vm4972_vm13, 1.0, %v19402_v28  ;;  %v14937_v59 = vsel %vm4975_vm15, 1.0, %v19402_v28  ;;  %v16934_v52 = vpop.f32.mrb[238].mxu0 }
 0x350   :  { %v6589_v53 = vmax.bf16 %v6391_v5, %v6390_v9  ;;  %v6393_v61 = vpack.c.bf16 %v14937_v59, %v14936_v46  ;;  %v3646_v34 = vadd.f32 %v21303_v37, %v16933_v19  ;;  %v3638_v2 = vadd.f32 %v21303_v37, %v3637_v43  ;;  %v3640_v17 = vpop.f32.mrb[239].mxu0 }
 0x351   :  { %7221 = vst.msk [vmem:[%s23608_s5 + $0xc0] sm:$0xf] %vm7172_vm14, %v15262_v13  ;;  %7222 = vst.msk [vmem:[%s23608_s5 + $0xc4] sm:$0xf] %vm7172_vm14, %v15263_v60  ;;  %v3649_v10 = vadd.f32 %v21303_v37, %v16934_v52  ;;  %v3641_v4 = vadd.f32 %v21303_v37, %v3640_v17  ;;  %v16937_v50 = vpop.f32.mrb[240].mxu0 }
 0x352   :  { %17522 = vmatpush3.bf16.msra.mxu1 %v18824_v16  ;;  %v21421_v57 = vmax.bf16 %v6589_v53, %v21267_v56  ;;  %vm4978_vm3 = vcmp.ge.f32.partialorder %v3646_v34, 2.0  ;;  %v18832_v16 = vld [vmem:[#allocation7 + $0x418] sm:$0xff]   ;;  %vm4976_vm4 = vcmp.ge.f32.partialorder %v3638_v2, 2.0  ;;  %v3662_v60 = vadd.f32 %v21303_v37, %v16937_v50  ;;  %v3653_v9 = vpop.f32.mrb[241].mxu0  ;;  %v18844_v50 = vld [vmem:[#allocation7 + $0x440] sm:$0xff]  }
 0x353   :  { %17527 = vmatprep.subr.bf16.mxu1 %v19402_v28  ;;  %v14940_v23 = vsel %vm4978_vm3, 1.0, %v19402_v28  ;;  %vm4979_vm5 = vcmp.ge.f32.partialorder %v3649_v10, 2.0  ;;  %v14938_v21 = vsel %vm4976_vm4, 1.0, %v19402_v28  ;;  %vm4977_vm6 = vcmp.ge.f32.partialorder %v3641_v4, 2.0  ;;  %v16938_v58 = vpop.f32.mrb[242].mxu0 }
 0x354   :  { %17080 = vmatmul.mubr.msk.bf16.gmra.mrb[128].mxu0 %vm1886_vm1, %v18826_v47  ;;  %v15264_v62 = vcombine.low %v21421_v57, %v21421_v57  ;;  %v15265_v56 = vcombine.high %v21421_v57, %v21421_v57  ;;  %v14941_v47 = vsel %vm4979_vm5, 1.0, %v19402_v28  ;;  %v14939_v5 = vsel %vm4977_vm6, 1.0, %v19402_v28  ;;  %v3656_v44 = vpop.f32.mrb[243].mxu0 }
 0x355   :  { %17524 = vmatmul.mubr.bf16.vlgmr.msra.gmra.mrb[60].mxu1 %v20571_v25  ;;  %17083 = vmatprep.mubr.msk.bf16.mxu0 %vm1886_vm1, %v18829_v31  ;;  %v3625_v25 = vadd.f32 %v21303_v37, %v3624_v45  ;;  %v18837_v31 = vld [vmem:[%s23603_s0 + $0x630] sm:$0xff]   ;;  %v6395_v20 = vpack.c.bf16 %v14941_v47, %v14940_v23  ;;  %v3654_v39 = vadd.f32 %v21303_v37, %v3653_v9  ;;  %vm4982_vm7 = vcmp.ge.f32.partialorder %v3662_v60, 2.0  ;;  %v16941_v2 = vpop.f32.mrb[244].mxu0  ;;  %v18840_v23 = vld [vmem:[#allocation7 + $0x438] sm:$0xff]  }
 0x356   :  { %17528 = vmatpush3.bf16.msra.mxu1 %v18827_v30  ;;  %17543 = vmatprep.mubr.msk.bf16.mxu1 %vm19403_vm2, %v19402_v28  ;;  %7223 = vst.msk [vmem:[%s23608_s5 + $0xc8] sm:$0xf] %vm7172_vm14, %v15264_v62  ;;  %7224 = vst.msk [vmem:[%s23608_s5 + $0xcc] sm:$0xf] %vm7172_vm14, %v15265_v56  ;;  %v18835_v30 = vld [vmem:[#allocation7 + $0x420] sm:$0xff]   ;;  %v3665_v53 = vadd.f32 %v21303_v37, %v16938_v58  ;;  %v3657_v45 = vadd.f32 %v21303_v37, %v3656_v44  ;;  %v18839_v62 = vld [vmem:[#allocation7 + $0x430] sm:$0xff]  }
 0x357   :  { %17529 = vmatprep.subr.bf16.mxu1 %v19402_v28  ;;  %vm4973_vm0 = vcmp.ge.f32.partialorder %v3625_v25, 2.0  ;;  %vm4980_vm8 = vcmp.ge.f32.partialorder %v3654_v39, 2.0  ;;  %v18838_v25 = vld [vmem:[%s23603_s0 + $0x638] sm:$0xff]   ;;  %v3678_v52 = vadd.f32 %v21303_v37, %v16941_v2  ;;  %v18843_v47 = vld [vmem:[%s23603_s0 + $0x648] sm:$0xff]  }
 0x358   :  { %v14935_v0 = vsel %vm4973_vm0, 1.0, %v19402_v28  ;;  %vm4983_vm9 = vcmp.ge.f32.partialorder %v3665_v53, 2.0  ;;  %vm4981_vm10 = vcmp.ge.f32.partialorder %v3657_v45, 2.0  ;;  %v18907_v58 = vld [vmem:[#allocation7 + $0x828] sm:$0xff]  }
 0x359   :  { %v6392_v42 = vpack.c.bf16 %v14935_v0, %v14934_v3  ;;  %v14945_v3 = vsel %vm4983_vm9, 1.0, %v19402_v28  ;;  %v14943_v56 = vsel %vm4981_vm10, 1.0, %v19402_v28  ;;  %vm4986_vm11 = vcmp.ge.f32.partialorder %v3678_v52, 2.0  ;;  %v18845_v44 = vld [vmem:[#allocation7 + $0x448] sm:$0xff]   ;;  %17858 = vmatpush3.bf16.msra.mxu0 %v18907_v58 }
 0x35a   :  { %17530 = vmatpush3.bf16.msra.mxu1 %v18828_v41  ;;  %v14944_v41 = vsel %vm4982_vm7, 1.0, %v19402_v28  ;;  %17859 = vmatprep.subr.bf16.mxu0 %v19402_v28 }
 0x35b   :  { %17531 = vmatprep.subr.bf16.mxu1 %v19402_v28  ;;  %v6590_v15 = vmax.bf16 %v6393_v61, %v6392_v42  ;;  %v18841_v61 = vld [vmem:[%s23603_s0 + $0x640] sm:$0xff]   ;;  %v6397_v0 = vpack.c.bf16 %v14945_v3, %v14944_v41 }
 0x35c   :  { %17084 = vmatmul.mubr.msk.bf16.gmra.mrb[132].mxu0 %vm1886_vm1, %v18830_v49  ;;  %v14942_v49 = vsel %vm4980_vm8, 1.0, %v19402_v28 }
 0x35d   :  { %17087 = vmatprep.mubr.msk.bf16.mxu0 %vm1886_vm1, %v18833_v14  ;;  %v21455_v11 = vmax.bf16 %v6590_v15, %v21283_v7  ;;  %v6394_v7 = vpack.c.bf16 %v14939_v5, %v14938_v21  ;;  %v6396_v43 = vpack.c.bf16 %v14943_v56, %v14942_v49  ;;  %v3669_v15 = vpop.f32.mrb[245].mxu0  ;;  %v18847_v49 = vld [vmem:[%s23603_s0 + $0x658] sm:$0xff]  }
 0x35e   :  { %17532 = vmatpush3.bf16.msra.mxu1 %v18831_v1  ;;  %v3670_v10 = vadd.f32 %v21303_v37, %v3669_v15 }
 0x35f   :  { %17533 = vmatprep.subr.bf16.mxu1 %v19402_v28  ;;  %v15266_v35 = vcombine.low %v21455_v11, %v21455_v11  ;;  %v15267_v13 = vcombine.high %v21455_v11, %v21455_v11  ;;  %v6591_v40 = vmax.bf16 %v6395_v20, %v6394_v7 }
 0x360   :  { %vm4984_vm12 = vcmp.ge.f32.partialorder %v3670_v10, 2.0 }
 0x361   :  { %7225 = vst.msk [vmem:[%s23608_s5 + $0xd0] sm:$0xf] %vm7172_vm14, %v15266_v35  ;;  %7226 = vst.msk [vmem:[%s23608_s5 + $0xd4] sm:$0xf] %vm7172_vm14, %v15267_v13  ;;  %v21488_v14 = vmax.bf16 %v6591_v40, %v21300_v33 }
 0x362   :  { %17534 = vmatpush3.bf16.msra.mxu1 %v18832_v16  ;;  %v16942_v16 = vpop.f32.mrb[246].mxu0 }
 0x363   :  { %17535 = vmatprep.subr.bf16.mxu1 %v19402_v28  ;;  %v15268_v42 = vcombine.low %v21488_v14, %v21488_v14  ;;  %v15269_v33 = vcombine.high %v21488_v14, %v21488_v14  ;;  %v3681_v17 = vadd.f32 %v21303_v37, %v16942_v16  ;;  %v3672_v4 = vpop.f32.mrb[247].mxu0  ;;  %v18849_v16 = vld [vmem:[#allocation7 + $0x458] sm:$0xff]  }
 0x364   :  { %17088 = vmatmul.mubr.msk.bf16.gmra.mrb[136].mxu0 %vm1886_vm1, %v18834_v18  ;;  %v14948_v18 = vsel %vm4986_vm11, 1.0, %v19402_v28  ;;  %v3673_v21 = vadd.f32 %v21303_v37, %v3672_v4  ;;  %v16945_v7 = vpop.f32.mrb[248].mxu0 }
 0x365   :  { %17091 = vmatprep.mubr.msk.bf16.mxu0 %vm1886_vm1, %v18837_v31  ;;  %7227 = vst.msk [vmem:[%s23608_s5 + $0xd8] sm:$0xf] %vm7172_vm14, %v15268_v42  ;;  %7228 = vst.msk [vmem:[%s23608_s5 + $0xdc] sm:$0xf] %vm7172_vm14, %v15269_v33  ;;  %v14946_v31 = vsel %vm4984_vm12, 1.0, %v19402_v28  ;;  %vm4987_vm13 = vcmp.ge.f32.partialorder %v3681_v17, 2.0  ;;  %v3694_v39 = vadd.f32 %v21303_v37, %v16945_v7 }
 0x366   :  { %17536 = vmatpush3.bf16.msra.mxu1 %v18835_v30  ;;  %v18846_v30 = vld [vmem:[%s23603_s0 + $0x650] sm:$0xff]   ;;  %v14949_v5 = vsel %vm4987_vm13, 1.0, %v19402_v28  ;;  %vm4985_vm15 = vcmp.ge.f32.partialorder %v3673_v21, 2.0  ;;  %v3685_v40 = vpop.f32.mrb[249].mxu0 }
 0x367   :  { %17537 = vmatprep.subr.bf16.mxu1 %v19402_v28  ;;  %v6399_v35 = vpack.c.bf16 %v14949_v5, %v14948_v18  ;;  %v14947_v13 = vsel %vm4985_vm15, 1.0, %v19402_v28  ;;  %v3686_v53 = vadd.f32 %v21303_v37, %v3685_v40  ;;  %vm4990_vm0 = vcmp.ge.f32.partialorder %v3694_v39, 2.0  ;;  %v16946_v41 = vpop.f32.mrb[250].mxu0  ;;  %v18851_v18 = vld [vmem:[%s23603_s0 + $0x668] sm:$0xff]   ;;  %v18855_v39 = vld [vmem:[%s23603_s0 + $0x678] sm:$0xff]  }
 0x368   :  { %v9208_v46 = vpop.f32.mrb[36].mxu1  ;;  %v6398_v9 = vpack.c.bf16 %v14947_v13, %v14946_v31  ;;  %v3697_v45 = vadd.f32 %v21303_v37, %v16946_v41 }
 0x369   :  { %v21491_v59 = vadd.f32 %v21358_v32, %v9208_v46  ;;  %v17405_v1 = vpop.f32.mrb[37].mxu1  ;;  %vm4988_vm3 = vcmp.ge.f32.partialorder %v3686_v53, 2.0  ;;  %v3688_v46 = vpop.f32.mrb[251].mxu0 }
 0x36a   :  { %v9211_v19 = vpop.f32.mrb[38].mxu1  ;;  %17538 = vmatpush3.bf16.msra.mxu1 %v18836_v24  ;;  %v6593_v24 = vmax.bf16 %v6399_v35, %v6398_v9  ;;  %v14950_v3 = vsel %vm4988_vm3, 1.0, %v19402_v28  ;;  %vm4991_vm4 = vcmp.ge.f32.partialorder %v3697_v45, 2.0  ;;  %v16949_v42 = vpop.f32.mrb[252].mxu0 }
 0x36b   :  { %v21502_v32 = vadd.f32 %v21368_v29, %v9211_v19  ;;  %v17406_v34 = vpop.f32.mrb[39].mxu1  ;;  %17539 = vmatprep.subr.bf16.mxu1 %v19402_v28  ;;  %v6592_v29 = vmax.bf16 %v6397_v0, %v6396_v43  ;;  %v14953_v0 = vsel %vm4991_vm4, 1.0, %v19402_v28  ;;  %v18848_v19 = vld [vmem:[#allocation7 + $0x450] sm:$0xff]   ;;  %v3710_v43 = vadd.f32 %v21303_v37, %v16949_v42  ;;  %v3701_v2 = vpop.f32.mrb[253].mxu0  ;;  %v18868_v42 = vld [vmem:[#allocation7 + $0x4a0] sm:$0xff]  }
 0x36c   :  { %17092 = vmatmul.mubr.msk.bf16.gmra.mrb[140].mxu0 %vm1886_vm1, %v18838_v25  ;;  %v14952_v25 = vsel %vm4990_vm0, 1.0, %v19402_v28  ;;  %v21563_v1 = vmax.bf16 %v6593_v24, %v21332_v12  ;;  %v3702_v52 = vadd.f32 %v21303_v37, %v3701_v2  ;;  %v16950_v15 = vpop.f32.mrb[254].mxu0  ;;  %v18858_v24 = vld [vmem:[%s23603_s0 + $0x680] sm:$0xff]  }
 0x36d   :  { %17095 = vmatprep.mubr.msk.bf16.mxu0 %vm1886_vm1, %v18841_v61  ;;  %v21526_v20 = vmax.bf16 %v6592_v29, %v21315_v26  ;;  %v18850_v61 = vld [vmem:[%s23603_s0 + $0x660] sm:$0xff]   ;;  %vm4994_vm6 = vcmp.ge.f32.partialorder %v3710_v43, 2.0  ;;  %v3713_v10 = vadd.f32 %v21303_v37, %v16950_v15  ;;  %v3704_v17 = vpop.f32.mrb[255].mxu0  ;;  %v18869_v15 = vld [vmem:[#allocation7 + $0x4a8] sm:$0xff]  }
 0x36e   :  { %17540 = vmatpush3.bf16.msra.mxu1 %v18839_v62  ;;  %v6401_v62 = vpack.c.bf16 %v14953_v0, %v14952_v25  ;;  %v15272_v33 = vcombine.low %v21563_v1, %v21563_v1  ;;  %v15273_v12 = vcombine.high %v21563_v1, %v21563_v1  ;;  %vm4992_vm7 = vcmp.ge.f32.partialorder %v3702_v52, 2.0  ;;  %v18866_v0 = vld [vmem:[%s23603_s0 + $0x6a0] sm:$0xff]  }
 0x36f   :  { %17541 = vmatprep.subr.bf16.mxu1 %v19402_v28  ;;  %v15270_v60 = vcombine.low %v21526_v20, %v21526_v20  ;;  %v15271_v26 = vcombine.high %v21526_v20, %v21526_v20  ;;  %vm4995_vm8 = vcmp.ge.f32.partialorder %v3713_v10, 2.0  ;;  %v3705_v4 = vadd.f32 %v21303_v37, %v3704_v17 }
 0x370   :  { %7231 = vst.msk [vmem:[%s23608_s5 + $0xe8] sm:$0xf] %vm7172_vm14, %v15272_v33  ;;  %7232 = vst.msk [vmem:[%s23608_s5 + $0xec] sm:$0xf] %vm7172_vm14, %v15273_v12  ;;  %v14954_v21 = vsel %vm4992_vm7, 1.0, %v19402_v28  ;;  %v16953_v33 = vpop.f32.mrb[0].mxu0 }
 0x371   :  { %7229 = vst.msk [vmem:[%s23608_s5 + $0xe0] sm:$0xf] %vm7172_vm14, %v15270_v60  ;;  %7230 = vst.msk [vmem:[%s23608_s5 + $0xe4] sm:$0xf] %vm7172_vm14, %v15271_v26  ;;  %vm4993_vm9 = vcmp.ge.f32.partialorder %v3705_v4, 2.0  ;;  %v18853_v26 = vld [vmem:[#allocation7 + $0x468] sm:$0xff]   ;;  %v3726_v12 = vadd.f32 %v21303_v37, %v16953_v33 }
 0x372   :  { %17542 = vmatpush3.bf16.msra.mxu1 %v18840_v23  ;;  %v14956_v23 = vsel %vm4994_vm6, 1.0, %v19402_v28  ;;  %v14955_v35 = vsel %vm4993_vm9, 1.0, %v19402_v28  ;;  %v18871_v4 = vld [vmem:[%s23603_s0 + $0x6b8] sm:$0xff]  }
 0x373   :  { %17547 = vmatprep.subr.bf16.mxu1 %v19402_v28  ;;  %vm4998_vm10 = vcmp.ge.f32.partialorder %v3726_v12, 2.0 }
 0x374   :  { %17096 = vmatmul.mubr.msk.bf16.gmra.mrb[144].mxu0 %vm1886_vm1, %v18843_v47  ;;  %v14957_v47 = vsel %vm4995_vm8, 1.0, %v19402_v28 }
 0x375   :  { %17544 = vmatmul.mubr.bf16.vlgmr.msra.gmra.mrb[64].mxu1 %v20881_v36  ;;  %17099 = vmatprep.mubr.msk.bf16.mxu0 %vm1886_vm1, %v18846_v30  ;;  %v3689_v36 = vadd.f32 %v21303_v37, %v3688_v46  ;;  %v18854_v30 = vld [vmem:[%s23603_s0 + $0x670] sm:$0xff]   ;;  %v6403_v5 = vpack.c.bf16 %v14957_v47, %v14956_v23 }
 0x376   :  { %17548 = vmatpush3.bf16.msra.mxu1 %v18844_v50  ;;  %17563 = vmatprep.mubr.msk.bf16.mxu1 %vm19403_vm2, %v19402_v28  ;;  %v18852_v50 = vld [vmem:[#allocation7 + $0x460] sm:$0xff]  }
 0x377   :  { %17549 = vmatprep.subr.bf16.mxu1 %v19402_v28  ;;  %vm4989_vm5 = vcmp.ge.f32.partialorder %v3689_v36, 2.0  ;;  %v18862_v36 = vld [vmem:[%s23603_s0 + $0x690] sm:$0xff]  }
 0x378   :  { %v14951_v56 = vsel %vm4989_vm5, 1.0, %v19402_v28 }
 0x379   :  { %v6400_v34 = vpack.c.bf16 %v14951_v56, %v14950_v3  ;;  %v18861_v3 = vld [vmem:[#allocation7 + $0x488] sm:$0xff]  }
 0x37a   :  { %17550 = vmatpush3.bf16.msra.mxu1 %v18845_v44  ;;  %v18856_v44 = vld [vmem:[#allocation7 + $0x470] sm:$0xff]   ;;  %v18870_v56 = vld [vmem:[%s23603_s0 + $0x6b0] sm:$0xff]  }
 0x37b   :  { %17551 = vmatprep.subr.bf16.mxu1 %v19402_v28  ;;  %v6594_v29 = vmax.bf16 %v6401_v62, %v6400_v34  ;;  %v18867_v62 = vld [vmem:[%s23603_s0 + $0x6a8] sm:$0xff]   ;;  %v3717_v34 = vpop.f32.mrb[1].mxu0 }
 0x37c   :  { %17100 = vmatmul.mubr.msk.bf16.gmra.mrb[148].mxu0 %vm1886_vm1, %v18847_v49  ;;  %v18860_v49 = vld [vmem:[#allocation7 + $0x480] sm:$0xff]   ;;  %v3718_v43 = vadd.f32 %v21303_v37, %v3717_v34  ;;  %v16954_v2 = vpop.f32.mrb[2].mxu0 }
 0x37d   :  { %17103 = vmatprep.mubr.msk.bf16.mxu0 %vm1886_vm1, %v18850_v61  ;;  %v21597_v31 = vmax.bf16 %v6594_v29, %v21345_v38  ;;  %v6402_v38 = vpack.c.bf16 %v14955_v35, %v14954_v21  ;;  %v18863_v61 = vld [vmem:[%s23603_s0 + $0x698] sm:$0xff]   ;;  %v3729_v52 = vadd.f32 %v21303_v37, %v16954_v2  ;;  %v14960_v29 = vsel %vm4998_vm10, 1.0, %v19402_v28  ;;  %v3720_v10 = vpop.f32.mrb[3].mxu0 }
 0x37e   :  { %17552 = vmatpush3.bf16.msra.mxu1 %v18848_v19  ;;  %v18864_v19 = vld [vmem:[#allocation7 + $0x490] sm:$0xff]   ;;  %vm4996_vm11 = vcmp.ge.f32.partialorder %v3718_v43, 2.0  ;;  %v16957_v23 = vpop.f32.mrb[4].mxu0  ;;  %v18878_v43 = vld [vmem:[%s23603_s0 + $0x6d0] sm:$0xff]  }
 0x37f   :  { %17553 = vmatprep.subr.bf16.mxu1 %v19402_v28  ;;  %v15274_v13 = vcombine.low %v21597_v31, %v21597_v31  ;;  %v15275_v7 = vcombine.high %v21597_v31, %v21597_v31  ;;  %v6595_v60 = vmax.bf16 %v6403_v5, %v6402_v38  ;;  %vm4999_vm12 = vcmp.ge.f32.partialorder %v3729_v52, 2.0  ;;  %v18872_v38 = vld [vmem:[#allocation7 + $0x4b0] sm:$0xff]  }
 0x380   :  { %v14961_v21 = vsel %vm4999_vm12, 1.0, %v19402_v28  ;;  %v3742_v47 = vadd.f32 %v21303_v37, %v16957_v23 }
 0x381   :  { %7233 = vst.msk [vmem:[%s23608_s5 + $0xf0] sm:$0xf] %vm7172_vm14, %v15274_v13  ;;  %7234 = vst.msk [vmem:[%s23608_s5 + $0xf4] sm:$0xf] %vm7172_vm14, %v15275_v7  ;;  %v21623_v58 = vmax.bf16 %v6595_v60, %v21364_v63  ;;  %v6405_v35 = vpack.c.bf16 %v14961_v21, %v14960_v29  ;;  %v3733_v13 = vpop.f32.mrb[5].mxu0  ;;  %v18876_v29 = vld [vmem:[#allocation7 + $0x4c0] sm:$0xff]  }
 0x382   :  { %17554 = vmatpush3.bf16.msra.mxu1 %v18849_v16  ;;  %v3721_v16 = vadd.f32 %v21303_v37, %v3720_v10  ;;  %vm5002_vm15 = vcmp.ge.f32.partialorder %v3742_v47, 2.0 }
 0x383   :  { %17555 = vmatprep.subr.bf16.mxu1 %v19402_v28  ;;  %v15276_v45 = vcombine.low %v21623_v58, %v21623_v58  ;;  %v15277_v46 = vcombine.high %v21623_v58, %v21623_v58 }
 0x384   :  { %17104 = vmatmul.mubr.msk.bf16.gmra.mrb[152].mxu0 %vm1886_vm1, %v18851_v18  ;;  %v14958_v18 = vsel %vm4996_vm11, 1.0, %v19402_v28  ;;  %vm4997_vm13 = vcmp.ge.f32.partialorder %v3721_v16, 2.0 }
 0x385   :  { %17107 = vmatprep.mubr.msk.bf16.mxu0 %vm1886_vm1, %v18854_v30  ;;  %7235 = vst.msk [vmem:[%s23608_s5 + $0xf8] sm:$0xf] %vm7172_vm14, %v15276_v45  ;;  %7236 = vst.msk [vmem:[%s23608_s5 + $0xfc] sm:$0xf] %vm7172_vm14, %v15277_v46  ;;  %v14959_v60 = vsel %vm4997_vm13, 1.0, %v19402_v28 }
 0x386   :  { %17556 = vmatpush3.bf16.msra.mxu1 %v18852_v50  ;;  %v18874_v50 = vld [vmem:[%s23603_s0 + $0x6c0] sm:$0xff]  }
 0x387   :  { %17557 = vmatprep.subr.bf16.mxu1 %v19402_v28 }
 0x388   :  { %v9297_v9 = vpop.f32.mrb[40].mxu1 }
 0x389   :  { %v21626_v40 = vadd.f32 %v21491_v59, %v9297_v9  ;;  %v17425_v53 = vpop.f32.mrb[41].mxu1  ;;  %v18857_v59 = vld [vmem:[#allocation7 + $0x478] sm:$0xff]   ;;  %v16958_v9 = vpop.f32.mrb[6].mxu0 }
 0x38a   :  { %v9300_v41 = vpop.f32.mrb[42].mxu1  ;;  %17558 = vmatpush3.bf16.msra.mxu1 %v18853_v26  ;;  %v3734_v26 = vadd.f32 %v21303_v37, %v3733_v13  ;;  %v6404_v53 = vpack.c.bf16 %v14959_v60, %v14958_v18 }
 0x38b   :  { %v21636_v63 = vadd.f32 %v21502_v32, %v9300_v41  ;;  %v17426_v25 = vpop.f32.mrb[43].mxu1  ;;  %17559 = vmatprep.subr.bf16.mxu1 %v19402_v28  ;;  %v18859_v32 = vld [vmem:[%s23603_s0 + $0x688] sm:$0xff]   ;;  %v3736_v41 = vpop.f32.mrb[7].mxu0 }
 0x38c   :  { %17108 = vmatmul.mubr.msk.bf16.gmra.mrb[156].mxu0 %vm1886_vm1, %v18855_v39  ;;  %vm5000_vm0 = vcmp.ge.f32.partialorder %v3734_v26, 2.0  ;;  %v3737_v45 = vadd.f32 %v21303_v37, %v3736_v41  ;;  %v16961_v46 = vpop.f32.mrb[8].mxu0  ;;  %v21711_v25 = vmax.bf16 %v6405_v35, %v6404_v53 }
 0x38d   :  { %17111 = vmatprep.mubr.msk.bf16.mxu0 %vm1886_vm1, %v18858_v24  ;;  %v3745_v24 = vadd.f32 %v21303_v37, %v16958_v9  ;;  %v18877_v9 = vld [vmem:[#allocation7 + $0x4c8] sm:$0xff]  }
 0x38e   :  { %17560 = vmatpush3.bf16.msra.mxu1 %v18856_v44  ;;  %v14964_v44 = vsel %vm5002_vm15, 1.0, %v19402_v28  ;;  %vm5001_vm4 = vcmp.ge.f32.partialorder %v3737_v45, 2.0 }
 0x38f   :  { %17561 = vmatprep.subr.bf16.mxu1 %v19402_v28  ;;  %vm5003_vm3 = vcmp.ge.f32.partialorder %v3745_v24, 2.0 }
 0x392   :  { %17562 = vmatpush3.bf16.msra.mxu1 %v18857_v59  ;;  %v3758_v59 = vadd.f32 %v21303_v37, %v16961_v46  ;;  %v18879_v46 = vld [vmem:[%s23603_s0 + $0x6d8] sm:$0xff]  }
 0x393   :  { %17567 = vmatprep.subr.bf16.mxu1 %v19402_v28 }
 0x394   :  { %17112 = vmatmul.mubr.msk.bf16.gmra.mrb[160].mxu0 %vm1886_vm1, %v18859_v32  ;;  %v3749_v32 = vpop.f32.mrb[9].mxu0  ;;  %vm5006_vm5 = vcmp.ge.f32.partialorder %v3758_v59, 2.0 }
 0x395   :  { %17564 = vmatmul.mubr.bf16.vlgmr.msra.gmra.mrb[68].mxu1 %v20916_v22  ;;  %17115 = vmatprep.mubr.msk.bf16.mxu0 %vm1886_vm1, %v18862_v36  ;;  %v18865_v22 = vld [vmem:[#allocation7 + $0x498] sm:$0xff]   ;;  %v14968_v33 = vsel %vm5006_vm5, 1.0, %v19402_v28 }
 0x396   :  { %17568 = vmatpush3.bf16.msra.mxu1 %v18860_v49  ;;  %17583 = vmatprep.mubr.msk.bf16.mxu1 %vm19403_vm2, %v19402_v28  ;;  %v18873_v36 = vld [vmem:[#allocation7 + $0x4b8] sm:$0xff]   ;;  %v14965_v49 = vsel %vm5003_vm3, 1.0, %v19402_v28 }
 0x397   :  { %17569 = vmatprep.subr.bf16.mxu1 %v19402_v28 }
 0x39a   :  { %17570 = vmatpush3.bf16.msra.mxu1 %v18861_v3  ;;  %v3750_v3 = vadd.f32 %v21303_v37, %v3749_v32 }
 0x39b   :  { %17571 = vmatprep.subr.bf16.mxu1 %v19402_v28 }
 0x39c   :  { %17116 = vmatmul.mubr.msk.bf16.gmra.mrb[164].mxu0 %vm1886_vm1, %v18863_v61  ;;  %v16962_v61 = vpop.f32.mrb[10].mxu0  ;;  %vm5004_vm6 = vcmp.ge.f32.partialorder %v3750_v3, 2.0 }
 0x39d   :  { %17119 = vmatprep.mubr.msk.bf16.mxu0 %vm1886_vm1, %v18866_v0  ;;  %v6407_v0 = vpack.c.bf16 %v14965_v49, %v14964_v44  ;;  %v14966_v2 = vsel %vm5004_vm6, 1.0, %v19402_v28  ;;  %v18882_v49 = vld [vmem:[%s23603_s0 + $0x6e0] sm:$0xff]  }
 0x39e   :  { %17572 = vmatpush3.bf16.msra.mxu1 %v18864_v19  ;;  %v14963_v19 = vsel %vm5001_vm4, 1.0, %v19402_v28 }
 0x39f   :  { %17573 = vmatprep.subr.bf16.mxu1 %v19402_v28 }
 0x3a2   :  { %17574 = vmatpush3.bf16.msra.mxu1 %v18865_v22  ;;  %v3761_v22 = vadd.f32 %v21303_v37, %v16962_v61 }
 0x3a3   :  { %17575 = vmatprep.subr.bf16.mxu1 %v19402_v28 }
 0x3a4   :  { %17120 = vmatmul.mubr.msk.bf16.gmra.mrb[168].mxu0 %vm1886_vm1, %v18867_v62  ;;  %v3752_v62 = vpop.f32.mrb[11].mxu0  ;;  %vm5007_vm7 = vcmp.ge.f32.partialorder %v3761_v22, 2.0 }
 0x3a5   :  { %17123 = vmatprep.mubr.msk.bf16.mxu0 %vm1886_vm1, %v18870_v56  ;;  %v18875_v56 = vld [vmem:[%s23603_s0 + $0x6c8] sm:$0xff]   ;;  %v3753_v12 = vadd.f32 %v21303_v37, %v3752_v62  ;;  %v16965_v34 = vpop.f32.mrb[12].mxu0  ;;  %v14969_v16 = vsel %vm5007_vm7, 1.0, %v19402_v28 }
 0x3a6   :  { %17576 = vmatpush3.bf16.msra.mxu1 %v18868_v42  ;;  %v3774_v52 = vadd.f32 %v21303_v37, %v16965_v34 }
 0x3a7   :  { %17577 = vmatprep.subr.bf16.mxu1 %v19402_v28  ;;  %vm5005_vm8 = vcmp.ge.f32.partialorder %v3753_v12, 2.0 }
 0x3a8   :  { %v9386_v17 = vpop.f32.mrb[44].mxu1  ;;  %v14967_v18 = vsel %vm5005_vm8, 1.0, %v19402_v28  ;;  %vm5010_vm9 = vcmp.ge.f32.partialorder %v3774_v52, 2.0 }
 0x3a9   :  { %v21695_v30 = vadd.f32 %v21626_v40, %v9386_v17  ;;  %v17445_v5 = vpop.f32.mrb[45].mxu1 }
 0x3aa   :  { %v9389_v7 = vpop.f32.mrb[46].mxu1  ;;  %17578 = vmatpush3.bf16.msra.mxu1 %v18869_v15  ;;  %v3765_v15 = vpop.f32.mrb[13].mxu0  ;;  %v6408_v5 = vpack.c.bf16 %v14967_v18, %v14966_v2 }
 0x3ab   :  { %v21703_v39 = vadd.f32 %v21636_v63, %v9389_v7  ;;  %v17446_v40 = vpop.f32.mrb[47].mxu1  ;;  %17579 = vmatprep.subr.bf16.mxu1 %v19402_v28  ;;  %v14962_v63 = vsel %vm5000_vm0, 1.0, %v19402_v28  ;;  %v3766_v23 = vadd.f32 %v21303_v37, %v3765_v15  ;;  %v16966_v17 = vpop.f32.mrb[14].mxu0 }
 0x3ac   :  { %17124 = vmatmul.mubr.msk.bf16.gmra.mrb[172].mxu0 %vm1886_vm1, %v18871_v4  ;;  %v6406_v42 = vpack.c.bf16 %v14963_v19, %v14962_v63  ;;  %v6409_v4 = vpack.c.bf16 %v14969_v16, %v14968_v33  ;;  %v3777_v21 = vadd.f32 %v21303_v37, %v16966_v17  ;;  %v3768_v47 = vpop.f32.mrb[15].mxu0  ;;  %v18880_v19 = vld [vmem:[#allocation7 + $0x4d0] sm:$0xff]  }
 0x3ad   :  { %17127 = vmatprep.mubr.msk.bf16.mxu0 %vm1886_vm1, %v18874_v50  ;;  %v14972_v50 = vsel %vm5010_vm9, 1.0, %v19402_v28  ;;  %vm5008_vm10 = vcmp.ge.f32.partialorder %v3766_v23, 2.0  ;;  %v3769_v35 = vadd.f32 %v21303_v37, %v3768_v47  ;;  %v16969_v13 = vpop.f32.mrb[16].mxu0 }
 0x3ae   :  { %17580 = vmatpush3.bf16.msra.mxu1 %v18872_v38  ;;  %v21730_v10 = vmax.bf16 %v6407_v0, %v6406_v42  ;;  %v14970_v7 = vsel %vm5008_vm10, 1.0, %v19402_v28  ;;  %vm5011_vm11 = vcmp.ge.f32.partialorder %v3777_v21, 2.0  ;;  %v21743_v38 = vld [vmem:[#allocation5] ss:$0 sm:$0xff]  ;;  %v3781_v26 = vpop.f32.mrb[17].mxu0  ;;  %v21748_v40 = vmax.bf16 %v6409_v4, %v6408_v5 }
 0x3af   :  { %17581 = vmatprep.subr.bf16.mxu1 %v19402_v28  ;;  %v3790_v60 = vadd.f32 %v21743_v38, %v16969_v13  ;;  %v14973_v37 = vsel %vm5011_vm11, 1.0, %v19402_v28  ;;  %vm5009_vm12 = vcmp.ge.f32.partialorder %v3769_v35, 2.0  ;;  %v16970_v53 = vpop.f32.mrb[18].mxu0  ;;  %v18881_v4 = vld [vmem:[#allocation7 + $0x4d8] sm:$0xff]  }
 0x3b0   :  { %v6411_v24 = vpack.c.bf16 %v14973_v37, %v14972_v50  ;;  %v14971_v41 = vsel %vm5009_vm12, 1.0, %v19402_v28  ;;  %v3793_v44 = vadd.f32 %v21743_v38, %v16970_v53  ;;  %v3784_v45 = vpop.f32.mrb[19].mxu0  ;;  %v18886_v53 = vld [vmem:[%s23603_s0 + $0x6f0] sm:$0xff]  }
 0x3b1   :  { %vm5014_vm13 = vcmp.ge.f32.partialorder %v3790_v60, 2.0  ;;  %v6410_v63 = vpack.c.bf16 %v14971_v41, %v14970_v7  ;;  %v3785_v32 = vadd.f32 %v21743_v38, %v3784_v45  ;;  %v18883_v60 = vld [vmem:[%s23603_s0 + $0x6e8] sm:$0xff]  }
 0x3b2   :  { %17582 = vmatpush3.bf16.msra.mxu1 %v18873_v36  ;;  %v14976_v59 = vsel %vm5014_vm13, 1.0, %v19402_v28  ;;  %v16973_v36 = vpop.f32.mrb[20].mxu0  ;;  %vm5015_vm0 = vcmp.ge.f32.partialorder %v3793_v44, 2.0  ;;  %v18884_v45 = vld [vmem:[#allocation7 + $0x4e0] sm:$0xff]  }
 0x3b3   :  { %17587 = vmatprep.subr.bf16.mxu1 %v19402_v28  ;;  %v3806_v61 = vadd.f32 %v21743_v38, %v16973_v36  ;;  %v3797_v0 = vpop.f32.mrb[21].mxu0  ;;  %v21765_v22 = vmax.bf16 %v6411_v24, %v6410_v63  ;;  %v14977_v62 = vsel %vm5015_vm0, 1.0, %v19402_v28  ;;  %vm5013_vm3 = vcmp.ge.f32.partialorder %v3785_v32, 2.0 }
 0x3b4   :  { %17128 = vmatmul.mubr.msk.bf16.gmra.mrb[176].mxu0 %vm1886_vm1, %v18875_v56  ;;  %v3798_v56 = vadd.f32 %v21743_v38, %v3797_v0  ;;  %v16974_v42 = vpop.f32.mrb[22].mxu0  ;;  %v6413_v33 = vpack.c.bf16 %v14977_v62, %v14976_v59  ;;  %v14975_v12 = vsel %vm5013_vm3, 1.0, %v19402_v28 }
 0x3b5   :  { %17584 = vmatmul.mubr.bf16.vlgmr.msra.gmra.mrb[72].mxu1 %v20949_v54  ;;  %17131 = vmatprep.mubr.msk.bf16.mxu0 %vm1886_vm1, %v18878_v43  ;;  %v3782_v54 = vadd.f32 %v21743_v38, %v3781_v26  ;;  %vm5018_vm4 = vcmp.ge.f32.partialorder %v3806_v61, 2.0  ;;  %v3809_v34 = vadd.f32 %v21743_v38, %v16974_v42  ;;  %v3800_v43 = vpop.f32.mrb[23].mxu0 }
 0x3b6   :  { %17588 = vmatpush3.bf16.msra.mxu1 %v18876_v29  ;;  %17603 = vmatprep.mubr.msk.bf16.mxu1 %vm19403_vm2, %v19402_v28  ;;  %v14980_v52 = vsel %vm5018_vm4, 1.0, %v19402_v28  ;;  %vm5016_vm5 = vcmp.ge.f32.partialorder %v3798_v56, 2.0  ;;  %v3801_v15 = vadd.f32 %v21743_v38, %v3800_v43  ;;  %v16977_v29 = vpop.f32.mrb[24].mxu0 }
 0x3b7   :  { %17589 = vmatprep.subr.bf16.mxu1 %v19402_v28  ;;  %vm5012_vm15 = vcmp.ge.f32.partialorder %v3782_v54, 2.0  ;;  %v14978_v16 = vsel %vm5016_vm5, 1.0, %v19402_v28  ;;  %vm5019_vm6 = vcmp.ge.f32.partialorder %v3809_v34, 2.0  ;;  %v3822_v23 = vadd.f32 %v21743_v38, %v16977_v29  ;;  %v3813_v17 = vpop.f32.mrb[25].mxu0  ;;  %v18885_v34 = vld [vmem:[#allocation7 + $0x4e8] sm:$0xff]  }
 0x3b8   :  { %v14974_v3 = vsel %vm5012_vm15, 1.0, %v19402_v28  ;;  %v14981_v21 = vsel %vm5019_vm6, 1.0, %v19402_v28  ;;  %vm5017_vm7 = vcmp.ge.f32.partialorder %v3801_v15, 2.0  ;;  %v3814_v47 = vadd.f32 %v21743_v38, %v3813_v17  ;;  %v16978_v5 = vpop.f32.mrb[26].mxu0 }
 0x3b9   :  { %v6412_v2 = vpack.c.bf16 %v14975_v12, %v14974_v3  ;;  %v6415_v50 = vpack.c.bf16 %v14981_v21, %v14980_v52  ;;  %v14979_v35 = vsel %vm5017_vm7, 1.0, %v19402_v28  ;;  %vm5022_vm8 = vcmp.ge.f32.partialorder %v3822_v23, 2.0  ;;  %v3816_v7 = vpop.f32.mrb[27].mxu0  ;;  %v18887_v21 = vld [vmem:[%s23603_s0 + $0x6f8] sm:$0xff]  }
 0x3ba   :  { %17590 = vmatpush3.bf16.msra.mxu1 %v18877_v9  ;;  %v3825_v13 = vadd.f32 %v21743_v38, %v16978_v5  ;;  %v6414_v26 = vpack.c.bf16 %v14979_v35, %v14978_v16  ;;  %v14984_v9 = vsel %vm5022_vm8, 1.0, %v19402_v28  ;;  %vm5020_vm9 = vcmp.ge.f32.partialorder %v3814_v47, 2.0  ;;  %v16981_v54 = vpop.f32.mrb[28].mxu0 }
 0x3bb   :  { %17591 = vmatprep.subr.bf16.mxu1 %v19402_v28  ;;  %v21778_v18 = vmax.bf16 %v6413_v33, %v6412_v2  ;;  %v3817_v37 = vadd.f32 %v21743_v38, %v3816_v7  ;;  %v14982_v24 = vsel %vm5020_vm9, 1.0, %v19402_v28  ;;  %v3838_v41 = vadd.f32 %v21743_v38, %v16981_v54  ;;  %v3829_v44 = vpop.f32.mrb[29].mxu0  ;;  %v18890_v7 = vld [vmem:[%s23603_s0 + $0x700] sm:$0xff]  }
 0x3bc   :  { %17132 = vmatmul.mubr.msk.bf16.gmra.mrb[180].mxu0 %vm1886_vm1, %v18879_v46  ;;  %vm5023_vm10 = vcmp.ge.f32.partialorder %v3825_v13, 2.0  ;;  %v21795_v46 = vmax.bf16 %v6415_v50, %v6414_v26  ;;  %v3830_v59 = vadd.f32 %v21743_v38, %v3829_v44  ;;  %v16982_v32 = vpop.f32.mrb[30].mxu0 }
 0x3bd   :  { %17135 = vmatprep.mubr.msk.bf16.mxu0 %vm1886_vm1, %v18882_v49  ;;  %v14985_v63 = vsel %vm5023_vm10, 1.0, %v19402_v28  ;;  %vm5021_vm11 = vcmp.ge.f32.partialorder %v3817_v37, 2.0  ;;  %vm5026_vm12 = vcmp.ge.f32.partialorder %v3838_v41, 2.0  ;;  %v3841_v3 = vadd.f32 %v21743_v38, %v16982_v32  ;;  %v3832_v61 = vpop.f32.mrb[31].mxu0 }
 0x3be   :  { %17592 = vmatpush3.bf16.msra.mxu1 %v18880_v19  ;;  %v6417_v36 = vpack.c.bf16 %v14985_v63, %v14984_v9  ;;  %v14983_v49 = vsel %vm5021_vm11, 1.0, %v19402_v28  ;;  %v14988_v19 = vsel %vm5026_vm12, 1.0, %v19402_v28  ;;  %vm5024_vm13 = vcmp.ge.f32.partialorder %v3830_v59, 2.0  ;;  %v16985_v56 = vpop.f32.mrb[32].mxu0  ;;  %v18888_v9 = vld [vmem:[#allocation7 + $0x4f0] sm:$0xff]  }
 0x3bf   :  { %17593 = vmatprep.subr.bf16.mxu1 %v19402_v28  ;;  %v6416_v0 = vpack.c.bf16 %v14983_v49, %v14982_v24  ;;  %v3833_v62 = vadd.f32 %v21743_v38, %v3832_v61  ;;  %v14986_v42 = vsel %vm5024_vm13, 1.0, %v19402_v28  ;;  %vm5027_vm15 = vcmp.ge.f32.partialorder %v3841_v3, 2.0  ;;  %v3845_v12 = vpop.f32.mrb[33].mxu0  ;;  %v18889_v49 = vld [vmem:[#allocation7 + $0x4f8] sm:$0xff]  }
 0x3c0   :  { %v3854_v33 = vadd.f32 %v21743_v38, %v16985_v56  ;;  %v14989_v2 = vsel %vm5027_vm15, 1.0, %v19402_v28  ;;  %v3846_v52 = vadd.f32 %v21743_v38, %v3845_v12  ;;  %v16986_v15 = vpop.f32.mrb[34].mxu0 }
 0x3c1   :  { %v21808_v43 = vmax.bf16 %v6417_v36, %v6416_v0  ;;  %vm5025_vm0 = vcmp.ge.f32.partialorder %v3833_v62, 2.0  ;;  %v6419_v29 = vpack.c.bf16 %v14989_v2, %v14988_v19  ;;  %v3857_v23 = vadd.f32 %v21743_v38, %v16986_v15  ;;  %v3848_v17 = vpop.f32.mrb[35].mxu0  ;;  %v18894_v15 = vld [vmem:[%s23603_s0 + $0x710] sm:$0xff]  }
 0x3c2   :  { %17594 = vmatpush3.bf16.msra.mxu1 %v18881_v4  ;;  %v14987_v16 = vsel %vm5025_vm0, 1.0, %v19402_v28  ;;  %vm5030_vm3 = vcmp.ge.f32.partialorder %v3854_v33, 2.0  ;;  %vm5028_vm4 = vcmp.ge.f32.partialorder %v3846_v52, 2.0  ;;  %v3849_v50 = vadd.f32 %v21743_v38, %v3848_v17  ;;  %v16989_v44 = vpop.f32.mrb[36].mxu0  ;;  %v18891_v33 = vld [vmem:[%s23603_s0 + $0x708] sm:$0xff]  }
 0x3c3   :  { %17595 = vmatprep.subr.bf16.mxu1 %v19402_v28  ;;  %v6418_v47 = vpack.c.bf16 %v14987_v16, %v14986_v42  ;;  %v14992_v5 = vsel %vm5030_vm3, 1.0, %v19402_v28  ;;  %vm5031_vm5 = vcmp.ge.f32.partialorder %v3857_v23, 2.0  ;;  %v3870_v59 = vadd.f32 %v21743_v38, %v16989_v44  ;;  %v3861_v32 = vpop.f32.mrb[37].mxu0  ;;  %v18955_v42 = vld [vmem:[#allocation7 + $0x838] sm:$0xff]  }
 0x3c4   :  { %17136 = vmatmul.mubr.msk.bf16.gmra.mrb[184].mxu0 %vm1886_vm1, %v18883_v60  ;;  %v14990_v60 = vsel %vm5028_vm4, 1.0, %v19402_v28  ;;  %v14993_v54 = vsel %vm5031_vm5, 1.0, %v19402_v28  ;;  %vm5029_vm6 = vcmp.ge.f32.partialorder %v3849_v50, 2.0  ;;  %v3862_v36 = vadd.f32 %v21743_v38, %v3861_v32 }
 0x3c5   :  { %17139 = vmatprep.mubr.msk.bf16.mxu0 %vm1886_vm1, %v18886_v53  ;;  %v21827_v37 = vmax.bf16 %v6419_v29, %v6418_v47  ;;  %v6421_v24 = vpack.c.bf16 %v14993_v54, %v14992_v5  ;;  %v14991_v41 = vsel %vm5029_vm6, 1.0, %v19402_v28  ;;  %vm5034_vm7 = vcmp.ge.f32.partialorder %v3870_v59, 2.0 }
 0x3c6   :  { %17596 = vmatpush3.bf16.msra.mxu1 %v18884_v45  ;;  %v18953_v45 = vld [vmem:[#allocation7 + $0x830] sm:$0xff]   ;;  %v6420_v63 = vpack.c.bf16 %v14991_v41, %v14990_v60  ;;  %v14996_v19 = vsel %vm5034_vm7, 1.0, %v19402_v28  ;;  %vm5032_vm8 = vcmp.ge.f32.partialorder %v3862_v36, 2.0 }
 0x3c7   :  { %17597 = vmatprep.subr.bf16.mxu1 %v19402_v28  ;;  %17860 = vmatpush3.bf16.msra.mxu0 %v18953_v45  ;;  %v18893_v45 = vld [vmem:[#allocation7 + $0x508] sm:$0xff]  }
 0x3c8   :  { %v9475_v4 = vpop.f32.mrb[48].mxu1  ;;  %v6604_v3 = vmax.bf16 %v6421_v24, %v6420_v63  ;;  %17861 = vmatprep.subr.bf16.mxu0 %v19402_v28 }
 0x3c9   :  { %v21821_v35 = vadd.f32 %v21695_v30, %v9475_v4  ;;  %v17465_v13 = vpop.f32.mrb[49].mxu1 }
 0x3ca   :  { %v9478_v26 = vpop.f32.mrb[50].mxu1  ;;  %17598 = vmatpush3.bf16.msra.mxu1 %v18885_v34  ;;  %v21848_v12 = vmax.bf16 %v6604_v3, %v21711_v25  ;;  %v14994_v34 = vsel %vm5032_vm8, 1.0, %v19402_v28  ;;  %v18892_v25 = vld [vmem:[#allocation7 + $0x500] sm:$0xff]   ;;  %v18895_v3 = vld [vmem:[%s23603_s0 + $0x718] sm:$0xff]  }
 0x3cb   :  { %v21831_v53 = vadd.f32 %v21703_v39, %v9478_v26  ;;  %v17466_v30 = vpop.f32.mrb[51].mxu1  ;;  %17599 = vmatprep.subr.bf16.mxu1 %v19402_v28  ;;  %v16990_v39 = vpop.f32.mrb[38].mxu0  ;;  %17862 = vmatpush3.bf16.msra.mxu0 %v18955_v42 }
 0x3cc   :  { %17140 = vmatmul.mubr.msk.bf16.gmra.mrb[188].mxu0 %vm1886_vm1, %v18887_v21  ;;  %v3873_v61 = vadd.f32 %v21743_v38, %v16990_v39  ;;  %v3864_v0 = vpop.f32.mrb[39].mxu0  ;;  %v15278_v17 = vcombine.low %v21848_v12, %v21848_v12  ;;  %v15279_v4 = vcombine.high %v21848_v12, %v21848_v12  ;;  %17887 = vmatprep.subr.bf16.mxu0 %v19402_v28 }
 0x3cd   :  { %17143 = vmatprep.mubr.msk.bf16.mxu0 %vm1886_vm1, %v18890_v7  ;;  %v3865_v62 = vadd.f32 %v21743_v38, %v3864_v0  ;;  %v16993_v56 = vpop.f32.mrb[40].mxu0 }
 0x3ce   :  { %17600 = vmatpush3.bf16.msra.mxu1 %v18888_v9  ;;  %vm5035_vm9 = vcmp.ge.f32.partialorder %v3873_v61, 2.0  ;;  %v3886_v2 = vadd.f32 %v21743_v38, %v16993_v56  ;;  %v3877_v52 = vpop.f32.mrb[41].mxu0  ;;  %7237 = vst.msk [vmem:[%s23608_s5 + $0x100] sm:$0xf] %vm7172_vm14, %v15278_v17  ;;  %7238 = vst.msk [vmem:[%s23608_s5 + $0x104] sm:$0xf] %vm7172_vm14, %v15279_v4 }
 0x3cf   :  { %17601 = vmatprep.subr.bf16.mxu1 %v19402_v28  ;;  %v14997_v29 = vsel %vm5035_vm9, 1.0, %v19402_v28  ;;  %vm5033_vm10 = vcmp.ge.f32.partialorder %v3865_v62, 2.0  ;;  %v3878_v16 = vadd.f32 %v21743_v38, %v3877_v52  ;;  %v16994_v23 = vpop.f32.mrb[42].mxu0  ;;  %v18898_v56 = vld [vmem:[%s23603_s0 + $0x720] sm:$0xff]  }
 0x3d0   :  { %v6423_v21 = vpack.c.bf16 %v14997_v29, %v14996_v19  ;;  %v14995_v47 = vsel %vm5033_vm10, 1.0, %v19402_v28  ;;  %v3880_v5 = vpop.f32.mrb[43].mxu0  ;;  %vm5038_vm11 = vcmp.ge.f32.partialorder %v3886_v2, 2.0  ;;  %v3889_v13 = vadd.f32 %v21743_v38, %v16994_v23 }
 0x3d1   :  { %v6422_v50 = vpack.c.bf16 %v14995_v47, %v14994_v34  ;;  %vm5036_vm12 = vcmp.ge.f32.partialorder %v3878_v16, 2.0  ;;  %v16997_v7 = vpop.f32.mrb[44].mxu0  ;;  %v15000_v60 = vsel %vm5038_vm11, 1.0, %v19402_v28  ;;  %v3881_v26 = vadd.f32 %v21743_v38, %v3880_v5 }
 0x3d2   :  { %17602 = vmatpush3.bf16.msra.mxu1 %v18889_v49  ;;  %v3902_v9 = vadd.f32 %v21743_v38, %v16997_v7  ;;  %v3893_v54 = vpop.f32.mrb[45].mxu0  ;;  %v14998_v24 = vsel %vm5036_vm12, 1.0, %v19402_v28  ;;  %vm5039_vm13 = vcmp.ge.f32.partialorder %v3889_v13, 2.0 }
 0x3d3   :  { %17607 = vmatprep.subr.bf16.mxu1 %v19402_v28  ;;  %v6605_v30 = vmax.bf16 %v6423_v21, %v6422_v50  ;;  %v3894_v41 = vadd.f32 %v21743_v38, %v3893_v54  ;;  %v16998_v44 = vpop.f32.mrb[46].mxu0  ;;  %v15001_v63 = vsel %vm5039_vm13, 1.0, %v19402_v28  ;;  %vm5037_vm15 = vcmp.ge.f32.partialorder %v3881_v26, 2.0 }
 0x3d4   :  { %17144 = vmatmul.mubr.msk.bf16.gmra.mrb[192].mxu0 %vm1886_vm1, %v18891_v33  ;;  %vm5042_vm0 = vcmp.ge.f32.partialorder %v3902_v9, 2.0  ;;  %v3896_v59 = vpop.f32.mrb[47].mxu0  ;;  %v6425_v32 = vpack.c.bf16 %v15001_v63, %v15000_v60  ;;  %v14999_v36 = vsel %vm5037_vm15, 1.0, %v19402_v28  ;;  %v18897_v9 = vld [vmem:[#allocation7 + $0x518] sm:$0xff]  }
 0x3d5   :  { %17604 = vmatmul.mubr.bf16.vlgmr.msra.gmra.mrb[76].mxu1 %v20985_v55  ;;  %17147 = vmatprep.mubr.msk.bf16.mxu0 %vm1886_vm1, %v18894_v15  ;;  %v3905_v55 = vadd.f32 %v21743_v38, %v16998_v44  ;;  %v15004_v39 = vsel %vm5042_vm0, 1.0, %v19402_v28  ;;  %vm5040_vm3 = vcmp.ge.f32.partialorder %v3894_v41, 2.0  ;;  %v17001_v49 = vpop.f32.mrb[48].mxu0  ;;  %v6424_v61 = vpack.c.bf16 %v14999_v36, %v14998_v24  ;;  %v18896_v15 = vld [vmem:[#allocation7 + $0x510] sm:$0xff]  }
 0x3d6   :  { %17608 = vmatpush3.bf16.msra.mxu1 %v18892_v25  ;;  %17623 = vmatprep.mubr.msk.bf16.mxu1 %vm19403_vm2, %v19402_v28  ;;  %v15002_v0 = vsel %vm5040_vm3, 1.0, %v19402_v28  ;;  %v3897_v19 = vadd.f32 %v21743_v38, %v3896_v59  ;;  %v3909_v62 = vpop.f32.mrb[49].mxu0  ;;  %v3918_v33 = vadd.f32 %v21743_v38, %v17001_v49  ;;  %v21900_v52 = vmax.bf16 %v6605_v30, %v21730_v10 }
 0x3d7   :  { %17609 = vmatprep.subr.bf16.mxu1 %v19402_v28  ;;  %vm5043_vm4 = vcmp.ge.f32.partialorder %v3905_v55, 2.0  ;;  %v3910_v34 = vadd.f32 %v21743_v38, %v3909_v62  ;;  %v17002_v2 = vpop.f32.mrb[50].mxu0  ;;  %v6606_v29 = vmax.bf16 %v6425_v32, %v6424_v61  ;;  %v18899_v55 = vld [vmem:[%s23603_s0 + $0x728] sm:$0xff]  }
 0x3d8   :  { %v15005_v42 = vsel %vm5043_vm4, 1.0, %v19402_v28  ;;  %vm5041_vm5 = vcmp.ge.f32.partialorder %v3897_v19, 2.0  ;;  %v3921_v23 = vadd.f32 %v21743_v38, %v17002_v2  ;;  %v3912_v25 = vpop.f32.mrb[51].mxu0  ;;  %vm5046_vm6 = vcmp.ge.f32.partialorder %v3918_v33, 2.0 }
 0x3d9   :  { %v6427_v16 = vpack.c.bf16 %v15005_v42, %v15004_v39  ;;  %v15003_v17 = vsel %vm5041_vm5, 1.0, %v19402_v28  ;;  %vm5044_vm7 = vcmp.ge.f32.partialorder %v3910_v34, 2.0  ;;  %v3913_v4 = vadd.f32 %v21743_v38, %v3912_v25  ;;  %v17005_v21 = vpop.f32.mrb[52].mxu0  ;;  %v18900_v42 = vld [vmem:[#allocation7 + $0x520] sm:$0xff]  }
 0x3da   :  { %17610 = vmatpush3.bf16.msra.mxu1 %v18893_v45  ;;  %v21908_v10 = vmax.bf16 %v6606_v29, %v21748_v40  ;;  %v6426_v47 = vpack.c.bf16 %v15003_v17, %v15002_v0  ;;  %v15008_v5 = vsel %vm5046_vm6, 1.0, %v19402_v28  ;;  %v15006_v50 = vsel %vm5044_vm7, 1.0, %v19402_v28  ;;  %v3925_v13 = vpop.f32.mrb[53].mxu0 }
 0x3db   :  { %17611 = vmatprep.subr.bf16.mxu1 %v19402_v28  ;;  %vm5047_vm8 = vcmp.ge.f32.partialorder %v3921_v23, 2.0  ;;  %vm5045_vm9 = vcmp.ge.f32.partialorder %v3913_v4, 2.0  ;;  %v3934_v7 = vadd.f32 %v21743_v38, %v17005_v21  ;;  %v3926_v60 = vadd.f32 %v21743_v38, %v3925_v13  ;;  %v17006_v26 = vpop.f32.mrb[54].mxu0  ;;  %v18901_v13 = vld [vmem:[#allocation7 + $0x528] sm:$0xff]  }
 0x3dc   :  { %17148 = vmatmul.mubr.msk.bf16.gmra.mrb[196].mxu0 %vm1886_vm1, %v18895_v3  ;;  %v15282_v40 = vcombine.low %v21908_v10, %v21908_v10  ;;  %v15283_v54 = vcombine.high %v21908_v10, %v21908_v10  ;;  %v21919_v30 = vmax.bf16 %v6427_v16, %v6426_v47  ;;  %v15009_v24 = vsel %vm5047_vm8, 1.0, %v19402_v28  ;;  %v3928_v41 = vpop.f32.mrb[55].mxu0  ;;  %v18902_v3 = vld [vmem:[%s23603_s0 + $0x730] sm:$0xff]  }
 0x3dd   :  { %17151 = vmatprep.mubr.msk.bf16.mxu0 %vm1886_vm1, %v18898_v56  ;;  %v6429_v44 = vpack.c.bf16 %v15009_v24, %v15008_v5  ;;  %v15007_v45 = vsel %vm5045_vm9, 1.0, %v19402_v28  ;;  %vm5050_vm10 = vcmp.ge.f32.partialorder %v3934_v7, 2.0  ;;  %vm5048_vm11 = vcmp.ge.f32.partialorder %v3926_v60, 2.0  ;;  %v17009_v63 = vpop.f32.mrb[56].mxu0 }
 0x3de   :  { %17612 = vmatpush3.bf16.msra.mxu1 %v18896_v15  ;;  %7241 = vst.msk [vmem:[%s23608_s5 + $0x110] sm:$0xf] %vm7172_vm14, %v15282_v40  ;;  %7242 = vst.msk [vmem:[%s23608_s5 + $0x114] sm:$0xf] %vm7172_vm14, %v15283_v54  ;;  %v6428_v59 = vpack.c.bf16 %v15007_v45, %v15006_v50  ;;  %v15012_v32 = vsel %vm5050_vm10, 1.0, %v19402_v28  ;;  %v15010_v36 = vsel %vm5048_vm11, 1.0, %v19402_v28  ;;  %v3937_v39 = vadd.f32 %v21743_v38, %v17006_v26 }
 0x3df   :  { %17613 = vmatprep.subr.bf16.mxu1 %v19402_v28  ;;  %v3941_v49 = vpop.f32.mrb[57].mxu0  ;;  %v3929_v61 = vadd.f32 %v21743_v38, %v3928_v41  ;;  %v3950_v0 = vadd.f32 %v21743_v38, %v17009_v63  ;;  %v15280_v56 = vcombine.low %v21900_v52, %v21900_v52  ;;  %v15281_v15 = vcombine.high %v21900_v52, %v21900_v52  ;;  %v18903_v63 = vld [vmem:[%s23603_s0 + $0x738] sm:$0xff]  }
 0x3e0   :  { %v3942_v19 = vadd.f32 %v21743_v38, %v3941_v49  ;;  %v17010_v62 = vpop.f32.mrb[58].mxu0  ;;  %v6608_v33 = vmax.bf16 %v6429_v44, %v6428_v59  ;;  %vm5051_vm12 = vcmp.ge.f32.partialorder %v3937_v39, 2.0  ;;  %v18906_v49 = vld [vmem:[%s23603_s0 + $0x740] sm:$0xff]  }
 0x3e1   :  { %v3953_v34 = vadd.f32 %v21743_v38, %v17010_v62  ;;  %v3944_v2 = vpop.f32.mrb[59].mxu0  ;;  %v15013_v29 = vsel %vm5051_vm12, 1.0, %v19402_v28  ;;  %vm5049_vm13 = vcmp.ge.f32.partialorder %v3929_v61, 2.0  ;;  %vm5054_vm15 = vcmp.ge.f32.partialorder %v3950_v0, 2.0  ;;  %7239 = vst.msk [vmem:[%s23608_s5 + $0x108] sm:$0xf] %vm7172_vm14, %v15280_v56 }
 0x3e2   :  { %17614 = vmatpush3.bf16.msra.mxu1 %v18897_v9  ;;  %vm5052_vm0 = vcmp.ge.f32.partialorder %v3942_v19, 2.0  ;;  %v17013_v16 = vpop.f32.mrb[60].mxu0  ;;  %v21957_v23 = vmax.bf16 %v6608_v33, %v21778_v18  ;;  %v6431_v25 = vpack.c.bf16 %v15013_v29, %v15012_v32  ;;  %v15011_v17 = vsel %vm5049_vm13, 1.0, %v19402_v28  ;;  %7240 = vst.msk [vmem:[%s23608_s5 + $0x10c] sm:$0xf] %vm7172_vm14, %v15281_v15  ;;  %v18904_v62 = vld [vmem:[#allocation7 + $0x530] sm:$0xff]  }
 0x3e3   :  { %17615 = vmatprep.subr.bf16.mxu1 %v19402_v28  ;;  %v15016_v4 = vsel %vm5054_vm15, 1.0, %v19402_v28  ;;  %v3957_v21 = vpop.f32.mrb[61].mxu0  ;;  %v6430_v47 = vpack.c.bf16 %v15011_v17, %v15010_v36  ;;  %v15014_v5 = vsel %vm5052_vm0, 1.0, %v19402_v28  ;;  %vm5055_vm3 = vcmp.ge.f32.partialorder %v3953_v34, 2.0 }
 0x3e4   :  { %17152 = vmatmul.mubr.msk.bf16.gmra.mrb[200].mxu0 %vm1886_vm1, %v18899_v55  ;;  %v3945_v18 = vadd.f32 %v21743_v38, %v3944_v2  ;;  %v17014_v50 = vpop.f32.mrb[62].mxu0  ;;  %v15286_v7 = vcombine.low %v21957_v23, %v21957_v23  ;;  %v15287_v60 = vcombine.high %v21957_v23, %v21957_v23  ;;  %v15017_v26 = vsel %vm5055_vm3, 1.0, %v19402_v28 }
 0x3e5   :  { %17155 = vmatprep.mubr.msk.bf16.mxu0 %vm1886_vm1, %v18902_v3  ;;  %v3966_v9 = vadd.f32 %v21743_v38, %v17013_v16  ;;  %v3960_v40 = vpop.f32.mrb[63].mxu0  ;;  %v21975_v54 = vmax.bf16 %v6431_v25, %v6430_v47  ;;  %v6433_v24 = vpack.c.bf16 %v15017_v26, %v15016_v4  ;;  %v3958_v41 = vadd.f32 %v21743_v38, %v3957_v21 }
 0x3e6   :  { %17616 = vmatpush3.bf16.msra.mxu1 %v18900_v42  ;;  %vm5053_vm4 = vcmp.ge.f32.partialorder %v3945_v18, 2.0  ;;  %v17017_v44 = vpop.f32.mrb[64].mxu0  ;;  %7245 = vst.msk [vmem:[%s23608_s5 + $0x120] sm:$0xf] %vm7172_vm14, %v15286_v7  ;;  %7246 = vst.msk [vmem:[%s23608_s5 + $0x124] sm:$0xf] %vm7172_vm14, %v15287_v60  ;;  %v3969_v59 = vadd.f32 %v21743_v38, %v17014_v50  ;;  %v3961_v32 = vadd.f32 %v21743_v38, %v3960_v40 }
 0x3e7   :  { %17617 = vmatprep.subr.bf16.mxu1 %v19402_v28  ;;  %v15015_v55 = vsel %vm5053_vm4, 1.0, %v19402_v28  ;;  %vm5058_vm5 = vcmp.ge.f32.partialorder %v3966_v9, 2.0  ;;  %vm5056_vm6 = vcmp.ge.f32.partialorder %v3958_v41, 2.0  ;;  %v3973_v0 = vpop.f32.mrb[65].mxu0 }
 0x3e8   :  { %v9564_v45 = vpop.f32.mrb[52].mxu1  ;;  %v6432_v3 = vpack.c.bf16 %v15015_v55, %v15014_v5  ;;  %v15020_v61 = vsel %vm5058_vm5, 1.0, %v19402_v28  ;;  %v15018_v56 = vsel %vm5056_vm6, 1.0, %v19402_v28  ;;  %vm5059_vm7 = vcmp.ge.f32.partialorder %v3969_v59, 2.0  ;;  %v17018_v42 = vpop.f32.mrb[66].mxu0  ;;  %v18911_v55 = vld [vmem:[%s23603_s0 + $0x750] sm:$0xff]  }
 0x3e9   :  { %v21993_v36 = vadd.f32 %v21821_v35, %v9564_v45  ;;  %v17485_v39 = vpop.f32.mrb[53].mxu1  ;;  %vm5057_vm8 = vcmp.ge.f32.partialorder %v3961_v32, 2.0  ;;  %v3982_v35 = vadd.f32 %v21743_v38, %v17017_v44  ;;  %v15021_v15 = vsel %vm5059_vm7, 1.0, %v19402_v28  ;;  %v3976_v16 = vpop.f32.mrb[67].mxu0  ;;  %v18908_v44 = vld [vmem:[%s23603_s0 + $0x748] sm:$0xff]  }
 0x3ea   :  { %v9567_v19 = vpop.f32.mrb[54].mxu1  ;;  %17618 = vmatpush3.bf16.msra.mxu1 %v18901_v13  ;;  %v6610_v2 = vmax.bf16 %v6433_v24, %v6432_v3  ;;  %v15019_v29 = vsel %vm5057_vm8, 1.0, %v19402_v28  ;;  %v6435_v25 = vpack.c.bf16 %v15021_v15, %v15020_v61  ;;  %v3974_v4 = vadd.f32 %v21743_v38, %v3973_v0  ;;  %v17021_v21 = vpop.f32.mrb[68].mxu0  ;;  %v18905_v13 = vld [vmem:[#allocation7 + $0x538] sm:$0xff]   ;;  %v18909_v3 = vld [vmem:[#allocation7 + $0x540] sm:$0xff]  }
 0x3eb   :  { %v22002_v33 = vadd.f32 %v21831_v53, %v9567_v19  ;;  %v17486_v34 = vpop.f32.mrb[55].mxu1  ;;  %17619 = vmatprep.subr.bf16.mxu1 %v19402_v28  ;;  %v6434_v17 = vpack.c.bf16 %v15019_v29, %v15018_v56  ;;  %vm5062_vm9 = vcmp.ge.f32.partialorder %v3982_v35, 2.0  ;;  %v3985_v5 = vadd.f32 %v21743_v38, %v17018_v42  ;;  %v3989_v50 = vpop.f32.mrb[69].mxu0 }
 0x3ec   :  { %17156 = vmatmul.mubr.msk.bf16.gmra.mrb[204].mxu0 %vm1886_vm1, %v18903_v63  ;;  %v22011_v53 = vmax.bf16 %v6610_v2, %v21808_v43  ;;  %v15024_v47 = vsel %vm5062_vm9, 1.0, %v19402_v28  ;;  %v3977_v18 = vadd.f32 %v21743_v38, %v3976_v16  ;;  %vm5060_vm10 = vcmp.ge.f32.partialorder %v3974_v4, 2.0  ;;  %v17022_v9 = vpop.f32.mrb[70].mxu0 }
 0x3ed   :  { %17159 = vmatprep.mubr.msk.bf16.mxu0 %vm1886_vm1, %v18906_v49  ;;  %v22016_v7 = vmax.bf16 %v6435_v25, %v6434_v17  ;;  %v3998_v60 = vadd.f32 %v21743_v38, %v17021_v21  ;;  %v3990_v26 = vadd.f32 %v21743_v38, %v3989_v50  ;;  %v15022_v24 = vsel %vm5060_vm10, 1.0, %v19402_v28  ;;  %v3992_v41 = vpop.f32.mrb[71].mxu0 }
 0x3ee   :  { %17620 = vmatpush3.bf16.msra.mxu1 %v18904_v62  ;;  %v15290_v43 = vcombine.low %v22011_v53, %v22011_v53  ;;  %v15291_v40 = vcombine.high %v22011_v53, %v22011_v53  ;;  %vm5063_vm11 = vcmp.ge.f32.partialorder %v3985_v5, 2.0  ;;  %vm5061_vm12 = vcmp.ge.f32.partialorder %v3977_v18, 2.0  ;;  %v17025_v63 = vpop.f32.mrb[72].mxu0 }
 0x3ef   :  { %17621 = vmatprep.subr.bf16.mxu1 %v19402_v28  ;;  %v15025_v45 = vsel %vm5063_vm11, 1.0, %v19402_v28  ;;  %vm5066_vm13 = vcmp.ge.f32.partialorder %v3998_v60, 2.0  ;;  %vm5064_vm15 = vcmp.ge.f32.partialorder %v3990_v26, 2.0  ;;  %v15023_v32 = vsel %vm5061_vm12, 1.0, %v19402_v28  ;;  %v4005_v49 = vpop.f32.mrb[73].mxu0 }
 0x3f0   :  { %7249 = vst.msk [vmem:[%s23608_s5 + $0x130] sm:$0xf] %vm7172_vm14, %v15290_v43  ;;  %7250 = vst.msk [vmem:[%s23608_s5 + $0x134] sm:$0xf] %vm7172_vm14, %v15291_v40  ;;  %v6437_v59 = vpack.c.bf16 %v15025_v45, %v15024_v47  ;;  %v15028_v39 = vsel %vm5066_vm13, 1.0, %v19402_v28  ;;  %v6436_v61 = vpack.c.bf16 %v15023_v32, %v15022_v24  ;;  %v4001_v0 = vadd.f32 %v21743_v38, %v17022_v9  ;;  %v17026_v56 = vpop.f32.mrb[74].mxu0 }
 0x3f1   :  { %v3993_v19 = vadd.f32 %v21743_v38, %v3992_v41  ;;  %v4014_v62 = vadd.f32 %v21743_v38, %v17025_v63  ;;  %v15026_v35 = vsel %vm5064_vm15, 1.0, %v19402_v28  ;;  %v4006_v42 = vadd.f32 %v21743_v38, %v4005_v49  ;;  %v4008_v2 = vpop.f32.mrb[75].mxu0  ;;  %v18912_v9 = vld [vmem:[%s23603_s0 + $0x758] sm:$0xff]   ;;  %v18915_v45 = vld [vmem:[%s23603_s0 + $0x760] sm:$0xff]  }
 0x3f2   :  { %17622 = vmatpush3.bf16.msra.mxu1 %v18905_v13  ;;  %v4017_v34 = vadd.f32 %v21743_v38, %v17026_v56  ;;  %v22053_v15 = vmax.bf16 %v21919_v30, %v21765_v22  ;;  %v22056_v29 = vmax.bf16 %v6437_v59, %v6436_v61  ;;  %vm5067_vm0 = vcmp.ge.f32.partialorder %v4001_v0, 2.0  ;;  %v17029_v16 = vpop.f32.mrb[76].mxu0  ;;  %v18910_v30 = vld [vmem:[#allocation7 + $0x548] sm:$0xff]   ;;  %v18913_v59 = vld [vmem:[#allocation7 + $0x550] sm:$0xff]  }
 0x3f3   :  { %17627 = vmatprep.subr.bf16.mxu1 %v19402_v28  ;;  %vm5065_vm3 = vcmp.ge.f32.partialorder %v3993_v19, 2.0  ;;  %vm5070_vm4 = vcmp.ge.f32.partialorder %v4014_v62, 2.0  ;;  %v15029_v25 = vsel %vm5067_vm0, 1.0, %v19402_v28  ;;  %vm5068_vm5 = vcmp.ge.f32.partialorder %v4006_v42, 2.0  ;;  %v4021_v22 = vpop.f32.mrb[77].mxu0 }
 0x3f4   :  { %17160 = vmatmul.mubr.msk.bf16.gmra.mrb[208].mxu0 %vm1886_vm1, %v18908_v44  ;;  %v15027_v17 = vsel %vm5065_vm3, 1.0, %v19402_v28  ;;  %v15032_v4 = vsel %vm5070_vm4, 1.0, %v19402_v28  ;;  %v6439_v21 = vpack.c.bf16 %v15029_v25, %v15028_v39  ;;  %v15030_v5 = vsel %vm5068_vm5, 1.0, %v19402_v28 }
 0x3f5   :  { %17624 = vmatmul.mubr.bf16.vlgmr.msra.gmra.mrb[80].mxu1 %v21021_v8  ;;  %17163 = vmatprep.mubr.msk.bf16.mxu0 %vm1886_vm1, %v18911_v55  ;;  %v6438_v47 = vpack.c.bf16 %v15027_v17, %v15026_v35  ;;  %vm5071_vm6 = vcmp.ge.f32.partialorder %v4017_v34, 2.0  ;;  %v17030_v8 = vpop.f32.mrb[78].mxu0  ;;  %v4009_v50 = vadd.f32 %v21743_v38, %v4008_v2  ;;  %v4030_v13 = vadd.f32 %v21743_v38, %v17029_v16 }
 0x3f6   :  { %17628 = vmatpush3.bf16.msra.mxu1 %v18909_v3  ;;  %17643 = vmatprep.mubr.msk.bf16.mxu1 %vm19403_vm2, %v19402_v28  ;;  %v15033_v18 = vsel %vm5071_vm6, 1.0, %v19402_v28  ;;  %v4022_v60 = vadd.f32 %v21743_v38, %v4021_v22  ;;  %v4024_v26 = vpop.f32.mrb[79].mxu0  ;;  %v4033_v24 = vadd.f32 %v21743_v38, %v17030_v8  ;;  %v18914_v22 = vld [vmem:[#allocation7 + $0x558] sm:$0xff]  }
 0x3f7   :  { %17629 = vmatprep.subr.bf16.mxu1 %v19402_v28  ;;  %v22074_v43 = vmax.bf16 %v6439_v21, %v6438_v47  ;;  %v6441_v40 = vpack.c.bf16 %v15033_v18, %v15032_v4  ;;  %v4025_v41 = vadd.f32 %v21743_v38, %v4024_v26  ;;  %v17033_v44 = vpop.f32.mrb[80].mxu0  ;;  %vm5069_vm7 = vcmp.ge.f32.partialorder %v4009_v50, 2.0 }
 0x3f8   :  { %vm5074_vm8 = vcmp.ge.f32.partialorder %v4030_v13, 2.0  ;;  %vm5072_vm9 = vcmp.ge.f32.partialorder %v4022_v60, 2.0  ;;  %v4046_v63 = vadd.f32 %v21743_v38, %v17033_v44  ;;  %v4037_v55 = vpop.f32.mrb[81].mxu0  ;;  %v15031_v32 = vsel %vm5069_vm7, 1.0, %v19402_v28  ;;  %v18916_v13 = vld [vmem:[%s23603_s0 + $0x768] sm:$0xff]  }
 0x3f9   :  { %v15036_v39 = vsel %vm5074_vm8, 1.0, %v19402_v28  ;;  %v15034_v49 = vsel %vm5072_vm9, 1.0, %v19402_v28  ;;  %vm5075_vm10 = vcmp.ge.f32.partialorder %v4033_v24, 2.0  ;;  %v17034_v3 = vpop.f32.mrb[82].mxu0  ;;  %v6440_v61 = vpack.c.bf16 %v15031_v32, %v15030_v5 }
 0x3fa   :  { %17630 = vmatpush3.bf16.msra.mxu1 %v18910_v30  ;;  %v15037_v0 = vsel %vm5075_vm10, 1.0, %v19402_v28  ;;  %vm5073_vm11 = vcmp.ge.f32.partialorder %v4025_v41, 2.0  ;;  %vm5078_vm12 = vcmp.ge.f32.partialorder %v4046_v63, 2.0  ;;  %v4040_v19 = vpop.f32.mrb[83].mxu0  ;;  %v4038_v42 = vadd.f32 %v21743_v38, %v4037_v55  ;;  %v18917_v55 = vld [vmem:[#allocation7 + $0x560] sm:$0xff]  }
 0x3fb   :  { %17631 = vmatprep.subr.bf16.mxu1 %v19402_v28  ;;  %v6443_v62 = vpack.c.bf16 %v15037_v0, %v15036_v39  ;;  %v15035_v56 = vsel %vm5073_vm11, 1.0, %v19402_v28  ;;  %v15040_v35 = vsel %vm5078_vm12, 1.0, %v19402_v28  ;;  %v17037_v34 = vpop.f32.mrb[84].mxu0  ;;  %v22092_v2 = vmax.bf16 %v6441_v40, %v6440_v61  ;;  %v18919_v40 = vld [vmem:[%s23603_s0 + $0x770] sm:$0xff]  }
 0x3fc   :  { %17164 = vmatmul.mubr.msk.bf16.gmra.mrb[212].mxu0 %vm1886_vm1, %v18912_v9  ;;  %v6442_v16 = vpack.c.bf16 %v15035_v56, %v15034_v49  ;;  %v4049_v25 = vadd.f32 %v21743_v38, %v17034_v3  ;;  %v4041_v17 = vadd.f32 %v21743_v38, %v4040_v19  ;;  %v4053_v4 = vpop.f32.mrb[85].mxu0  ;;  %vm5076_vm13 = vcmp.ge.f32.partialorder %v4038_v42, 2.0 }
 0x3fd   :  { %17167 = vmatprep.mubr.msk.bf16.mxu0 %vm1886_vm1, %v18915_v45  ;;  %v4062_v30 = vadd.f32 %v21743_v38, %v17037_v34  ;;  %v4054_v21 = vadd.f32 %v21743_v38, %v4053_v4  ;;  %v17038_v47 = vpop.f32.mrb[86].mxu0  ;;  %v15284_v5 = vcombine.low %v22053_v15, %v22053_v15  ;;  %v15038_v18 = vsel %vm5076_vm13, 1.0, %v19402_v28  ;;  %v22142_v4 = vld [vmem:[#allocation5] ss:$0 sm:$0xff] }
 0x3fe   :  { %17632 = vmatpush3.bf16.msra.mxu1 %v18913_v59  ;;  %v22101_v8 = vmax.bf16 %v6443_v62, %v6442_v16  ;;  %vm5079_vm15 = vcmp.ge.f32.partialorder %v4049_v25, 2.0  ;;  %vm5077_vm0 = vcmp.ge.f32.partialorder %v4041_v17, 2.0  ;;  %v4056_v50 = vpop.f32.mrb[87].mxu0  ;;  %v4065_v59 = vadd.f32 %v21743_v38, %v17038_v47 }
 0x3ff   :  { %17633 = vmatprep.subr.bf16.mxu1 %v19402_v28  ;;  %v15041_v60 = vsel %vm5079_vm15, 1.0, %v19402_v28  ;;  %v15039_v26 = vsel %vm5077_vm0, 1.0, %v19402_v28  ;;  %vm5082_vm3 = vcmp.ge.f32.partialorder %v4062_v30, 2.0  ;;  %vm5080_vm4 = vcmp.ge.f32.partialorder %v4054_v21, 2.0  ;;  %v17041_v9 = vpop.f32.mrb[88].mxu0 }
 0x400   :  { %7243 = vst.msk [vmem:[%s23608_s5 + $0x118] sm:$0xf] %vm7172_vm14, %v15284_v5  ;;  %v6445_v24 = vpack.c.bf16 %v15041_v60, %v15040_v35  ;;  %v6444_v41 = vpack.c.bf16 %v15039_v26, %v15038_v18  ;;  %v15044_v44 = vsel %vm5082_vm3, 1.0, %v19402_v28  ;;  %v15042_v45 = vsel %vm5080_vm4, 1.0, %v19402_v28  ;;  %v4069_v63 = vpop.f32.mrb[89].mxu0  ;;  %v18920_v60 = vld [vmem:[%s23603_s0 + $0x778] sm:$0xff]  }
 0x401   :  { %v4057_v32 = vadd.f32 %v21743_v38, %v4056_v50  ;;  %v4078_v39 = vadd.f32 %v21743_v38, %v17041_v9  ;;  %v4070_v49 = vadd.f32 %v21743_v38, %v4069_v63  ;;  %v17042_v3 = vpop.f32.mrb[90].mxu0  ;;  %v15285_v62 = vcombine.high %v22053_v15, %v22053_v15 }
 0x402   :  { %17634 = vmatpush3.bf16.msra.mxu1 %v18914_v22  ;;  %v22123_v61 = vmax.bf16 %v6445_v24, %v6444_v41  ;;  %v4081_v0 = vadd.f32 %v21743_v38, %v17042_v3  ;;  %v4072_v19 = vpop.f32.mrb[91].mxu0  ;;  %v22130_v56 = vmax.bf16 %v21975_v54, %v21795_v46  ;;  %vm5083_vm5 = vcmp.ge.f32.partialorder %v4065_v59, 2.0  ;;  %v18918_v46 = vld [vmem:[#allocation7 + $0x568] sm:$0xff]  }
 0x403   :  { %17635 = vmatprep.subr.bf16.mxu1 %v19402_v28  ;;  %vm5081_vm6 = vcmp.ge.f32.partialorder %v4057_v32, 2.0  ;;  %vm5086_vm7 = vcmp.ge.f32.partialorder %v4078_v39, 2.0  ;;  %vm5084_vm8 = vcmp.ge.f32.partialorder %v4070_v49, 2.0  ;;  %v17045_v35 = vpop.f32.mrb[92].mxu0  ;;  %v15045_v42 = vsel %vm5083_vm5, 1.0, %v19402_v28  ;;  %v18921_v32 = vld [vmem:[#allocation7 + $0x570] sm:$0xff]  }
 0x404   :  { %17168 = vmatmul.mubr.msk.bf16.gmra.mrb[216].mxu0 %vm1886_vm1, %v18916_v13  ;;  %v15043_v38 = vsel %vm5081_vm6, 1.0, %v19402_v28  ;;  %v15048_v34 = vsel %vm5086_vm7, 1.0, %v19402_v28  ;;  %v15046_v16 = vsel %vm5084_vm8, 1.0, %v19402_v28  ;;  %v4085_v25 = vpop.f32.mrb[93].mxu0  ;;  %7244 = vst.msk [vmem:[%s23608_s5 + $0x11c] sm:$0xf] %vm7172_vm14, %v15285_v62  ;;  %v6447_v54 = vpack.c.bf16 %v15045_v42, %v15044_v44 }
 0x405   :  { %17171 = vmatprep.mubr.msk.bf16.mxu0 %vm1886_vm1, %v18919_v40  ;;  %v6446_v17 = vpack.c.bf16 %v15043_v38, %v15042_v45  ;;  %vm5087_vm9 = vcmp.ge.f32.partialorder %v4081_v0, 2.0  ;;  %v4073_v22 = vadd.f32 %v22142_v4, %v4072_v19  ;;  %v17046_v30 = vpop.f32.mrb[94].mxu0  ;;  %v4094_v47 = vadd.f32 %v22142_v4, %v17045_v35  ;;  %v18923_v45 = vld [vmem:[%s23603_s0 + $0x780] sm:$0xff]  }
 0x406   :  { %17636 = vmatpush3.bf16.msra.mxu1 %v18917_v55  ;;  %v15049_v21 = vsel %vm5087_vm9, 1.0, %v19402_v28  ;;  %v4086_v5 = vadd.f32 %v22142_v4, %v4085_v25  ;;  %v4097_v18 = vadd.f32 %v22142_v4, %v17046_v30  ;;  %v4088_v50 = vpop.f32.mrb[95].mxu0  ;;  %v18922_v30 = vld [vmem:[#allocation7 + $0x578] sm:$0xff]  }
 0x407   :  { %17637 = vmatprep.subr.bf16.mxu1 %v19402_v28  ;;  %v22153_v26 = vmax.bf16 %v6447_v54, %v6446_v17  ;;  %v6449_v9 = vpack.c.bf16 %v15049_v21, %v15048_v34  ;;  %vm5085_vm10 = vcmp.ge.f32.partialorder %v4073_v22, 2.0  ;;  %v4089_v40 = vadd.f32 %v22142_v4, %v4088_v50  ;;  %v17049_v24 = vpop.f32.mrb[96].mxu0 }
 0x408   :  { %v9653_v13 = vpop.f32.mrb[56].mxu1  ;;  %v15047_v63 = vsel %vm5085_vm10, 1.0, %v19402_v28  ;;  %vm5090_vm11 = vcmp.ge.f32.partialorder %v4094_v47, 2.0  ;;  %vm5088_vm12 = vcmp.ge.f32.partialorder %v4086_v5, 2.0  ;;  %v4101_v55 = vpop.f32.mrb[97].mxu0  ;;  %vm5091_vm13 = vcmp.ge.f32.partialorder %v4097_v18, 2.0 }
 0x409   :  { %v22157_v41 = vadd.f32 %v21993_v36, %v9653_v13  ;;  %v17505_v44 = vpop.f32.mrb[57].mxu1  ;;  %v6448_v39 = vpack.c.bf16 %v15047_v63, %v15046_v16  ;;  %v15052_v49 = vsel %vm5090_vm11, 1.0, %v19402_v28  ;;  %v15050_v3 = vsel %vm5088_vm12, 1.0, %v19402_v28  ;;  %v17050_v36 = vpop.f32.mrb[98].mxu0 }
 0x40a   :  { %v9656_v59 = vpop.f32.mrb[58].mxu1  ;;  %17638 = vmatpush3.bf16.msra.mxu1 %v18918_v46  ;;  %v15053_v62 = vsel %vm5091_vm13, 1.0, %v19402_v28  ;;  %vm5089_vm15 = vcmp.ge.f32.partialorder %v4089_v40, 2.0  ;;  %v4110_v35 = vadd.f32 %v22142_v4, %v17049_v24  ;;  %v4104_v42 = vpop.f32.mrb[99].mxu0  ;;  %v4102_v25 = vadd.f32 %v22142_v4, %v4101_v55 }
 0x40b   :  { %v22166_v0 = vadd.f32 %v22002_v33, %v9656_v59  ;;  %v17506_v19 = vpop.f32.mrb[59].mxu1  ;;  %17639 = vmatprep.subr.bf16.mxu1 %v19402_v28  ;;  %v22172_v38 = vmax.bf16 %v6449_v9, %v6448_v39  ;;  %v6451_v34 = vpack.c.bf16 %v15053_v62, %v15052_v49  ;;  %v15051_v16 = vsel %vm5089_vm15, 1.0, %v19402_v28  ;;  %v17053_v33 = vpop.f32.mrb[100].mxu0  ;;  %v18924_v9 = vld [vmem:[%s23603_s0 + $0x788] sm:$0xff]  }
 0x40c   :  { %17172 = vmatmul.mubr.msk.bf16.gmra.mrb[220].mxu0 %vm1886_vm1, %v18920_v60  ;;  %v6450_v46 = vpack.c.bf16 %v15051_v16, %v15050_v3  ;;  %vm5094_vm0 = vcmp.ge.f32.partialorder %v4110_v35, 2.0  ;;  %v4113_v54 = vadd.f32 %v22142_v4, %v17050_v36  ;;  %v4105_v17 = vadd.f32 %v22142_v4, %v4104_v42  ;;  %v4117_v22 = vpop.f32.mrb[101].mxu0  ;;  %v18925_v49 = vld [vmem:[#allocation7 + $0x580] sm:$0xff]  }
 0x40d   :  { %17175 = vmatprep.mubr.msk.bf16.mxu0 %vm1886_vm1, %v18923_v45  ;;  %v15056_v21 = vsel %vm5094_vm0, 1.0, %v19402_v28  ;;  %vm5092_vm3 = vcmp.ge.f32.partialorder %v4102_v25, 2.0  ;;  %v4126_v47 = vadd.f32 %v22142_v4, %v17053_v33  ;;  %v4118_v5 = vadd.f32 %v22142_v4, %v4117_v22  ;;  %v17054_v18 = vpop.f32.mrb[102].mxu0  ;;  %v18927_v45 = vld [vmem:[%s23603_s0 + $0x790] sm:$0xff]  }
 0x40e   :  { %17640 = vmatpush3.bf16.msra.mxu1 %v18921_v32  ;;  %v22183_v50 = vmax.bf16 %v6451_v34, %v6450_v46  ;;  %v15054_v13 = vsel %vm5092_vm3, 1.0, %v19402_v28  ;;  %vm5095_vm4 = vcmp.ge.f32.partialorder %v4113_v54, 2.0  ;;  %vm5093_vm5 = vcmp.ge.f32.partialorder %v4105_v17, 2.0  ;;  %v4120_v60 = vpop.f32.mrb[103].mxu0 }
 0x40f   :  { %17641 = vmatprep.subr.bf16.mxu1 %v19402_v28  ;;  %v15057_v40 = vsel %vm5095_vm4, 1.0, %v19402_v28  ;;  %v15055_v24 = vsel %vm5093_vm5, 1.0, %v19402_v28  ;;  %vm5098_vm6 = vcmp.ge.f32.partialorder %v4126_v47, 2.0  ;;  %vm5096_vm7 = vcmp.ge.f32.partialorder %v4118_v5, 2.0  ;;  %v17057_v44 = vpop.f32.mrb[104].mxu0 }
 0x410   :  { %v6453_v63 = vpack.c.bf16 %v15057_v40, %v15056_v21  ;;  %v6452_v55 = vpack.c.bf16 %v15055_v24, %v15054_v13  ;;  %v15060_v59 = vsel %vm5098_vm6, 1.0, %v19402_v28  ;;  %v15058_v32 = vsel %vm5096_vm7, 1.0, %v19402_v28  ;;  %v4133_v39 = vpop.f32.mrb[105].mxu0 }
 0x411   :  { %v4129_v3 = vadd.f32 %v22142_v4, %v17054_v18  ;;  %v4121_v36 = vadd.f32 %v22142_v4, %v4120_v60  ;;  %v4142_v19 = vadd.f32 %v22142_v4, %v17057_v44  ;;  %v4134_v62 = vadd.f32 %v22142_v4, %v4133_v39  ;;  %v17058_v35 = vpop.f32.mrb[106].mxu0  ;;  %v18928_v44 = vld [vmem:[%s23603_s0 + $0x798] sm:$0xff]   ;;  %v18931_v39 = vld [vmem:[%s23603_s0 + $0x7a0] sm:$0xff]  }
 0x412   :  { %17642 = vmatpush3.bf16.msra.mxu1 %v18922_v30  ;;  %v6620_v42 = vmax.bf16 %v6453_v63, %v6452_v55  ;;  %v4145_v34 = vadd.f32 %v22142_v4, %v17058_v35  ;;  %v4136_v16 = vpop.f32.mrb[107].mxu0  ;;  %v15288_v25 = vcombine.low %v22130_v56, %v22130_v56  ;;  %v15289_v33 = vcombine.high %v22130_v56, %v22130_v56 }
 0x413   :  { %17647 = vmatprep.subr.bf16.mxu1 %v19402_v28  ;;  %vm5099_vm8 = vcmp.ge.f32.partialorder %v4129_v3, 2.0  ;;  %vm5097_vm9 = vcmp.ge.f32.partialorder %v4121_v36, 2.0  ;;  %vm5102_vm10 = vcmp.ge.f32.partialorder %v4142_v19, 2.0  ;;  %vm5100_vm11 = vcmp.ge.f32.partialorder %v4134_v62, 2.0  ;;  %v17061_v46 = vpop.f32.mrb[108].mxu0  ;;  %v18929_v62 = vld [vmem:[#allocation7 + $0x590] sm:$0xff]  }
 0x414   :  { %17176 = vmatmul.mubr.msk.bf16.gmra.mrb[224].mxu0 %vm1886_vm1, %v18924_v9  ;;  %v22210_v54 = vmax.bf16 %v6620_v42, %v22056_v29  ;;  %v15061_v17 = vsel %vm5099_vm8, 1.0, %v19402_v28  ;;  %v15059_v22 = vsel %vm5097_vm9, 1.0, %v19402_v28  ;;  %v15064_v30 = vsel %vm5102_vm10, 1.0, %v19402_v28  ;;  %v4149_v21 = vpop.f32.mrb[109].mxu0  ;;  %7247 = vst.msk [vmem:[%s23608_s5 + $0x128] sm:$0xf] %vm7172_vm14, %v15288_v25 }
 0x415   :  { %17644 = vmatmul.mubr.bf16.vlgmr.msra.gmra.mrb[84].mxu1 %v21059_v6  ;;  %17179 = vmatprep.mubr.msk.bf16.mxu0 %vm1886_vm1, %v18927_v45  ;;  %7248 = vst.msk [vmem:[%s23608_s5 + $0x12c] sm:$0xf] %vm7172_vm14, %v15289_v33  ;;  %v18926_v6 = vld [vmem:[#allocation7 + $0x588] sm:$0xff]   ;;  %v6455_v29 = vpack.c.bf16 %v15061_v17, %v15060_v59  ;;  %v6454_v47 = vpack.c.bf16 %v15059_v22, %v15058_v32  ;;  %v15062_v5 = vsel %vm5100_vm11, 1.0, %v19402_v28  ;;  %vm5103_vm12 = vcmp.ge.f32.partialorder %v4145_v34, 2.0  ;;  %v17062_v18 = vpop.f32.mrb[110].mxu0 }
 0x416   :  { %17648 = vmatpush3.bf16.msra.mxu1 %v18925_v49  ;;  %17663 = vmatprep.mubr.msk.bf16.mxu1 %vm19403_vm2, %v19402_v28  ;;  %v15294_v13 = vcombine.low %v22210_v54, %v22210_v54  ;;  %v15295_v60 = vcombine.high %v22210_v54, %v22210_v54  ;;  %v15065_v9 = vsel %vm5103_vm12, 1.0, %v19402_v28  ;;  %v4137_v40 = vadd.f32 %v22142_v4, %v4136_v16  ;;  %v4152_v24 = vpop.f32.mrb[111].mxu0 }
 0x417   :  { %17649 = vmatprep.subr.bf16.mxu1 %v19402_v28  ;;  %v6621_v45 = vmax.bf16 %v6455_v29, %v6454_v47  ;;  %v6457_v63 = vpack.c.bf16 %v15065_v9, %v15064_v30  ;;  %v4158_v55 = vadd.f32 %v22142_v4, %v17061_v46  ;;  %v4150_v59 = vadd.f32 %v22142_v4, %v4149_v21  ;;  %v17065_v32 = vpop.f32.mrb[112].mxu0 }
 0x418   :  { %7253 = vst.msk [vmem:[%s23608_s5 + $0x140] sm:$0xf] %vm7172_vm14, %v15294_v13  ;;  %7254 = vst.msk [vmem:[%s23608_s5 + $0x144] sm:$0xf] %vm7172_vm14, %v15295_v60  ;;  %vm5101_vm13 = vcmp.ge.f32.partialorder %v4137_v40, 2.0  ;;  %v4161_v49 = vadd.f32 %v22142_v4, %v17062_v18  ;;  %v4153_v3 = vadd.f32 %v22142_v4, %v4152_v24  ;;  %v4174_v36 = vadd.f32 %v22142_v4, %v17065_v32  ;;  %v4165_v19 = vpop.f32.mrb[113].mxu0 }
 0x419   :  { %v22254_v35 = vmax.bf16 %v6621_v45, %v22074_v43  ;;  %v15063_v42 = vsel %vm5101_vm13, 1.0, %v19402_v28  ;;  %vm5106_vm15 = vcmp.ge.f32.partialorder %v4158_v55, 2.0  ;;  %vm5104_vm0 = vcmp.ge.f32.partialorder %v4150_v59, 2.0  ;;  %v17066_v34 = vpop.f32.mrb[114].mxu0  ;;  %v18932_v59 = vld [vmem:[%s23603_s0 + $0x7a8] sm:$0xff]  }
 0x41a   :  { %17650 = vmatpush3.bf16.msra.mxu1 %v18926_v6  ;;  %v6456_v16 = vpack.c.bf16 %v15063_v42, %v15062_v5  ;;  %v15068_v25 = vsel %vm5106_vm15, 1.0, %v19402_v28  ;;  %v15066_v33 = vsel %vm5104_vm0, 1.0, %v19402_v28  ;;  %vm5107_vm3 = vcmp.ge.f32.partialorder %v4161_v49, 2.0  ;;  %v4168_v46 = vpop.f32.mrb[115].mxu0  ;;  %v18930_v5 = vld [vmem:[#allocation7 + $0x598] sm:$0xff]  }
 0x41b   :  { %17651 = vmatprep.subr.bf16.mxu1 %v19402_v28  ;;  %v15296_v43 = vcombine.low %v22254_v35, %v22254_v35  ;;  %v15297_v17 = vcombine.high %v22254_v35, %v22254_v35  ;;  %v15069_v22 = vsel %vm5107_vm3, 1.0, %v19402_v28  ;;  %vm5105_vm4 = vcmp.ge.f32.partialorder %v4153_v3, 2.0  ;;  %v17069_v30 = vpop.f32.mrb[116].mxu0 }
 0x41c   :  { %17180 = vmatmul.mubr.msk.bf16.gmra.mrb[228].mxu0 %vm1886_vm1, %v18928_v44  ;;  %v6622_v21 = vmax.bf16 %v6457_v63, %v6456_v16  ;;  %v6459_v6 = vpack.c.bf16 %v15069_v22, %v15068_v25  ;;  %v15067_v29 = vsel %vm5105_vm4, 1.0, %v19402_v28  ;;  %vm5110_vm5 = vcmp.ge.f32.partialorder %v4174_v36, 2.0  ;;  %v4181_v47 = vpop.f32.mrb[117].mxu0 }
 0x41d   :  { %17183 = vmatprep.mubr.msk.bf16.mxu0 %vm1886_vm1, %v18931_v39  ;;  %7255 = vst.msk [vmem:[%s23608_s5 + $0x148] sm:$0xf] %vm7172_vm14, %v15296_v43  ;;  %7256 = vst.msk [vmem:[%s23608_s5 + $0x14c] sm:$0xf] %vm7172_vm14, %v15297_v17  ;;  %v6458_v18 = vpack.c.bf16 %v15067_v29, %v15066_v33  ;;  %v15072_v13 = vsel %vm5110_vm5, 1.0, %v19402_v28  ;;  %v4166_v60 = vadd.f32 %v22142_v4, %v4165_v19  ;;  %v17070_v40 = vpop.f32.mrb[118].mxu0 }
 0x41e   :  { %17652 = vmatpush3.bf16.msra.mxu1 %v18929_v62  ;;  %v4177_v9 = vadd.f32 %v22142_v4, %v17066_v34  ;;  %v22281_v24 = vmax.bf16 %v6622_v21, %v22092_v2  ;;  %v4169_v44 = vadd.f32 %v22142_v4, %v4168_v46  ;;  %v4190_v45 = vadd.f32 %v22142_v4, %v17069_v30  ;;  %v4184_v55 = vpop.f32.mrb[119].mxu0  ;;  %v18935_v2 = vld [vmem:[%s23603_s0 + $0x7b0] sm:$0xff]  }
 0x41f   :  { %17653 = vmatprep.subr.bf16.mxu1 %v19402_v28  ;;  %v4182_v63 = vadd.f32 %v22142_v4, %v4181_v47  ;;  %v6623_v32 = vmax.bf16 %v6459_v6, %v6458_v18  ;;  %vm5108_vm6 = vcmp.ge.f32.partialorder %v4166_v60, 2.0  ;;  %v4193_v39 = vadd.f32 %v22142_v4, %v17070_v40  ;;  %v17073_v49 = vpop.f32.mrb[120].mxu0  ;;  %v18933_v34 = vld [vmem:[#allocation7 + $0x5a0] sm:$0xff]   ;;  %v18934_v60 = vld [vmem:[#allocation7 + $0x5a8] sm:$0xff]  }
 0x420   :  { %vm5111_vm7 = vcmp.ge.f32.partialorder %v4177_v9, 2.0  ;;  %v15298_v3 = vcombine.low %v22281_v24, %v22281_v24  ;;  %v15299_v36 = vcombine.high %v22281_v24, %v22281_v24  ;;  %v15070_v19 = vsel %vm5108_vm6, 1.0, %v19402_v28  ;;  %v4197_v42 = vpop.f32.mrb[121].mxu0 }
 0x421   :  { %v15073_v62 = vsel %vm5111_vm7, 1.0, %v19402_v28  ;;  %v22300_v16 = vmax.bf16 %v6623_v32, %v22101_v8  ;;  %vm5109_vm8 = vcmp.ge.f32.partialorder %v4169_v44, 2.0  ;;  %vm5114_vm9 = vcmp.ge.f32.partialorder %v4190_v45, 2.0  ;;  %v17074_v33 = vpop.f32.mrb[122].mxu0 }
 0x422   :  { %17654 = vmatpush3.bf16.msra.mxu1 %v18930_v5  ;;  %v6461_v25 = vpack.c.bf16 %v15073_v62, %v15072_v13  ;;  %7257 = vst.msk [vmem:[%s23608_s5 + $0x150] sm:$0xf] %vm7172_vm14, %v15298_v3  ;;  %7258 = vst.msk [vmem:[%s23608_s5 + $0x154] sm:$0xf] %vm7172_vm14, %v15299_v36  ;;  %v15071_v46 = vsel %vm5109_vm8, 1.0, %v19402_v28  ;;  %v15076_v8 = vsel %vm5114_vm9, 1.0, %v19402_v28  ;;  %v4185_v47 = vadd.f32 %v22142_v4, %v4184_v55 }
 0x423   :  { %17655 = vmatprep.subr.bf16.mxu1 %v19402_v28  ;;  %vm5112_vm10 = vcmp.ge.f32.partialorder %v4182_v63, 2.0  ;;  %vm5115_vm11 = vcmp.ge.f32.partialorder %v4193_v39, 2.0  ;;  %v4200_v43 = vpop.f32.mrb[123].mxu0  ;;  %v15300_v17 = vcombine.low %v22300_v16, %v22300_v16  ;;  %v15301_v22 = vcombine.high %v22300_v16, %v22300_v16  ;;  %v18936_v39 = vld [vmem:[%s23603_s0 + $0x7b8] sm:$0xff]  }
 0x424   :  { %17184 = vmatmul.mubr.msk.bf16.gmra.mrb[232].mxu0 %vm1886_vm1, %v18932_v59  ;;  %v6460_v30 = vpack.c.bf16 %v15071_v46, %v15070_v19  ;;  %v15074_v21 = vsel %vm5112_vm10, 1.0, %v19402_v28  ;;  %v17077_v6 = vpop.f32.mrb[124].mxu0  ;;  %v15077_v29 = vsel %vm5115_vm11, 1.0, %v19402_v28  ;;  %v4206_v5 = vadd.f32 %v22142_v4, %v17073_v49  ;;  %v18937_v46 = vld [vmem:[#allocation7 + $0x5b0] sm:$0xff]  }
 0x425   :  { %17187 = vmatprep.mubr.msk.bf16.mxu0 %vm1886_vm1, %v18935_v2  ;;  %v4198_v18 = vadd.f32 %v22142_v4, %v4197_v42  ;;  %v4213_v13 = vpop.f32.mrb[125].mxu0  ;;  %7259 = vst.msk [vmem:[%s23608_s5 + $0x158] sm:$0xf] %vm7172_vm14, %v15300_v17  ;;  %7260 = vst.msk [vmem:[%s23608_s5 + $0x15c] sm:$0xf] %vm7172_vm14, %v15301_v22  ;;  %v6463_v40 = vpack.c.bf16 %v15077_v29, %v15076_v8  ;;  %v4209_v44 = vadd.f32 %v22142_v4, %v17074_v33 }
 0x426   :  { %17656 = vmatpush3.bf16.msra.mxu1 %v18933_v34  ;;  %v6624_v9 = vmax.bf16 %v6461_v25, %v6460_v30  ;;  %v4201_v45 = vadd.f32 %v22142_v4, %v4200_v43  ;;  %v17078_v63 = vpop.f32.mrb[126].mxu0  ;;  %vm5113_vm12 = vcmp.ge.f32.partialorder %v4185_v47, 2.0  ;;  %vm5118_vm13 = vcmp.ge.f32.partialorder %v4206_v5, 2.0  ;;  %v18939_v34 = vld [vmem:[%s23603_s0 + $0x7c0] sm:$0xff]  }
 0x427   :  { %17657 = vmatprep.subr.bf16.mxu1 %v19402_v28  ;;  %vm5116_vm15 = vcmp.ge.f32.partialorder %v4198_v18, 2.0  ;;  %v4222_v55 = vadd.f32 %v22142_v4, %v17077_v6  ;;  %v4216_v59 = vpop.f32.mrb[127].mxu0  ;;  %v15075_v2 = vsel %vm5113_vm12, 1.0, %v19402_v28  ;;  %v15080_v3 = vsel %vm5118_vm13, 1.0, %v19402_v28 }
 0x428   :  { %v9742_v32 = vpop.f32.mrb[60].mxu1  ;;  %v22340_v49 = vmax.bf16 %v6624_v9, %v22123_v61  ;;  %v15078_v36 = vsel %vm5116_vm15, 1.0, %v19402_v28  ;;  %v17081_v19 = vpop.f32.mrb[128].mxu0  ;;  %v6462_v25 = vpack.c.bf16 %v15075_v2, %v15074_v21  ;;  %vm5119_vm0 = vcmp.ge.f32.partialorder %v4209_v44, 2.0  ;;  %v18940_v2 = vld [vmem:[%s23603_s0 + $0x7c8] sm:$0xff]  }
 0x429   :  { %v22346_v62 = vadd.f32 %v22157_v41, %v9742_v32  ;;  %v17525_v42 = vpop.f32.mrb[61].mxu1  ;;  %vm5117_vm3 = vcmp.ge.f32.partialorder %v4201_v45, 2.0  ;;  %v4229_v61 = vpop.f32.mrb[129].mxu0  ;;  %v15081_v41 = vsel %vm5119_vm0, 1.0, %v19402_v28  ;;  %vm5122_vm4 = vcmp.ge.f32.partialorder %v4222_v55, 2.0  ;;  %v18938_v32 = vld [vmem:[#allocation7 + $0x5b8] sm:$0xff]  }
 0x42a   :  { %v9745_v33 = vpop.f32.mrb[62].mxu1  ;;  %17658 = vmatpush3.bf16.msra.mxu1 %v18934_v60  ;;  %v15302_v8 = vcombine.low %v22340_v49, %v22340_v49  ;;  %v15303_v43 = vcombine.high %v22340_v49, %v22340_v49  ;;  %v15079_v17 = vsel %vm5117_vm3, 1.0, %v19402_v28  ;;  %v17082_v22 = vpop.f32.mrb[130].mxu0  ;;  %v6625_v6 = vmax.bf16 %v6463_v40, %v6462_v25  ;;  %v18943_v42 = vld [vmem:[%s23603_s0 + $0x7d0] sm:$0xff]  }
 0x42b   :  { %v22358_v30 = vadd.f32 %v22166_v0, %v9745_v33  ;;  %v17526_v21 = vpop.f32.mrb[63].mxu1  ;;  %17659 = vmatprep.subr.bf16.mxu1 %v19402_v28  ;;  %v6465_v29 = vpack.c.bf16 %v15081_v41, %v15080_v3  ;;  %v6464_v47 = vpack.c.bf16 %v15079_v17, %v15078_v36  ;;  %v4232_v5 = vpop.f32.mrb[131].mxu0  ;;  %v4214_v0 = vadd.f32 %v22142_v4, %v4213_v13 }
 0x42c   :  { %17188 = vmatmul.mubr.msk.bf16.gmra.mrb[236].mxu0 %vm1886_vm1, %v18936_v39  ;;  %7261 = vst.msk [vmem:[%s23608_s5 + $0x160] sm:$0xf] %vm7172_vm14, %v15302_v8  ;;  %7262 = vst.msk [vmem:[%s23608_s5 + $0x164] sm:$0xf] %vm7172_vm14, %v15303_v43  ;;  %v4225_v18 = vadd.f32 %v22142_v4, %v17078_v63  ;;  %v4217_v60 = vadd.f32 %v22142_v4, %v4216_v59  ;;  %v22375_v9 = vmax.bf16 %v6625_v6, %v22153_v26 }
 0x42d   :  { %17191 = vmatprep.mubr.msk.bf16.mxu0 %vm1886_vm1, %v18939_v34  ;;  %v6626_v40 = vmax.bf16 %v6465_v29, %v6464_v47  ;;  %v15084_v44 = vsel %vm5122_vm4, 1.0, %v19402_v28  ;;  %v4238_v45 = vadd.f32 %v22142_v4, %v17081_v19  ;;  %vm5120_vm5 = vcmp.ge.f32.partialorder %v4214_v0, 2.0 }
 0x42e   :  { %17660 = vmatpush3.bf16.msra.mxu1 %v18937_v46  ;;  %vm5123_vm6 = vcmp.ge.f32.partialorder %v4225_v18, 2.0  ;;  %vm5121_vm7 = vcmp.ge.f32.partialorder %v4217_v60, 2.0  ;;  %v4230_v13 = vadd.f32 %v22142_v4, %v4229_v61  ;;  %v15304_v63 = vcombine.low %v22375_v9, %v22375_v9  ;;  %v18941_v46 = vld [vmem:[#allocation7 + $0x5c0] sm:$0xff]  }
 0x42f   :  { %17661 = vmatprep.subr.bf16.mxu1 %v19402_v28  ;;  %v15305_v26 = vcombine.high %v22375_v9, %v22375_v9  ;;  %v22386_v55 = vmax.bf16 %v6626_v40, %v22172_v38  ;;  %v15082_v59 = vsel %vm5120_vm5, 1.0, %v19402_v28  ;;  %v17085_v39 = vpop.f32.mrb[132].mxu0  ;;  %v15085_v3 = vsel %vm5123_vm6, 1.0, %v19402_v28 }
 0x430   :  { %v15083_v36 = vsel %vm5121_vm7, 1.0, %v19402_v28  ;;  %vm5126_vm8 = vcmp.ge.f32.partialorder %v4238_v45, 2.0  ;;  %vm5124_vm9 = vcmp.ge.f32.partialorder %v4230_v13, 2.0  ;;  %v4245_v19 = vpop.f32.mrb[133].mxu0  ;;  %7263 = vst.msk [vmem:[%s23608_s5 + $0x168] sm:$0xf] %vm7172_vm14, %v15304_v63  ;;  %v6467_v25 = vpack.c.bf16 %v15085_v3, %v15084_v44 }
 0x431   :  { %7264 = vst.msk [vmem:[%s23608_s5 + $0x16c] sm:$0xf] %vm7172_vm14, %v15305_v26  ;;  %v15306_v38 = vcombine.low %v22386_v55, %v22386_v55  ;;  %v15307_v34 = vcombine.high %v22386_v55, %v22386_v55  ;;  %v6466_v61 = vpack.c.bf16 %v15083_v36, %v15082_v59  ;;  %v17086_v33 = vpop.f32.mrb[134].mxu0  ;;  %v15088_v8 = vsel %vm5126_vm8, 1.0, %v19402_v28  ;;  %v18942_v44 = vld [vmem:[#allocation7 + $0x5c8] sm:$0xff]   ;;  %v18947_v3 = vld [vmem:[%s23603_s0 + $0x7e0] sm:$0xff]  }
 0x432   :  { %17662 = vmatpush3.bf16.msra.mxu1 %v18938_v32  ;;  %v15086_v43 = vsel %vm5124_vm9, 1.0, %v19402_v28  ;;  %v4241_v41 = vadd.f32 %v22142_v4, %v17082_v22  ;;  %v4233_v17 = vadd.f32 %v22142_v4, %v4232_v5  ;;  %v4248_v21 = vpop.f32.mrb[135].mxu0  ;;  %v4254_v29 = vadd.f32 %v22142_v4, %v17085_v39  ;;  %v18944_v63 = vld [vmem:[%s23603_s0 + $0x7d8] sm:$0xff]  }
 0x433   :  { %17667 = vmatprep.subr.bf16.mxu1 %v19402_v28  ;;  %7265 = vst.msk [vmem:[%s23608_s5 + $0x170] sm:$0xf] %vm7172_vm14, %v15306_v38  ;;  %7266 = vst.msk [vmem:[%s23608_s5 + $0x174] sm:$0xf] %vm7172_vm14, %v15307_v34  ;;  %v6627_v6 = vmax.bf16 %v6467_v25, %v6466_v61  ;;  %v4246_v22 = vadd.f32 %v22142_v4, %v4245_v19  ;;  %v4257_v47 = vadd.f32 %v22142_v4, %v17086_v33  ;;  %v18945_v25 = vld [vmem:[#allocation7 + $0x5d0] sm:$0xff]  }
 0x434   :  { %17192 = vmatmul.mubr.msk.bf16.gmra.mrb[240].mxu0 %vm1886_vm1, %v18940_v2  ;;  %vm5127_vm10 = vcmp.ge.f32.partialorder %v4241_v41, 2.0  ;;  %vm5125_vm11 = vcmp.ge.f32.partialorder %v4233_v17, 2.0  ;;  %v4249_v5 = vadd.f32 %v22142_v4, %v4248_v21  ;;  %v22429_v0 = vmax.bf16 %v22016_v7, %v21827_v37 }
 0x435   :  { %17664 = vmatmul.mubr.bf16.vlgmr.msra.gmra.mrb[88].mxu1 %v21092_v51  ;;  %17195 = vmatprep.mubr.msk.bf16.mxu0 %vm1886_vm1, %v18943_v42  ;;  %v22434_v18 = vmax.bf16 %v6627_v6, %v22183_v50  ;;  %v15089_v60 = vsel %vm5127_vm10, 1.0, %v19402_v28  ;;  %v15087_v40 = vsel %vm5125_vm11, 1.0, %v19402_v28  ;;  %vm5130_vm12 = vcmp.ge.f32.partialorder %v4254_v29, 2.0  ;;  %v18946_v29 = vld [vmem:[#allocation7 + $0x5d8] sm:$0xff]  }
 0x436   :  { %17668 = vmatpush3.bf16.msra.mxu1 %v18941_v46  ;;  %17683 = vmatprep.mubr.msk.bf16.mxu1 %vm19403_vm2, %v19402_v28  ;;  %v6469_v45 = vpack.c.bf16 %v15089_v60, %v15088_v8  ;;  %v6468_v37 = vpack.c.bf16 %v15087_v40, %v15086_v43  ;;  %v15092_v7 = vsel %vm5130_vm12, 1.0, %v19402_v28  ;;  %vm5128_vm13 = vcmp.ge.f32.partialorder %v4246_v22, 2.0  ;;  %v18948_v40 = vld [vmem:[%s23603_s0 + $0x7e8] sm:$0xff]  }
 0x437   :  { %17669 = vmatprep.subr.bf16.mxu1 %v19402_v28  ;;  %v15308_v51 = vcombine.low %v22434_v18, %v22434_v18  ;;  %v15309_v50 = vcombine.high %v22434_v18, %v22434_v18  ;;  %v15090_v32 = vsel %vm5128_vm13, 1.0, %v19402_v28  ;;  %vm5131_vm15 = vcmp.ge.f32.partialorder %v4257_v47, 2.0  ;;  %v17089_v13 = vpop.f32.mrb[136].mxu0 }
 0x438   :  { %v22450_v26 = vmax.bf16 %v6469_v45, %v6468_v37  ;;  %v15093_v59 = vsel %vm5131_vm15, 1.0, %v19402_v28  ;;  %vm5129_vm0 = vcmp.ge.f32.partialorder %v4249_v5, 2.0  ;;  %v4270_v39 = vadd.f32 %v22142_v4, %v17089_v13  ;;  %v4261_v2 = vpop.f32.mrb[137].mxu0  ;;  %v18951_v37 = vld [vmem:[%s23603_s0 + $0x7f0] sm:$0xff]  }
 0x439   :  { %7267 = vst.msk [vmem:[%s23608_s5 + $0x178] sm:$0xf] %vm7172_vm14, %v15308_v51  ;;  %7268 = vst.msk [vmem:[%s23608_s5 + $0x17c] sm:$0xf] %vm7172_vm14, %v15309_v50  ;;  %v6471_v36 = vpack.c.bf16 %v15093_v59, %v15092_v7  ;;  %v15091_v19 = vsel %vm5129_vm0, 1.0, %v19402_v28  ;;  %v4262_v42 = vadd.f32 %v22142_v4, %v4261_v2  ;;  %v17090_v38 = vpop.f32.mrb[138].mxu0  ;;  %v15292_v34 = vcombine.low %v22429_v0, %v22429_v0 }
 0x43a   :  { %17670 = vmatpush3.bf16.msra.mxu1 %v18942_v44  ;;  %v6470_v61 = vpack.c.bf16 %v15091_v19, %v15090_v32  ;;  %vm5134_vm3 = vcmp.ge.f32.partialorder %v4270_v39, 2.0  ;;  %v4273_v33 = vadd.f32 %v22142_v4, %v17090_v38  ;;  %v4264_v46 = vpop.f32.mrb[139].mxu0  ;;  %v15293_v8 = vcombine.high %v22429_v0, %v22429_v0  ;;  %v18949_v32 = vld [vmem:[#allocation7 + $0x5e0] sm:$0xff]  }
 0x43b   :  { %17671 = vmatprep.subr.bf16.mxu1 %v19402_v28  ;;  %v15096_v43 = vsel %vm5134_vm3, 1.0, %v19402_v28  ;;  %vm5132_vm4 = vcmp.ge.f32.partialorder %v4262_v42, 2.0  ;;  %v4265_v41 = vadd.f32 %v22142_v4, %v4264_v46  ;;  %7251 = vst.msk [vmem:[%s23608_s5 + $0x138] sm:$0xf] %vm7172_vm14, %v15292_v34 }
 0x43c   :  { %17196 = vmatmul.mubr.msk.bf16.gmra.mrb[244].mxu0 %vm1886_vm1, %v18944_v63  ;;  %v22480_v17 = vmax.bf16 %v6471_v36, %v6470_v61  ;;  %v15094_v21 = vsel %vm5132_vm4, 1.0, %v19402_v28  ;;  %vm5135_vm5 = vcmp.ge.f32.partialorder %v4273_v33, 2.0  ;;  %7252 = vst.msk [vmem:[%s23608_s5 + $0x13c] sm:$0xf] %vm7172_vm14, %v15293_v8  ;;  %v18950_v36 = vld [vmem:[#allocation7 + $0x5e8] sm:$0xff]  }
 0x43d   :  { %17199 = vmatprep.mubr.msk.bf16.mxu0 %vm1886_vm1, %v18947_v3  ;;  %v15097_v6 = vsel %vm5135_vm5, 1.0, %v19402_v28  ;;  %vm5133_vm6 = vcmp.ge.f32.partialorder %v4265_v41, 2.0  ;;  %v18952_v61 = vld [vmem:[%s23603_s0 + $0x7f8] sm:$0xff]  }
 0x43e   :  { %17672 = vmatpush3.bf16.msra.mxu1 %v18945_v25  ;;  %v6473_v22 = vpack.c.bf16 %v15097_v6, %v15096_v43  ;;  %v15095_v47 = vsel %vm5133_vm6, 1.0, %v19402_v28 }
 0x43f   :  { %17673 = vmatprep.subr.bf16.mxu1 %v19402_v28  ;;  %v6472_v5 = vpack.c.bf16 %v15095_v47, %v15094_v21  ;;  %v17093_v60 = vpop.f32.mrb[140].mxu0 }
 0x440   :  { %v4286_v44 = vadd.f32 %v22142_v4, %v17093_v60  ;;  %v4277_v45 = vpop.f32.mrb[141].mxu0 }
 0x441   :  { %v22498_v7 = vmax.bf16 %v6473_v22, %v6472_v5  ;;  %v4278_v51 = vadd.f32 %v22142_v4, %v4277_v45  ;;  %v17094_v50 = vpop.f32.mrb[142].mxu0  ;;  %v18954_v22 = vld [vmem:[#allocation7 + $0x5f0] sm:$0xff]  }
 0x442   :  { %17674 = vmatpush3.bf16.msra.mxu1 %v18946_v29  ;;  %vm5138_vm7 = vcmp.ge.f32.partialorder %v4286_v44, 2.0  ;;  %v4289_v13 = vadd.f32 %v22142_v4, %v17094_v50  ;;  %v4280_v63 = vpop.f32.mrb[143].mxu0 }
 0x443   :  { %17675 = vmatprep.subr.bf16.mxu1 %v19402_v28  ;;  %v15100_v59 = vsel %vm5138_vm7, 1.0, %v19402_v28  ;;  %vm5136_vm8 = vcmp.ge.f32.partialorder %v4278_v51, 2.0  ;;  %v4281_v39 = vadd.f32 %v22142_v4, %v4280_v63 }
 0x444   :  { %17200 = vmatmul.mubr.msk.bf16.gmra.mrb[248].mxu0 %vm1886_vm1, %v18948_v40  ;;  %v15098_v2 = vsel %vm5136_vm8, 1.0, %v19402_v28  ;;  %vm5139_vm9 = vcmp.ge.f32.partialorder %v4289_v13, 2.0 }
 0x445   :  { %17203 = vmatprep.mubr.msk.bf16.mxu0 %vm1886_vm1, %v18951_v37  ;;  %v15101_v3 = vsel %vm5139_vm9, 1.0, %v19402_v28  ;;  %vm5137_vm10 = vcmp.ge.f32.partialorder %v4281_v39, 2.0  ;;  %v18957_v39 = vld [vmem:[#allocation7 + $0x880] sm:$0xff]  }
 0x446   :  { %17676 = vmatpush3.bf16.msra.mxu1 %v18949_v32  ;;  %v6475_v19 = vpack.c.bf16 %v15101_v3, %v15100_v59  ;;  %v15099_v42 = vsel %vm5137_vm10, 1.0, %v19402_v28 }
 0x447   :  { %17677 = vmatprep.subr.bf16.mxu1 %v19402_v28  ;;  %v6474_v38 = vpack.c.bf16 %v15099_v42, %v15098_v2  ;;  %v17097_v34 = vpop.f32.mrb[144].mxu0 }
 0x448   :  { %v9831_v25 = vpop.f32.mrb[64].mxu1  ;;  %v4302_v33 = vadd.f32 %v22142_v4, %v17097_v34  ;;  %v4293_v46 = vpop.f32.mrb[145].mxu0 }
 0x449   :  { %v22516_v8 = vadd.f32 %v22346_v62, %v9831_v25  ;;  %v17545_v43 = vpop.f32.mrb[65].mxu1  ;;  %v22518_v41 = vmax.bf16 %v6475_v19, %v6474_v38  ;;  %v4294_v21 = vadd.f32 %v22142_v4, %v4293_v46  ;;  %v17098_v6 = vpop.f32.mrb[146].mxu0  ;;  %v18958_v19 = vld [vmem:[#allocation7 + $0x600] sm:$0xff]  }
 0x44a   :  { %v9834_v29 = vpop.f32.mrb[66].mxu1  ;;  %17678 = vmatpush3.bf16.msra.mxu1 %v18950_v36  ;;  %vm5142_vm11 = vcmp.ge.f32.partialorder %v4302_v33, 2.0  ;;  %v4305_v47 = vadd.f32 %v22142_v4, %v17098_v6  ;;  %v4296_v5 = vpop.f32.mrb[147].mxu0  ;;  %v18959_v33 = vld [vmem:[#allocation7 + $0x888] sm:$0xff]  }
 0x44b   :  { %v22523_v60 = vadd.f32 %v22358_v30, %v9834_v29  ;;  %v17546_v40 = vpop.f32.mrb[67].mxu1  ;;  %17679 = vmatprep.subr.bf16.mxu1 %v19402_v28  ;;  %v15104_v62 = vsel %vm5142_vm11, 1.0, %v19402_v28  ;;  %vm5140_vm12 = vcmp.ge.f32.partialorder %v4294_v21, 2.0  ;;  %v4297_v44 = vadd.f32 %v22142_v4, %v4296_v5  ;;  %v18956_v30 = vld [vmem:[#allocation7 + $0x5f8] sm:$0xff]   ;;  %v18960_v43 = vld [vmem:[#allocation7 + $0x608] sm:$0xff]  }
 0x44c   :  { %17204 = vmatmul.mubr.msk.bf16.gmra.mrb[252].mxu0 %vm1886_vm1, %v18952_v61  ;;  %v15102_v45 = vsel %vm5140_vm12, 1.0, %v19402_v28  ;;  %vm5143_vm13 = vcmp.ge.f32.partialorder %v4305_v47, 2.0  ;;  %v18961_v47 = vld [vmem:[#allocation7 + $0x890] sm:$0xff]  }
 0x44d   :  { %17863 = vmatprep.mubr.msk.bf16.mxu0 %vm19403_vm2, %v19402_v28  ;;  %v15105_v37 = vsel %vm5143_vm13, 1.0, %v19402_v28  ;;  %vm5141_vm15 = vcmp.ge.f32.partialorder %v4297_v44, 2.0  ;;  %v18962_v44 = vld [vmem:[#allocation7 + $0x610] sm:$0xff]  }
 0x44e   :  { %17680 = vmatpush3.bf16.msra.mxu1 %v18954_v22  ;;  %v6477_v51 = vpack.c.bf16 %v15105_v37, %v15104_v62  ;;  %v15103_v50 = vsel %vm5141_vm15, 1.0, %v19402_v28 }
 0x44f   :  { %17681 = vmatprep.subr.bf16.mxu1 %v19402_v28  ;;  %v6476_v32 = vpack.c.bf16 %v15103_v50, %v15102_v45  ;;  %v17101_v13 = vpop.f32.mrb[148].mxu0 }
 0x450   :  { %v4318_v63 = vadd.f32 %v22142_v4, %v17101_v13  ;;  %v4309_v59 = vpop.f32.mrb[149].mxu0 }
 0x451   :  { %v22536_v2 = vmax.bf16 %v6477_v51, %v6476_v32  ;;  %v4310_v3 = vadd.f32 %v22142_v4, %v4309_v59  ;;  %v17102_v36 = vpop.f32.mrb[150].mxu0  ;;  %v18963_v32 = vld [vmem:[#allocation7 + $0x898] sm:$0xff]  }
 0x452   :  { %17682 = vmatpush3.bf16.msra.mxu1 %v18956_v30  ;;  %vm5146_vm1 = vcmp.ge.f32.partialorder %v4318_v63, 2.0  ;;  %v4321_v42 = vadd.f32 %v22142_v4, %v17102_v36  ;;  %v4312_v38 = vpop.f32.mrb[151].mxu0  ;;  %v18964_v63 = vld [vmem:[#allocation7 + $0x618] sm:$0xff]  }
 0x453   :  { %17687 = vmatprep.subr.bf16.mxu1 %v19402_v28  ;;  %v15108_v34 = vsel %vm5146_vm1, 1.0, %v19402_v28  ;;  %vm5144_vm0 = vcmp.ge.f32.partialorder %v4310_v3, 2.0  ;;  %v4313_v25 = vadd.f32 %v22142_v4, %v4312_v38  ;;  %v18965_v38 = vld [vmem:[#allocation7 + $0x8a0] sm:$0xff]  }
 0x454   :  { %17864 = vmatmul.mubr.bf16.vlgmr.msra.gmra.mrb[0].mxu0 %v21848_v12  ;;  %v15106_v61 = vsel %vm5144_vm0, 1.0, %v19402_v28  ;;  %vm5147_vm3 = vcmp.ge.f32.partialorder %v4321_v42, 2.0 }
 0x455   :  { %17684 = vmatmul.mubr.bf16.vlgmr.msra.gmra.mrb[92].mxu1 %v21120_v48  ;;  %17888 = vmatpush3.bf16.msra.mxu0 %v18957_v39  ;;  %v15109_v46 = vsel %vm5147_vm3, 1.0, %v19402_v28  ;;  %vm5145_vm4 = vcmp.ge.f32.partialorder %v4313_v25, 2.0 }
 0x456   :  { %17688 = vmatpush3.bf16.msra.mxu1 %v18958_v19  ;;  %17889 = vmatprep.subr.bf16.mxu0 %v19402_v28  ;;  %v6479_v21 = vpack.c.bf16 %v15109_v46, %v15108_v34  ;;  %v15107_v6 = vsel %vm5145_vm4, 1.0, %v19402_v28 }
 0x457   :  { %17689 = vmatprep.subr.bf16.mxu1 %v19402_v28  ;;  %17903 = vmatprep.mubr.msk.bf16.mxu0 %vm19403_vm2, %v19402_v28  ;;  %v6478_v12 = vpack.c.bf16 %v15107_v6, %v15106_v61  ;;  %v17105_v29 = vpop.f32.mrb[152].mxu0  ;;  %v22576_v6 = vld [vmem:[#allocation5] ss:$0 sm:$0xff] }
 0x458   :  { %17703 = vmatprep.mubr.msk.bf16.mxu1 %vm19403_vm2, %v19402_v28  ;;  %v4334_v48 = vadd.f32 %v22142_v4, %v17105_v29  ;;  %v4325_v22 = vpop.f32.mrb[153].mxu0 }
 0x459   :  { %17890 = vmatpush3.bf16.msra.mxu0 %v18959_v33  ;;  %v22555_v5 = vmax.bf16 %v6479_v21, %v6478_v12  ;;  %v4326_v40 = vadd.f32 %v22142_v4, %v4325_v22  ;;  %v17106_v62 = vpop.f32.mrb[154].mxu0  ;;  %v18966_v33 = vld [vmem:[#allocation7 + $0x620] sm:$0xff]  }
 0x45a   :  { %17690 = vmatpush3.bf16.msra.mxu1 %v18960_v43  ;;  %17891 = vmatprep.subr.bf16.mxu0 %v19402_v28  ;;  %vm5150_vm5 = vcmp.ge.f32.partialorder %v4334_v48, 2.0  ;;  %v4337_v45 = vadd.f32 %v22142_v4, %v17106_v62  ;;  %v4328_v37 = vpop.f32.mrb[155].mxu0  ;;  %v18967_v48 = vld [vmem:[#allocation7 + $0x8a8] sm:$0xff]  }
 0x45b   :  { %17691 = vmatprep.subr.bf16.mxu1 %v19402_v28  ;;  %v15112_v30 = vsel %vm5150_vm5, 1.0, %v19402_v28  ;;  %vm5148_vm6 = vcmp.ge.f32.partialorder %v4326_v40, 2.0  ;;  %v4329_v51 = vadd.f32 %v22142_v4, %v4328_v37 }
 0x45c   :  { %v15110_v50 = vsel %vm5148_vm6, 1.0, %v19402_v28  ;;  %vm5151_vm7 = vcmp.ge.f32.partialorder %v4337_v45, 2.0 }
 0x45d   :  { %17892 = vmatpush3.bf16.msra.mxu0 %v18961_v47  ;;  %v15113_v13 = vsel %vm5151_vm7, 1.0, %v19402_v28  ;;  %vm5149_vm8 = vcmp.ge.f32.partialorder %v4329_v51, 2.0 }
 0x45e   :  { %17692 = vmatpush3.bf16.msra.mxu1 %v18962_v44  ;;  %17893 = vmatprep.subr.bf16.mxu0 %v19402_v28  ;;  %v6481_v59 = vpack.c.bf16 %v15113_v13, %v15112_v30  ;;  %v15111_v39 = vsel %vm5149_vm8, 1.0, %v19402_v28 }
 0x45f   :  { %17693 = vmatprep.subr.bf16.mxu1 %v19402_v28  ;;  %v6480_v3 = vpack.c.bf16 %v15111_v39, %v15110_v50  ;;  %v17109_v36 = vpop.f32.mrb[156].mxu0 }
 0x460   :  { %v4350_v19 = vadd.f32 %v22142_v4, %v17109_v36  ;;  %v4341_v42 = vpop.f32.mrb[157].mxu0 }
 0x461   :  { %17894 = vmatpush3.bf16.msra.mxu0 %v18963_v32  ;;  %v22569_v34 = vmax.bf16 %v6481_v59, %v6480_v3  ;;  %v4342_v25 = vadd.f32 %v22142_v4, %v4341_v42  ;;  %v17110_v61 = vpop.f32.mrb[158].mxu0  ;;  %v18969_v32 = vld [vmem:[#allocation7 + $0x8b0] sm:$0xff]  }
 0x462   :  { %17694 = vmatpush3.bf16.msra.mxu1 %v18964_v63  ;;  %17895 = vmatprep.subr.bf16.mxu0 %v19402_v28  ;;  %vm5154_vm9 = vcmp.ge.f32.partialorder %v4350_v19, 2.0  ;;  %v4353_v46 = vadd.f32 %v22142_v4, %v17110_v61  ;;  %v4344_v43 = vpop.f32.mrb[159].mxu0  ;;  %v18968_v4 = vld [vmem:[#allocation7 + $0x628] sm:$0xff]   ;;  %v18970_v3 = vld [vmem:[#allocation7 + $0x630] sm:$0xff]  }
 0x463   :  { %17695 = vmatprep.subr.bf16.mxu1 %v19402_v28  ;;  %v15116_v21 = vsel %vm5154_vm9, 1.0, %v19402_v28  ;;  %vm5152_vm10 = vcmp.ge.f32.partialorder %v4342_v25, 2.0  ;;  %v4345_v12 = vadd.f32 %v22576_v6, %v4344_v43 }
 0x464   :  { %v15114_v29 = vsel %vm5152_vm10, 1.0, %v19402_v28  ;;  %vm5155_vm11 = vcmp.ge.f32.partialorder %v4353_v46, 2.0 }
 0x465   :  { %17896 = vmatpush3.bf16.msra.mxu0 %v18965_v38  ;;  %v15117_v22 = vsel %vm5155_vm11, 1.0, %v19402_v28  ;;  %vm5153_vm12 = vcmp.ge.f32.partialorder %v4345_v12, 2.0 }
 0x466   :  { %17696 = vmatpush3.bf16.msra.mxu1 %v18966_v33  ;;  %17897 = vmatprep.subr.bf16.mxu0 %v19402_v28  ;;  %v6483_v47 = vpack.c.bf16 %v15117_v22, %v15116_v21  ;;  %v15115_v40 = vsel %vm5153_vm12, 1.0, %v19402_v28  ;;  %v18971_v33 = vld [vmem:[#allocation7 + $0x8b8] sm:$0xff]  }
 0x467   :  { %17697 = vmatprep.subr.bf16.mxu1 %v19402_v28  ;;  %v6482_v62 = vpack.c.bf16 %v15115_v40, %v15114_v29  ;;  %v17113_v44 = vpop.f32.mrb[160].mxu0 }
 0x468   :  { %v9920_v45 = vpop.f32.mrb[68].mxu1  ;;  %v4366_v37 = vadd.f32 %v22576_v6, %v17113_v44  ;;  %v4357_v30 = vpop.f32.mrb[161].mxu0  ;;  %v18974_v44 = vld [vmem:[#allocation7 + $0x640] sm:$0xff]  }
 0x469   :  { %v22586_v51 = vadd.f32 %v22516_v8, %v9920_v45  ;;  %v17565_v50 = vpop.f32.mrb[69].mxu1  ;;  %17898 = vmatpush3.bf16.msra.mxu0 %v18967_v48  ;;  %v22588_v13 = vmax.bf16 %v6483_v47, %v6482_v62  ;;  %v4358_v63 = vadd.f32 %v22576_v6, %v4357_v30  ;;  %v17114_v59 = vpop.f32.mrb[162].mxu0 }
 0x46a   :  { %v9923_v39 = vpop.f32.mrb[70].mxu1  ;;  %17698 = vmatpush3.bf16.msra.mxu1 %v18968_v4  ;;  %17899 = vmatprep.subr.bf16.mxu0 %v19402_v28  ;;  %vm5158_vm13 = vcmp.ge.f32.partialorder %v4366_v37, 2.0  ;;  %v4369_v36 = vadd.f32 %v22576_v6, %v17114_v59  ;;  %v4360_v19 = vpop.f32.mrb[163].mxu0  ;;  %v18973_v4 = vld [vmem:[#allocation7 + $0x900] sm:$0xff]   ;;  %v18975_v59 = vld [vmem:[#allocation7 + $0x908] sm:$0xff]  }
 0x46b   :  { %v22594_v8 = vadd.f32 %v22523_v60, %v9923_v39  ;;  %v17566_v42 = vpop.f32.mrb[71].mxu1  ;;  %17699 = vmatprep.subr.bf16.mxu1 %v19402_v28  ;;  %v15120_v38 = vsel %vm5158_vm13, 1.0, %v19402_v28  ;;  %vm5156_vm15 = vcmp.ge.f32.partialorder %v4358_v63, 2.0  ;;  %v4361_v25 = vadd.f32 %v22576_v6, %v4360_v19  ;;  %v18972_v60 = vld [vmem:[#allocation7 + $0x638] sm:$0xff]  }
 0x46c   :  { %v15118_v61 = vsel %vm5156_vm15, 1.0, %v19402_v28  ;;  %vm5159_vm1 = vcmp.ge.f32.partialorder %v4369_v36, 2.0 }
 0x46d   :  { %17900 = vmatpush3.bf16.msra.mxu0 %v18969_v32  ;;  %v15121_v46 = vsel %vm5159_vm1, 1.0, %v19402_v28  ;;  %vm5157_vm0 = vcmp.ge.f32.partialorder %v4361_v25, 2.0 }
 0x46e   :  { %17700 = vmatpush3.bf16.msra.mxu1 %v18970_v3  ;;  %17901 = vmatprep.subr.bf16.mxu0 %v19402_v28  ;;  %v6485_v43 = vpack.c.bf16 %v15121_v46, %v15120_v38  ;;  %v15119_v21 = vsel %vm5157_vm0, 1.0, %v19402_v28 }
 0x46f   :  { %17701 = vmatprep.subr.bf16.mxu1 %v19402_v28  ;;  %v6484_v12 = vpack.c.bf16 %v15119_v21, %v15118_v61  ;;  %v17117_v29 = vpop.f32.mrb[164].mxu0  ;;  %v18977_v61 = vld [vmem:[#allocation7 + $0x910] sm:$0xff]  }
 0x470   :  { %v4382_v48 = vadd.f32 %v22576_v6, %v17117_v29  ;;  %v4373_v22 = vpop.f32.mrb[165].mxu0 }
 0x471   :  { %17902 = vmatpush3.bf16.msra.mxu0 %v18971_v33  ;;  %v6636_v47 = vmax.bf16 %v6485_v43, %v6484_v12  ;;  %v4374_v40 = vadd.f32 %v22576_v6, %v4373_v22  ;;  %v17118_v62 = vpop.f32.mrb[166].mxu0  ;;  %v18978_v43 = vld [vmem:[#allocation7 + $0x650] sm:$0xff]  }
 0x472   :  { %17702 = vmatpush3.bf16.msra.mxu1 %v18972_v60  ;;  %17927 = vmatprep.subr.bf16.mxu0 %v19402_v28  ;;  %vm5162_vm3 = vcmp.ge.f32.partialorder %v4382_v48, 2.0  ;;  %v4385_v45 = vadd.f32 %v22576_v6, %v17118_v62  ;;  %v4376_v37 = vpop.f32.mrb[167].mxu0 }
 0x473   :  { %17707 = vmatprep.subr.bf16.mxu1 %v19402_v28  ;;  %v22610_v30 = vmax.bf16 %v6636_v47, %v22450_v26  ;;  %v15124_v50 = vsel %vm5162_vm3, 1.0, %v19402_v28  ;;  %vm5160_vm4 = vcmp.ge.f32.partialorder %v4374_v40, 2.0  ;;  %v4377_v32 = vadd.f32 %v22576_v6, %v4376_v37  ;;  %v18979_v47 = vld [vmem:[#allocation7 + $0x918] sm:$0xff]  }
 0x474   :  { %17904 = vmatmul.mubr.bf16.vlgmr.msra.gmra.mrb[4].mxu0 %v21908_v10  ;;  %v15122_v63 = vsel %vm5160_vm4, 1.0, %v19402_v28  ;;  %vm5163_vm5 = vcmp.ge.f32.partialorder %v4385_v45, 2.0  ;;  %v18976_v10 = vld [vmem:[#allocation7 + $0x648] sm:$0xff]  }
 0x475   :  { %17704 = vmatmul.mubr.bf16.vlgmr.msra.gmra.mrb[96].mxu1 %v21385_v27  ;;  %17928 = vmatpush3.bf16.msra.mxu0 %v18973_v4  ;;  %v15310_v39 = vcombine.low %v22610_v30, %v22610_v30  ;;  %v15311_v26 = vcombine.high %v22610_v30, %v22610_v30  ;;  %v15125_v3 = vsel %vm5163_vm5, 1.0, %v19402_v28  ;;  %vm5161_vm6 = vcmp.ge.f32.partialorder %v4377_v32, 2.0 }
 0x476   :  { %17708 = vmatpush3.bf16.msra.mxu1 %v18974_v44  ;;  %17929 = vmatprep.subr.bf16.mxu0 %v19402_v28  ;;  %v6487_v36 = vpack.c.bf16 %v15125_v3, %v15124_v50  ;;  %v15123_v19 = vsel %vm5161_vm6, 1.0, %v19402_v28 }
 0x477   :  { %17709 = vmatprep.subr.bf16.mxu1 %v19402_v28  ;;  %17943 = vmatprep.mubr.msk.bf16.mxu0 %vm19403_vm2, %v19402_v28  ;;  %7269 = vst.msk [vmem:[%s23608_s5 + $0x180] sm:$0xf] %vm7172_vm14, %v15310_v39  ;;  %7270 = vst.msk [vmem:[%s23608_s5 + $0x184] sm:$0xf] %vm7172_vm14, %v15311_v26  ;;  %v6486_v27 = vpack.c.bf16 %v15123_v19, %v15122_v63  ;;  %v17121_v42 = vpop.f32.mrb[168].mxu0  ;;  %v18981_v39 = vld [vmem:[#allocation7 + $0x920] sm:$0xff]  }
 0x478   :  { %17723 = vmatprep.mubr.msk.bf16.mxu1 %vm19403_vm2, %v19402_v28  ;;  %v4398_v38 = vadd.f32 %v22576_v6, %v17121_v42  ;;  %v4389_v25 = vpop.f32.mrb[169].mxu0 }
 0x479   :  { %17930 = vmatpush3.bf16.msra.mxu0 %v18975_v59  ;;  %v6637_v33 = vmax.bf16 %v6487_v36, %v6486_v27  ;;  %v4390_v46 = vadd.f32 %v22576_v6, %v4389_v25  ;;  %v17122_v60 = vpop.f32.mrb[170].mxu0  ;;  %v18982_v36 = vld [vmem:[#allocation7 + $0x660] sm:$0xff]  }
 0x47a   :  { %17710 = vmatpush3.bf16.msra.mxu1 %v18976_v10  ;;  %17931 = vmatprep.subr.bf16.mxu0 %v19402_v28  ;;  %vm5166_vm7 = vcmp.ge.f32.partialorder %v4398_v38, 2.0  ;;  %v4401_v21 = vadd.f32 %v22576_v6, %v17122_v60  ;;  %v4392_v12 = vpop.f32.mrb[171].mxu0 }
 0x47b   :  { %17711 = vmatprep.subr.bf16.mxu1 %v19402_v28  ;;  %v22643_v29 = vmax.bf16 %v6637_v33, %v22480_v17  ;;  %v15128_v48 = vsel %vm5166_vm7, 1.0, %v19402_v28  ;;  %vm5164_vm8 = vcmp.ge.f32.partialorder %v4390_v46, 2.0  ;;  %v4393_v22 = vadd.f32 %v22576_v6, %v4392_v12  ;;  %v18980_v17 = vld [vmem:[#allocation7 + $0x658] sm:$0xff]   ;;  %v18983_v33 = vld [vmem:[#allocation7 + $0x928] sm:$0xff]  }
 0x47c   :  { %v15126_v4 = vsel %vm5164_vm8, 1.0, %v19402_v28  ;;  %vm5167_vm9 = vcmp.ge.f32.partialorder %v4401_v21, 2.0 }
 0x47d   :  { %17932 = vmatpush3.bf16.msra.mxu0 %v18977_v61  ;;  %v15312_v40 = vcombine.low %v22643_v29, %v22643_v29  ;;  %v15313_v62 = vcombine.high %v22643_v29, %v22643_v29  ;;  %v15129_v44 = vsel %vm5167_vm9, 1.0, %v19402_v28  ;;  %vm5165_vm10 = vcmp.ge.f32.partialorder %v4393_v22, 2.0 }
 0x47e   :  { %17712 = vmatpush3.bf16.msra.mxu1 %v18978_v43  ;;  %17933 = vmatprep.subr.bf16.mxu0 %v19402_v28  ;;  %v6489_v45 = vpack.c.bf16 %v15129_v44, %v15128_v48  ;;  %v15127_v37 = vsel %vm5165_vm10, 1.0, %v19402_v28 }
 0x47f   :  { %17713 = vmatprep.subr.bf16.mxu1 %v19402_v28  ;;  %7271 = vst.msk [vmem:[%s23608_s5 + $0x188] sm:$0xf] %vm7172_vm14, %v15312_v40  ;;  %7272 = vst.msk [vmem:[%s23608_s5 + $0x18c] sm:$0xf] %vm7172_vm14, %v15313_v62  ;;  %v6488_v50 = vpack.c.bf16 %v15127_v37, %v15126_v4  ;;  %v17125_v32 = vpop.f32.mrb[172].mxu0 }
 0x480   :  { %v4414_v63 = vadd.f32 %v22576_v6, %v17125_v32  ;;  %v4405_v59 = vpop.f32.mrb[173].mxu0 }
 0x481   :  { %17934 = vmatpush3.bf16.msra.mxu0 %v18979_v47  ;;  %v6638_v26 = vmax.bf16 %v6489_v45, %v6488_v50  ;;  %v4406_v3 = vadd.f32 %v22576_v6, %v4405_v59  ;;  %v17126_v10 = vpop.f32.mrb[174].mxu0 }
 0x482   :  { %17714 = vmatpush3.bf16.msra.mxu1 %v18980_v17  ;;  %17935 = vmatprep.subr.bf16.mxu0 %v19402_v28  ;;  %vm5170_vm11 = vcmp.ge.f32.partialorder %v4414_v63, 2.0  ;;  %v4417_v19 = vadd.f32 %v22576_v6, %v17126_v10  ;;  %v4408_v27 = vpop.f32.mrb[175].mxu0  ;;  %v18985_v17 = vld [vmem:[#allocation7 + $0x930] sm:$0xff]  }
 0x483   :  { %17715 = vmatprep.subr.bf16.mxu1 %v19402_v28  ;;  %v22670_v42 = vmax.bf16 %v6638_v26, %v22498_v7  ;;  %v15132_v38 = vsel %vm5170_vm11, 1.0, %v19402_v28  ;;  %vm5168_vm12 = vcmp.ge.f32.partialorder %v4406_v3, 2.0  ;;  %v4409_v25 = vadd.f32 %v22576_v6, %v4408_v27  ;;  %v18984_v7 = vld [vmem:[#allocation7 + $0x668] sm:$0xff]   ;;  %v18986_v63 = vld [vmem:[#allocation7 + $0x670] sm:$0xff]  }
 0x484   :  { %v15130_v61 = vsel %vm5168_vm12, 1.0, %v19402_v28  ;;  %vm5171_vm13 = vcmp.ge.f32.partialorder %v4417_v19, 2.0  ;;  %v18987_v19 = vld [vmem:[#allocation7 + $0x938] sm:$0xff]  }
 0x485   :  { %17936 = vmatpush3.bf16.msra.mxu0 %v18981_v39  ;;  %v15314_v46 = vcombine.low %v22670_v42, %v22670_v42  ;;  %v15315_v60 = vcombine.high %v22670_v42, %v22670_v42  ;;  %v15133_v43 = vsel %vm5171_vm13, 1.0, %v19402_v28  ;;  %vm5169_vm15 = vcmp.ge.f32.partialorder %v4409_v25, 2.0 }
 0x486   :  { %17716 = vmatpush3.bf16.msra.mxu1 %v18982_v36  ;;  %17937 = vmatprep.subr.bf16.mxu0 %v19402_v28  ;;  %v6491_v21 = vpack.c.bf16 %v15133_v43, %v15132_v38  ;;  %v15131_v12 = vsel %vm5169_vm15, 1.0, %v19402_v28 }
 0x487   :  { %17717 = vmatprep.subr.bf16.mxu1 %v19402_v28  ;;  %7273 = vst.msk [vmem:[%s23608_s5 + $0x190] sm:$0xf] %vm7172_vm14, %v15314_v46  ;;  %7274 = vst.msk [vmem:[%s23608_s5 + $0x194] sm:$0xf] %vm7172_vm14, %v15315_v60  ;;  %v6490_v48 = vpack.c.bf16 %v15131_v12, %v15130_v61  ;;  %v17129_v22 = vpop.f32.mrb[176].mxu0 }
 0x488   :  { %v10009_v4 = vpop.f32.mrb[72].mxu1  ;;  %v4430_v47 = vadd.f32 %v22576_v6, %v17129_v22  ;;  %v4421_v40 = vpop.f32.mrb[177].mxu0  ;;  %v18990_v22 = vld [vmem:[#allocation7 + $0x680] sm:$0xff]  }
 0x489   :  { %v22693_v62 = vadd.f32 %v22586_v51, %v10009_v4  ;;  %v17585_v44 = vpop.f32.mrb[73].mxu1  ;;  %17938 = vmatpush3.bf16.msra.mxu0 %v18983_v33  ;;  %v6639_v45 = vmax.bf16 %v6491_v21, %v6490_v48  ;;  %v4422_v37 = vadd.f32 %v22576_v6, %v4421_v40  ;;  %v17130_v50 = vpop.f32.mrb[178].mxu0  ;;  %v18989_v21 = vld [vmem:[#allocation7 + $0x980] sm:$0xff]  }
 0x48a   :  { %v10012_v32 = vpop.f32.mrb[74].mxu1  ;;  %17718 = vmatpush3.bf16.msra.mxu1 %v18984_v7  ;;  %17939 = vmatprep.subr.bf16.mxu0 %v19402_v28  ;;  %vm5174_vm1 = vcmp.ge.f32.partialorder %v4430_v47, 2.0  ;;  %v4433_v59 = vadd.f32 %v22576_v6, %v17130_v50  ;;  %v4424_v39 = vpop.f32.mrb[179].mxu0  ;;  %v18991_v50 = vld [vmem:[#allocation7 + $0x988] sm:$0xff]  }
 0x48b   :  { %v22699_v26 = vadd.f32 %v22594_v8, %v10012_v32  ;;  %v17586_v51 = vpop.f32.mrb[75].mxu1  ;;  %17719 = vmatprep.subr.bf16.mxu1 %v19402_v28  ;;  %v22703_v3 = vmax.bf16 %v6639_v45, %v22518_v41  ;;  %v15136_v10 = vsel %vm5174_vm1, 1.0, %v19402_v28  ;;  %vm5172_vm0 = vcmp.ge.f32.partialorder %v4422_v37, 2.0  ;;  %v18988_v41 = vld [vmem:[#allocation7 + $0x678] sm:$0xff]  }
 0x48c   :  { %vm5175_vm3 = vcmp.ge.f32.partialorder %v4433_v59, 2.0  ;;  %v4425_v36 = vadd.f32 %v22576_v6, %v4424_v39  ;;  %v15134_v38 = vsel %vm5172_vm0, 1.0, %v19402_v28 }
 0x48d   :  { %17940 = vmatpush3.bf16.msra.mxu0 %v18985_v17  ;;  %v15316_v27 = vcombine.low %v22703_v3, %v22703_v3  ;;  %v15317_v8 = vcombine.high %v22703_v3, %v22703_v3  ;;  %v15137_v25 = vsel %vm5175_vm3, 1.0, %v19402_v28 }
 0x48e   :  { %17720 = vmatpush3.bf16.msra.mxu1 %v18986_v63  ;;  %17941 = vmatprep.subr.bf16.mxu0 %v19402_v28  ;;  %v6493_v61 = vpack.c.bf16 %v15137_v25, %v15136_v10  ;;  %vm5173_vm4 = vcmp.ge.f32.partialorder %v4425_v36, 2.0  ;;  %v18992_v63 = vld [vmem:[#allocation7 + $0x688] sm:$0xff]   ;;  %v18994_v25 = vld [vmem:[#allocation7 + $0x690] sm:$0xff]  }
 0x48f   :  { %17721 = vmatprep.subr.bf16.mxu1 %v19402_v28  ;;  %7275 = vst.msk [vmem:[%s23608_s5 + $0x198] sm:$0xf] %vm7172_vm14, %v15316_v27  ;;  %7276 = vst.msk [vmem:[%s23608_s5 + $0x19c] sm:$0xf] %vm7172_vm14, %v15317_v8  ;;  %v15135_v33 = vsel %vm5173_vm4, 1.0, %v19402_v28  ;;  %v17133_v46 = vpop.f32.mrb[180].mxu0 }
 0x490   :  { %v6492_v60 = vpack.c.bf16 %v15135_v33, %v15134_v38  ;;  %v4446_v43 = vadd.f32 %v22576_v6, %v17133_v46  ;;  %v4437_v7 = vpop.f32.mrb[181].mxu0 }
 0x491   :  { %17942 = vmatpush3.bf16.msra.mxu0 %v18987_v19  ;;  %v4438_v12 = vadd.f32 %v22576_v6, %v4437_v7  ;;  %v17134_v48 = vpop.f32.mrb[182].mxu0  ;;  %v18993_v19 = vld [vmem:[#allocation7 + $0x990] sm:$0xff]   ;;  %v18995_v7 = vld [vmem:[#allocation7 + $0x998] sm:$0xff]  }
 0x492   :  { %17722 = vmatpush3.bf16.msra.mxu1 %v18988_v41  ;;  %17967 = vmatprep.subr.bf16.mxu0 %v19402_v28  ;;  %v6640_v4 = vmax.bf16 %v6493_v61, %v6492_v60  ;;  %vm5178_vm5 = vcmp.ge.f32.partialorder %v4446_v43, 2.0  ;;  %v4449_v47 = vadd.f32 %v22576_v6, %v17134_v48  ;;  %v4440_v40 = vpop.f32.mrb[183].mxu0 }
 0x493   :  { %17727 = vmatprep.subr.bf16.mxu1 %v19402_v28  ;;  %v15140_v44 = vsel %vm5178_vm5, 1.0, %v19402_v28  ;;  %vm5176_vm6 = vcmp.ge.f32.partialorder %v4438_v12, 2.0  ;;  %v4441_v17 = vadd.f32 %v22576_v6, %v4440_v40 }
 0x494   :  { %17944 = vmatmul.mubr.bf16.vlgmr.msra.gmra.mrb[8].mxu0 %v21957_v23  ;;  %v22733_v45 = vmax.bf16 %v6640_v4, %v22536_v2  ;;  %v15138_v37 = vsel %vm5176_vm6, 1.0, %v19402_v28  ;;  %vm5179_vm7 = vcmp.ge.f32.partialorder %v4449_v47, 2.0 }
 0x495   :  { %17724 = vmatmul.mubr.bf16.vlgmr.msra.gmra.mrb[100].mxu1 %v21421_v57  ;;  %17968 = vmatpush3.bf16.msra.mxu0 %v18989_v21  ;;  %v15141_v32 = vsel %vm5179_vm7, 1.0, %v19402_v28  ;;  %vm5177_vm8 = vcmp.ge.f32.partialorder %v4441_v17, 2.0 }
 0x496   :  { %17728 = vmatpush3.bf16.msra.mxu1 %v18990_v22  ;;  %17969 = vmatprep.subr.bf16.mxu0 %v19402_v28  ;;  %v15318_v23 = vcombine.low %v22733_v45, %v22733_v45  ;;  %v15319_v2 = vcombine.high %v22733_v45, %v22733_v45  ;;  %v6495_v59 = vpack.c.bf16 %v15141_v32, %v15140_v44  ;;  %v15139_v39 = vsel %vm5177_vm8, 1.0, %v19402_v28 }
 0x497   :  { %17729 = vmatprep.subr.bf16.mxu1 %v19402_v28  ;;  %17983 = vmatprep.mubr.msk.bf16.mxu0 %vm19403_vm2, %v19402_v28  ;;  %v6494_v57 = vpack.c.bf16 %v15139_v39, %v15138_v37  ;;  %v17137_v51 = vpop.f32.mrb[184].mxu0  ;;  %v18997_v37 = vld [vmem:[#allocation7 + $0x9a0] sm:$0xff]  }
 0x498   :  { %17743 = vmatprep.mubr.msk.bf16.mxu1 %vm19403_vm2, %v19402_v28  ;;  %7277 = vst.msk [vmem:[%s23608_s5 + $0x1a0] sm:$0xf] %vm7172_vm14, %v15318_v23  ;;  %7278 = vst.msk [vmem:[%s23608_s5 + $0x1a4] sm:$0xf] %vm7172_vm14, %v15319_v2  ;;  %v4462_v10 = vadd.f32 %v22576_v6, %v17137_v51  ;;  %v4453_v36 = vpop.f32.mrb[185].mxu0  ;;  %v18998_v23 = vld [vmem:[#allocation7 + $0x6a0] sm:$0xff]  }
 0x499   :  { %17970 = vmatpush3.bf16.msra.mxu0 %v18991_v50  ;;  %v6641_v27 = vmax.bf16 %v6495_v59, %v6494_v57  ;;  %v4454_v8 = vadd.f32 %v22576_v6, %v4453_v36  ;;  %v17138_v38 = vpop.f32.mrb[186].mxu0  ;;  %v18999_v36 = vld [vmem:[#allocation7 + $0x9a8] sm:$0xff]  }
 0x49a   :  { %17730 = vmatpush3.bf16.msra.mxu1 %v18992_v63  ;;  %17971 = vmatprep.subr.bf16.mxu0 %v19402_v28  ;;  %vm5182_vm9 = vcmp.ge.f32.partialorder %v4462_v10, 2.0  ;;  %v4465_v41 = vadd.f32 %v22576_v6, %v17138_v38  ;;  %v4456_v61 = vpop.f32.mrb[187].mxu0 }
 0x49b   :  { %17731 = vmatprep.subr.bf16.mxu1 %v19402_v28  ;;  %v22763_v33 = vmax.bf16 %v6641_v27, %v22555_v5  ;;  %v15144_v46 = vsel %vm5182_vm9, 1.0, %v19402_v28  ;;  %vm5180_vm10 = vcmp.ge.f32.partialorder %v4454_v8, 2.0  ;;  %v4457_v60 = vadd.f32 %v22576_v6, %v4456_v61  ;;  %v18996_v5 = vld [vmem:[#allocation7 + $0x698] sm:$0xff]  }
 0x49c   :  { %v15142_v43 = vsel %vm5180_vm10, 1.0, %v19402_v28  ;;  %vm5183_vm11 = vcmp.ge.f32.partialorder %v4465_v41, 2.0 }
 0x49d   :  { %17972 = vmatpush3.bf16.msra.mxu0 %v18993_v19  ;;  %v15320_v21 = vcombine.low %v22763_v33, %v22763_v33  ;;  %v15321_v12 = vcombine.high %v22763_v33, %v22763_v33  ;;  %v15145_v48 = vsel %vm5183_vm11, 1.0, %v19402_v28  ;;  %vm5181_vm12 = vcmp.ge.f32.partialorder %v4457_v60, 2.0 }
 0x49e   :  { %17732 = vmatpush3.bf16.msra.mxu1 %v18994_v25  ;;  %17973 = vmatprep.subr.bf16.mxu0 %v19402_v28  ;;  %v6497_v22 = vpack.c.bf16 %v15145_v48, %v15144_v46  ;;  %v15143_v4 = vsel %vm5181_vm12, 1.0, %v19402_v28 }
 0x49f   :  { %17733 = vmatprep.subr.bf16.mxu1 %v19402_v28  ;;  %7279 = vst.msk [vmem:[%s23608_s5 + $0x1a8] sm:$0xf] %vm7172_vm14, %v15320_v21  ;;  %7280 = vst.msk [vmem:[%s23608_s5 + $0x1ac] sm:$0xf] %vm7172_vm14, %v15321_v12  ;;  %v6496_v47 = vpack.c.bf16 %v15143_v4, %v15142_v43  ;;  %v17141_v40 = vpop.f32.mrb[188].mxu0  ;;  %v19001_v12 = vld [vmem:[#allocation7 + $0x9b0] sm:$0xff]  }
 0x4a0   :  { %v4478_v44 = vadd.f32 %v22576_v6, %v17141_v40  ;;  %v4469_v17 = vpop.f32.mrb[189].mxu0 }
 0x4a1   :  { %17974 = vmatpush3.bf16.msra.mxu0 %v18995_v7  ;;  %v6642_v50 = vmax.bf16 %v6497_v22, %v6496_v47  ;;  %v4470_v32 = vadd.f32 %v22576_v6, %v4469_v17  ;;  %v17142_v63 = vpop.f32.mrb[190].mxu0  ;;  %v19002_v47 = vld [vmem:[#allocation7 + $0x6b0] sm:$0xff]  }
 0x4a2   :  { %17734 = vmatpush3.bf16.msra.mxu1 %v18996_v5  ;;  %17975 = vmatprep.subr.bf16.mxu0 %v19402_v28  ;;  %vm5186_vm13 = vcmp.ge.f32.partialorder %v4478_v44, 2.0  ;;  %v4481_v2 = vadd.f32 %v22576_v6, %v17142_v63  ;;  %v4472_v59 = vpop.f32.mrb[191].mxu0  ;;  %v19003_v63 = vld [vmem:[#allocation7 + $0x9b8] sm:$0xff]  }
 0x4a3   :  { %17735 = vmatprep.subr.bf16.mxu1 %v19402_v28  ;;  %v22790_v39 = vmax.bf16 %v6642_v50, %v22569_v34  ;;  %v15148_v57 = vsel %vm5186_vm13, 1.0, %v19402_v28  ;;  %vm5184_vm15 = vcmp.ge.f32.partialorder %v4470_v32, 2.0  ;;  %v4473_v51 = vadd.f32 %v22576_v6, %v4472_v59  ;;  %v19000_v34 = vld [vmem:[#allocation7 + $0x6a8] sm:$0xff]  }
 0x4a4   :  { %v15146_v10 = vsel %vm5184_vm15, 1.0, %v19402_v28  ;;  %vm5187_vm1 = vcmp.ge.f32.partialorder %v4481_v2, 2.0 }
 0x4a5   :  { %17976 = vmatpush3.bf16.msra.mxu0 %v18997_v37  ;;  %v15322_v19 = vcombine.low %v22790_v39, %v22790_v39  ;;  %v15323_v27 = vcombine.high %v22790_v39, %v22790_v39  ;;  %v15149_v8 = vsel %vm5187_vm1, 1.0, %v19402_v28  ;;  %vm5185_vm0 = vcmp.ge.f32.partialorder %v4473_v51, 2.0 }
 0x4a6   :  { %17736 = vmatpush3.bf16.msra.mxu1 %v18998_v23  ;;  %17977 = vmatprep.subr.bf16.mxu0 %v19402_v28  ;;  %v6499_v38 = vpack.c.bf16 %v15149_v8, %v15148_v57  ;;  %v15147_v25 = vsel %vm5185_vm0, 1.0, %v19402_v28  ;;  %v19005_v8 = vld [vmem:[#allocation7 + $0xa00] sm:$0xff]  }
 0x4a7   :  { %17737 = vmatprep.subr.bf16.mxu1 %v19402_v28  ;;  %7281 = vst.msk [vmem:[%s23608_s5 + $0x1b0] sm:$0xf] %vm7172_vm14, %v15322_v19  ;;  %7282 = vst.msk [vmem:[%s23608_s5 + $0x1b4] sm:$0xf] %vm7172_vm14, %v15323_v27  ;;  %v6498_v41 = vpack.c.bf16 %v15147_v25, %v15146_v10  ;;  %v17145_v61 = vpop.f32.mrb[192].mxu0  ;;  %v19006_v25 = vld [vmem:[#allocation7 + $0x6c0] sm:$0xff]  }
 0x4a8   :  { %v10098_v46 = vpop.f32.mrb[76].mxu1  ;;  %v4494_v60 = vadd.f32 %v22576_v6, %v17145_v61  ;;  %v4485_v43 = vpop.f32.mrb[193].mxu0 }
 0x4a9   :  { %v22813_v7 = vadd.f32 %v22693_v62, %v10098_v46  ;;  %v17605_v21 = vpop.f32.mrb[77].mxu1  ;;  %17978 = vmatpush3.bf16.msra.mxu0 %v18999_v36  ;;  %v6643_v48 = vmax.bf16 %v6499_v38, %v6498_v41  ;;  %v4486_v5 = vadd.f32 %v22576_v6, %v4485_v43  ;;  %v17146_v22 = vpop.f32.mrb[194].mxu0 }
 0x4aa   :  { %v10101_v4 = vpop.f32.mrb[78].mxu1  ;;  %17738 = vmatpush3.bf16.msra.mxu1 %v19000_v34  ;;  %17979 = vmatprep.subr.bf16.mxu0 %v19402_v28  ;;  %vm5190_vm3 = vcmp.ge.f32.partialorder %v4494_v60, 2.0  ;;  %v4497_v40 = vadd.f32 %v22576_v6, %v17146_v22  ;;  %v4488_v44 = vpop.f32.mrb[195].mxu0 }
 0x4ab   :  { %v22819_v17 = vadd.f32 %v22699_v26, %v10101_v4  ;;  %v17606_v62 = vpop.f32.mrb[79].mxu1  ;;  %17739 = vmatprep.subr.bf16.mxu1 %v19402_v28  ;;  %v22823_v37 = vmax.bf16 %v6643_v48, %v22588_v13  ;;  %v15152_v50 = vsel %vm5190_vm3, 1.0, %v19402_v28  ;;  %vm5188_vm4 = vcmp.ge.f32.partialorder %v4486_v5, 2.0  ;;  %v19004_v13 = vld [vmem:[#allocation7 + $0x6b8] sm:$0xff]   ;;  %v19008_v5 = vld [vmem:[#allocation7 + $0x6c8] sm:$0xff]  }
 0x4ac   :  { %vm5191_vm5 = vcmp.ge.f32.partialorder %v4497_v40, 2.0  ;;  %v4489_v32 = vadd.f32 %v22576_v6, %v4488_v44  ;;  %v15150_v2 = vsel %vm5188_vm4, 1.0, %v19402_v28  ;;  %v19009_v44 = vld [vmem:[#allocation7 + $0xa10] sm:$0xff]  }
 0x4ad   :  { %17980 = vmatpush3.bf16.msra.mxu0 %v19001_v12  ;;  %v15324_v23 = vcombine.low %v22823_v37, %v22823_v37  ;;  %v15325_v26 = vcombine.high %v22823_v37, %v22823_v37  ;;  %v15153_v59 = vsel %vm5191_vm5, 1.0, %v19402_v28  ;;  %v19007_v12 = vld [vmem:[#allocation7 + $0xa08] sm:$0xff]  }
 0x4ae   :  { %17740 = vmatpush3.bf16.msra.mxu1 %v19002_v47  ;;  %17981 = vmatprep.subr.bf16.mxu0 %v19402_v28  ;;  %v6501_v57 = vpack.c.bf16 %v15153_v59, %v15152_v50  ;;  %vm5189_vm6 = vcmp.ge.f32.partialorder %v4489_v32, 2.0 }
 0x4af   :  { %17741 = vmatprep.subr.bf16.mxu1 %v19402_v28  ;;  %7283 = vst.msk [vmem:[%s23608_s5 + $0x1b8] sm:$0xf] %vm7172_vm14, %v15324_v23  ;;  %7284 = vst.msk [vmem:[%s23608_s5 + $0x1bc] sm:$0xf] %vm7172_vm14, %v15325_v26  ;;  %v15151_v51 = vsel %vm5189_vm6, 1.0, %v19402_v28  ;;  %v17149_v10 = vpop.f32.mrb[196].mxu0 }
 0x4b0   :  { %v6500_v36 = vpack.c.bf16 %v15151_v51, %v15150_v2  ;;  %v4510_v19 = vadd.f32 %v22576_v6, %v17149_v10  ;;  %v4501_v27 = vpop.f32.mrb[197].mxu0  ;;  %v19012_v10 = vld [vmem:[#allocation7 + $0x6d8] sm:$0xff]  }
 0x4b1   :  { %17982 = vmatpush3.bf16.msra.mxu0 %v19003_v63  ;;  %v4502_v34 = vadd.f32 %v22576_v6, %v4501_v27  ;;  %v17150_v38 = vpop.f32.mrb[198].mxu0  ;;  %v19010_v63 = vld [vmem:[#allocation7 + $0x6d0] sm:$0xff]  }
 0x4b2   :  { %17742 = vmatpush3.bf16.msra.mxu1 %v19004_v13  ;;  %18007 = vmatprep.subr.bf16.mxu0 %v19402_v28  ;;  %v22847_v41 = vmax.bf16 %v6501_v57, %v6500_v36  ;;  %vm5194_vm7 = vcmp.ge.f32.partialorder %v4510_v19, 2.0  ;;  %v4513_v61 = vadd.f32 %v22576_v6, %v17150_v38  ;;  %v4504_v46 = vpop.f32.mrb[199].mxu0  ;;  %v19011_v57 = vld [vmem:[#allocation7 + $0xa18] sm:$0xff]  }
 0x4b3   :  { %17747 = vmatprep.subr.bf16.mxu1 %v19402_v28  ;;  %v15156_v60 = vsel %vm5194_vm7, 1.0, %v19402_v28  ;;  %vm5192_vm8 = vcmp.ge.f32.partialorder %v4502_v34, 2.0  ;;  %v4505_v43 = vadd.f32 %v22576_v6, %v4504_v46 }
 0x4b4   :  { %17984 = vmatmul.mubr.bf16.vlgmr.msra.gmra.mrb[12].mxu0 %v22011_v53  ;;  %v15154_v21 = vsel %vm5192_vm8, 1.0, %v19402_v28  ;;  %vm5195_vm9 = vcmp.ge.f32.partialorder %v4513_v61, 2.0 }
 0x4b5   :  { %17744 = vmatmul.mubr.bf16.vlgmr.msra.gmra.mrb[104].mxu1 %v21455_v11  ;;  %18008 = vmatpush3.bf16.msra.mxu0 %v19005_v8  ;;  %v15157_v48 = vsel %vm5195_vm9, 1.0, %v19402_v28  ;;  %vm5193_vm10 = vcmp.ge.f32.partialorder %v4505_v43, 2.0  ;;  %v19014_v43 = vld [vmem:[#allocation7 + $0x6e0] sm:$0xff]  }
 0x4b6   :  { %17748 = vmatpush3.bf16.msra.mxu1 %v19006_v25  ;;  %18009 = vmatprep.subr.bf16.mxu0 %v19402_v28  ;;  %v6503_v22 = vpack.c.bf16 %v15157_v48, %v15156_v60  ;;  %v15155_v4 = vsel %vm5193_vm10, 1.0, %v19402_v28  ;;  %v19013_v25 = vld [vmem:[#allocation7 + $0xa20] sm:$0xff]  }
 0x4b7   :  { %17749 = vmatprep.subr.bf16.mxu1 %v19402_v28  ;;  %18023 = vmatprep.mubr.msk.bf16.mxu0 %vm19403_vm2, %v19402_v28  ;;  %v6502_v53 = vpack.c.bf16 %v15155_v4, %v15154_v21  ;;  %v17153_v47 = vpop.f32.mrb[200].mxu0  ;;  %v19015_v4 = vld [vmem:[#allocation7 + $0xa28] sm:$0xff]  }
 0x4b8   :  { %17763 = vmatprep.mubr.msk.bf16.mxu1 %vm19403_vm2, %v19402_v28  ;;  %v4526_v11 = vadd.f32 %v22576_v6, %v17153_v47  ;;  %v4517_v40 = vpop.f32.mrb[201].mxu0  ;;  %v19016_v47 = vld [vmem:[#allocation7 + $0x6e8] sm:$0xff]  }
 0x4b9   :  { %18010 = vmatpush3.bf16.msra.mxu0 %v19007_v12  ;;  %v22865_v62 = vmax.bf16 %v6503_v22, %v6502_v53  ;;  %v4518_v50 = vadd.f32 %v22576_v6, %v4517_v40  ;;  %v17154_v32 = vpop.f32.mrb[202].mxu0 }
 0x4ba   :  { %17750 = vmatpush3.bf16.msra.mxu1 %v19008_v5  ;;  %18011 = vmatprep.subr.bf16.mxu0 %v19402_v28  ;;  %vm5198_vm11 = vcmp.ge.f32.partialorder %v4526_v11, 2.0  ;;  %v4529_v23 = vadd.f32 %v22576_v6, %v17154_v32  ;;  %v4520_v26 = vpop.f32.mrb[203].mxu0 }
 0x4bb   :  { %17751 = vmatprep.subr.bf16.mxu1 %v19402_v28  ;;  %v15160_v2 = vsel %vm5198_vm11, 1.0, %v19402_v28  ;;  %vm5196_vm12 = vcmp.ge.f32.partialorder %v4518_v50, 2.0  ;;  %v4521_v59 = vadd.f32 %v22576_v6, %v4520_v26 }
 0x4bc   :  { %v15158_v13 = vsel %vm5196_vm12, 1.0, %v19402_v28  ;;  %vm5199_vm13 = vcmp.ge.f32.partialorder %v4529_v23, 2.0 }
 0x4bd   :  { %18012 = vmatpush3.bf16.msra.mxu0 %v19009_v44  ;;  %v15161_v51 = vsel %vm5199_vm13, 1.0, %v19402_v28  ;;  %vm5197_vm15 = vcmp.ge.f32.partialorder %v4521_v59, 2.0  ;;  %v19017_v59 = vld [vmem:[#allocation7 + $0xa30] sm:$0xff]  }
 0x4be   :  { %17752 = vmatpush3.bf16.msra.mxu1 %v19010_v63  ;;  %18013 = vmatprep.subr.bf16.mxu0 %v19402_v28  ;;  %v6505_v36 = vpack.c.bf16 %v15161_v51, %v15160_v2  ;;  %v15159_v19 = vsel %vm5197_vm15, 1.0, %v19402_v28 }
 0x4bf   :  { %17753 = vmatprep.subr.bf16.mxu1 %v19402_v28  ;;  %v6504_v27 = vpack.c.bf16 %v15159_v19, %v15158_v13  ;;  %v17157_v8 = vpop.f32.mrb[204].mxu0 }
 0x4c0   :  { %v4542_v34 = vadd.f32 %v22576_v6, %v17157_v8  ;;  %v4533_v38 = vpop.f32.mrb[205].mxu0 }
 0x4c1   :  { %18014 = vmatpush3.bf16.msra.mxu0 %v19011_v57  ;;  %v22879_v61 = vmax.bf16 %v6505_v36, %v6504_v27  ;;  %v4534_v46 = vadd.f32 %v22576_v6, %v4533_v38  ;;  %v17158_v60 = vpop.f32.mrb[206].mxu0  ;;  %v19018_v36 = vld [vmem:[#allocation7 + $0x6f0] sm:$0xff]  }
 0x4c2   :  { %17754 = vmatpush3.bf16.msra.mxu1 %v19012_v10  ;;  %18015 = vmatprep.subr.bf16.mxu0 %v19402_v28  ;;  %vm5202_vm1 = vcmp.ge.f32.partialorder %v4542_v34, 2.0  ;;  %v4545_v21 = vadd.f32 %v22576_v6, %v17158_v60  ;;  %v4536_v12 = vpop.f32.mrb[207].mxu0 }
 0x4c3   :  { %17755 = vmatprep.subr.bf16.mxu1 %v19402_v28  ;;  %v15164_v48 = vsel %vm5202_vm1, 1.0, %v19402_v28  ;;  %vm5200_vm0 = vcmp.ge.f32.partialorder %v4534_v46, 2.0  ;;  %v4537_v5 = vadd.f32 %v22576_v6, %v4536_v12  ;;  %v19019_v46 = vld [vmem:[#allocation7 + $0xa38] sm:$0xff]  }
 0x4c4   :  { %v15162_v22 = vsel %vm5200_vm0, 1.0, %v19402_v28  ;;  %vm5203_vm3 = vcmp.ge.f32.partialorder %v4545_v21, 2.0 }
 0x4c5   :  { %18016 = vmatpush3.bf16.msra.mxu0 %v19013_v25  ;;  %v15165_v53 = vsel %vm5203_vm3, 1.0, %v19402_v28  ;;  %vm5201_vm4 = vcmp.ge.f32.partialorder %v4537_v5, 2.0 }
 0x4c6   :  { %17756 = vmatpush3.bf16.msra.mxu1 %v19014_v43  ;;  %18017 = vmatprep.subr.bf16.mxu0 %v19402_v28  ;;  %v6507_v11 = vpack.c.bf16 %v15165_v53, %v15164_v48  ;;  %v15163_v40 = vsel %vm5201_vm4, 1.0, %v19402_v28 }
 0x4c7   :  { %17757 = vmatprep.subr.bf16.mxu1 %v19402_v28  ;;  %v6506_v44 = vpack.c.bf16 %v15163_v40, %v15162_v22  ;;  %v17161_v50 = vpop.f32.mrb[208].mxu0  ;;  %v19022_v40 = vld [vmem:[#allocation7 + $0x700] sm:$0xff]  }
 0x4c8   :  { %v10187_v32 = vpop.f32.mrb[80].mxu1  ;;  %v4558_v63 = vadd.f32 %v22576_v6, %v17161_v50  ;;  %v4549_v23 = vpop.f32.mrb[209].mxu0 }
 0x4c9   :  { %v22894_v26 = vadd.f32 %v22813_v7, %v10187_v32  ;;  %v17625_v2 = vpop.f32.mrb[81].mxu1  ;;  %18018 = vmatpush3.bf16.msra.mxu0 %v19015_v4  ;;  %v22896_v13 = vmax.bf16 %v6507_v11, %v6506_v44  ;;  %v4550_v57 = vadd.f32 %v22576_v6, %v4549_v23  ;;  %v17162_v51 = vpop.f32.mrb[210].mxu0  ;;  %v19021_v4 = vld [vmem:[#allocation7 + $0xa80] sm:$0xff]  }
 0x4ca   :  { %v10190_v10 = vpop.f32.mrb[82].mxu1  ;;  %17758 = vmatpush3.bf16.msra.mxu1 %v19016_v47  ;;  %18019 = vmatprep.subr.bf16.mxu0 %v19402_v28  ;;  %vm5206_vm5 = vcmp.ge.f32.partialorder %v4558_v63, 2.0  ;;  %v4561_v19 = vadd.f32 %v22576_v6, %v17162_v51  ;;  %v4552_v27 = vpop.f32.mrb[211].mxu0  ;;  %v19023_v2 = vld [vmem:[#allocation7 + $0xa88] sm:$0xff]  }
 0x4cb   :  { %v22902_v7 = vadd.f32 %v22819_v17, %v10190_v10  ;;  %v17626_v8 = vpop.f32.mrb[83].mxu1  ;;  %17759 = vmatprep.subr.bf16.mxu1 %v19402_v28  ;;  %v15168_v34 = vsel %vm5206_vm5, 1.0, %v19402_v28  ;;  %vm5204_vm6 = vcmp.ge.f32.partialorder %v4550_v57, 2.0  ;;  %v4553_v38 = vadd.f32 %v22576_v6, %v4552_v27  ;;  %v19020_v17 = vld [vmem:[#allocation7 + $0x6f8] sm:$0xff]   ;;  %v19024_v57 = vld [vmem:[#allocation7 + $0x708] sm:$0xff]   ;;  %v19025_v27 = vld [vmem:[#allocation7 + $0xa90] sm:$0xff]  }
 0x4cc   :  { %v15166_v25 = vsel %vm5204_vm6, 1.0, %v19402_v28  ;;  %vm5207_vm7 = vcmp.ge.f32.partialorder %v4561_v19, 2.0 }
 0x4cd   :  { %18020 = vmatpush3.bf16.msra.mxu0 %v19017_v59  ;;  %v15169_v60 = vsel %vm5207_vm7, 1.0, %v19402_v28  ;;  %vm5205_vm8 = vcmp.ge.f32.partialorder %v4553_v38, 2.0 }
 0x4ce   :  { %17760 = vmatpush3.bf16.msra.mxu1 %v19018_v36  ;;  %18021 = vmatprep.subr.bf16.mxu0 %v19402_v28  ;;  %v6509_v43 = vpack.c.bf16 %v15169_v60, %v15168_v34  ;;  %v15167_v21 = vsel %vm5205_vm8, 1.0, %v19402_v28 }
 0x4cf   :  { %17761 = vmatprep.subr.bf16.mxu1 %v19402_v28  ;;  %v6508_v12 = vpack.c.bf16 %v15167_v21, %v15166_v25  ;;  %v17165_v48 = vpop.f32.mrb[212].mxu0  ;;  %v19026_v25 = vld [vmem:[#allocation7 + $0x710] sm:$0xff]  }
 0x4d0   :  { %v4574_v5 = vadd.f32 %v22576_v6, %v17165_v48  ;;  %v4565_v22 = vpop.f32.mrb[213].mxu0 }
 0x4d1   :  { %18022 = vmatpush3.bf16.msra.mxu0 %v19019_v46  ;;  %v22913_v53 = vmax.bf16 %v6509_v43, %v6508_v12  ;;  %v4566_v47 = vadd.f32 %v22576_v6, %v4565_v22  ;;  %v17166_v11 = vpop.f32.mrb[214].mxu0  ;;  %v19027_v12 = vld [vmem:[#allocation7 + $0xa98] sm:$0xff]  }
 0x4d2   :  { %17762 = vmatpush3.bf16.msra.mxu1 %v19020_v17  ;;  %18047 = vmatprep.subr.bf16.mxu0 %v19402_v28  ;;  %vm5210_vm9 = vcmp.ge.f32.partialorder %v4574_v5, 2.0  ;;  %v4577_v44 = vadd.f32 %v22576_v6, %v17166_v11  ;;  %v4568_v50 = vpop.f32.mrb[215].mxu0  ;;  %v19028_v5 = vld [vmem:[#allocation7 + $0x718] sm:$0xff]  }
 0x4d3   :  { %17767 = vmatprep.subr.bf16.mxu1 %v19402_v28  ;;  %v15172_v32 = vsel %vm5210_vm9, 1.0, %v19402_v28  ;;  %vm5208_vm10 = vcmp.ge.f32.partialorder %v4566_v47, 2.0  ;;  %v4569_v63 = vadd.f32 %v22576_v6, %v4568_v50  ;;  %v19029_v50 = vld [vmem:[#allocation7 + $0xaa0] sm:$0xff]  }
 0x4d4   :  { %18024 = vmatmul.mubr.bf16.vlgmr.msra.gmra.mrb[16].mxu0 %v22210_v54  ;;  %v15170_v23 = vsel %vm5208_vm10, 1.0, %v19402_v28  ;;  %vm5211_vm11 = vcmp.ge.f32.partialorder %v4577_v44, 2.0 }
 0x4d5   :  { %17764 = vmatmul.mubr.bf16.vlgmr.msra.gmra.mrb[108].mxu1 %v21488_v14  ;;  %18048 = vmatpush3.bf16.msra.mxu0 %v19021_v4  ;;  %v15173_v59 = vsel %vm5211_vm11, 1.0, %v19402_v28  ;;  %vm5209_vm12 = vcmp.ge.f32.partialorder %v4569_v63, 2.0  ;;  %v22932_v14 = vld [vmem:[#allocation5] ss:$0 sm:$0xff] }
 0x4d6   :  { %17768 = vmatpush3.bf16.msra.mxu1 %v19022_v40  ;;  %18049 = vmatprep.subr.bf16.mxu0 %v19402_v28  ;;  %v6511_v51 = vpack.c.bf16 %v15173_v59, %v15172_v32  ;;  %v15171_v10 = vsel %vm5209_vm12, 1.0, %v19402_v28 }
 0x4d7   :  { %17769 = vmatprep.subr.bf16.mxu1 %v19402_v28  ;;  %18063 = vmatprep.mubr.msk.bf16.mxu0 %vm19403_vm2, %v19402_v28  ;;  %v6510_v54 = vpack.c.bf16 %v15171_v10, %v15170_v23  ;;  %v17169_v6 = vpop.f32.mrb[216].mxu0 }
 0x4d8   :  { %17783 = vmatprep.mubr.msk.bf16.mxu1 %vm19403_vm2, %v19402_v28  ;;  %v4590_v36 = vadd.f32 %v22932_v14, %v17169_v6  ;;  %v4581_v19 = vpop.f32.mrb[217].mxu0  ;;  %v19031_v6 = vld [vmem:[#allocation7 + $0xaa8] sm:$0xff]  }
 0x4d9   :  { %18050 = vmatpush3.bf16.msra.mxu0 %v19023_v2  ;;  %v22935_v8 = vmax.bf16 %v6511_v51, %v6510_v54  ;;  %v4582_v34 = vadd.f32 %v22932_v14, %v4581_v19  ;;  %v17170_v38 = vpop.f32.mrb[218].mxu0  ;;  %v19030_v2 = vld [vmem:[#allocation7 + $0x720] sm:$0xff]   ;;  %v19032_v19 = vld [vmem:[#allocation7 + $0x728] sm:$0xff]  }
 0x4da   :  { %17770 = vmatpush3.bf16.msra.mxu1 %v19024_v57  ;;  %18051 = vmatprep.subr.bf16.mxu0 %v19402_v28  ;;  %vm5214_vm13 = vcmp.ge.f32.partialorder %v4590_v36, 2.0  ;;  %v4593_v46 = vadd.f32 %v22932_v14, %v17170_v38  ;;  %v4584_v60 = vpop.f32.mrb[219].mxu0 }
 0x4db   :  { %17771 = vmatprep.subr.bf16.mxu1 %v19402_v28  ;;  %v15176_v17 = vsel %vm5214_vm13, 1.0, %v19402_v28  ;;  %vm5212_vm15 = vcmp.ge.f32.partialorder %v4582_v34, 2.0  ;;  %v4585_v43 = vadd.f32 %v22932_v14, %v4584_v60 }
 0x4dc   :  { %v15174_v21 = vsel %vm5212_vm15, 1.0, %v19402_v28  ;;  %vm5215_vm1 = vcmp.ge.f32.partialorder %v4593_v46, 2.0 }
 0x4dd   :  { %18052 = vmatpush3.bf16.msra.mxu0 %v19025_v27  ;;  %v15177_v48 = vsel %vm5215_vm1, 1.0, %v19402_v28  ;;  %vm5213_vm0 = vcmp.ge.f32.partialorder %v4585_v43, 2.0 }
 0x4de   :  { %17772 = vmatpush3.bf16.msra.mxu1 %v19026_v25  ;;  %18053 = vmatprep.subr.bf16.mxu0 %v19402_v28  ;;  %v6513_v22 = vpack.c.bf16 %v15177_v48, %v15176_v17  ;;  %v15175_v4 = vsel %vm5213_vm0, 1.0, %v19402_v28 }
 0x4df   :  { %17773 = vmatprep.subr.bf16.mxu1 %v19402_v28  ;;  %v6512_v47 = vpack.c.bf16 %v15175_v4, %v15174_v21  ;;  %v17173_v11 = vpop.f32.mrb[220].mxu0 }
 0x4e0   :  { %v4606_v40 = vadd.f32 %v22932_v14, %v17173_v11  ;;  %v4597_v44 = vpop.f32.mrb[221].mxu0 }
 0x4e1   :  { %18054 = vmatpush3.bf16.msra.mxu0 %v19027_v12  ;;  %v22949_v32 = vmax.bf16 %v6513_v22, %v6512_v47  ;;  %v4598_v63 = vadd.f32 %v22932_v14, %v4597_v44  ;;  %v17174_v23 = vpop.f32.mrb[222].mxu0  ;;  %v19033_v12 = vld [vmem:[#allocation7 + $0xab0] sm:$0xff]  }
 0x4e2   :  { %17774 = vmatpush3.bf16.msra.mxu1 %v19028_v5  ;;  %18055 = vmatprep.subr.bf16.mxu0 %v19402_v28  ;;  %vm5218_vm3 = vcmp.ge.f32.partialorder %v4606_v40, 2.0  ;;  %v4609_v59 = vadd.f32 %v22932_v14, %v17174_v23  ;;  %v4600_v57 = vpop.f32.mrb[223].mxu0  ;;  %v19034_v47 = vld [vmem:[#allocation7 + $0x730] sm:$0xff]  }
 0x4e3   :  { %17775 = vmatprep.subr.bf16.mxu1 %v19402_v28  ;;  %v15180_v51 = vsel %vm5218_vm3, 1.0, %v19402_v28  ;;  %vm5216_vm4 = vcmp.ge.f32.partialorder %v4598_v63, 2.0  ;;  %v4601_v10 = vadd.f32 %v22932_v14, %v4600_v57 }
 0x4e4   :  { %v15178_v54 = vsel %vm5216_vm4, 1.0, %v19402_v28  ;;  %vm5219_vm5 = vcmp.ge.f32.partialorder %v4609_v59, 2.0 }
 0x4e5   :  { %18056 = vmatpush3.bf16.msra.mxu0 %v19029_v50  ;;  %v15181_v36 = vsel %vm5219_vm5, 1.0, %v19402_v28  ;;  %vm5217_vm6 = vcmp.ge.f32.partialorder %v4601_v10, 2.0 }
 0x4e6   :  { %17776 = vmatpush3.bf16.msra.mxu1 %v19030_v2  ;;  %18057 = vmatprep.subr.bf16.mxu0 %v19402_v28  ;;  %v6515_v27 = vpack.c.bf16 %v15181_v36, %v15180_v51  ;;  %v15179_v34 = vsel %vm5217_vm6, 1.0, %v19402_v28  ;;  %v19035_v2 = vld [vmem:[#allocation7 + $0xab8] sm:$0xff]  }
 0x4e7   :  { %17777 = vmatprep.subr.bf16.mxu1 %v19402_v28  ;;  %v6514_v38 = vpack.c.bf16 %v15179_v34, %v15178_v54  ;;  %v17177_v25 = vpop.f32.mrb[224].mxu0 }
 0x4e8   :  { %v10276_v46 = vpop.f32.mrb[84].mxu1  ;;  %v4622_v60 = vadd.f32 %v22932_v14, %v17177_v25  ;;  %v4613_v17 = vpop.f32.mrb[225].mxu0  ;;  %v19038_v25 = vld [vmem:[#allocation7 + $0x740] sm:$0xff]  }
 0x4e9   :  { %v22964_v43 = vadd.f32 %v22894_v26, %v10276_v46  ;;  %v17645_v21 = vpop.f32.mrb[85].mxu1  ;;  %18058 = vmatpush3.bf16.msra.mxu0 %v19031_v6  ;;  %v22966_v48 = vmax.bf16 %v6515_v27, %v6514_v38  ;;  %v4614_v5 = vadd.f32 %v22932_v14, %v4613_v17  ;;  %v17178_v22 = vpop.f32.mrb[226].mxu0 }
 0x4ea   :  { %v10279_v4 = vpop.f32.mrb[86].mxu1  ;;  %17778 = vmatpush3.bf16.msra.mxu1 %v19032_v19  ;;  %18059 = vmatprep.subr.bf16.mxu0 %v19402_v28  ;;  %vm5222_vm7 = vcmp.ge.f32.partialorder %v4622_v60, 2.0  ;;  %v4625_v11 = vadd.f32 %v22932_v14, %v17178_v22  ;;  %v4616_v40 = vpop.f32.mrb[227].mxu0  ;;  %v19037_v19 = vld [vmem:[#allocation7 + $0xb00] sm:$0xff]   ;;  %v19039_v22 = vld [vmem:[#allocation7 + $0xb08] sm:$0xff]  }
 0x4eb   :  { %v22972_v26 = vadd.f32 %v22902_v7, %v10279_v4  ;;  %v17646_v44 = vpop.f32.mrb[87].mxu1  ;;  %17779 = vmatprep.subr.bf16.mxu1 %v19402_v28  ;;  %v15184_v50 = vsel %vm5222_vm7, 1.0, %v19402_v28  ;;  %vm5220_vm8 = vcmp.ge.f32.partialorder %v4614_v5, 2.0  ;;  %v4617_v63 = vadd.f32 %v22932_v14, %v4616_v40  ;;  %v19036_v7 = vld [vmem:[#allocation7 + $0x738] sm:$0xff]  }
 0x4ec   :  { %v15182_v23 = vsel %vm5220_vm8, 1.0, %v19402_v28  ;;  %vm5223_vm9 = vcmp.ge.f32.partialorder %v4625_v11, 2.0 }
 0x4ed   :  { %18060 = vmatpush3.bf16.msra.mxu0 %v19033_v12  ;;  %v15185_v59 = vsel %vm5223_vm9, 1.0, %v19402_v28  ;;  %vm5221_vm10 = vcmp.ge.f32.partialorder %v4617_v63, 2.0 }
 0x4ee   :  { %17780 = vmatpush3.bf16.msra.mxu1 %v19034_v47  ;;  %18061 = vmatprep.subr.bf16.mxu0 %v19402_v28  ;;  %v6517_v57 = vpack.c.bf16 %v15185_v59, %v15184_v50  ;;  %v15183_v51 = vsel %vm5221_vm10, 1.0, %v19402_v28 }
 0x4ef   :  { %17781 = vmatprep.subr.bf16.mxu1 %v19402_v28  ;;  %v6516_v10 = vpack.c.bf16 %v15183_v51, %v15182_v23  ;;  %v17181_v54 = vpop.f32.mrb[228].mxu0  ;;  %v19041_v23 = vld [vmem:[#allocation7 + $0xb10] sm:$0xff]  }
 0x4f0   :  { %v4638_v6 = vadd.f32 %v22932_v14, %v17181_v54  ;;  %v4629_v36 = vpop.f32.mrb[229].mxu0 }
 0x4f1   :  { %18062 = vmatpush3.bf16.msra.mxu0 %v19035_v2  ;;  %v6652_v27 = vmax.bf16 %v6517_v57, %v6516_v10  ;;  %v4630_v34 = vadd.f32 %v22932_v14, %v4629_v36  ;;  %v17182_v38 = vpop.f32.mrb[230].mxu0  ;;  %v19042_v57 = vld [vmem:[#allocation7 + $0x750] sm:$0xff]  }
 0x4f2   :  { %17782 = vmatpush3.bf16.msra.mxu1 %v19036_v7  ;;  %18087 = vmatprep.subr.bf16.mxu0 %v19402_v28  ;;  %vm5226_vm11 = vcmp.ge.f32.partialorder %v4638_v6, 2.0  ;;  %v4641_v46 = vadd.f32 %v22932_v14, %v17182_v38  ;;  %v4632_v60 = vpop.f32.mrb[231].mxu0 }
 0x4f3   :  { %17787 = vmatprep.subr.bf16.mxu1 %v19402_v28  ;;  %v22988_v17 = vmax.bf16 %v6652_v27, %v22847_v41  ;;  %v15188_v21 = vsel %vm5226_vm11, 1.0, %v19402_v28  ;;  %vm5224_vm12 = vcmp.ge.f32.partialorder %v4630_v34, 2.0  ;;  %v4633_v12 = vadd.f32 %v22932_v14, %v4632_v60  ;;  %v19043_v27 = vld [vmem:[#allocation7 + $0xb18] sm:$0xff]  }
 0x4f4   :  { %18064 = vmatmul.mubr.bf16.vlgmr.msra.gmra.mrb[20].mxu0 %v22281_v24  ;;  %v15186_v5 = vsel %vm5224_vm12, 1.0, %v19402_v28  ;;  %vm5227_vm13 = vcmp.ge.f32.partialorder %v4641_v46, 2.0  ;;  %v19040_v24 = vld [vmem:[#allocation7 + $0x748] sm:$0xff]  }
 0x4f5   :  { %17784 = vmatmul.mubr.bf16.vlgmr.msra.gmra.mrb[112].mxu1 %v21526_v20  ;;  %18088 = vmatpush3.bf16.msra.mxu0 %v19037_v19  ;;  %v15326_v4 = vcombine.low %v22988_v17, %v22988_v17  ;;  %v15327_v41 = vcombine.high %v22988_v17, %v22988_v17  ;;  %v15189_v47 = vsel %vm5227_vm13, 1.0, %v19402_v28  ;;  %vm5225_vm15 = vcmp.ge.f32.partialorder %v4633_v12, 2.0 }
 0x4f6   :  { %17788 = vmatpush3.bf16.msra.mxu1 %v19038_v25  ;;  %18089 = vmatprep.subr.bf16.mxu0 %v19402_v28  ;;  %v6519_v11 = vpack.c.bf16 %v15189_v47, %v15188_v21  ;;  %v15187_v40 = vsel %vm5225_vm15, 1.0, %v19402_v28 }
 0x4f7   :  { %17789 = vmatprep.subr.bf16.mxu1 %v19402_v28  ;;  %7285 = vst.msk [vmem:[%s23608_s5 + $0x1c0] sm:$0xf] %vm7172_vm14, %v15326_v4  ;;  %7286 = vst.msk [vmem:[%s23608_s5 + $0x1c4] sm:$0xf] %vm7172_vm14, %v15327_v41  ;;  %v6518_v20 = vpack.c.bf16 %v15187_v40, %v15186_v5  ;;  %v17185_v44 = vpop.f32.mrb[232].mxu0  ;;  %18103 = vmatprep.mubr.msk.bf16.mxu0 %vm19403_vm2, %v19402_v28  ;;  %v19045_v4 = vld [vmem:[#allocation7 + $0xb20] sm:$0xff]  }
 0x4f8   :  { %v4654_v50 = vadd.f32 %v22932_v14, %v17185_v44  ;;  %v4645_v63 = vpop.f32.mrb[233].mxu0  ;;  %17803 = vmatprep.mubr.msk.bf16.mxu1 %vm19403_vm2, %v19402_v28 }
 0x4f9   :  { %18090 = vmatpush3.bf16.msra.mxu0 %v19039_v22  ;;  %v6653_v2 = vmax.bf16 %v6519_v11, %v6518_v20  ;;  %v4646_v59 = vadd.f32 %v22932_v14, %v4645_v63  ;;  %v17186_v7 = vpop.f32.mrb[234].mxu0  ;;  %v19046_v11 = vld [vmem:[#allocation7 + $0x760] sm:$0xff]  }
 0x4fa   :  { %17790 = vmatpush3.bf16.msra.mxu1 %v19040_v24  ;;  %18091 = vmatprep.subr.bf16.mxu0 %v19402_v28  ;;  %vm5230_vm1 = vcmp.ge.f32.partialorder %v4654_v50, 2.0  ;;  %v4657_v51 = vadd.f32 %v22932_v14, %v17186_v7  ;;  %v4648_v10 = vpop.f32.mrb[235].mxu0 }
 0x4fb   :  { %17791 = vmatprep.subr.bf16.mxu1 %v19402_v28  ;;  %v23021_v54 = vmax.bf16 %v6653_v2, %v22865_v62  ;;  %v15192_v6 = vsel %vm5230_vm1, 1.0, %v19402_v28  ;;  %vm5228_vm0 = vcmp.ge.f32.partialorder %v4646_v59, 2.0  ;;  %v4649_v36 = vadd.f32 %v22932_v14, %v4648_v10  ;;  %v19044_v62 = vld [vmem:[#allocation7 + $0x758] sm:$0xff]   ;;  %v19047_v2 = vld [vmem:[#allocation7 + $0xb28] sm:$0xff]  }
 0x4fc   :  { %v15190_v19 = vsel %vm5228_vm0, 1.0, %v19402_v28  ;;  %vm5231_vm3 = vcmp.ge.f32.partialorder %v4657_v51, 2.0 }
 0x4fd   :  { %18092 = vmatpush3.bf16.msra.mxu0 %v19041_v23  ;;  %v15328_v34 = vcombine.low %v23021_v54, %v23021_v54  ;;  %v15329_v38 = vcombine.high %v23021_v54, %v23021_v54  ;;  %v15193_v25 = vsel %vm5231_vm3, 1.0, %v19402_v28  ;;  %vm5229_vm4 = vcmp.ge.f32.partialorder %v4649_v36, 2.0 }
 0x4fe   :  { %17792 = vmatpush3.bf16.msra.mxu1 %v19042_v57  ;;  %18093 = vmatprep.subr.bf16.mxu0 %v19402_v28  ;;  %v6521_v46 = vpack.c.bf16 %v15193_v25, %v15192_v6  ;;  %v15191_v60 = vsel %vm5229_vm4, 1.0, %v19402_v28 }
 0x4ff   :  { %17793 = vmatprep.subr.bf16.mxu1 %v19402_v28  ;;  %7287 = vst.msk [vmem:[%s23608_s5 + $0x1c8] sm:$0xf] %vm7172_vm14, %v15328_v34  ;;  %7288 = vst.msk [vmem:[%s23608_s5 + $0x1cc] sm:$0xf] %vm7172_vm14, %v15329_v38  ;;  %v6520_v21 = vpack.c.bf16 %v15191_v60, %v15190_v19  ;;  %v17189_v12 = vpop.f32.mrb[236].mxu0 }
 0x500   :  { %v4670_v5 = vadd.f32 %v22932_v14, %v17189_v12  ;;  %v4661_v22 = vpop.f32.mrb[237].mxu0 }
 0x501   :  { %18094 = vmatpush3.bf16.msra.mxu0 %v19043_v27  ;;  %v6654_v41 = vmax.bf16 %v6521_v46, %v6520_v21  ;;  %v4662_v47 = vadd.f32 %v22932_v14, %v4661_v22  ;;  %v17190_v24 = vpop.f32.mrb[238].mxu0 }
 0x502   :  { %17794 = vmatpush3.bf16.msra.mxu1 %v19044_v62  ;;  %18095 = vmatprep.subr.bf16.mxu0 %v19402_v28  ;;  %vm5234_vm5 = vcmp.ge.f32.partialorder %v4670_v5, 2.0  ;;  %v4673_v40 = vadd.f32 %v22932_v14, %v17190_v24  ;;  %v4664_v20 = vpop.f32.mrb[239].mxu0  ;;  %v19049_v62 = vld [vmem:[#allocation7 + $0xb30] sm:$0xff]  }
 0x503   :  { %17795 = vmatprep.subr.bf16.mxu1 %v19402_v28  ;;  %v23048_v44 = vmax.bf16 %v6654_v41, %v22879_v61  ;;  %v15196_v50 = vsel %vm5234_vm5, 1.0, %v19402_v28  ;;  %vm5232_vm6 = vcmp.ge.f32.partialorder %v4662_v47, 2.0  ;;  %v4665_v63 = vadd.f32 %v22932_v14, %v4664_v20  ;;  %v19048_v61 = vld [vmem:[#allocation7 + $0x768] sm:$0xff]   ;;  %v19050_v5 = vld [vmem:[#allocation7 + $0x770] sm:$0xff]  }
 0x504   :  { %v15194_v23 = vsel %vm5232_vm6, 1.0, %v19402_v28  ;;  %vm5235_vm7 = vcmp.ge.f32.partialorder %v4673_v40, 2.0  ;;  %v19051_v40 = vld [vmem:[#allocation7 + $0xb38] sm:$0xff]  }
 0x505   :  { %18096 = vmatpush3.bf16.msra.mxu0 %v19045_v4  ;;  %v15330_v59 = vcombine.low %v23048_v44, %v23048_v44  ;;  %v15331_v7 = vcombine.high %v23048_v44, %v23048_v44  ;;  %v15197_v57 = vsel %vm5235_vm7, 1.0, %v19402_v28  ;;  %vm5233_vm8 = vcmp.ge.f32.partialorder %v4665_v63, 2.0 }
 0x506   :  { %17796 = vmatpush3.bf16.msra.mxu1 %v19046_v11  ;;  %18097 = vmatprep.subr.bf16.mxu0 %v19402_v28  ;;  %v6523_v51 = vpack.c.bf16 %v15197_v57, %v15196_v50  ;;  %v15195_v10 = vsel %vm5233_vm8, 1.0, %v19402_v28 }
 0x507   :  { %17797 = vmatprep.subr.bf16.mxu1 %v19402_v28  ;;  %7289 = vst.msk [vmem:[%s23608_s5 + $0x1d0] sm:$0xf] %vm7172_vm14, %v15330_v59  ;;  %7290 = vst.msk [vmem:[%s23608_s5 + $0x1d4] sm:$0xf] %vm7172_vm14, %v15331_v7  ;;  %v6522_v6 = vpack.c.bf16 %v15195_v10, %v15194_v23  ;;  %v17193_v36 = vpop.f32.mrb[240].mxu0 }
 0x508   :  { %v10365_v19 = vpop.f32.mrb[88].mxu1  ;;  %v4686_v27 = vadd.f32 %v22932_v14, %v17193_v36  ;;  %v4677_v34 = vpop.f32.mrb[241].mxu0  ;;  %v19054_v36 = vld [vmem:[#allocation7 + $0x780] sm:$0xff]  }
 0x509   :  { %v23071_v38 = vadd.f32 %v22964_v43, %v10365_v19  ;;  %v17665_v25 = vpop.f32.mrb[89].mxu1  ;;  %18098 = vmatpush3.bf16.msra.mxu0 %v19047_v2  ;;  %v6655_v46 = vmax.bf16 %v6523_v51, %v6522_v6  ;;  %v4678_v60 = vadd.f32 %v22932_v14, %v4677_v34  ;;  %v17194_v21 = vpop.f32.mrb[242].mxu0  ;;  %v19053_v51 = vld [vmem:[#allocation7 + $0xb80] sm:$0xff]  }
 0x50a   :  { %v10368_v12 = vpop.f32.mrb[90].mxu1  ;;  %17798 = vmatpush3.bf16.msra.mxu1 %v19048_v61  ;;  %18099 = vmatprep.subr.bf16.mxu0 %v19402_v28  ;;  %vm5238_vm9 = vcmp.ge.f32.partialorder %v4686_v27, 2.0  ;;  %v4689_v22 = vadd.f32 %v22932_v14, %v17194_v21  ;;  %v4680_v4 = vpop.f32.mrb[243].mxu0  ;;  %v19055_v21 = vld [vmem:[#allocation7 + $0xb88] sm:$0xff]  }
 0x50b   :  { %v23077_v41 = vadd.f32 %v22972_v26, %v10368_v12  ;;  %v17666_v43 = vpop.f32.mrb[91].mxu1  ;;  %17799 = vmatprep.subr.bf16.mxu1 %v19402_v28  ;;  %v23081_v47 = vmax.bf16 %v6655_v46, %v22896_v13  ;;  %v15200_v24 = vsel %vm5238_vm9, 1.0, %v19402_v28  ;;  %vm5236_vm10 = vcmp.ge.f32.partialorder %v4678_v60, 2.0  ;;  %v19052_v13 = vld [vmem:[#allocation7 + $0x778] sm:$0xff]  }
 0x50c   :  { %vm5239_vm11 = vcmp.ge.f32.partialorder %v4689_v22, 2.0  ;;  %v4681_v11 = vadd.f32 %v22932_v14, %v4680_v4  ;;  %v15198_v50 = vsel %vm5236_vm10, 1.0, %v19402_v28 }
 0x50d   :  { %18100 = vmatpush3.bf16.msra.mxu0 %v19049_v62  ;;  %v15332_v20 = vcombine.low %v23081_v47, %v23081_v47  ;;  %v15333_v26 = vcombine.high %v23081_v47, %v23081_v47  ;;  %v15201_v63 = vsel %vm5239_vm11, 1.0, %v19402_v28 }
 0x50e   :  { %17800 = vmatpush3.bf16.msra.mxu1 %v19050_v5  ;;  %18101 = vmatprep.subr.bf16.mxu0 %v19402_v28  ;;  %v6525_v23 = vpack.c.bf16 %v15201_v63, %v15200_v24  ;;  %vm5237_vm12 = vcmp.ge.f32.partialorder %v4681_v11, 2.0  ;;  %v19056_v5 = vld [vmem:[#allocation7 + $0x788] sm:$0xff]   ;;  %v19058_v63 = vld [vmem:[#allocation7 + $0x790] sm:$0xff]  }
 0x50f   :  { %17801 = vmatprep.subr.bf16.mxu1 %v19402_v28  ;;  %7291 = vst.msk [vmem:[%s23608_s5 + $0x1d8] sm:$0xf] %vm7172_vm14, %v15332_v20  ;;  %7292 = vst.msk [vmem:[%s23608_s5 + $0x1dc] sm:$0xf] %vm7172_vm14, %v15333_v26  ;;  %v15199_v2 = vsel %vm5237_vm12, 1.0, %v19402_v28  ;;  %v17197_v59 = vpop.f32.mrb[244].mxu0 }
 0x510   :  { %v6524_v7 = vpack.c.bf16 %v15199_v2, %v15198_v50  ;;  %v4702_v57 = vadd.f32 %v22932_v14, %v17197_v59  ;;  %v4693_v61 = vpop.f32.mrb[245].mxu0 }
 0x511   :  { %18102 = vmatpush3.bf16.msra.mxu0 %v19051_v40  ;;  %v4694_v10 = vadd.f32 %v22932_v14, %v4693_v61  ;;  %v17198_v6 = vpop.f32.mrb[246].mxu0  ;;  %v19057_v40 = vld [vmem:[#allocation7 + $0xb90] sm:$0xff]  }
 0x512   :  { %17802 = vmatpush3.bf16.msra.mxu1 %v19052_v13  ;;  %18127 = vmatprep.subr.bf16.mxu0 %v19402_v28  ;;  %v6656_v19 = vmax.bf16 %v6525_v23, %v6524_v7  ;;  %vm5242_vm13 = vcmp.ge.f32.partialorder %v4702_v57, 2.0  ;;  %v4705_v27 = vadd.f32 %v22932_v14, %v17198_v6  ;;  %v4696_v34 = vpop.f32.mrb[247].mxu0 }
 0x513   :  { %17807 = vmatprep.subr.bf16.mxu1 %v19402_v28  ;;  %v15204_v25 = vsel %vm5242_vm13, 1.0, %v19402_v28  ;;  %vm5240_vm15 = vcmp.ge.f32.partialorder %v4694_v10, 2.0  ;;  %v4697_v62 = vadd.f32 %v22932_v14, %v4696_v34  ;;  %v19059_v10 = vld [vmem:[#allocation7 + $0xb98] sm:$0xff]  }
 0x514   :  { %18104 = vmatmul.mubr.bf16.vlgmr.msra.gmra.mrb[24].mxu0 %v22340_v49  ;;  %v23111_v46 = vmax.bf16 %v6656_v19, %v22913_v53  ;;  %v15202_v60 = vsel %vm5240_vm15, 1.0, %v19402_v28  ;;  %vm5243_vm1 = vcmp.ge.f32.partialorder %v4705_v27, 2.0 }
 0x515   :  { %17804 = vmatmul.mubr.bf16.vlgmr.msra.gmra.mrb[116].mxu1 %v21563_v1  ;;  %18128 = vmatpush3.bf16.msra.mxu0 %v19053_v51  ;;  %v15205_v12 = vsel %vm5243_vm1, 1.0, %v19402_v28  ;;  %vm5241_vm0 = vcmp.ge.f32.partialorder %v4697_v62, 2.0 }
 0x516   :  { %17808 = vmatpush3.bf16.msra.mxu1 %v19054_v36  ;;  %18129 = vmatprep.subr.bf16.mxu0 %v19402_v28  ;;  %v15334_v49 = vcombine.low %v23111_v46, %v23111_v46  ;;  %v15335_v53 = vcombine.high %v23111_v46, %v23111_v46  ;;  %v6527_v22 = vpack.c.bf16 %v15205_v12, %v15204_v25  ;;  %v15203_v4 = vsel %vm5241_vm0, 1.0, %v19402_v28  ;;  %v19060_v36 = vld [vmem:[#allocation7 + $0x798] sm:$0xff]   ;;  %v19061_v12 = vld [vmem:[#allocation7 + $0xba0] sm:$0xff]  }
 0x517   :  { %17809 = vmatprep.subr.bf16.mxu1 %v19402_v28  ;;  %v6526_v1 = vpack.c.bf16 %v15203_v4, %v15202_v60  ;;  %v17201_v43 = vpop.f32.mrb[248].mxu0  ;;  %18143 = vmatprep.mubr.msk.bf16.mxu0 %vm19403_vm2, %v19402_v28 }
 0x518   :  { %7293 = vst.msk [vmem:[%s23608_s5 + $0x1e0] sm:$0xf] %vm7172_vm14, %v15334_v49  ;;  %7294 = vst.msk [vmem:[%s23608_s5 + $0x1e4] sm:$0xf] %vm7172_vm14, %v15335_v53  ;;  %v4718_v24 = vadd.f32 %v22932_v14, %v17201_v43  ;;  %v4709_v11 = vpop.f32.mrb[249].mxu0  ;;  %17823 = vmatprep.mubr.msk.bf16.mxu1 %vm19403_vm2, %v19402_v28  ;;  %v19062_v53 = vld [vmem:[#allocation7 + $0x7a0] sm:$0xff]  }
 0x519   :  { %18130 = vmatpush3.bf16.msra.mxu0 %v19055_v21  ;;  %v6657_v20 = vmax.bf16 %v6527_v22, %v6526_v1  ;;  %v4710_v26 = vadd.f32 %v22932_v14, %v4709_v11  ;;  %v17202_v50 = vpop.f32.mrb[250].mxu0 }
 0x51a   :  { %17810 = vmatpush3.bf16.msra.mxu1 %v19056_v5  ;;  %18131 = vmatprep.subr.bf16.mxu0 %v19402_v28  ;;  %vm5246_vm3 = vcmp.ge.f32.partialorder %v4718_v24, 2.0  ;;  %v4721_v13 = vadd.f32 %v22932_v14, %v17202_v50  ;;  %v4712_v23 = vpop.f32.mrb[251].mxu0 }
 0x51b   :  { %17811 = vmatprep.subr.bf16.mxu1 %v19402_v28  ;;  %v23141_v2 = vmax.bf16 %v6657_v20, %v22935_v8  ;;  %v15208_v59 = vsel %vm5246_vm3, 1.0, %v19402_v28  ;;  %vm5244_vm4 = vcmp.ge.f32.partialorder %v4710_v26, 2.0  ;;  %v4713_v7 = vadd.f32 %v22932_v14, %v4712_v23  ;;  %v19063_v20 = vld [vmem:[#allocation7 + $0xba8] sm:$0xff]  }
 0x51c   :  { %v15206_v57 = vsel %vm5244_vm4, 1.0, %v19402_v28  ;;  %vm5247_vm5 = vcmp.ge.f32.partialorder %v4721_v13, 2.0 }
 0x51d   :  { %18132 = vmatpush3.bf16.msra.mxu0 %v19057_v40  ;;  %v15336_v61 = vcombine.low %v23141_v2, %v23141_v2  ;;  %v15337_v51 = vcombine.high %v23141_v2, %v23141_v2  ;;  %v15209_v6 = vsel %vm5247_vm5, 1.0, %v19402_v28  ;;  %vm5245_vm6 = vcmp.ge.f32.partialorder %v4713_v7, 2.0 }
 0x51e   :  { %17812 = vmatpush3.bf16.msra.mxu1 %v19058_v63  ;;  %18133 = vmatprep.subr.bf16.mxu0 %v19402_v28  ;;  %v6529_v8 = vpack.c.bf16 %v15209_v6, %v15208_v59  ;;  %v15207_v19 = vsel %vm5245_vm6, 1.0, %v19402_v28 }
 0x51f   :  { %7295 = vst.msk [vmem:[%s23608_s5 + $0x1e8] sm:$0xf] %vm7172_vm14, %v15336_v61  ;;  %7296 = vst.msk [vmem:[%s23608_s5 + $0x1ec] sm:$0xf] %vm7172_vm14, %v15337_v51  ;;  %17813 = vmatprep.subr.bf16.mxu1 %v19402_v28  ;;  %v6528_v27 = vpack.c.bf16 %v15207_v19, %v15206_v57  ;;  %v17205_v34 = vpop.f32.mrb[252].mxu0 }
 0x520   :  { %v4734_v25 = vadd.f32 %v22932_v14, %v17205_v34  ;;  %v4725_v62 = vpop.f32.mrb[253].mxu0 }
 0x521   :  { %18134 = vmatpush3.bf16.msra.mxu0 %v19059_v10  ;;  %v6658_v60 = vmax.bf16 %v6529_v8, %v6528_v27  ;;  %v4726_v21 = vadd.f32 %v22932_v14, %v4725_v62  ;;  %v17206_v5 = vpop.f32.mrb[254].mxu0  ;;  %v19065_v10 = vld [vmem:[#allocation7 + $0xbb0] sm:$0xff]   ;;  %v19067_v62 = vld [vmem:[#allocation7 + $0xbb8] sm:$0xff]  }
 0x522   :  { %17814 = vmatpush3.bf16.msra.mxu1 %v19060_v36  ;;  %vm5250_vm7 = vcmp.ge.f32.partialorder %v4734_v25, 2.0  ;;  %18135 = vmatprep.subr.bf16.mxu0 %v19402_v28  ;;  %v4737_v49 = vadd.f32 %v22932_v14, %v17206_v5  ;;  %v4728_v22 = vpop.f32.mrb[255].mxu0  ;;  %v19066_v36 = vld [vmem:[#allocation7 + $0x7b0] sm:$0xff]  }
 0x523   :  { %v23167_v4 = vmax.bf16 %v6658_v60, %v22949_v32  ;;  %v15212_v1 = vsel %vm5250_vm7, 1.0, %v19402_v28  ;;  %vm5248_vm8 = vcmp.ge.f32.partialorder %v4726_v21, 2.0  ;;  %17815 = vmatprep.subr.bf16.mxu1 %v19402_v28  ;;  %v4729_v43 = vadd.f32 %v22932_v14, %v4728_v22  ;;  %v19064_v14 = vld [vmem:[#allocation7 + $0x7a8] sm:$0xff]   ;;  %v19068_v60 = vld [vmem:[#allocation7 + $0x7b8] sm:$0xff]   ;;  %v19073_v5 = vld [vmem:[#allocation7 + $0xc10] sm:$0xff]  }
 0x524   :  { %v15210_v24 = vsel %vm5248_vm8, 1.0, %v19402_v28  ;;  %vm5251_vm9 = vcmp.ge.f32.partialorder %v4737_v49, 2.0  ;;  %v19071_v21 = vld [vmem:[#allocation7 + $0xc08] sm:$0xff]   ;;  %v19076_v49 = vld [vmem:[#allocation7 + $0x7d8] sm:$0xff]   ;;  %v19078_v22 = vld [vmem:[#allocation7 + $0x7e0] sm:$0xff]  }
 0x525   :  { %v15338_v11 = vcombine.low %v23167_v4, %v23167_v4  ;;  %v15339_v40 = vcombine.high %v23167_v4, %v23167_v4  ;;  %18136 = vmatpush3.bf16.msra.mxu0 %v19061_v12  ;;  %v15213_v32 = vsel %vm5251_vm9, 1.0, %v19402_v28  ;;  %vm5249_vm10 = vcmp.ge.f32.partialorder %v4729_v43, 2.0  ;;  %v19072_v12 = vld [vmem:[#allocation7 + $0x7c8] sm:$0xff]  }
 0x526   :  { %v6531_v26 = vpack.c.bf16 %v15213_v32, %v15212_v1  ;;  %17816 = vmatpush3.bf16.msra.mxu1 %v19062_v53  ;;  %v15211_v50 = vsel %vm5249_vm10, 1.0, %v19402_v28  ;;  %18137 = vmatprep.subr.bf16.mxu0 %v19402_v28  ;;  %v19077_v53 = vld [vmem:[#allocation7 + $0xc20] sm:$0xff]   ;;  %v19079_v1 = vld [vmem:[#allocation7 + $0xc28] sm:$0xff]  }
 0x527   :  { %7297 = vst.msk [vmem:[%s23608_s5 + $0x1f0] sm:$0xf] %vm7172_vm14, %v15338_v11  ;;  %7298 = vst.msk [vmem:[%s23608_s5 + $0x1f4] sm:$0xf] %vm7172_vm14, %v15339_v40  ;;  %v6530_v63 = vpack.c.bf16 %v15211_v50, %v15210_v24  ;;  %v23188_v13 = vpop.f32.mrb[0].mxu0  ;;  %17817 = vmatprep.subr.bf16.mxu1 %v19402_v28  ;;  %v19080_v43 = vld [vmem:[#allocation7 + $0x7e8] sm:$0xff]  }
 0x528   :  { %v10454_v23 = vpop.f32.mrb[92].mxu1  ;;  %v17865_v59 = vpop.f32.mrb[1].mxu0  ;;  %v19081_v50 = vld [vmem:[#allocation7 + $0xc30] sm:$0xff]  }
 0x529   :  { %v6659_v7 = vmax.bf16 %v6531_v26, %v6530_v63  ;;  %v23192_v57 = vadd.f32 %v23071_v38, %v10454_v23  ;;  %v17685_v61 = vpop.f32.mrb[93].mxu1  ;;  %18138 = vmatpush3.bf16.msra.mxu0 %v19063_v20  ;;  %v23194_v51 = vpop.f32.mrb[2].mxu0  ;;  %v19082_v23 = vld [vmem:[#allocation7 + $0x7f0] sm:$0xff]  }
 0x52a   :  { %v10457_v6 = vpop.f32.mrb[94].mxu1  ;;  %17818 = vmatpush3.bf16.msra.mxu1 %v19064_v14  ;;  %v17866_v8 = vpop.f32.mrb[3].mxu0  ;;  %18139 = vmatprep.subr.bf16.mxu0 %v19402_v28  ;;  %v19083_v61 = vld [vmem:[#allocation7 + $0xc38] sm:$0xff]  }
 0x52b   :  { %v23198_v19 = vmax.bf16 %v6659_v7, %v22966_v48  ;;  %v23201_v27 = vadd.f32 %v23077_v41, %v10457_v6  ;;  %v17686_v34 = vpop.f32.mrb[95].mxu1  ;;  %17819 = vmatprep.subr.bf16.mxu1 %v19402_v28  ;;  %v19069_v48 = vld [vmem:[#allocation7 + $0xc00] sm:$0xff]   ;;  %v19087_v8 = vld [vmem:[#allocation7 + $0xc88] sm:$0xff]  }
 0x52c   :  { %v19070_v41 = vld [vmem:[#allocation7 + $0x7c0] sm:$0xff]   ;;  %v19092_v34 = vld [vmem:[#allocation7 + $0x858] sm:$0xff]  }
 0x52d   :  { %v15340_v38 = vcombine.low %v23198_v19, %v23198_v19  ;;  %v15341_v25 = vcombine.high %v23198_v19, %v23198_v19  ;;  %18140 = vmatpush3.bf16.msra.mxu0 %v19065_v10  ;;  %v19085_v10 = vld [vmem:[#allocation7 + $0xc80] sm:$0xff]  }
 0x52e   :  { %17820 = vmatpush3.bf16.msra.mxu1 %v19066_v36  ;;  %18141 = vmatprep.subr.bf16.mxu0 %v19402_v28  ;;  %v19086_v6 = vld [vmem:[#allocation7 + $0x840] sm:$0xff]   ;;  %v19088_v36 = vld [vmem:[#allocation7 + $0x848] sm:$0xff]  }
 0x52f   :  { %7299 = vst.msk [vmem:[%s23608_s5 + $0x1f8] sm:$0xf] %vm7172_vm14, %v15340_v38  ;;  %7300 = vst.msk [vmem:[%s23608_s5 + $0x1fc] sm:$0xf] %vm7172_vm14, %v15341_v25  ;;  %17821 = vmatprep.subr.bf16.mxu1 %v19402_v28  ;;  %v19093_v38 = vld [vmem:[#allocation7 + $0xca0] sm:$0xff]   ;;  %s19404_s5 = smov [#allocation10]  }
 0x530   :  { %v19094_v25 = vld [vmem:[#allocation7 + $0x860] sm:$0xff]   ;;  %s14171_s30 = sshll.u32 %s19404_s5, 4  ;;  %s14172_s30 = int_to_ptr.vmem [resolvable:$true] %s14171_s30 }
 0x531   :  { %18142 = vmatpush3.bf16.msra.mxu0 %v19067_v62  ;;  %v19095_v62 = vld [vmem:[#allocation7 + $0xca8] sm:$0xff]   ;;  %s19366_s7 = scalar_lea.vmem %s14172_s30, 256  ;;  %p19371_p5 = scmp.lt.s32.totalorder %s14172_s30, %s14172_s30 }
 0x532   :  { %17822 = vmatpush3.bf16.msra.mxu1 %v19068_v60  ;;  %18167 = vmatprep.subr.bf16.mxu0 %v19402_v28  ;;  %v19096_v60 = vld [vmem:[#allocation7 + $0x868] sm:$0xff]   ;;  %p19367_p4 = scmp.ne.s32.totalorder %s14172_s30, %s19366_s7  ;;  %p19372_p6 = scmp.lt.s32.totalorder %s19366_s7, %s19366_s7 }
 0x533   :  { %17827 = vmatprep.subr.bf16.mxu1 %v19402_v28 }
 0x534   :  { %18144 = vmatmul.mubr.bf16.vlgmr.msra.gmra.mrb[28].mxu0 %v22386_v55  ;;  %v19075_v55 = vld [vmem:[#allocation7 + $0xc18] sm:$0xff]   ;;  %p19373_p7 = por %p19372_p6, %p19371_p5 }
 0x535   :  { %17824 = vmatmul.mubr.bf16.vlgmr.msra.gmra.mrb[120].mxu1 %v21597_v31  ;;  %18168 = vmatpush3.bf16.msra.mxu0 %v19069_v48  ;;  %v19074_v31 = vld [vmem:[#allocation7 + $0x7d0] sm:$0xff]  }
 0x536   :  { %17828 = vmatpush3.bf16.msra.mxu1 %v19070_v41  ;;  %18169 = vmatprep.subr.bf16.mxu0 %v19402_v28  ;;  %p19374_p8 = pnand %p19373_p7, %p19367_p4 }
 0x537   :  { %17829 = vmatprep.subr.bf16.mxu1 %v19402_v28  ;;  %18183 = vmatprep.mubr.msk.bf16.mxu0 %vm19403_vm2, %v19402_v28 }
 0x538   :  { %17843 = vmatprep.mubr.msk.bf16.mxu1 %vm19403_vm2, %v19402_v28 }
 0x539   :  { %18170 = vmatpush3.bf16.msra.mxu0 %v19071_v21 }
 0x53a   :  { %17830 = vmatpush3.bf16.msra.mxu1 %v19072_v12  ;;  %18171 = vmatprep.subr.bf16.mxu0 %v19402_v28 }
 0x53b   :  { %17831 = vmatprep.subr.bf16.mxu1 %v19402_v28 }
 0x53d   :  { %18172 = vmatpush3.bf16.msra.mxu0 %v19073_v5 }
 0x53e   :  { %17832 = vmatpush3.bf16.msra.mxu1 %v19074_v31  ;;  %18173 = vmatprep.subr.bf16.mxu0 %v19402_v28 }
 0x53f   :  { %17833 = vmatprep.subr.bf16.mxu1 %v19402_v28 }
 0x541   :  { %18174 = vmatpush3.bf16.msra.mxu0 %v19075_v55  ;;  %v19097_v55 = vld [vmem:[#allocation7 + $0xcb0] sm:$0xff]  }
 0x542   :  { %17834 = vmatpush3.bf16.msra.mxu1 %v19076_v49  ;;  %18175 = vmatprep.subr.bf16.mxu0 %v19402_v28 }
 0x543   :  { %17835 = vmatprep.subr.bf16.mxu1 %v19402_v28 }
 0x545   :  { %18176 = vmatpush3.bf16.msra.mxu0 %v19077_v53 }
 0x546   :  { %17836 = vmatpush3.bf16.msra.mxu1 %v19078_v22  ;;  %18177 = vmatprep.subr.bf16.mxu0 %v19402_v28  ;;  %v19098_v22 = vld [vmem:[#allocation7 + $0x870] sm:$0xff]  }
 0x547   :  { %v23235_v24 = vpop.f32.mrb[4].mxu0  ;;  %17837 = vmatprep.subr.bf16.mxu1 %v19402_v28 }
 0x548   :  { %v10543_v11 = vpop.f32.mrb[96].mxu1  ;;  %v17905_v40 = vpop.f32.mrb[5].mxu0 }
 0x549   :  { %v14044_v32 = vadd.f32 %v23192_v57, %v10543_v11  ;;  %v17705_v20 = vpop.f32.mrb[97].mxu1  ;;  %v23239_v26 = vpop.f32.mrb[6].mxu0  ;;  %18178 = vmatpush3.bf16.msra.mxu0 %v19079_v1  ;;  %v19084_v57 = vld [vmem:[#allocation7 + $0x7f8] sm:$0xff]  }
 0x54a   :  { %v10546_v14 = vpop.f32.mrb[98].mxu1  ;;  %17838 = vmatpush3.bf16.msra.mxu1 %v19080_v43  ;;  %v17906_v63 = vpop.f32.mrb[7].mxu0  ;;  %18179 = vmatprep.subr.bf16.mxu0 %v19402_v28  ;;  %v19099_v11 = vld [vmem:[#allocation7 + $0xcb8] sm:$0xff]   ;;  %v19102_v20 = vld [vmem:[#allocation7 + $0x8c0] sm:$0xff]  }
 0x54b   :  { %v14107_v59 = vadd.f32 %v23201_v27, %v10546_v14  ;;  %v17706_v7 = vpop.f32.mrb[99].mxu1  ;;  %17839 = vmatprep.subr.bf16.mxu1 %v19402_v28  ;;  %v19089_v27 = vld [vmem:[#allocation7 + $0xc90] sm:$0xff]   ;;  %v19100_v40 = vld [vmem:[#allocation7 + $0x878] sm:$0xff]   ;;  %v19104_v14 = vld [vmem:[#allocation7 + $0x8c8] sm:$0xff]  }
 0x54c   :  { %v19105_v63 = vld [vmem:[#allocation7 + $0xd10] sm:$0xff]   ;;  %v19110_v7 = vld [vmem:[#allocation7 + $0x8e0] sm:$0xff]  }
 0x54d   :  { %18180 = vmatpush3.bf16.msra.mxu0 %v19081_v50  ;;  %v19103_v50 = vld [vmem:[#allocation7 + $0xd08] sm:$0xff]  }
 0x54e   :  { %17840 = vmatpush3.bf16.msra.mxu1 %v19082_v23  ;;  %18181 = vmatprep.subr.bf16.mxu0 %v19402_v28  ;;  %v19108_v23 = vld [vmem:[#allocation7 + $0x8d8] sm:$0xff]  }
 0x54f   :  { %17841 = vmatprep.subr.bf16.mxu1 %v19402_v28 }
 0x551   :  { %18182 = vmatpush3.bf16.msra.mxu0 %v19083_v61  ;;  %v19111_v61 = vld [vmem:[#allocation7 + $0xd28] sm:$0xff]  }
 0x552   :  { %17842 = vmatpush3.bf16.msra.mxu1 %v19084_v57  ;;  %18207 = vmatprep.subr.bf16.mxu0 %v19402_v28  ;;  %v19112_v57 = vld [vmem:[#allocation7 + $0x8e8] sm:$0xff]  }
 0x553   :  { %17867 = vmatprep.subr.bf16.mxu1 %v19402_v28 }
 0x554   :  { %18184 = vmatmul.mubr.bf16.vlgmr.msra.gmra.mrb[32].mxu0 %v22610_v30  ;;  %v19091_v30 = vld [vmem:[#allocation7 + $0xc98] sm:$0xff]  }
 0x555   :  { %17844 = vmatmul.mubr.bf16.vlgmr.msra.gmra.mrb[124].mxu1 %v21623_v58  ;;  %18208 = vmatpush3.bf16.msra.mxu0 %v19085_v10  ;;  %v19090_v58 = vld [vmem:[#allocation7 + $0x850] sm:$0xff]  }
 0x556   :  { %17868 = vmatpush3.bf16.msra.mxu1 %v19086_v6  ;;  %18209 = vmatprep.subr.bf16.mxu0 %v19402_v28 }
 0x557   :  { %17869 = vmatprep.subr.bf16.mxu1 %v19402_v28  ;;  %18223 = vmatprep.mubr.msk.bf16.mxu0 %vm19403_vm2, %v19402_v28 }
 0x558   :  { %17883 = vmatprep.mubr.msk.bf16.mxu1 %vm19403_vm2, %v19402_v28 }
 0x559   :  { %18210 = vmatpush3.bf16.msra.mxu0 %v19087_v8 }
 0x55a   :  { %17870 = vmatpush3.bf16.msra.mxu1 %v19088_v36  ;;  %18211 = vmatprep.subr.bf16.mxu0 %v19402_v28 }
 0x55b   :  { %17871 = vmatprep.subr.bf16.mxu1 %v19402_v28 }
 0x55d   :  { %18212 = vmatpush3.bf16.msra.mxu0 %v19089_v27 }
 0x55e   :  { %17872 = vmatpush3.bf16.msra.mxu1 %v19090_v58  ;;  %18213 = vmatprep.subr.bf16.mxu0 %v19402_v28 }
 0x55f   :  { %17873 = vmatprep.subr.bf16.mxu1 %v19402_v28 }
 0x561   :  { %18214 = vmatpush3.bf16.msra.mxu0 %v19091_v30  ;;  %v19113_v30 = vld [vmem:[#allocation7 + $0xd30] sm:$0xff]  }
 0x562   :  { %17874 = vmatpush3.bf16.msra.mxu1 %v19092_v34  ;;  %18215 = vmatprep.subr.bf16.mxu0 %v19402_v28 }
 0x563   :  { %17875 = vmatprep.subr.bf16.mxu1 %v19402_v28 }
 0x565   :  { %18216 = vmatpush3.bf16.msra.mxu0 %v19093_v38 }
 0x566   :  { %17876 = vmatpush3.bf16.msra.mxu1 %v19094_v25  ;;  %18217 = vmatprep.subr.bf16.mxu0 %v19402_v28  ;;  %v19114_v25 = vld [vmem:[#allocation7 + $0x8f0] sm:$0xff]  }
 0x567   :  { %v23263_v48 = vpop.f32.mrb[8].mxu0  ;;  %17877 = vmatprep.subr.bf16.mxu1 %v19402_v28 }
 0x568   :  { %v10632_v41 = vpop.f32.mrb[100].mxu1  ;;  %v17945_v21 = vpop.f32.mrb[9].mxu0 }
 0x569   :  { %v14045_v12 = vadd.f32 %v14044_v32, %v10632_v41  ;;  %v17725_v5 = vpop.f32.mrb[101].mxu1  ;;  %v23266_v31 = vpop.f32.mrb[10].mxu0  ;;  %18218 = vmatpush3.bf16.msra.mxu0 %v19095_v62  ;;  %v19101_v32 = vld [vmem:[#allocation7 + $0xd00] sm:$0xff]   ;;  %v19115_v41 = vld [vmem:[#allocation7 + $0xd38] sm:$0xff]  }
 0x56a   :  { %v10635_v49 = vpop.f32.mrb[102].mxu1  ;;  %17878 = vmatpush3.bf16.msra.mxu1 %v19096_v60  ;;  %v17946_v53 = vpop.f32.mrb[11].mxu0  ;;  %18219 = vmatprep.subr.bf16.mxu0 %v19402_v28  ;;  %v19116_v21 = vld [vmem:[#allocation7 + $0x8f8] sm:$0xff]   ;;  %v19118_v5 = vld [vmem:[#allocation7 + $0x940] sm:$0xff]  }
 0x56b   :  { %v14108_v1 = vadd.f32 %v14107_v59, %v10635_v49  ;;  %v17726_v43 = vpop.f32.mrb[103].mxu1  ;;  %17879 = vmatprep.subr.bf16.mxu1 %v19402_v28  ;;  %v19109_v59 = vld [vmem:[#allocation7 + $0xd20] sm:$0xff]   ;;  %v19120_v49 = vld [vmem:[#allocation7 + $0x948] sm:$0xff]   ;;  %v19121_v53 = vld [vmem:[#allocation7 + $0xd90] sm:$0xff]  }
 0x56c   :  { %v19126_v43 = vld [vmem:[#allocation7 + $0x960] sm:$0xff]  }
 0x56d   :  { %18220 = vmatpush3.bf16.msra.mxu0 %v19097_v55  ;;  %v19119_v55 = vld [vmem:[#allocation7 + $0xd88] sm:$0xff]  }
 0x56e   :  { %17880 = vmatpush3.bf16.msra.mxu1 %v19098_v22  ;;  %18221 = vmatprep.subr.bf16.mxu0 %v19402_v28  ;;  %v19124_v22 = vld [vmem:[#allocation7 + $0x958] sm:$0xff]  }
 0x56f   :  { %17881 = vmatprep.subr.bf16.mxu1 %v19402_v28 }
 0x571   :  { %18222 = vmatpush3.bf16.msra.mxu0 %v19099_v11  ;;  %v19127_v11 = vld [vmem:[#allocation7 + $0xda8] sm:$0xff]  }
 0x572   :  { %17882 = vmatpush3.bf16.msra.mxu1 %v19100_v40  ;;  %18247 = vmatprep.subr.bf16.mxu0 %v19402_v28  ;;  %v19128_v40 = vld [vmem:[#allocation7 + $0x968] sm:$0xff]  }
 0x573   :  { %17907 = vmatprep.subr.bf16.mxu1 %v19402_v28 }
 0x574   :  { %18224 = vmatmul.mubr.bf16.vlgmr.msra.gmra.mrb[36].mxu0 %v22670_v42  ;;  %v19107_v42 = vld [vmem:[#allocation7 + $0xd18] sm:$0xff]  }
 0x575   :  { %17884 = vmatmul.mubr.bf16.vlgmr.msra.gmra.mrb[128].mxu1 %v21900_v52  ;;  %18248 = vmatpush3.bf16.msra.mxu0 %v19101_v32  ;;  %v19106_v52 = vld [vmem:[#allocation7 + $0x8d0] sm:$0xff]  }
 0x576   :  { %17908 = vmatpush3.bf16.msra.mxu1 %v19102_v20  ;;  %18249 = vmatprep.subr.bf16.mxu0 %v19402_v28 }
 0x577   :  { %17909 = vmatprep.subr.bf16.mxu1 %v19402_v28  ;;  %18263 = vmatprep.mubr.msk.bf16.mxu0 %vm19403_vm2, %v19402_v28 }
 0x578   :  { %17923 = vmatprep.mubr.msk.bf16.mxu1 %vm19403_vm2, %v19402_v28 }
 0x579   :  { %18250 = vmatpush3.bf16.msra.mxu0 %v19103_v50 }
 0x57a   :  { %17910 = vmatpush3.bf16.msra.mxu1 %v19104_v14  ;;  %18251 = vmatprep.subr.bf16.mxu0 %v19402_v28 }
 0x57b   :  { %17911 = vmatprep.subr.bf16.mxu1 %v19402_v28 }
 0x57d   :  { %18252 = vmatpush3.bf16.msra.mxu0 %v19105_v63 }
 0x57e   :  { %17912 = vmatpush3.bf16.msra.mxu1 %v19106_v52  ;;  %18253 = vmatprep.subr.bf16.mxu0 %v19402_v28 }
 0x57f   :  { %17913 = vmatprep.subr.bf16.mxu1 %v19402_v28 }
 0x581   :  { %18254 = vmatpush3.bf16.msra.mxu0 %v19107_v42  ;;  %v19129_v42 = vld [vmem:[#allocation7 + $0xdb0] sm:$0xff]  }
 0x582   :  { %17914 = vmatpush3.bf16.msra.mxu1 %v19108_v23  ;;  %18255 = vmatprep.subr.bf16.mxu0 %v19402_v28 }
 0x583   :  { %17915 = vmatprep.subr.bf16.mxu1 %v19402_v28 }
 0x585   :  { %18256 = vmatpush3.bf16.msra.mxu0 %v19109_v59 }
 0x586   :  { %17916 = vmatpush3.bf16.msra.mxu1 %v19110_v7  ;;  %18257 = vmatprep.subr.bf16.mxu0 %v19402_v28  ;;  %v19130_v7 = vld [vmem:[#allocation7 + $0x970] sm:$0xff]  }
 0x587   :  { %v23289_v10 = vpop.f32.mrb[12].mxu0  ;;  %17917 = vmatprep.subr.bf16.mxu1 %v19402_v28 }
 0x588   :  { %v10721_v6 = vpop.f32.mrb[104].mxu1  ;;  %v17985_v8 = vpop.f32.mrb[13].mxu0 }
 0x589   :  { %v14046_v36 = vadd.f32 %v14045_v12, %v10721_v6  ;;  %v17745_v27 = vpop.f32.mrb[105].mxu1  ;;  %v23292_v58 = vpop.f32.mrb[14].mxu0  ;;  %18258 = vmatpush3.bf16.msra.mxu0 %v19111_v61  ;;  %v19117_v12 = vld [vmem:[#allocation7 + $0xd80] sm:$0xff]   ;;  %v19131_v6 = vld [vmem:[#allocation7 + $0xdb8] sm:$0xff]  }
 0x58a   :  { %v10724_v34 = vpop.f32.mrb[106].mxu1  ;;  %17918 = vmatpush3.bf16.msra.mxu1 %v19112_v57  ;;  %v17986_v38 = vpop.f32.mrb[15].mxu0  ;;  %18259 = vmatprep.subr.bf16.mxu0 %v19402_v28  ;;  %v19132_v8 = vld [vmem:[#allocation7 + $0x978] sm:$0xff]   ;;  %v19134_v27 = vld [vmem:[#allocation7 + $0x9c0] sm:$0xff]  }
 0x58b   :  { %v14109_v62 = vadd.f32 %v14108_v1, %v10724_v34  ;;  %v17746_v60 = vpop.f32.mrb[107].mxu1  ;;  %17919 = vmatprep.subr.bf16.mxu1 %v19402_v28  ;;  %v19125_v1 = vld [vmem:[#allocation7 + $0xda0] sm:$0xff]   ;;  %v19136_v34 = vld [vmem:[#allocation7 + $0x9c8] sm:$0xff]   ;;  %v19137_v38 = vld [vmem:[#allocation7 + $0xe10] sm:$0xff]  }
 0x58c   :  { %v19142_v60 = vld [vmem:[#allocation7 + $0x9e0] sm:$0xff]  }
 0x58d   :  { %18260 = vmatpush3.bf16.msra.mxu0 %v19113_v30  ;;  %v19135_v30 = vld [vmem:[#allocation7 + $0xe08] sm:$0xff]  }
 0x58e   :  { %17920 = vmatpush3.bf16.msra.mxu1 %v19114_v25  ;;  %18261 = vmatprep.subr.bf16.mxu0 %v19402_v28  ;;  %v19140_v25 = vld [vmem:[#allocation7 + $0x9d8] sm:$0xff]  }
 0x58f   :  { %17921 = vmatprep.subr.bf16.mxu1 %v19402_v28 }
 0x591   :  { %18262 = vmatpush3.bf16.msra.mxu0 %v19115_v41  ;;  %v19143_v41 = vld [vmem:[#allocation7 + $0xe28] sm:$0xff]  }
 0x592   :  { %17922 = vmatpush3.bf16.msra.mxu1 %v19116_v21  ;;  %18287 = vmatprep.subr.bf16.mxu0 %v19402_v28  ;;  %v19144_v21 = vld [vmem:[#allocation7 + $0x9e8] sm:$0xff]  }
 0x593   :  { %17947 = vmatprep.subr.bf16.mxu1 %v19402_v28 }
 0x594   :  { %18264 = vmatmul.mubr.bf16.vlgmr.msra.gmra.mrb[40].mxu0 %v22733_v45  ;;  %v19123_v45 = vld [vmem:[#allocation7 + $0xd98] sm:$0xff]  }
 0x595   :  { %17924 = vmatmul.mubr.bf16.vlgmr.msra.gmra.mrb[132].mxu1 %v22053_v15  ;;  %18288 = vmatpush3.bf16.msra.mxu0 %v19117_v12  ;;  %v19122_v15 = vld [vmem:[#allocation7 + $0x950] sm:$0xff]  }
 0x596   :  { %17948 = vmatpush3.bf16.msra.mxu1 %v19118_v5  ;;  %18289 = vmatprep.subr.bf16.mxu0 %v19402_v28 }
 0x597   :  { %17949 = vmatprep.subr.bf16.mxu1 %v19402_v28  ;;  %18303 = vmatprep.mubr.msk.bf16.mxu0 %vm19403_vm2, %v19402_v28 }
 0x598   :  { %17963 = vmatprep.mubr.msk.bf16.mxu1 %vm19403_vm2, %v19402_v28 }
 0x599   :  { %18290 = vmatpush3.bf16.msra.mxu0 %v19119_v55 }
 0x59a   :  { %17950 = vmatpush3.bf16.msra.mxu1 %v19120_v49  ;;  %18291 = vmatprep.subr.bf16.mxu0 %v19402_v28 }
 0x59b   :  { %17951 = vmatprep.subr.bf16.mxu1 %v19402_v28 }
 0x59d   :  { %18292 = vmatpush3.bf16.msra.mxu0 %v19121_v53 }
 0x59e   :  { %17952 = vmatpush3.bf16.msra.mxu1 %v19122_v15  ;;  %18293 = vmatprep.subr.bf16.mxu0 %v19402_v28 }
 0x59f   :  { %17953 = vmatprep.subr.bf16.mxu1 %v19402_v28 }
 0x5a1   :  { %18294 = vmatpush3.bf16.msra.mxu0 %v19123_v45  ;;  %v19145_v45 = vld [vmem:[#allocation7 + $0xe30] sm:$0xff]  }
 0x5a2   :  { %17954 = vmatpush3.bf16.msra.mxu1 %v19124_v22  ;;  %18295 = vmatprep.subr.bf16.mxu0 %v19402_v28 }
 0x5a3   :  { %17955 = vmatprep.subr.bf16.mxu1 %v19402_v28 }
 0x5a5   :  { %18296 = vmatpush3.bf16.msra.mxu0 %v19125_v1 }
 0x5a6   :  { %17956 = vmatpush3.bf16.msra.mxu1 %v19126_v43  ;;  %18297 = vmatprep.subr.bf16.mxu0 %v19402_v28  ;;  %v19146_v43 = vld [vmem:[#allocation7 + $0x9f0] sm:$0xff]  }
 0x5a7   :  { %v23315_v32 = vpop.f32.mrb[16].mxu0  ;;  %17957 = vmatprep.subr.bf16.mxu1 %v19402_v28 }
 0x5a8   :  { %v10810_v20 = vpop.f32.mrb[108].mxu1  ;;  %v18025_v50 = vpop.f32.mrb[17].mxu0 }
 0x5a9   :  { %v14047_v14 = vadd.f32 %v14046_v36, %v10810_v20  ;;  %v17765_v63 = vpop.f32.mrb[109].mxu1  ;;  %v23318_v52 = vpop.f32.mrb[18].mxu0  ;;  %18298 = vmatpush3.bf16.msra.mxu0 %v19127_v11  ;;  %v19133_v36 = vld [vmem:[#allocation7 + $0xe00] sm:$0xff]   ;;  %v19147_v20 = vld [vmem:[#allocation7 + $0xe38] sm:$0xff]  }
 0x5aa   :  { %v10813_v23 = vpop.f32.mrb[110].mxu1  ;;  %17958 = vmatpush3.bf16.msra.mxu1 %v19128_v40  ;;  %v18026_v59 = vpop.f32.mrb[19].mxu0  ;;  %18299 = vmatprep.subr.bf16.mxu0 %v19402_v28  ;;  %v19148_v50 = vld [vmem:[#allocation7 + $0x9f8] sm:$0xff]   ;;  %v19150_v63 = vld [vmem:[#allocation7 + $0xa40] sm:$0xff]  }
 0x5ab   :  { %v14110_v61 = vadd.f32 %v14109_v62, %v10813_v23  ;;  %v17766_v57 = vpop.f32.mrb[111].mxu1  ;;  %17959 = vmatprep.subr.bf16.mxu1 %v19402_v28  ;;  %v19141_v62 = vld [vmem:[#allocation7 + $0xe20] sm:$0xff]   ;;  %v19152_v23 = vld [vmem:[#allocation7 + $0xa48] sm:$0xff]   ;;  %v19153_v59 = vld [vmem:[#allocation7 + $0xe90] sm:$0xff]  }
 0x5ac   :  { %v19158_v57 = vld [vmem:[#allocation7 + $0xa60] sm:$0xff]  }
 0x5ad   :  { %18300 = vmatpush3.bf16.msra.mxu0 %v19129_v42  ;;  %v19151_v42 = vld [vmem:[#allocation7 + $0xe88] sm:$0xff]  }
 0x5ae   :  { %17960 = vmatpush3.bf16.msra.mxu1 %v19130_v7  ;;  %18301 = vmatprep.subr.bf16.mxu0 %v19402_v28  ;;  %v19156_v7 = vld [vmem:[#allocation7 + $0xa58] sm:$0xff]  }
 0x5af   :  { %17961 = vmatprep.subr.bf16.mxu1 %v19402_v28 }
 0x5b1   :  { %18302 = vmatpush3.bf16.msra.mxu0 %v19131_v6  ;;  %v19159_v6 = vld [vmem:[#allocation7 + $0xea8] sm:$0xff]  }
 0x5b2   :  { %17962 = vmatpush3.bf16.msra.mxu1 %v19132_v8  ;;  %18327 = vmatprep.subr.bf16.mxu0 %v19402_v28  ;;  %v19160_v8 = vld [vmem:[#allocation7 + $0xa68] sm:$0xff]  }
 0x5b3   :  { %17987 = vmatprep.subr.bf16.mxu1 %v19402_v28 }
 0x5b4   :  { %18304 = vmatmul.mubr.bf16.vlgmr.msra.gmra.mrb[44].mxu0 %v22790_v39  ;;  %v19139_v39 = vld [vmem:[#allocation7 + $0xe18] sm:$0xff]  }
 0x5b5   :  { %17964 = vmatmul.mubr.bf16.vlgmr.msra.gmra.mrb[136].mxu1 %v22130_v56  ;;  %18328 = vmatpush3.bf16.msra.mxu0 %v19133_v36  ;;  %v19138_v56 = vld [vmem:[#allocation7 + $0x9d0] sm:$0xff]  }
 0x5b6   :  { %17988 = vmatpush3.bf16.msra.mxu1 %v19134_v27  ;;  %18329 = vmatprep.subr.bf16.mxu0 %v19402_v28 }
 0x5b7   :  { %17989 = vmatprep.subr.bf16.mxu1 %v19402_v28  ;;  %18343 = vmatprep.mubr.msk.bf16.mxu0 %vm19403_vm2, %v19402_v28 }
 0x5b8   :  { %18003 = vmatprep.mubr.msk.bf16.mxu1 %vm19403_vm2, %v19402_v28 }
 0x5b9   :  { %18330 = vmatpush3.bf16.msra.mxu0 %v19135_v30 }
 0x5ba   :  { %17990 = vmatpush3.bf16.msra.mxu1 %v19136_v34  ;;  %18331 = vmatprep.subr.bf16.mxu0 %v19402_v28 }
 0x5bb   :  { %17991 = vmatprep.subr.bf16.mxu1 %v19402_v28 }
 0x5bd   :  { %18332 = vmatpush3.bf16.msra.mxu0 %v19137_v38 }
 0x5be   :  { %17992 = vmatpush3.bf16.msra.mxu1 %v19138_v56  ;;  %18333 = vmatprep.subr.bf16.mxu0 %v19402_v28 }
 0x5bf   :  { %17993 = vmatprep.subr.bf16.mxu1 %v19402_v28 }
 0x5c1   :  { %18334 = vmatpush3.bf16.msra.mxu0 %v19139_v39  ;;  %v19161_v39 = vld [vmem:[#allocation7 + $0xeb0] sm:$0xff]  }
 0x5c2   :  { %17994 = vmatpush3.bf16.msra.mxu1 %v19140_v25  ;;  %18335 = vmatprep.subr.bf16.mxu0 %v19402_v28 }
 0x5c3   :  { %17995 = vmatprep.subr.bf16.mxu1 %v19402_v28 }
 0x5c5   :  { %18336 = vmatpush3.bf16.msra.mxu0 %v19141_v62 }
 0x5c6   :  { %17996 = vmatpush3.bf16.msra.mxu1 %v19142_v60  ;;  %18337 = vmatprep.subr.bf16.mxu0 %v19402_v28  ;;  %v19162_v60 = vld [vmem:[#allocation7 + $0xa70] sm:$0xff]  }
 0x5c7   :  { %v23341_v12 = vpop.f32.mrb[20].mxu0  ;;  %17997 = vmatprep.subr.bf16.mxu1 %v19402_v28 }
 0x5c8   :  { %v10899_v5 = vpop.f32.mrb[112].mxu1  ;;  %v18065_v55 = vpop.f32.mrb[21].mxu0 }
 0x5c9   :  { %v14048_v49 = vadd.f32 %v14047_v14, %v10899_v5  ;;  %v17785_v53 = vpop.f32.mrb[113].mxu1  ;;  %v23344_v15 = vpop.f32.mrb[22].mxu0  ;;  %18338 = vmatpush3.bf16.msra.mxu0 %v19143_v41  ;;  %v19149_v14 = vld [vmem:[#allocation7 + $0xe80] sm:$0xff]   ;;  %v19163_v5 = vld [vmem:[#allocation7 + $0xeb8] sm:$0xff]  }
 0x5ca   :  { %v10902_v22 = vpop.f32.mrb[114].mxu1  ;;  %17998 = vmatpush3.bf16.msra.mxu1 %v19144_v21  ;;  %v18066_v1 = vpop.f32.mrb[23].mxu0  ;;  %18339 = vmatprep.subr.bf16.mxu0 %v19402_v28  ;;  %v19164_v55 = vld [vmem:[#allocation7 + $0xa78] sm:$0xff]   ;;  %v19166_v53 = vld [vmem:[#allocation7 + $0xac0] sm:$0xff]  }
 0x5cb   :  { %v14111_v11 = vadd.f32 %v14110_v61, %v10902_v22  ;;  %v17786_v40 = vpop.f32.mrb[115].mxu1  ;;  %17999 = vmatprep.subr.bf16.mxu1 %v19402_v28  ;;  %v19157_v61 = vld [vmem:[#allocation7 + $0xea0] sm:$0xff]   ;;  %v19168_v22 = vld [vmem:[#allocation7 + $0xac8] sm:$0xff]   ;;  %v19169_v1 = vld [vmem:[#allocation7 + $0xf10] sm:$0xff]  }
 0x5cc   :  { %v19174_v40 = vld [vmem:[#allocation7 + $0xae0] sm:$0xff]  }
 0x5cd   :  { %18340 = vmatpush3.bf16.msra.mxu0 %v19145_v45  ;;  %v19167_v45 = vld [vmem:[#allocation7 + $0xf08] sm:$0xff]  }
 0x5ce   :  { %18000 = vmatpush3.bf16.msra.mxu1 %v19146_v43  ;;  %18341 = vmatprep.subr.bf16.mxu0 %v19402_v28  ;;  %v19172_v43 = vld [vmem:[#allocation7 + $0xad8] sm:$0xff]  }
 0x5cf   :  { %18001 = vmatprep.subr.bf16.mxu1 %v19402_v28 }
 0x5d1   :  { %18342 = vmatpush3.bf16.msra.mxu0 %v19147_v20  ;;  %v19175_v20 = vld [vmem:[#allocation7 + $0xf28] sm:$0xff]  }
 0x5d2   :  { %18002 = vmatpush3.bf16.msra.mxu1 %v19148_v50  ;;  %18367 = vmatprep.subr.bf16.mxu0 %v19402_v28  ;;  %v19176_v50 = vld [vmem:[#allocation7 + $0xae8] sm:$0xff]  }
 0x5d3   :  { %18027 = vmatprep.subr.bf16.mxu1 %v19402_v28 }
 0x5d4   :  { %18344 = vmatmul.mubr.bf16.vlgmr.msra.gmra.mrb[48].mxu0 %v22988_v17  ;;  %v19155_v17 = vld [vmem:[#allocation7 + $0xe98] sm:$0xff]  }
 0x5d5   :  { %18004 = vmatmul.mubr.bf16.vlgmr.msra.gmra.mrb[140].mxu1 %v22429_v0  ;;  %18368 = vmatpush3.bf16.msra.mxu0 %v19149_v14  ;;  %v19154_v0 = vld [vmem:[#allocation7 + $0xa50] sm:$0xff]  }
 0x5d6   :  { %18028 = vmatpush3.bf16.msra.mxu1 %v19150_v63  ;;  %18369 = vmatprep.subr.bf16.mxu0 %v19402_v28 }
 0x5d7   :  { %18029 = vmatprep.subr.bf16.mxu1 %v19402_v28  ;;  %18383 = vmatprep.mubr.msk.bf16.mxu0 %vm19403_vm2, %v19402_v28 }
 0x5d8   :  { %18043 = vmatprep.mubr.msk.bf16.mxu1 %vm19403_vm2, %v19402_v28 }
 0x5d9   :  { %18370 = vmatpush3.bf16.msra.mxu0 %v19151_v42 }
 0x5da   :  { %18030 = vmatpush3.bf16.msra.mxu1 %v19152_v23  ;;  %18371 = vmatprep.subr.bf16.mxu0 %v19402_v28 }
 0x5db   :  { %18031 = vmatprep.subr.bf16.mxu1 %v19402_v28 }
 0x5dd   :  { %18372 = vmatpush3.bf16.msra.mxu0 %v19153_v59 }
 0x5de   :  { %18032 = vmatpush3.bf16.msra.mxu1 %v19154_v0  ;;  %18373 = vmatprep.subr.bf16.mxu0 %v19402_v28 }
 0x5df   :  { %18033 = vmatprep.subr.bf16.mxu1 %v19402_v28 }
 0x5e1   :  { %18374 = vmatpush3.bf16.msra.mxu0 %v19155_v17  ;;  %v19177_v17 = vld [vmem:[#allocation7 + $0xf30] sm:$0xff]  }
 0x5e2   :  { %18034 = vmatpush3.bf16.msra.mxu1 %v19156_v7  ;;  %18375 = vmatprep.subr.bf16.mxu0 %v19402_v28 }
 0x5e3   :  { %18035 = vmatprep.subr.bf16.mxu1 %v19402_v28 }
 0x5e5   :  { %18376 = vmatpush3.bf16.msra.mxu0 %v19157_v61 }
 0x5e6   :  { %18036 = vmatpush3.bf16.msra.mxu1 %v19158_v57  ;;  %18377 = vmatprep.subr.bf16.mxu0 %v19402_v28  ;;  %v19178_v57 = vld [vmem:[#allocation7 + $0xaf0] sm:$0xff]  }
 0x5e7   :  { %v23367_v36 = vpop.f32.mrb[24].mxu0  ;;  %18037 = vmatprep.subr.bf16.mxu1 %v19402_v28 }
 0x5e8   :  { %v10988_v27 = vpop.f32.mrb[116].mxu1  ;;  %v18105_v30 = vpop.f32.mrb[25].mxu0 }
 0x5e9   :  { %v14049_v34 = vadd.f32 %v14048_v49, %v10988_v27  ;;  %v17805_v38 = vpop.f32.mrb[117].mxu1  ;;  %v23370_v56 = vpop.f32.mrb[26].mxu0  ;;  %18378 = vmatpush3.bf16.msra.mxu0 %v19159_v6  ;;  %v19165_v49 = vld [vmem:[#allocation7 + $0xf00] sm:$0xff]   ;;  %v19179_v27 = vld [vmem:[#allocation7 + $0xf38] sm:$0xff]  }
 0x5ea   :  { %v10991_v25 = vpop.f32.mrb[118].mxu1  ;;  %18038 = vmatpush3.bf16.msra.mxu1 %v19160_v8  ;;  %v18106_v62 = vpop.f32.mrb[27].mxu0  ;;  %18379 = vmatprep.subr.bf16.mxu0 %v19402_v28  ;;  %v19180_v30 = vld [vmem:[#allocation7 + $0xaf8] sm:$0xff]   ;;  %v19182_v38 = vld [vmem:[#allocation7 + $0xb40] sm:$0xff]  }
 0x5eb   :  { %v14112_v41 = vadd.f32 %v14111_v11, %v10991_v25  ;;  %v17806_v21 = vpop.f32.mrb[119].mxu1  ;;  %18039 = vmatprep.subr.bf16.mxu1 %v19402_v28  ;;  %v19173_v11 = vld [vmem:[#allocation7 + $0xf20] sm:$0xff]   ;;  %v19184_v25 = vld [vmem:[#allocation7 + $0xb48] sm:$0xff]   ;;  %v19185_v62 = vld [vmem:[#allocation7 + $0xf90] sm:$0xff]  }
 0x5ec   :  { %v19190_v21 = vld [vmem:[#allocation7 + $0xb60] sm:$0xff]  }
 0x5ed   :  { %18380 = vmatpush3.bf16.msra.mxu0 %v19161_v39  ;;  %v19183_v39 = vld [vmem:[#allocation7 + $0xf88] sm:$0xff]  }
 0x5ee   :  { %18040 = vmatpush3.bf16.msra.mxu1 %v19162_v60  ;;  %18381 = vmatprep.subr.bf16.mxu0 %v19402_v28  ;;  %v19188_v60 = vld [vmem:[#allocation7 + $0xb58] sm:$0xff]  }
 0x5ef   :  { %18041 = vmatprep.subr.bf16.mxu1 %v19402_v28 }
 0x5f1   :  { %18382 = vmatpush3.bf16.msra.mxu0 %v19163_v5  ;;  %v19191_v5 = vld [vmem:[#allocation7 + $0xfa8] sm:$0xff]  }
 0x5f2   :  { %18042 = vmatpush3.bf16.msra.mxu1 %v19164_v55  ;;  %18407 = vmatprep.subr.bf16.mxu0 %v19402_v28  ;;  %v19192_v55 = vld [vmem:[#allocation7 + $0xb68] sm:$0xff]  }
 0x5f3   :  { %18067 = vmatprep.subr.bf16.mxu1 %v19402_v28 }
 0x5f4   :  { %18384 = vmatmul.mubr.bf16.vlgmr.msra.gmra.mrb[52].mxu0 %v23048_v44  ;;  %v19171_v44 = vld [vmem:[#allocation7 + $0xf18] sm:$0xff]  }
 0x5f5   :  { %18044 = vmatmul.mubr.bf16.vlgmr.msra.gmra.mrb[144].mxu1 %v22254_v35  ;;  %18408 = vmatpush3.bf16.msra.mxu0 %v19165_v49  ;;  %v19170_v35 = vld [vmem:[#allocation7 + $0xad0] sm:$0xff]  }
 0x5f6   :  { %18068 = vmatpush3.bf16.msra.mxu1 %v19166_v53  ;;  %18409 = vmatprep.subr.bf16.mxu0 %v19402_v28 }
 0x5f7   :  { %18069 = vmatprep.subr.bf16.mxu1 %v19402_v28  ;;  %18423 = vmatprep.mubr.msk.bf16.mxu0 %vm19403_vm2, %v19402_v28 }
 0x5f8   :  { %18083 = vmatprep.mubr.msk.bf16.mxu1 %vm19403_vm2, %v19402_v28 }
 0x5f9   :  { %18410 = vmatpush3.bf16.msra.mxu0 %v19167_v45 }
 0x5fa   :  { %18070 = vmatpush3.bf16.msra.mxu1 %v19168_v22  ;;  %18411 = vmatprep.subr.bf16.mxu0 %v19402_v28 }
 0x5fb   :  { %18071 = vmatprep.subr.bf16.mxu1 %v19402_v28 }
 0x5fd   :  { %18412 = vmatpush3.bf16.msra.mxu0 %v19169_v1 }
 0x5fe   :  { %18072 = vmatpush3.bf16.msra.mxu1 %v19170_v35  ;;  %18413 = vmatprep.subr.bf16.mxu0 %v19402_v28 }
 0x5ff   :  { %18073 = vmatprep.subr.bf16.mxu1 %v19402_v28 }
 0x601   :  { %18414 = vmatpush3.bf16.msra.mxu0 %v19171_v44  ;;  %v19193_v44 = vld [vmem:[#allocation7 + $0xfb0] sm:$0xff]  }
 0x602   :  { %18074 = vmatpush3.bf16.msra.mxu1 %v19172_v43  ;;  %18415 = vmatprep.subr.bf16.mxu0 %v19402_v28 }
 0x603   :  { %18075 = vmatprep.subr.bf16.mxu1 %v19402_v28 }
 0x605   :  { %18416 = vmatpush3.bf16.msra.mxu0 %v19173_v11 }
 0x606   :  { %18076 = vmatpush3.bf16.msra.mxu1 %v19174_v40  ;;  %18417 = vmatprep.subr.bf16.mxu0 %v19402_v28  ;;  %v19194_v40 = vld [vmem:[#allocation7 + $0xb70] sm:$0xff]  }
 0x607   :  { %v23393_v14 = vpop.f32.mrb[28].mxu0  ;;  %18077 = vmatprep.subr.bf16.mxu1 %v19402_v28 }
 0x608   :  { %v11077_v63 = vpop.f32.mrb[120].mxu1  ;;  %v18145_v42 = vpop.f32.mrb[29].mxu0 }
 0x609   :  { %v14050_v23 = vadd.f32 %v14049_v34, %v11077_v63  ;;  %v17825_v59 = vpop.f32.mrb[121].mxu1  ;;  %v23396_v0 = vpop.f32.mrb[30].mxu0  ;;  %18418 = vmatpush3.bf16.msra.mxu0 %v19175_v20  ;;  %v19181_v34 = vld [vmem:[#allocation7 + $0xf80] sm:$0xff]   ;;  %v19195_v42 = vld [vmem:[#allocation7 + $0xfb8] sm:$0xff]  }
 0x60a   :  { %v11080_v7 = vpop.f32.mrb[122].mxu1  ;;  %18078 = vmatpush3.bf16.msra.mxu1 %v19176_v50  ;;  %v18146_v61 = vpop.f32.mrb[31].mxu0  ;;  %18419 = vmatprep.subr.bf16.mxu0 %v19402_v28  ;;  %v19196_v59 = vld [vmem:[#allocation7 + $0xb78] sm:$0xff]  }
 0x60b   :  { %v14113_v6 = vadd.f32 %v14112_v41, %v11080_v7  ;;  %v17826_v8 = vpop.f32.mrb[123].mxu1  ;;  %18079 = vmatprep.subr.bf16.mxu1 %v19402_v28  ;;  %v19189_v41 = vld [vmem:[#allocation7 + $0xfa0] sm:$0xff]   ;;  %v19200_v7 = vld [vmem:[#allocation7 + $0xbd8] sm:$0xff]  }
 0x60c   :  { %v19201_v61 = vld [vmem:[#allocation7 + $0xbe0] sm:$0xff]  }
 0x60d   :  { %18420 = vmatpush3.bf16.msra.mxu0 %v19177_v17  ;;  %v19197_v17 = vld [vmem:[#allocation7 + $0xbc0] sm:$0xff]  }
 0x60e   :  { %18080 = vmatpush3.bf16.msra.mxu1 %v19178_v57  ;;  %18421 = vmatprep.subr.bf16.mxu0 %v19402_v28 }
 0x60f   :  { %18081 = vmatprep.subr.bf16.mxu1 %v19402_v28 }
 0x611   :  { %18422 = vmatpush3.bf16.msra.mxu0 %v19179_v27 }
 0x612   :  { %18082 = vmatpush3.bf16.msra.mxu1 %v19180_v30  ;;  %18447 = vmatprep.subr.bf16.mxu0 %v19402_v28 }
 0x613   :  { %18107 = vmatprep.subr.bf16.mxu1 %v19402_v28 }
 0x614   :  { %18424 = vmatmul.mubr.bf16.vlgmr.msra.gmra.mrb[56].mxu0 %v23111_v46  ;;  %v19187_v46 = vld [vmem:[#allocation7 + $0xf98] sm:$0xff]  }
 0x615   :  { %18084 = vmatmul.mubr.bf16.vlgmr.msra.gmra.mrb[148].mxu1 %v22300_v16  ;;  %18448 = vmatpush3.bf16.msra.mxu0 %v19181_v34  ;;  %v19186_v16 = vld [vmem:[#allocation7 + $0xb50] sm:$0xff]  }
 0x616   :  { %18108 = vmatpush3.bf16.msra.mxu1 %v19182_v38  ;;  %18449 = vmatprep.subr.bf16.mxu0 %v19402_v28 }
 0x617   :  { %18109 = vmatprep.subr.bf16.mxu1 %v19402_v28  ;;  %18463 = vmatprep.mubr.msk.bf16.mxu0 %vm19403_vm2, %v19402_v28 }
 0x618   :  { %18123 = vmatprep.mubr.msk.bf16.mxu1 %vm19403_vm2, %v19402_v28 }
 0x619   :  { %18450 = vmatpush3.bf16.msra.mxu0 %v19183_v39  ;;  %v19203_v39 = vld [vmem:[#allocation7 + $0xbf0] sm:$0xff]  }
 0x61a   :  { %18110 = vmatpush3.bf16.msra.mxu1 %v19184_v25  ;;  %18451 = vmatprep.subr.bf16.mxu0 %v19402_v28 }
 0x61b   :  { %18111 = vmatprep.subr.bf16.mxu1 %v19402_v28 }
 0x61d   :  { %18452 = vmatpush3.bf16.msra.mxu0 %v19185_v62 }
 0x61e   :  { %18112 = vmatpush3.bf16.msra.mxu1 %v19186_v16  ;;  %18453 = vmatprep.subr.bf16.mxu0 %v19402_v28 }
 0x61f   :  { %18113 = vmatprep.subr.bf16.mxu1 %v19402_v28 }
 0x621   :  { %18454 = vmatpush3.bf16.msra.mxu0 %v19187_v46 }
 0x622   :  { %18114 = vmatpush3.bf16.msra.mxu1 %v19188_v60  ;;  %18455 = vmatprep.subr.bf16.mxu0 %v19402_v28  ;;  %v19204_v60 = vld [vmem:[#allocation7 + $0xbf8] sm:$0xff]  }
 0x623   :  { %18115 = vmatprep.subr.bf16.mxu1 %v19402_v28 }
 0x625   :  { %18456 = vmatpush3.bf16.msra.mxu0 %v19189_v41  ;;  %v19205_v41 = vld [vmem:[#allocation7 + $0xc40] sm:$0xff]  }
 0x626   :  { %18116 = vmatpush3.bf16.msra.mxu1 %v19190_v21  ;;  %18457 = vmatprep.subr.bf16.mxu0 %v19402_v28  ;;  %v19206_v21 = vld [vmem:[#allocation7 + $0xc48] sm:$0xff]  }
 0x627   :  { %v23419_v49 = vpop.f32.mrb[32].mxu0  ;;  %18117 = vmatprep.subr.bf16.mxu1 %v19402_v28 }
 0x628   :  { %v11166_v53 = vpop.f32.mrb[124].mxu1  ;;  %v18185_v45 = vpop.f32.mrb[33].mxu0 }
 0x629   :  { %v14051_v22 = vadd.f32 %v14050_v23, %v11166_v53  ;;  %v17845_v1 = vpop.f32.mrb[125].mxu1  ;;  %v23422_v35 = vpop.f32.mrb[34].mxu0  ;;  %18458 = vmatpush3.bf16.msra.mxu0 %v19191_v5  ;;  %v19209_v5 = vld [vmem:[#allocation7 + $0xc60] sm:$0xff]  }
 0x62a   :  { %v11169_v43 = vpop.f32.mrb[126].mxu1  ;;  %18118 = vmatpush3.bf16.msra.mxu1 %v19192_v55  ;;  %v18186_v11 = vpop.f32.mrb[35].mxu0  ;;  %18459 = vmatprep.subr.bf16.mxu0 %v19402_v28 }
 0x62b   :  { %v14114_v20 = vadd.f32 %v14113_v6, %v11169_v43  ;;  %v17846_v50 = vpop.f32.mrb[127].mxu1  ;;  %18119 = vmatprep.subr.bf16.mxu1 %v19402_v28  ;;  %v14052_v63 = vadd.f32 %v14051_v22, %v23188_v13  ;;  %v19198_v13 = vld [vmem:[#allocation7 + $0xbc8] sm:$0xff]  }
 0x62d   :  { %18460 = vmatpush3.bf16.msra.mxu0 %v19193_v44  ;;  %v14115_v23 = vadd.f32 %v14114_v20, %v23194_v51  ;;  %v19199_v51 = vld [vmem:[#allocation7 + $0xbd0] sm:$0xff]  }
 0x62e   :  { %18120 = vmatpush3.bf16.msra.mxu1 %v19194_v40  ;;  %18461 = vmatprep.subr.bf16.mxu0 %v19402_v28  ;;  %v19211_v40 = vld [vmem:[#allocation7 + $0xc70] sm:$0xff]  }
 0x62f   :  { %18121 = vmatprep.subr.bf16.mxu1 %v19402_v28 }
 0x631   :  { %18462 = vmatpush3.bf16.msra.mxu0 %v19195_v42 }
 0x632   :  { %18122 = vmatpush3.bf16.msra.mxu1 %v19196_v59  ;;  %v19213_v59 = vld [vmem:[#allocation7 + $0xcc0] sm:$0xff]  }
 0x633   :  { %18147 = vmatprep.subr.bf16.mxu1 %v19402_v28 }
 0x634   :  { %18464 = vmatmul.mubr.bf16.vlgmr.msra.gmra.mrb[60].mxu0 %v23167_v4 }
 0x635   :  { %18124 = vmatmul.mubr.bf16.vlgmr.msra.gmra.mrb[152].mxu1 %v22375_v9  ;;  %v19202_v9 = vld [vmem:[#allocation7 + $0xbe8] sm:$0xff]  }
 0x636   :  { %18148 = vmatpush3.bf16.msra.mxu1 %v19197_v17  ;;  %18163 = vmatprep.mubr.msk.bf16.mxu1 %vm19403_vm2, %v19402_v28  ;;  %v19214_v17 = vld [vmem:[#allocation7 + $0xcc8] sm:$0xff]  }
 0x637   :  { %18149 = vmatprep.subr.bf16.mxu1 %v19402_v28 }
 0x63a   :  { %18150 = vmatpush3.bf16.msra.mxu1 %v19198_v13  ;;  %v19217_v13 = vld [vmem:[#allocation7 + $0xce0] sm:$0xff]  }
 0x63b   :  { %18151 = vmatprep.subr.bf16.mxu1 %v19402_v28 }
 0x63e   :  { %18152 = vmatpush3.bf16.msra.mxu1 %v19199_v51 }
 0x63f   :  { %18153 = vmatprep.subr.bf16.mxu1 %v19402_v28 }
 0x642   :  { %18154 = vmatpush3.bf16.msra.mxu1 %v19200_v7 }
 0x643   :  { %18155 = vmatprep.subr.bf16.mxu1 %v19402_v28 }
 0x646   :  { %18156 = vmatpush3.bf16.msra.mxu1 %v19201_v61 }
 0x647   :  { %v23439_v4 = vpop.f32.mrb[36].mxu0  ;;  %18157 = vmatprep.subr.bf16.mxu1 %v19402_v28 }
 0x648   :  { %v11344_v57 = vpop.f32.mrb[128].mxu1  ;;  %v18225_v6 = vpop.f32.mrb[37].mxu0 }
 0x649   :  { %v14053_v8 = vadd.f32 %v14052_v63, %v11344_v57  ;;  %v17885_v27 = vpop.f32.mrb[129].mxu1  ;;  %v23442_v30 = vpop.f32.mrb[38].mxu0 }
 0x64a   :  { %v11347_v34 = vpop.f32.mrb[130].mxu1  ;;  %18158 = vmatpush3.bf16.msra.mxu1 %v19202_v9  ;;  %v18226_v38 = vpop.f32.mrb[39].mxu0 }
 0x64b   :  { %v14116_v25 = vadd.f32 %v14115_v23, %v11347_v34  ;;  %v17886_v62 = vpop.f32.mrb[131].mxu1  ;;  %18159 = vmatprep.subr.bf16.mxu1 %v19402_v28  ;;  %v14054_v16 = vadd.f32 %v14053_v8, %v23235_v24  ;;  %v19207_v24 = vld [vmem:[#allocation7 + $0xc50] sm:$0xff]   ;;  %v19212_v23 = vld [vmem:[#allocation7 + $0xc78] sm:$0xff]  }
 0x64c   :  { %v19219_v34 = vld [vmem:[#allocation7 + $0xcf0] sm:$0xff]  }
 0x64d   :  { %v14117_v46 = vadd.f32 %v14116_v25, %v23239_v26  ;;  %v19208_v26 = vld [vmem:[#allocation7 + $0xc58] sm:$0xff]  }
 0x64e   :  { %18160 = vmatpush3.bf16.msra.mxu1 %v19203_v39 }
 0x64f   :  { %18161 = vmatprep.subr.bf16.mxu1 %v19402_v28 }
 0x652   :  { %18162 = vmatpush3.bf16.msra.mxu1 %v19204_v60  ;;  %v19222_v60 = vld [vmem:[#allocation7 + $0xd48] sm:$0xff]  }
 0x653   :  { %18187 = vmatprep.subr.bf16.mxu1 %v19402_v28 }
 0x655   :  { %18164 = vmatmul.mubr.bf16.vlgmr.msra.gmra.mrb[156].mxu1 %v22434_v18  ;;  %v19210_v18 = vld [vmem:[#allocation7 + $0xc68] sm:$0xff]  }
 0x656   :  { %18188 = vmatpush3.bf16.msra.mxu1 %v19205_v41  ;;  %18203 = vmatprep.mubr.msk.bf16.mxu1 %vm19403_vm2, %v19402_v28  ;;  %v19225_v41 = vld [vmem:[#allocation7 + $0xd60] sm:$0xff]  }
 0x657   :  { %18189 = vmatprep.subr.bf16.mxu1 %v19402_v28 }
 0x65a   :  { %18190 = vmatpush3.bf16.msra.mxu1 %v19206_v21 }
 0x65b   :  { %18191 = vmatprep.subr.bf16.mxu1 %v19402_v28 }
 0x65e   :  { %18192 = vmatpush3.bf16.msra.mxu1 %v19207_v24 }
 0x65f   :  { %18193 = vmatprep.subr.bf16.mxu1 %v19402_v28 }
 0x662   :  { %18194 = vmatpush3.bf16.msra.mxu1 %v19208_v26 }
 0x663   :  { %18195 = vmatprep.subr.bf16.mxu1 %v19402_v28 }
 0x666   :  { %18196 = vmatpush3.bf16.msra.mxu1 %v19209_v5 }
 0x667   :  { %v23456_v55 = vpop.f32.mrb[40].mxu0  ;;  %18197 = vmatprep.subr.bf16.mxu1 %v19402_v28 }
 0x668   :  { %v11522_v53 = vpop.f32.mrb[132].mxu1  ;;  %v18265_v45 = vpop.f32.mrb[41].mxu0 }
 0x669   :  { %v14055_v22 = vadd.f32 %v14054_v16, %v11522_v53  ;;  %v17925_v1 = vpop.f32.mrb[133].mxu1  ;;  %v23459_v44 = vpop.f32.mrb[42].mxu0  ;;  %v19220_v16 = vld [vmem:[#allocation7 + $0xcf8] sm:$0xff]  }
 0x66a   :  { %v11525_v43 = vpop.f32.mrb[134].mxu1  ;;  %18198 = vmatpush3.bf16.msra.mxu1 %v19210_v18  ;;  %v18266_v11 = vpop.f32.mrb[43].mxu0  ;;  %v19227_v1 = vld [vmem:[#allocation7 + $0xd70] sm:$0xff]  }
 0x66b   :  { %v14118_v20 = vadd.f32 %v14117_v46, %v11525_v43  ;;  %v17926_v50 = vpop.f32.mrb[135].mxu1  ;;  %18199 = vmatprep.subr.bf16.mxu1 %v19402_v28  ;;  %v14056_v63 = vadd.f32 %v14055_v22, %v23263_v48  ;;  %v19215_v48 = vld [vmem:[#allocation7 + $0xcd0] sm:$0xff]   ;;  %v19221_v46 = vld [vmem:[#allocation7 + $0xd40] sm:$0xff]  }
 0x66c   :  { %v19228_v50 = vld [vmem:[#allocation7 + $0xd78] sm:$0xff]  }
 0x66d   :  { %v14119_v42 = vadd.f32 %v14118_v20, %v23266_v31  ;;  %v19216_v31 = vld [vmem:[#allocation7 + $0xcd8] sm:$0xff]  }
 0x66e   :  { %18200 = vmatpush3.bf16.msra.mxu1 %v19211_v40 }
 0x66f   :  { %18201 = vmatprep.subr.bf16.mxu1 %v19402_v28 }
 0x672   :  { %18202 = vmatpush3.bf16.msra.mxu1 %v19212_v23  ;;  %v19233_v23 = vld [vmem:[#allocation7 + $0xde0] sm:$0xff]  }
 0x673   :  { %18227 = vmatprep.subr.bf16.mxu1 %v19402_v28 }
 0x675   :  { %18204 = vmatmul.mubr.bf16.vlgmr.msra.gmra.mrb[160].mxu1 %v22643_v29  ;;  %v19218_v29 = vld [vmem:[#allocation7 + $0xce8] sm:$0xff]  }
 0x676   :  { %18228 = vmatpush3.bf16.msra.mxu1 %v19213_v59  ;;  %18243 = vmatprep.mubr.msk.bf16.mxu1 %vm19403_vm2, %v19402_v28 }
 0x677   :  { %18229 = vmatprep.subr.bf16.mxu1 %v19402_v28 }
 0x67a   :  { %18230 = vmatpush3.bf16.msra.mxu1 %v19214_v17 }
 0x67b   :  { %18231 = vmatprep.subr.bf16.mxu1 %v19402_v28 }
 0x67e   :  { %18232 = vmatpush3.bf16.msra.mxu1 %v19215_v48 }
 0x67f   :  { %18233 = vmatprep.subr.bf16.mxu1 %v19402_v28 }
 0x682   :  { %18234 = vmatpush3.bf16.msra.mxu1 %v19216_v31 }
 0x683   :  { %18235 = vmatprep.subr.bf16.mxu1 %v19402_v28 }
 0x686   :  { %18236 = vmatpush3.bf16.msra.mxu1 %v19217_v13 }
 0x687   :  { %v23473_v51 = vpop.f32.mrb[44].mxu0  ;;  %18237 = vmatprep.subr.bf16.mxu1 %v19402_v28 }
 0x688   :  { %v11700_v7 = vpop.f32.mrb[136].mxu1  ;;  %v18305_v61 = vpop.f32.mrb[45].mxu0 }
 0x689   :  { %v14057_v9 = vadd.f32 %v14056_v63, %v11700_v7  ;;  %v17965_v57 = vpop.f32.mrb[137].mxu1  ;;  %v23476_v6 = vpop.f32.mrb[46].mxu0  ;;  %v19229_v63 = vld [vmem:[#allocation7 + $0xdc0] sm:$0xff]  }
 0x68a   :  { %v11703_v8 = vpop.f32.mrb[138].mxu1  ;;  %18238 = vmatpush3.bf16.msra.mxu1 %v19218_v29  ;;  %v18306_v27 = vpop.f32.mrb[47].mxu0 }
 0x68b   :  { %v14120_v38 = vadd.f32 %v14119_v42, %v11703_v8  ;;  %v17966_v39 = vpop.f32.mrb[139].mxu1  ;;  %18239 = vmatprep.subr.bf16.mxu1 %v19402_v28  ;;  %v14058_v25 = vadd.f32 %v14057_v9, %v23289_v10  ;;  %v19223_v10 = vld [vmem:[#allocation7 + $0xd50] sm:$0xff]   ;;  %v19230_v42 = vld [vmem:[#allocation7 + $0xdc8] sm:$0xff]  }
 0x68c   :  { %v19235_v9 = vld [vmem:[#allocation7 + $0xdf0] sm:$0xff]   ;;  %v19237_v39 = vld [vmem:[#allocation7 + $0xe40] sm:$0xff]  }
 0x68d   :  { %v14121_v62 = vadd.f32 %v14120_v38, %v23292_v58  ;;  %v19224_v58 = vld [vmem:[#allocation7 + $0xd58] sm:$0xff]  }
 0x68e   :  { %18240 = vmatpush3.bf16.msra.mxu1 %v19219_v34  ;;  %v19236_v38 = vld [vmem:[#allocation7 + $0xdf8] sm:$0xff]  }
 0x68f   :  { %18241 = vmatprep.subr.bf16.mxu1 %v19402_v28 }
 0x692   :  { %18242 = vmatpush3.bf16.msra.mxu1 %v19220_v16 }
 0x693   :  { %18267 = vmatprep.subr.bf16.mxu1 %v19402_v28 }
 0x695   :  { %18244 = vmatmul.mubr.bf16.vlgmr.msra.gmra.mrb[164].mxu1 %v22703_v3  ;;  %v19226_v3 = vld [vmem:[#allocation7 + $0xd68] sm:$0xff]  }
 0x696   :  { %18268 = vmatpush3.bf16.msra.mxu1 %v19221_v46  ;;  %18283 = vmatprep.mubr.msk.bf16.mxu1 %vm19403_vm2, %v19402_v28 }
 0x697   :  { %18269 = vmatprep.subr.bf16.mxu1 %v19402_v28 }
 0x69a   :  { %18270 = vmatpush3.bf16.msra.mxu1 %v19222_v60 }
 0x69b   :  { %18271 = vmatprep.subr.bf16.mxu1 %v19402_v28 }
 0x69e   :  { %18272 = vmatpush3.bf16.msra.mxu1 %v19223_v10 }
 0x69f   :  { %18273 = vmatprep.subr.bf16.mxu1 %v19402_v28 }
 0x6a2   :  { %18274 = vmatpush3.bf16.msra.mxu1 %v19224_v58 }
 0x6a3   :  { %18275 = vmatprep.subr.bf16.mxu1 %v19402_v28 }
 0x6a6   :  { %18276 = vmatpush3.bf16.msra.mxu1 %v19225_v41 }
 0x6a7   :  { %v23490_v21 = vpop.f32.mrb[48].mxu0  ;;  %18277 = vmatprep.subr.bf16.mxu1 %v19402_v28 }
 0x6a8   :  { %v11878_v24 = vpop.f32.mrb[140].mxu1  ;;  %v18345_v26 = vpop.f32.mrb[49].mxu0 }
 0x6a9   :  { %v14059_v5 = vadd.f32 %v14058_v25, %v11878_v24  ;;  %v18005_v18 = vpop.f32.mrb[141].mxu1  ;;  %v23493_v53 = vpop.f32.mrb[50].mxu0  ;;  %v19238_v25 = vld [vmem:[#allocation7 + $0xe48] sm:$0xff]   ;;  %v19243_v26 = vld [vmem:[#allocation7 + $0xe70] sm:$0xff]  }
 0x6aa   :  { %v11881_v45 = vpop.f32.mrb[142].mxu1  ;;  %18278 = vmatpush3.bf16.msra.mxu1 %v19226_v3  ;;  %v18346_v22 = vpop.f32.mrb[51].mxu0 }
 0x6ab   :  { %v14122_v43 = vadd.f32 %v14121_v62, %v11881_v45  ;;  %v18006_v11 = vpop.f32.mrb[143].mxu1  ;;  %18279 = vmatprep.subr.bf16.mxu1 %v19402_v28  ;;  %v14060_v40 = vadd.f32 %v14059_v5, %v23315_v32  ;;  %v19231_v32 = vld [vmem:[#allocation7 + $0xdd0] sm:$0xff]   ;;  %v19241_v62 = vld [vmem:[#allocation7 + $0xe60] sm:$0xff]  }
 0x6ac   :  { %v19246_v11 = vld [vmem:[#allocation7 + $0xec8] sm:$0xff]  }
 0x6ad   :  { %v14123_v20 = vadd.f32 %v14122_v43, %v23318_v52  ;;  %v19232_v52 = vld [vmem:[#allocation7 + $0xdd8] sm:$0xff]   ;;  %v19245_v43 = vld [vmem:[#allocation7 + $0xec0] sm:$0xff]  }
 0x6ae   :  { %18280 = vmatpush3.bf16.msra.mxu1 %v19227_v1  ;;  %v19244_v1 = vld [vmem:[#allocation7 + $0xe78] sm:$0xff]  }
 0x6af   :  { %18281 = vmatprep.subr.bf16.mxu1 %v19402_v28 }
 0x6b2   :  { %18282 = vmatpush3.bf16.msra.mxu1 %v19228_v50 }
 0x6b3   :  { %18307 = vmatprep.subr.bf16.mxu1 %v19402_v28 }
 0x6b5   :  { %18284 = vmatmul.mubr.bf16.vlgmr.msra.gmra.mrb[168].mxu1 %v22763_v33  ;;  %v19234_v33 = vld [vmem:[#allocation7 + $0xde8] sm:$0xff]  }
 0x6b6   :  { %18308 = vmatpush3.bf16.msra.mxu1 %v19229_v63  ;;  %18323 = vmatprep.mubr.msk.bf16.mxu1 %vm19403_vm2, %v19402_v28 }
 0x6b7   :  { %18309 = vmatprep.subr.bf16.mxu1 %v19402_v28 }
 0x6ba   :  { %18310 = vmatpush3.bf16.msra.mxu1 %v19230_v42 }
 0x6bb   :  { %18311 = vmatprep.subr.bf16.mxu1 %v19402_v28 }
 0x6be   :  { %18312 = vmatpush3.bf16.msra.mxu1 %v19231_v32 }
 0x6bf   :  { %18313 = vmatprep.subr.bf16.mxu1 %v19402_v28 }
 0x6c2   :  { %18314 = vmatpush3.bf16.msra.mxu1 %v19232_v52 }
 0x6c3   :  { %18315 = vmatprep.subr.bf16.mxu1 %v19402_v28 }
 0x6c6   :  { %18316 = vmatpush3.bf16.msra.mxu1 %v19233_v23 }
 0x6c7   :  { %v23507_v59 = vpop.f32.mrb[52].mxu0  ;;  %18317 = vmatprep.subr.bf16.mxu1 %v19402_v28 }
 0x6c8   :  { %v12056_v17 = vpop.f32.mrb[144].mxu1  ;;  %v18385_v48 = vpop.f32.mrb[53].mxu0 }
 0x6c9   :  { %v14061_v31 = vadd.f32 %v14060_v40, %v12056_v17  ;;  %v18045_v13 = vpop.f32.mrb[145].mxu1  ;;  %v23510_v29 = vpop.f32.mrb[54].mxu0  ;;  %v19249_v40 = vld [vmem:[#allocation7 + $0xee0] sm:$0xff]   ;;  %v19251_v17 = vld [vmem:[#allocation7 + $0xef0] sm:$0xff]  }
 0x6ca   :  { %v12059_v7 = vpop.f32.mrb[146].mxu1  ;;  %18318 = vmatpush3.bf16.msra.mxu1 %v19234_v33  ;;  %v18386_v61 = vpop.f32.mrb[55].mxu0 }
 0x6cb   :  { %v14124_v57 = vadd.f32 %v14123_v20, %v12059_v7  ;;  %v18046_v8 = vpop.f32.mrb[147].mxu1  ;;  %18319 = vmatprep.subr.bf16.mxu1 %v19402_v28  ;;  %v14062_v27 = vadd.f32 %v14061_v31, %v23341_v12  ;;  %v19239_v12 = vld [vmem:[#allocation7 + $0xe50] sm:$0xff]   ;;  %v19252_v61 = vld [vmem:[#allocation7 + $0xef8] sm:$0xff]  }
 0x6cc   :  { %v19257_v8 = vld [vmem:[#allocation7 + $0xf60] sm:$0xff]  }
 0x6cd   :  { %v14125_v34 = vadd.f32 %v14124_v57, %v23344_v15  ;;  %v19240_v15 = vld [vmem:[#allocation7 + $0xe58] sm:$0xff]   ;;  %v19254_v57 = vld [vmem:[#allocation7 + $0xf48] sm:$0xff]  }
 0x6ce   :  { %18320 = vmatpush3.bf16.msra.mxu1 %v19235_v9  ;;  %v19253_v9 = vld [vmem:[#allocation7 + $0xf40] sm:$0xff]  }
 0x6cf   :  { %18321 = vmatprep.subr.bf16.mxu1 %v19402_v28 }
 0x6d2   :  { %18322 = vmatpush3.bf16.msra.mxu1 %v19236_v38 }
 0x6d3   :  { %18347 = vmatprep.subr.bf16.mxu1 %v19402_v28 }
 0x6d5   :  { %18324 = vmatmul.mubr.bf16.vlgmr.msra.gmra.mrb[172].mxu1 %v22823_v37  ;;  %v19242_v37 = vld [vmem:[#allocation7 + $0xe68] sm:$0xff]  }
 0x6d6   :  { %18348 = vmatpush3.bf16.msra.mxu1 %v19237_v39  ;;  %18363 = vmatprep.mubr.msk.bf16.mxu1 %vm19403_vm2, %v19402_v28 }
 0x6d7   :  { %18349 = vmatprep.subr.bf16.mxu1 %v19402_v28 }
 0x6da   :  { %18350 = vmatpush3.bf16.msra.mxu1 %v19238_v25  ;;  %v19259_v25 = vld [vmem:[#allocation7 + $0xf70] sm:$0xff]  }
 0x6db   :  { %18351 = vmatprep.subr.bf16.mxu1 %v19402_v28 }
 0x6de   :  { %18352 = vmatpush3.bf16.msra.mxu1 %v19239_v12 }
 0x6df   :  { %18353 = vmatprep.subr.bf16.mxu1 %v19402_v28 }
 0x6e2   :  { %18354 = vmatpush3.bf16.msra.mxu1 %v19240_v15 }
 0x6e3   :  { %18355 = vmatprep.subr.bf16.mxu1 %v19402_v28 }
 0x6e6   :  { %18356 = vmatpush3.bf16.msra.mxu1 %v19241_v62 }
 0x6e7   :  { %v23524_v16 = vpop.f32.mrb[56].mxu0  ;;  %18357 = vmatprep.subr.bf16.mxu1 %v19402_v28 }
 0x6e8   :  { %v12234_v46 = vpop.f32.mrb[148].mxu1  ;;  %v18425_v60 = vpop.f32.mrb[57].mxu0 }
 0x6e9   :  { %v14063_v10 = vadd.f32 %v14062_v27, %v12234_v46  ;;  %v18085_v58 = vpop.f32.mrb[149].mxu1  ;;  %v23527_v41 = vpop.f32.mrb[58].mxu0  ;;  %v19260_v46 = vld [vmem:[#allocation7 + $0xf78] sm:$0xff]   ;;  %v19261_v60 = vld [vmem:[#allocation7 + $0xfc0] sm:$0xff]  }
 0x6ea   :  { %v12237_v3 = vpop.f32.mrb[150].mxu1  ;;  %18358 = vmatpush3.bf16.msra.mxu1 %v19242_v37  ;;  %v18426_v24 = vpop.f32.mrb[59].mxu0  ;;  %v19265_v58 = vld [vmem:[#allocation7 + $0xfe0] sm:$0xff]  }
 0x6eb   :  { %v14126_v5 = vadd.f32 %v14125_v34, %v12237_v3  ;;  %v18086_v18 = vpop.f32.mrb[151].mxu1  ;;  %18359 = vmatprep.subr.bf16.mxu1 %v19402_v28  ;;  %v14064_v45 = vadd.f32 %v14063_v10, %v23367_v36  ;;  %v19247_v36 = vld [vmem:[#allocation7 + $0xed0] sm:$0xff]   ;;  %v19262_v10 = vld [vmem:[#allocation7 + $0xfc8] sm:$0xff]  }
 0x6ec   :  { %v19267_v18 = vld [vmem:[#allocation7 + $0xff0] sm:$0xff]  }
 0x6ed   :  { %v14127_v22 = vadd.f32 %v14126_v5, %v23370_v56  ;;  %v19248_v56 = vld [vmem:[#allocation7 + $0xed8] sm:$0xff]  }
 0x6ee   :  { %18360 = vmatpush3.bf16.msra.mxu1 %v19243_v26 }
 0x6ef   :  { %18361 = vmatprep.subr.bf16.mxu1 %v19402_v28 }
 0x6f2   :  { %18362 = vmatpush3.bf16.msra.mxu1 %v19244_v1 }
 0x6f3   :  { %18387 = vmatprep.subr.bf16.mxu1 %v19402_v28 }
 0x6f5   :  { %18364 = vmatmul.mubr.bf16.vlgmr.msra.gmra.mrb[176].mxu1 %v23021_v54  ;;  %v19250_v54 = vld [vmem:[#allocation7 + $0xee8] sm:$0xff]  }
 0x6f6   :  { %18388 = vmatpush3.bf16.msra.mxu1 %v19245_v43  ;;  %18403 = vmatprep.mubr.msk.bf16.mxu1 %vm19403_vm2, %v19402_v28 }
 0x6f7   :  { %18389 = vmatprep.subr.bf16.mxu1 %v19402_v28 }
 0x6fa   :  { %18390 = vmatpush3.bf16.msra.mxu1 %v19246_v11  ;;  %v19268_v11 = vld [vmem:[#allocation7 + $0xff8] sm:$0xff]  }
 0x6fb   :  { %18391 = vmatprep.subr.bf16.mxu1 %v19402_v28 }
 0x6fe   :  { %18392 = vmatpush3.bf16.msra.mxu1 %v19247_v36 }
 0x6ff   :  { %18393 = vmatprep.subr.bf16.mxu1 %v19402_v28 }
 0x702   :  { %18394 = vmatpush3.bf16.msra.mxu1 %v19248_v56 }
 0x703   :  { %18395 = vmatprep.subr.bf16.mxu1 %v19402_v28 }
 0x706   :  { %18396 = vmatpush3.bf16.msra.mxu1 %v19249_v40 }
 0x707   :  { %v23541_v20 = vpop.f32.mrb[60].mxu0  ;;  %18397 = vmatprep.subr.bf16.mxu1 %v19402_v28 }
 0x708   :  { %v12412_v50 = vpop.f32.mrb[152].mxu1  ;;  %v18465_v63 = vpop.f32.mrb[61].mxu0 }
 0x709   :  { %v14065_v42 = vadd.f32 %v14064_v45, %v12412_v50  ;;  %v18125_v32 = vpop.f32.mrb[153].mxu1  ;;  %v23544_v52 = vpop.f32.mrb[62].mxu0 }
 0x70a   :  { %v12415_v23 = vpop.f32.mrb[154].mxu1  ;;  %18398 = vmatpush3.bf16.msra.mxu1 %v19250_v54  ;;  %v18466_v33 = vpop.f32.mrb[63].mxu0 }
 0x70b   :  { %v14128_v48 = vadd.f32 %v14127_v22, %v12415_v23  ;;  %v18126_v31 = vpop.f32.mrb[155].mxu1  ;;  %18399 = vmatprep.subr.bf16.mxu1 %v19402_v28  ;;  %v14066_v13 = vadd.f32 %v14065_v42, %v23393_v14  ;;  %v19255_v14 = vld [vmem:[#allocation7 + $0xf50] sm:$0xff]  }
 0x70d   :  { %v14129_v7 = vadd.f32 %v14128_v48, %v23396_v0  ;;  %v19256_v0 = vld [vmem:[#allocation7 + $0xf58] sm:$0xff]  }
 0x70e   :  { %18400 = vmatpush3.bf16.msra.mxu1 %v19251_v17 }
 0x70f   :  { %18401 = vmatprep.subr.bf16.mxu1 %v19402_v28 }
 0x712   :  { %18402 = vmatpush3.bf16.msra.mxu1 %v19252_v61 }
 0x713   :  { %18427 = vmatprep.subr.bf16.mxu1 %v19402_v28 }
 0x715   :  { %18404 = vmatmul.mubr.bf16.vlgmr.msra.gmra.mrb[180].mxu1 %v23081_v47  ;;  %v19258_v47 = vld [vmem:[#allocation7 + $0xf68] sm:$0xff]  }
 0x716   :  { %18428 = vmatpush3.bf16.msra.mxu1 %v19253_v9  ;;  %18443 = vmatprep.mubr.msk.bf16.mxu1 %vm19403_vm2, %v19402_v28 }
 0x717   :  { %18429 = vmatprep.subr.bf16.mxu1 %v19402_v28 }
 0x71a   :  { %18430 = vmatpush3.bf16.msra.mxu1 %v19254_v57 }
 0x71b   :  { %18431 = vmatprep.subr.bf16.mxu1 %v19402_v28 }
 0x71e   :  { %18432 = vmatpush3.bf16.msra.mxu1 %v19255_v14 }
 0x71f   :  { %18433 = vmatprep.subr.bf16.mxu1 %v19402_v28 }
 0x722   :  { %18434 = vmatpush3.bf16.msra.mxu1 %v19256_v0 }
 0x723   :  { %18435 = vmatprep.subr.bf16.mxu1 %v19402_v28 }
 0x726   :  { %18436 = vmatpush3.bf16.msra.mxu1 %v19257_v8 }
 0x727   :  { %18437 = vmatprep.subr.bf16.mxu1 %v19402_v28 }
 0x728   :  { %v12590_v27 = vpop.f32.mrb[156].mxu1 }
 0x729   :  { %v14067_v34 = vadd.f32 %v14066_v13, %v12590_v27  ;;  %v18165_v38 = vpop.f32.mrb[157].mxu1 }
 0x72a   :  { %v12593_v39 = vpop.f32.mrb[158].mxu1  ;;  %18438 = vmatpush3.bf16.msra.mxu1 %v19258_v47 }
 0x72b   :  { %v14130_v12 = vadd.f32 %v14129_v7, %v12593_v39  ;;  %v18166_v15 = vpop.f32.mrb[159].mxu1  ;;  %18439 = vmatprep.subr.bf16.mxu1 %v19402_v28  ;;  %v14068_v62 = vadd.f32 %v14067_v34, %v23419_v49  ;;  %v19263_v49 = vld [vmem:[#allocation7 + $0xfd0] sm:$0xff]  }
 0x72d   :  { %v14131_v37 = vadd.f32 %v14130_v12, %v23422_v35  ;;  %v19264_v35 = vld [vmem:[#allocation7 + $0xfd8] sm:$0xff]  }
 0x72e   :  { %18440 = vmatpush3.bf16.msra.mxu1 %v19259_v25 }
 0x72f   :  { %18441 = vmatprep.subr.bf16.mxu1 %v19402_v28 }
 0x732   :  { %18442 = vmatpush3.bf16.msra.mxu1 %v19260_v46 }
 0x733   :  { %18467 = vmatprep.subr.bf16.mxu1 %v19402_v28 }
 0x735   :  { %18444 = vmatmul.mubr.bf16.vlgmr.msra.gmra.mrb[184].mxu1 %v23141_v2  ;;  %v19266_v2 = vld [vmem:[#allocation7 + $0xfe8] sm:$0xff]  }
 0x736   :  { %18468 = vmatpush3.bf16.msra.mxu1 %v19261_v60  ;;  %18483 = vmatprep.mubr.msk.bf16.mxu1 %vm19403_vm2, %v19402_v28 }
 0x737   :  { %18469 = vmatprep.subr.bf16.mxu1 %v19402_v28 }
 0x73a   :  { %18470 = vmatpush3.bf16.msra.mxu1 %v19262_v10 }
 0x73b   :  { %18471 = vmatprep.subr.bf16.mxu1 %v19402_v28 }
 0x73e   :  { %18472 = vmatpush3.bf16.msra.mxu1 %v19263_v49 }
 0x73f   :  { %18473 = vmatprep.subr.bf16.mxu1 %v19402_v28 }
 0x742   :  { %18474 = vmatpush3.bf16.msra.mxu1 %v19264_v35 }
 0x743   :  { %18475 = vmatprep.subr.bf16.mxu1 %v19402_v28 }
 0x746   :  { %18476 = vmatpush3.bf16.msra.mxu1 %v19265_v58 }
 0x747   :  { %18477 = vmatprep.subr.bf16.mxu1 %v19402_v28 }
 0x748   :  { %v12768_v3 = vpop.f32.mrb[160].mxu1 }
 0x749   :  { %v14069_v24 = vadd.f32 %v14068_v62, %v12768_v3  ;;  %v18205_v26 = vpop.f32.mrb[161].mxu1  ;;  %v15854_v3 = vld [vmem:[#allocation8] ss:$0 sm:$0xff] }
 0x74a   :  { %v12771_v5 = vpop.f32.mrb[162].mxu1  ;;  %18478 = vmatpush3.bf16.msra.mxu1 %v19266_v2 }
 0x74b   :  { %v14132_v45 = vadd.f32 %v14131_v37, %v12771_v5  ;;  %v18206_v22 = vpop.f32.mrb[163].mxu1  ;;  %18479 = vmatprep.subr.bf16.mxu1 %v19402_v28  ;;  %v14070_v1 = vadd.f32 %v14069_v24, %v23439_v4 }
 0x74d   :  { %v14133_v43 = vadd.f32 %v14132_v45, %v23442_v30 }
 0x74e   :  { %18480 = vmatpush3.bf16.msra.mxu1 %v19267_v18 }
 0x74f   :  { %18481 = vmatprep.subr.bf16.mxu1 %v19402_v28 }
 0x752   :  { %18482 = vmatpush3.bf16.msra.mxu1 %v19268_v11 }
 0x755   :  { %18484 = vmatmul.mubr.bf16.vlgmr.msra.gmra.mrb[188].mxu1 %v23198_v19 }
 0x768   :  { %v12946_v36 = vpop.f32.mrb[164].mxu1 }
 0x769   :  { %v14071_v56 = vadd.f32 %v14070_v1, %v12946_v36  ;;  %v18245_v40 = vpop.f32.mrb[165].mxu1 }
 0x76a   :  { %v12949_v54 = vpop.f32.mrb[166].mxu1 }
 0x76b   :  { %v14134_v50 = vadd.f32 %v14133_v43, %v12949_v54  ;;  %v18246_v63 = vpop.f32.mrb[167].mxu1  ;;  %v14072_v42 = vadd.f32 %v14071_v56, %v23456_v55 }
 0x76d   :  { %v14135_v32 = vadd.f32 %v14134_v50, %v23459_v44 }
 0x788   :  { %v13124_v4 = vpop.f32.mrb[168].mxu1 }
 0x789   :  { %v14073_v23 = vadd.f32 %v14072_v42, %v13124_v4  ;;  %v18285_v30 = vpop.f32.mrb[169].mxu1 }
 0x78a   :  { %v13127_v33 = vpop.f32.mrb[170].mxu1 }
 0x78b   :  { %v14136_v17 = vadd.f32 %v14135_v32, %v13127_v33  ;;  %v18286_v48 = vpop.f32.mrb[171].mxu1  ;;  %v14074_v31 = vadd.f32 %v14073_v23, %v23473_v51 }
 0x78d   :  { %v14137_v19 = vadd.f32 %v14136_v17, %v23476_v6 }
 0x7a8   :  { %v13302_v13 = vpop.f32.mrb[172].mxu1 }
 0x7a9   :  { %v14075_v7 = vadd.f32 %v14074_v31, %v13302_v13  ;;  %v18325_v61 = vpop.f32.mrb[173].mxu1 }
 0x7aa   :  { %v13305_v9 = vpop.f32.mrb[174].mxu1 }
 0x7ab   :  { %v14138_v57 = vadd.f32 %v14137_v19, %v13305_v9  ;;  %v18326_v14 = vpop.f32.mrb[175].mxu1  ;;  %v14076_v55 = vadd.f32 %v14075_v7, %v23490_v21 }
 0x7ad   :  { %v14139_v44 = vadd.f32 %v14138_v57, %v23493_v53 }
 0x7c8   :  { %v13480_v0 = vpop.f32.mrb[176].mxu1 }
 0x7c9   :  { %v14077_v8 = vadd.f32 %v14076_v55, %v13480_v0  ;;  %v18365_v47 = vpop.f32.mrb[177].mxu1 }
 0x7ca   :  { %v13483_v27 = vpop.f32.mrb[178].mxu1 }
 0x7cb   :  { %v14140_v34 = vadd.f32 %v14139_v44, %v13483_v27  ;;  %v18366_v38 = vpop.f32.mrb[179].mxu1  ;;  %v14078_v51 = vadd.f32 %v14077_v8, %v23507_v59 }
 0x7cd   :  { %v14141_v6 = vadd.f32 %v14140_v34, %v23510_v29 }
 0x7e8   :  { %v13658_v39 = vpop.f32.mrb[180].mxu1 }
 0x7e9   :  { %v14079_v25 = vadd.f32 %v14078_v51, %v13658_v39  ;;  %v18405_v12 = vpop.f32.mrb[181].mxu1 }
 0x7ea   :  { %v13661_v15 = vpop.f32.mrb[182].mxu1 }
 0x7eb   :  { %v14142_v62 = vadd.f32 %v14141_v6, %v13661_v15  ;;  %v18406_v37 = vpop.f32.mrb[183].mxu1  ;;  %v14080_v21 = vadd.f32 %v14079_v25, %v23524_v16 }
 0x7ed   :  { %v14143_v53 = vadd.f32 %v14142_v62, %v23527_v41 }
 0x808   :  { %v13836_v46 = vpop.f32.mrb[184].mxu1 }
 0x809   :  { %v14081_v60 = vadd.f32 %v14080_v21, %v13836_v46  ;;  %v18445_v10 = vpop.f32.mrb[185].mxu1 }
 0x80a   :  { %v13839_v49 = vpop.f32.mrb[186].mxu1 }
 0x80b   :  { %v14144_v35 = vadd.f32 %v14143_v53, %v13839_v49  ;;  %v18446_v58 = vpop.f32.mrb[187].mxu1  ;;  %v14082_v59 = vadd.f32 %v14081_v60, %v23541_v20 }
 0x80d   :  { %v14145_v29 = vadd.f32 %v14144_v35, %v23544_v52 }
 0x828   :  { %v14014_v2 = vpop.f32.mrb[188].mxu1 }
 0x829   :  { %v14083_v24 = vadd.f32 %v14082_v59, %v14014_v2  ;;  %v18485_v26 = vpop.f32.mrb[189].mxu1 }
 0x82a   :  { %v14017_v5 = vpop.f32.mrb[190].mxu1 }
 0x82b   :  { %v14154_v18 = vadd.f32 %v15854_v3, %v14083_v24  ;;  %v14146_v45 = vadd.f32 %v14145_v29, %v14017_v5  ;;  %v18486_v16 = vpop.f32.mrb[191].mxu1 }
 0x82d   :  { %vm14156_vm2 = vcmp.ge.f32.partialorder %v14154_v18, 2.0  ;;  %v14155_v41 = vadd.f32 %v15854_v3, %v14146_v45 }
 0x82e   :  { %v15855_v22 = vsel %vm14156_vm2, 1.0, %v19402_v28 }
 0x82f   :  { %14162 = vst [vmem:[#allocation10] sm:$0xff] %v15855_v22  ;;  %vm14157_vm14 = vcmp.ge.f32.partialorder %v14155_v41, 2.0 }
 0x830   :  { %v15856_v20 = vsel %vm14157_vm14, 1.0, %v19402_v28 }
 0x831   :  { %14163 = vst [vmem:[#allocation10 + $0x8] sm:$0xff] %v15856_v20 }
 0x832   :  { %19377 = shalt.err (!%p19374_p8)
}
 0x833   :  { %s19378_s10 = scalar_lea.hbm %s23609_s6, 256 }
 0x834   :  { %p19379_p9 = scmp.ne.s32.totalorder %s23609_s6, %s19378_s10  ;;  %p19382_p10 = scmp.lt.u32.totalorder %s19378_s10, %s23609_s6 }
 0x836   :  { %p19384_p11 = pnand %p19382_p10, %p19379_p9 }
 0x838   :  { %19387 = shalt.err (!%p19384_p11)
}
 0x839   :  { %s19405_s13 = smov 128   ;;  %s19406_s14 = smov 8  }
 0x83a   :  { %14177 = dma.vmem_to_hbm [thread:$0]  %s14172_s30, 256, %s23609_s6, [#allocation4], %s19405_s13, %s19405_s13, %s19406_s14  }
 0x83b   :  { %19394 = dma.done.wait [#allocation4], 256  }
 0x83c   :  { %19395 = vsyncadd [#allocation4], 4294967040 }
 0x83d   :  { %14183 = vsyncpa [#allocation3], 1 }
 0x83e   :  { %14184 = vsyncpa [#allocation6], 1 }
 0x83f   :  { %14185 = vsyncpa [#allocation9], 1 }
 0x840   :  { %14186 = vsyncpa [#allocation4], 1 }

</bundles_post_ra>
